<compile_context>
chip_gen: v7x
topology: tpu7x:2x2x1
jax: 0.10.0
libtpu: 0.0.40
codegen_flags: <defaults>
</compile_context>

<pallas_src>
import numpy as np
import jax
import jax.numpy as jnp
from jax import lax
from jax.experimental import pallas as pl
from jax.experimental.pallas import tpu as pltpu


def _round8(n):
    return max(8, ((n + 7) // 8) * 8)


def _make_kernel(H, W, Ciq, Coq):
    Hp = H + 2          # spatial pad of x (host-side, pad 1 each side)
    Wq = W + 4          # conv2 scratch width: 2 left (pair-aligned) + 2 right
    Ho, Wo = H // 2, W // 2
    HW = H * W
    HWo = Ho * Wo
    HoW = Ho * W

    def kernel(x_ref, w1_ref, b1_ref, w2_ref, b2_ref, wb_ref, bb_ref,
               o_ref, h1p_ref, pool_ref):
        # ---- 3x3 conv as 9 per-tap MXU matmuls accumulated in f32 regs ----
        def conv3x3(tap_fn, w_ref):
            acc = None
            for t in range(9):
                dy, dx = divmod(t, 3)
                part = jnp.dot(tap_fn(dy, dx), w_ref[t],
                               preferred_element_type=jnp.float32)
                acc = part if acc is None else acc + part
            return acc

        # conv1: taps come straight from the spatially padded bf16 input.
        acc1 = conv3x3(
            lambda dy, dx: x_ref[0, dy:dy + H, dx:dx + W, :].reshape(HW, Ciq),
            w1_ref)
        h1 = jnp.maximum(acc1 + b1_ref[...], 0.0)          # ReLU, f32 (HW, Coq)

        # ---- re-embed h1 into a zero spatial frame for conv2 ----
        # Per-step zero fill (tiny: bf16, ~36 vreg stores) keeps the border
        # correct on every core; interior is stored at column offset 2 so the
        # packed-bf16 sublane store stays pair-aligned.
        h1p_ref[...] = jnp.zeros((Hp, Wq, Coq), jnp.bfloat16)
        h1p_ref[1:1 + H, 2:2 + W, :] = (
            h1.reshape(H, W, Coq).astype(jnp.bfloat16))

        # conv2: h1[r, c] lives at h1p[r + 1, c + 2]; tap (dy, dx) needs
        # h1[i + dy - 1, j + dx - 1]  ->  h1p[i + dy, j + dx + 1].
        acc2 = conv3x3(
            lambda dy, dx: h1p_ref[dy:dy + H,
                                   dx + 1:dx + 1 + W, :].reshape(HW, Coq),
            w2_ref)
        h2 = acc2 + b2_ref[...]                             # (HW, Coq) f32

        # ---- 2x2 avg-pool, H direction: aligned slab adds on the VPU ----
        h2r = h2.reshape(Ho, 2, W, Coq)
        main_h = (h2r[:, 0] + h2r[:, 1]).reshape(HoW, Coq)  # sums of 2

        # bypass: H-pool x, then the 1x1 conv (both linear, they commute);
        # the W-pool is shared with the main path below.
        xin = x_ref[0, 1:1 + H, 1:1 + W, :].astype(jnp.float32)
        xr = xin.reshape(Ho, 2, W, Ciq)
        x_h = (xr[:, 0] + xr[:, 1]).reshape(HoW, Ciq)
        byp_h = jnp.dot(x_h.astype(jnp.bfloat16), wb_ref[...],
                        preferred_element_type=jnp.float32)  # (HoW, Coq)

        # ---- 2x2 avg-pool, W direction: tiny f32 scratch + stride-2 reads ----
        pool_ref[...] = main_h + byp_h
        ev = pool_ref[pl.ds(0, HWo, stride=2), :]            # rows 2k
        od = pool_ref[pl.ds(1, HWo, stride=2), :]            # rows 2k + 1
        o_ref[0] = (0.25 * (ev + od) + bb_ref[...]).astype(o_ref.dtype)

    return kernel


def first_resblock_discriminator(x_nchw, params):
    """x_nchw: (N, Cin, H, W) float32.  Returns (N, Cout, H//2, W//2) f32."""
    w1, b1, w2, b2, wb, bb = params                      # conv weights in OIHW
    N, Cin, H, W = x_nchw.shape
    Cout = w1.shape[0]
    assert H % 2 == 0 and W % 2 == 0 and W % 8 == 0
    assert Cin <= 128 and Cout <= 128
    # TODO(synk): tile the channel dimension for Cin/Cout > 128.
    Ciq, Coq = _round8(Cin), _round8(Cout)
    Hp, Wp = H + 2, W + 2
    Ho, Wo = H // 2, W // 2
    HWo, HoW = Ho * Wo, Ho * W

    # glue: NCHW -> NHWC, zero-pad spatial by 1 and channels to a small
    # 8-lane quantum (NOT 128) -- HBM traffic stays dense.  x is DMA'd bf16.
    x_nhwc = jnp.transpose(x_nchw, (0, 2, 3, 1))
    x_pad = jnp.pad(x_nhwc, ((0, 0), (1, 1), (1, 1), (0, Ciq - Cin)))
    x_pad = x_pad.astype(jnp.bfloat16)

    # weight re-layout: OIHW -> (tap, Ciq, Coq), zero-padded only to the
    # 8-channel quantum; bf16 matmul operands (accumulation is f32 in-kernel).
    def conv3x3_weight(w, cin, cout, ciq, coq):
        wt = jnp.transpose(w, (2, 3, 1, 0)).reshape(9, cin, cout)
        full = jnp.zeros((9, ciq, coq), jnp.float32).at[:, :cin, :cout].set(wt)
        return full.astype(jnp.bfloat16)

    w1_k = conv3x3_weight(w1, Cin, Cout, Ciq, Coq)
    w2_k = conv3x3_weight(w2, Cout, Cout, Coq, Coq)
    wb_k = (jnp.zeros((Ciq, Coq), jnp.float32)
            .at[:Cin, :Cout].set(jnp.transpose(wb[:, :, 0, 0], (1, 0)))
            .astype(jnp.bfloat16))

    def bias_row(b, cq):
        return jnp.zeros((1, cq), jnp.float32).at[0, :b.shape[0]].set(b)

    b1_k, b2_k, bb_k = bias_row(b1, Coq), bias_row(b2, Coq), bias_row(bb, Coq)

    kernel = _make_kernel(H, W, Ciq, Coq)
    out_flat = pl.pallas_call(
        kernel,
        out_shape=jax.ShapeDtypeStruct((N, HWo, Coq), jnp.float32),
        grid_spec=pltpu.PrefetchScalarGridSpec(
            num_scalar_prefetch=0,
            grid=(N,),
            in_specs=[
                pl.BlockSpec((1, Hp, Wp, Ciq), lambda b: (b, 0, 0, 0)),  # x
                pl.BlockSpec((9, Ciq, Coq), lambda b: (0, 0, 0)),        # w1
                pl.BlockSpec((1, Coq), lambda b: (0, 0)),                # b1
                pl.BlockSpec((9, Coq, Coq), lambda b: (0, 0, 0)),        # w2
                pl.BlockSpec((1, Coq), lambda b: (0, 0)),                # b2
                pl.BlockSpec((Ciq, Coq), lambda b: (0, 0)),              # wb
                pl.BlockSpec((1, Coq), lambda b: (0, 0)),                # bb
            ],
            out_specs=pl.BlockSpec((1, HWo, Coq), lambda b: (b, 0, 0)),
            scratch_shapes=[
                pltpu.VMEM((Hp, W + 4, Coq), jnp.bfloat16),  # zero-framed h1
                pltpu.VMEM((HoW, Coq), jnp.float32),         # H-pooled main+byp
            ],
        ),
        compiler_params=pltpu.CompilerParams(
            dimension_semantics=("parallel",)),
    )(x_pad, w1_k, b1_k, w2_k, b2_k, wb_k, bb_k)

    # glue: (N, Ho*Wo, Coq) -> NCHW with only the real Cout channels
    out = out_flat.reshape(N, Ho, Wo, Coq)[:, :, :, :Cout]
    return jnp.transpose(out, (0, 3, 1, 2))


# ----------------------- parameter construction (deterministic) ---------------
def xavier_uniform(key, shape, gain):
    # shape = (Cout, Cin, kh, kw)
    fan_in = shape[1] * shape[2] * shape[3]
    fan_out = shape[0] * shape[2] * shape[3]
    bound = gain * np.sqrt(6.0 / (fan_in + fan_out))
    return jax.random.uniform(key, shape, jnp.float32, -bound, bound)


def conv_bias(key, cout, fan_in):
    bound = 1.0 / np.sqrt(fan_in)
    return jax.random.uniform(key, (cout,), jnp.float32, -bound, bound)


def spectral_normalize(w, key, n_iter=1, eps=1e-12):
    # Power iteration on the (Cout, Cin*kh*kw) matrix, as torch spectral_norm.
    w_mat = w.reshape(w.shape[0], -1)
    u = jax.random.normal(key, (w.shape[0],), jnp.float32)
    u = u / (jnp.linalg.norm(u) + eps)
    v = None
    for _ in range(n_iter):
        v = w_mat.T @ u
        v = v / (jnp.linalg.norm(v) + eps)
        u = w_mat @ v
        u = u / (jnp.linalg.norm(u) + eps)
    sigma = u @ (w_mat @ v)
    return w / sigma


# ----------------------- pure-JAX reference for sanity check ------------------
def _avgpool2_nchw(x):
    N, C, H, W = x.shape
    return x.reshape(N, C, H // 2, 2, W // 2, 2).mean(axis=(3, 5))


def reference(x, params):
    w1, b1, w2, b2, wb, bb = params
    dn = ("NCHW", "OIHW", "NCHW")
    h = lax.conv_general_dilated(x, w1, (1, 1), [(1, 1), (1, 1)],
                                 dimension_numbers=dn) + b1[None, :, None, None]
    h = jnp.maximum(h, 0.0)
    h = lax.conv_general_dilated(h, w2, (1, 1), [(1, 1), (1, 1)],
                                 dimension_numbers=dn) + b2[None, :, None, None]
    main = _avgpool2_nchw(h)
    xb = _avgpool2_nchw(x)
    byp = lax.conv_general_dilated(xb, wb, (1, 1), [(0, 0), (0, 0)],
                                   dimension_numbers=dn) + bb[None, :, None, None]
    return main + byp


if __name__ == "__main__":
    N, Cin, Cout, H, W = 2, 4, 8, 16, 16

    key = jax.random.PRNGKey(0)
    ks = jax.random.split(key, 10)
    x = jax.random.normal(ks[0], (N, Cin, H, W), jnp.float32)

    w1 = xavier_uniform(ks[1], (Cout, Cin, 3, 3), np.sqrt(2.0))
    b1 = conv_bias(ks[2], Cout, Cin * 9)
    w2 = xavier_uniform(ks[3], (Cout, Cout, 3, 3), np.sqrt(2.0))
    b2 = conv_bias(ks[4], Cout, Cout * 9)
    wb = xavier_uniform(ks[5], (Cout, Cin, 1, 1), 1.0)
    bb = conv_bias(ks[6], Cout, Cin)

    # spectral norm applied to the conv weights (parameter preprocessing)
    w1 = spectral_normalize(w1, ks[7])
    w2 = spectral_normalize(w2, ks[8])
    wb = spectral_normalize(wb, ks[9])

    # The kernel runs its matmuls with bf16 operands (f32 accumulation); give
    # both the kernel and the reference the same bf16-representable values so
    # they compute the same nominal function.
    def _bf16_roundtrip(a):
        return a.astype(jnp.bfloat16).astype(jnp.float32)

    x = _bf16_roundtrip(x)
    w1, w2, wb = _bf16_roundtrip(w1), _bf16_roundtrip(w2), _bf16_roundtrip(wb)

    params = (w1, b1, w2, b2, wb, bb)

    out = first_resblock_discriminator(x, params)
    out = jax.block_until_ready(out)

    ref = jax.block_until_ready(reference(x, params))
    assert out.shape == (N, Cout, H // 2, W // 2), out.shape
    assert bool(jnp.all(jnp.isfinite(out)))
    assert bool(jnp.allclose(out, ref, atol=2e-2, rtol=2e-2)), \
        float(jnp.max(jnp.abs(out - ref)))

    print("KERNEL_OK")
</pallas_src>

<mosaic_0001>
module attributes {stable_mosaic.version = 11 : i64} {
  func.func @kernel(%arg0: i32, %arg1: memref<1x18x18x8xbf16, #tpu.memory_space<vmem>>, %arg2: memref<9x8x8xbf16, #tpu.memory_space<vmem>>, %arg3: memref<1x8xf32, #tpu.memory_space<vmem>>, %arg4: memref<9x8x8xbf16, #tpu.memory_space<vmem>>, %arg5: memref<1x8xf32, #tpu.memory_space<vmem>>, %arg6: memref<8x8xbf16, #tpu.memory_space<vmem>>, %arg7: memref<1x8xf32, #tpu.memory_space<vmem>>, %arg8: memref<1x64x8xf32, #tpu.memory_space<vmem>>, %arg9: memref<18x20x8xbf16, #tpu.memory_space<vmem>>, %arg10: memref<128x8xf32, #tpu.memory_space<vmem>>) attributes {dimension_semantics = [#tpu.dimension_semantics<parallel>], iteration_bounds = array<i64: 2>, scalar_prefetch = 0 : i64, scratch_operands = 2 : i64, tpu.core_type = #tpu.core_type<tc>, window_params = [{transform_indices = @transform_0, window_bounds = array<i64: 1, 18, 18, 8>}, {pipeline_mode = #tpu.pipeline_mode<synchronous>, transform_indices = @transform_1, window_bounds = array<i64: 9, 8, 8>}, {pipeline_mode = #tpu.pipeline_mode<synchronous>, transform_indices = @transform_2, window_bounds = array<i64: 1, 8>}, {pipeline_mode = #tpu.pipeline_mode<synchronous>, transform_indices = @transform_3, window_bounds = array<i64: 9, 8, 8>}, {pipeline_mode = #tpu.pipeline_mode<synchronous>, transform_indices = @transform_4, window_bounds = array<i64: 1, 8>}, {pipeline_mode = #tpu.pipeline_mode<synchronous>, transform_indices = @transform_5, window_bounds = array<i64: 8, 8>}, {pipeline_mode = #tpu.pipeline_mode<synchronous>, transform_indices = @transform_6, window_bounds = array<i64: 1, 8>}, {transform_indices = @transform_7, window_bounds = array<i64: 1, 64, 8>}]} {
    %c0 = arith.constant 0 : index
    %c0_0 = arith.constant 0 : index
    %c0_1 = arith.constant 0 : index
    %c0_2 = arith.constant 0 : index
    %0 = vector.load %arg1[%c0, %c0_0, %c0_1, %c0_2] : memref<1x18x18x8xbf16, #tpu.memory_space<vmem>>, vector<1x16x16x8xbf16>
    %1 = vector.shape_cast %0 : vector<1x16x16x8xbf16> to vector<16x16x8xbf16>
    %2 = vector.shape_cast %1 : vector<16x16x8xbf16> to vector<256x8xbf16>
    %c0_3 = arith.constant 0 : index
    %c0_4 = arith.constant 0 : index
    %c0_5 = arith.constant 0 : index
    %3 = vector.load %arg2[%c0_3, %c0_4, %c0_5] : memref<9x8x8xbf16, #tpu.memory_space<vmem>>, vector<1x8x8xbf16>
    %4 = vector.shape_cast %3 : vector<1x8x8xbf16> to vector<8x8xbf16>
    %cst = arith.constant dense<0.000000e+00> : vector<256x8xf32>
    %5 = tpu.matmul %2, %4, %cst {dimension_numbers = #tpu.dot_dimension_numbers<[1], [0], [0], [1], [0, 0, 1, 1], [], []>} : vector<256x8xbf16>, vector<8x8xbf16>, vector<256x8xf32> -> vector<256x8xf32>
    %c0_6 = arith.constant 0 : index
    %c0_7 = arith.constant 0 : index
    %c1 = arith.constant 1 : index
    %c0_8 = arith.constant 0 : index
    %6 = vector.load %arg1[%c0_6, %c0_7, %c1, %c0_8] : memref<1x18x18x8xbf16, #tpu.memory_space<vmem>>, vector<1x16x16x8xbf16>
    %7 = vector.shape_cast %6 : vector<1x16x16x8xbf16> to vector<16x16x8xbf16>
    %8 = vector.shape_cast %7 : vector<16x16x8xbf16> to vector<256x8xbf16>
    %c1_9 = arith.constant 1 : index
    %c0_10 = arith.constant 0 : index
    %c0_11 = arith.constant 0 : index
    %9 = vector.load %arg2[%c1_9, %c0_10, %c0_11] : memref<9x8x8xbf16, #tpu.memory_space<vmem>>, vector<1x8x8xbf16>
    %10 = vector.shape_cast %9 : vector<1x8x8xbf16> to vector<8x8xbf16>
    %cst_12 = arith.constant dense<0.000000e+00> : vector<256x8xf32>
    %11 = tpu.matmul %8, %10, %cst_12 {dimension_numbers = #tpu.dot_dimension_numbers<[1], [0], [0], [1], [0, 0, 1, 1], [], []>} : vector<256x8xbf16>, vector<8x8xbf16>, vector<256x8xf32> -> vector<256x8xf32>
    %12 = arith.addf %5, %11 : vector<256x8xf32>
    %c0_13 = arith.constant 0 : index
    %c0_14 = arith.constant 0 : index
    %c2 = arith.constant 2 : index
    %c0_15 = arith.constant 0 : index
    %13 = vector.load %arg1[%c0_13, %c0_14, %c2, %c0_15] : memref<1x18x18x8xbf16, #tpu.memory_space<vmem>>, vector<1x16x16x8xbf16>
    %14 = vector.shape_cast %13 : vector<1x16x16x8xbf16> to vector<16x16x8xbf16>
    %15 = vector.shape_cast %14 : vector<16x16x8xbf16> to vector<256x8xbf16>
    %c2_16 = arith.constant 2 : index
    %c0_17 = arith.constant 0 : index
    %c0_18 = arith.constant 0 : index
    %16 = vector.load %arg2[%c2_16, %c0_17, %c0_18] : memref<9x8x8xbf16, #tpu.memory_space<vmem>>, vector<1x8x8xbf16>
    %17 = vector.shape_cast %16 : vector<1x8x8xbf16> to vector<8x8xbf16>
    %cst_19 = arith.constant dense<0.000000e+00> : vector<256x8xf32>
    %18 = tpu.matmul %15, %17, %cst_19 {dimension_numbers = #tpu.dot_dimension_numbers<[1], [0], [0], [1], [0, 0, 1, 1], [], []>} : vector<256x8xbf16>, vector<8x8xbf16>, vector<256x8xf32> -> vector<256x8xf32>
    %19 = arith.addf %12, %18 : vector<256x8xf32>
    %c0_20 = arith.constant 0 : index
    %c1_21 = arith.constant 1 : index
    %c0_22 = arith.constant 0 : index
    %c0_23 = arith.constant 0 : index
    %20 = vector.load %arg1[%c0_20, %c1_21, %c0_22, %c0_23] : memref<1x18x18x8xbf16, #tpu.memory_space<vmem>>, vector<1x16x16x8xbf16>
    %21 = vector.shape_cast %20 : vector<1x16x16x8xbf16> to vector<16x16x8xbf16>
    %22 = vector.shape_cast %21 : vector<16x16x8xbf16> to vector<256x8xbf16>
    %c3 = arith.constant 3 : index
    %c0_24 = arith.constant 0 : index
    %c0_25 = arith.constant 0 : index
    %23 = vector.load %arg2[%c3, %c0_24, %c0_25] : memref<9x8x8xbf16, #tpu.memory_space<vmem>>, vector<1x8x8xbf16>
    %24 = vector.shape_cast %23 : vector<1x8x8xbf16> to vector<8x8xbf16>
    %cst_26 = arith.constant dense<0.000000e+00> : vector<256x8xf32>
    %25 = tpu.matmul %22, %24, %cst_26 {dimension_numbers = #tpu.dot_dimension_numbers<[1], [0], [0], [1], [0, 0, 1, 1], [], []>} : vector<256x8xbf16>, vector<8x8xbf16>, vector<256x8xf32> -> vector<256x8xf32>
    %26 = arith.addf %19, %25 : vector<256x8xf32>
    %c0_27 = arith.constant 0 : index
    %c1_28 = arith.constant 1 : index
    %c1_29 = arith.constant 1 : index
    %c0_30 = arith.constant 0 : index
    %27 = vector.load %arg1[%c0_27, %c1_28, %c1_29, %c0_30] : memref<1x18x18x8xbf16, #tpu.memory_space<vmem>>, vector<1x16x16x8xbf16>
    %28 = vector.shape_cast %27 : vector<1x16x16x8xbf16> to vector<16x16x8xbf16>
    %29 = vector.shape_cast %28 : vector<16x16x8xbf16> to vector<256x8xbf16>
    %c4 = arith.constant 4 : index
    %c0_31 = arith.constant 0 : index
    %c0_32 = arith.constant 0 : index
    %30 = vector.load %arg2[%c4, %c0_31, %c0_32] : memref<9x8x8xbf16, #tpu.memory_space<vmem>>, vector<1x8x8xbf16>
    %31 = vector.shape_cast %30 : vector<1x8x8xbf16> to vector<8x8xbf16>
    %cst_33 = arith.constant dense<0.000000e+00> : vector<256x8xf32>
    %32 = tpu.matmul %29, %31, %cst_33 {dimension_numbers = #tpu.dot_dimension_numbers<[1], [0], [0], [1], [0, 0, 1, 1], [], []>} : vector<256x8xbf16>, vector<8x8xbf16>, vector<256x8xf32> -> vector<256x8xf32>
    %33 = arith.addf %26, %32 : vector<256x8xf32>
    %c0_34 = arith.constant 0 : index
    %c1_35 = arith.constant 1 : index
    %c2_36 = arith.constant 2 : index
    %c0_37 = arith.constant 0 : index
    %34 = vector.load %arg1[%c0_34, %c1_35, %c2_36, %c0_37] : memref<1x18x18x8xbf16, #tpu.memory_space<vmem>>, vector<1x16x16x8xbf16>
    %35 = vector.shape_cast %34 : vector<1x16x16x8xbf16> to vector<16x16x8xbf16>
    %36 = vector.shape_cast %35 : vector<16x16x8xbf16> to vector<256x8xbf16>
    %c5 = arith.constant 5 : index
    %c0_38 = arith.constant 0 : index
    %c0_39 = arith.constant 0 : index
    %37 = vector.load %arg2[%c5, %c0_38, %c0_39] : memref<9x8x8xbf16, #tpu.memory_space<vmem>>, vector<1x8x8xbf16>
    %38 = vector.shape_cast %37 : vector<1x8x8xbf16> to vector<8x8xbf16>
    %cst_40 = arith.constant dense<0.000000e+00> : vector<256x8xf32>
    %39 = tpu.matmul %36, %38, %cst_40 {dimension_numbers = #tpu.dot_dimension_numbers<[1], [0], [0], [1], [0, 0, 1, 1], [], []>} : vector<256x8xbf16>, vector<8x8xbf16>, vector<256x8xf32> -> vector<256x8xf32>
    %40 = arith.addf %33, %39 : vector<256x8xf32>
    %c0_41 = arith.constant 0 : index
    %c2_42 = arith.constant 2 : index
    %c0_43 = arith.constant 0 : index
    %c0_44 = arith.constant 0 : index
    %41 = vector.load %arg1[%c0_41, %c2_42, %c0_43, %c0_44] : memref<1x18x18x8xbf16, #tpu.memory_space<vmem>>, vector<1x16x16x8xbf16>
    %42 = vector.shape_cast %41 : vector<1x16x16x8xbf16> to vector<16x16x8xbf16>
    %43 = vector.shape_cast %42 : vector<16x16x8xbf16> to vector<256x8xbf16>
    %c6 = arith.constant 6 : index
    %c0_45 = arith.constant 0 : index
    %c0_46 = arith.constant 0 : index
    %44 = vector.load %arg2[%c6, %c0_45, %c0_46] : memref<9x8x8xbf16, #tpu.memory_space<vmem>>, vector<1x8x8xbf16>
    %45 = vector.shape_cast %44 : vector<1x8x8xbf16> to vector<8x8xbf16>
    %cst_47 = arith.constant dense<0.000000e+00> : vector<256x8xf32>
    %46 = tpu.matmul %43, %45, %cst_47 {dimension_numbers = #tpu.dot_dimension_numbers<[1], [0], [0], [1], [0, 0, 1, 1], [], []>} : vector<256x8xbf16>, vector<8x8xbf16>, vector<256x8xf32> -> vector<256x8xf32>
    %47 = arith.addf %40, %46 : vector<256x8xf32>
    %c0_48 = arith.constant 0 : index
    %c2_49 = arith.constant 2 : index
    %c1_50 = arith.constant 1 : index
    %c0_51 = arith.constant 0 : index
    %48 = vector.load %arg1[%c0_48, %c2_49, %c1_50, %c0_51] : memref<1x18x18x8xbf16, #tpu.memory_space<vmem>>, vector<1x16x16x8xbf16>
    %49 = vector.shape_cast %48 : vector<1x16x16x8xbf16> to vector<16x16x8xbf16>
    %50 = vector.shape_cast %49 : vector<16x16x8xbf16> to vector<256x8xbf16>
    %c7 = arith.constant 7 : index
    %c0_52 = arith.constant 0 : index
    %c0_53 = arith.constant 0 : index
    %51 = vector.load %arg2[%c7, %c0_52, %c0_53] : memref<9x8x8xbf16, #tpu.memory_space<vmem>>, vector<1x8x8xbf16>
    %52 = vector.shape_cast %51 : vector<1x8x8xbf16> to vector<8x8xbf16>
    %cst_54 = arith.constant dense<0.000000e+00> : vector<256x8xf32>
    %53 = tpu.matmul %50, %52, %cst_54 {dimension_numbers = #tpu.dot_dimension_numbers<[1], [0], [0], [1], [0, 0, 1, 1], [], []>} : vector<256x8xbf16>, vector<8x8xbf16>, vector<256x8xf32> -> vector<256x8xf32>
    %54 = arith.addf %47, %53 : vector<256x8xf32>
    %c0_55 = arith.constant 0 : index
    %c2_56 = arith.constant 2 : index
    %c2_57 = arith.constant 2 : index
    %c0_58 = arith.constant 0 : index
    %55 = vector.load %arg1[%c0_55, %c2_56, %c2_57, %c0_58] : memref<1x18x18x8xbf16, #tpu.memory_space<vmem>>, vector<1x16x16x8xbf16>
    %56 = vector.shape_cast %55 : vector<1x16x16x8xbf16> to vector<16x16x8xbf16>
    %57 = vector.shape_cast %56 : vector<16x16x8xbf16> to vector<256x8xbf16>
    %c8 = arith.constant 8 : index
    %c0_59 = arith.constant 0 : index
    %c0_60 = arith.constant 0 : index
    %58 = vector.load %arg2[%c8, %c0_59, %c0_60] : memref<9x8x8xbf16, #tpu.memory_space<vmem>>, vector<1x8x8xbf16>
    %59 = vector.shape_cast %58 : vector<1x8x8xbf16> to vector<8x8xbf16>
    %cst_61 = arith.constant dense<0.000000e+00> : vector<256x8xf32>
    %60 = tpu.matmul %57, %59, %cst_61 {dimension_numbers = #tpu.dot_dimension_numbers<[1], [0], [0], [1], [0, 0, 1, 1], [], []>} : vector<256x8xbf16>, vector<8x8xbf16>, vector<256x8xf32> -> vector<256x8xf32>
    %61 = arith.addf %54, %60 : vector<256x8xf32>
    %c0_62 = arith.constant 0 : index
    %c0_63 = arith.constant 0 : index
    %62 = vector.load %arg3[%c0_62, %c0_63] : memref<1x8xf32, #tpu.memory_space<vmem>>, vector<1x8xf32>
    %63 = vector.broadcast %62 : vector<1x8xf32> to vector<256x8xf32>
    %64 = arith.addf %61, %63 : vector<256x8xf32>
    %cst_64 = arith.constant 0.000000e+00 : f32
    %65 = vector.broadcast %cst_64 : f32 to vector<256x8xf32>
    %66 = arith.maximumf %64, %65 : vector<256x8xf32>
    %cst_65 = arith.constant 0.000000e+00 : bf16
    %67 = vector.broadcast %cst_65 : bf16 to vector<18x20x8xbf16>
    %c0_66 = arith.constant 0 : index
    %c0_67 = arith.constant 0 : index
    %c0_68 = arith.constant 0 : index
    %68 = vector.load %arg9[%c0_66, %c0_67, %c0_68] : memref<18x20x8xbf16, #tpu.memory_space<vmem>>, vector<18x20x8xbf16>
    tpu.vector_store %arg9[%c0_66, %c0_67, %c0_68], %67 {strides = array<i32>} : memref<18x20x8xbf16, #tpu.memory_space<vmem>>, vector<18x20x8xbf16>,
    %69 = vector.shape_cast %66 : vector<256x8xf32> to vector<16x16x8xf32>
    %70 = arith.truncf %69 : vector<16x16x8xf32> to vector<16x16x8xbf16>
    %c1_69 = arith.constant 1 : index
    %c2_70 = arith.constant 2 : index
    %c0_71 = arith.constant 0 : index
    %71 = vector.load %arg9[%c1_69, %c2_70, %c0_71] : memref<18x20x8xbf16, #tpu.memory_space<vmem>>, vector<16x16x8xbf16>
    tpu.vector_store %arg9[%c1_69, %c2_70, %c0_71], %70 {strides = array<i32>} : memref<18x20x8xbf16, #tpu.memory_space<vmem>>, vector<16x16x8xbf16>,
    %c0_72 = arith.constant 0 : index
    %c1_73 = arith.constant 1 : index
    %c0_74 = arith.constant 0 : index
    %72 = vector.load %arg9[%c0_72, %c1_73, %c0_74] : memref<18x20x8xbf16, #tpu.memory_space<vmem>>, vector<16x16x8xbf16>
    %73 = vector.shape_cast %72 : vector<16x16x8xbf16> to vector<256x8xbf16>
    %c0_75 = arith.constant 0 : index
    %c0_76 = arith.constant 0 : index
    %c0_77 = arith.constant 0 : index
    %74 = vector.load %arg4[%c0_75, %c0_76, %c0_77] : memref<9x8x8xbf16, #tpu.memory_space<vmem>>, vector<1x8x8xbf16>
    %75 = vector.shape_cast %74 : vector<1x8x8xbf16> to vector<8x8xbf16>
    %cst_78 = arith.constant dense<0.000000e+00> : vector<256x8xf32>
    %76 = tpu.matmul %73, %75, %cst_78 {dimension_numbers = #tpu.dot_dimension_numbers<[1], [0], [0], [1], [0, 0, 1, 1], [], []>} : vector<256x8xbf16>, vector<8x8xbf16>, vector<256x8xf32> -> vector<256x8xf32>
    %c0_79 = arith.constant 0 : index
    %c2_80 = arith.constant 2 : index
    %c0_81 = arith.constant 0 : index
    %77 = vector.load %arg9[%c0_79, %c2_80, %c0_81] : memref<18x20x8xbf16, #tpu.memory_space<vmem>>, vector<16x16x8xbf16>
    %78 = vector.shape_cast %77 : vector<16x16x8xbf16> to vector<256x8xbf16>
    %c1_82 = arith.constant 1 : index
    %c0_83 = arith.constant 0 : index
    %c0_84 = arith.constant 0 : index
    %79 = vector.load %arg4[%c1_82, %c0_83, %c0_84] : memref<9x8x8xbf16, #tpu.memory_space<vmem>>, vector<1x8x8xbf16>
    %80 = vector.shape_cast %79 : vector<1x8x8xbf16> to vector<8x8xbf16>
    %cst_85 = arith.constant dense<0.000000e+00> : vector<256x8xf32>
    %81 = tpu.matmul %78, %80, %cst_85 {dimension_numbers = #tpu.dot_dimension_numbers<[1], [0], [0], [1], [0, 0, 1, 1], [], []>} : vector<256x8xbf16>, vector<8x8xbf16>, vector<256x8xf32> -> vector<256x8xf32>
    %82 = arith.addf %76, %81 : vector<256x8xf32>
    %c0_86 = arith.constant 0 : index
    %c3_87 = arith.constant 3 : index
    %c0_88 = arith.constant 0 : index
    %83 = vector.load %arg9[%c0_86, %c3_87, %c0_88] : memref<18x20x8xbf16, #tpu.memory_space<vmem>>, vector<16x16x8xbf16>
    %84 = vector.shape_cast %83 : vector<16x16x8xbf16> to vector<256x8xbf16>
    %c2_89 = arith.constant 2 : index
    %c0_90 = arith.constant 0 : index
    %c0_91 = arith.constant 0 : index
    %85 = vector.load %arg4[%c2_89, %c0_90, %c0_91] : memref<9x8x8xbf16, #tpu.memory_space<vmem>>, vector<1x8x8xbf16>
    %86 = vector.shape_cast %85 : vector<1x8x8xbf16> to vector<8x8xbf16>
    %cst_92 = arith.constant dense<0.000000e+00> : vector<256x8xf32>
    %87 = tpu.matmul %84, %86, %cst_92 {dimension_numbers = #tpu.dot_dimension_numbers<[1], [0], [0], [1], [0, 0, 1, 1], [], []>} : vector<256x8xbf16>, vector<8x8xbf16>, vector<256x8xf32> -> vector<256x8xf32>
    %88 = arith.addf %82, %87 : vector<256x8xf32>
    %c1_93 = arith.constant 1 : index
    %c1_94 = arith.constant 1 : index
    %c0_95 = arith.constant 0 : index
    %89 = vector.load %arg9[%c1_93, %c1_94, %c0_95] : memref<18x20x8xbf16, #tpu.memory_space<vmem>>, vector<16x16x8xbf16>
    %90 = vector.shape_cast %89 : vector<16x16x8xbf16> to vector<256x8xbf16>
    %c3_96 = arith.constant 3 : index
    %c0_97 = arith.constant 0 : index
    %c0_98 = arith.constant 0 : index
    %91 = vector.load %arg4[%c3_96, %c0_97, %c0_98] : memref<9x8x8xbf16, #tpu.memory_space<vmem>>, vector<1x8x8xbf16>
    %92 = vector.shape_cast %91 : vector<1x8x8xbf16> to vector<8x8xbf16>
    %cst_99 = arith.constant dense<0.000000e+00> : vector<256x8xf32>
    %93 = tpu.matmul %90, %92, %cst_99 {dimension_numbers = #tpu.dot_dimension_numbers<[1], [0], [0], [1], [0, 0, 1, 1], [], []>} : vector<256x8xbf16>, vector<8x8xbf16>, vector<256x8xf32> -> vector<256x8xf32>
    %94 = arith.addf %88, %93 : vector<256x8xf32>
    %c1_100 = arith.constant 1 : index
    %c2_101 = arith.constant 2 : index
    %c0_102 = arith.constant 0 : index
    %95 = vector.load %arg9[%c1_100, %c2_101, %c0_102] : memref<18x20x8xbf16, #tpu.memory_space<vmem>>, vector<16x16x8xbf16>
    %96 = vector.shape_cast %95 : vector<16x16x8xbf16> to vector<256x8xbf16>
    %c4_103 = arith.constant 4 : index
    %c0_104 = arith.constant 0 : index
    %c0_105 = arith.constant 0 : index
    %97 = vector.load %arg4[%c4_103, %c0_104, %c0_105] : memref<9x8x8xbf16, #tpu.memory_space<vmem>>, vector<1x8x8xbf16>
    %98 = vector.shape_cast %97 : vector<1x8x8xbf16> to vector<8x8xbf16>
    %cst_106 = arith.constant dense<0.000000e+00> : vector<256x8xf32>
    %99 = tpu.matmul %96, %98, %cst_106 {dimension_numbers = #tpu.dot_dimension_numbers<[1], [0], [0], [1], [0, 0, 1, 1], [], []>} : vector<256x8xbf16>, vector<8x8xbf16>, vector<256x8xf32> -> vector<256x8xf32>
    %100 = arith.addf %94, %99 : vector<256x8xf32>
    %c1_107 = arith.constant 1 : index
    %c3_108 = arith.constant 3 : index
    %c0_109 = arith.constant 0 : index
    %101 = vector.load %arg9[%c1_107, %c3_108, %c0_109] : memref<18x20x8xbf16, #tpu.memory_space<vmem>>, vector<16x16x8xbf16>
    %102 = vector.shape_cast %101 : vector<16x16x8xbf16> to vector<256x8xbf16>
    %c5_110 = arith.constant 5 : index
    %c0_111 = arith.constant 0 : index
    %c0_112 = arith.constant 0 : index
    %103 = vector.load %arg4[%c5_110, %c0_111, %c0_112] : memref<9x8x8xbf16, #tpu.memory_space<vmem>>, vector<1x8x8xbf16>
    %104 = vector.shape_cast %103 : vector<1x8x8xbf16> to vector<8x8xbf16>
    %cst_113 = arith.constant dense<0.000000e+00> : vector<256x8xf32>
    %105 = tpu.matmul %102, %104, %cst_113 {dimension_numbers = #tpu.dot_dimension_numbers<[1], [0], [0], [1], [0, 0, 1, 1], [], []>} : vector<256x8xbf16>, vector<8x8xbf16>, vector<256x8xf32> -> vector<256x8xf32>
    %106 = arith.addf %100, %105 : vector<256x8xf32>
    %c2_114 = arith.constant 2 : index
    %c1_115 = arith.constant 1 : index
    %c0_116 = arith.constant 0 : index
    %107 = vector.load %arg9[%c2_114, %c1_115, %c0_116] : memref<18x20x8xbf16, #tpu.memory_space<vmem>>, vector<16x16x8xbf16>
    %108 = vector.shape_cast %107 : vector<16x16x8xbf16> to vector<256x8xbf16>
    %c6_117 = arith.constant 6 : index
    %c0_118 = arith.constant 0 : index
    %c0_119 = arith.constant 0 : index
    %109 = vector.load %arg4[%c6_117, %c0_118, %c0_119] : memref<9x8x8xbf16, #tpu.memory_space<vmem>>, vector<1x8x8xbf16>
    %110 = vector.shape_cast %109 : vector<1x8x8xbf16> to vector<8x8xbf16>
    %cst_120 = arith.constant dense<0.000000e+00> : vector<256x8xf32>
    %111 = tpu.matmul %108, %110, %cst_120 {dimension_numbers = #tpu.dot_dimension_numbers<[1], [0], [0], [1], [0, 0, 1, 1], [], []>} : vector<256x8xbf16>, vector<8x8xbf16>, vector<256x8xf32> -> vector<256x8xf32>
    %112 = arith.addf %106, %111 : vector<256x8xf32>
    %c2_121 = arith.constant 2 : index
    %c2_122 = arith.constant 2 : index
    %c0_123 = arith.constant 0 : index
    %113 = vector.load %arg9[%c2_121, %c2_122, %c0_123] : memref<18x20x8xbf16, #tpu.memory_space<vmem>>, vector<16x16x8xbf16>
    %114 = vector.shape_cast %113 : vector<16x16x8xbf16> to vector<256x8xbf16>
    %c7_124 = arith.constant 7 : index
    %c0_125 = arith.constant 0 : index
    %c0_126 = arith.constant 0 : index
    %115 = vector.load %arg4[%c7_124, %c0_125, %c0_126] : memref<9x8x8xbf16, #tpu.memory_space<vmem>>, vector<1x8x8xbf16>
    %116 = vector.shape_cast %115 : vector<1x8x8xbf16> to vector<8x8xbf16>
    %cst_127 = arith.constant dense<0.000000e+00> : vector<256x8xf32>
    %117 = tpu.matmul %114, %116, %cst_127 {dimension_numbers = #tpu.dot_dimension_numbers<[1], [0], [0], [1], [0, 0, 1, 1], [], []>} : vector<256x8xbf16>, vector<8x8xbf16>, vector<256x8xf32> -> vector<256x8xf32>
    %118 = arith.addf %112, %117 : vector<256x8xf32>
    %c2_128 = arith.constant 2 : index
    %c3_129 = arith.constant 3 : index
    %c0_130 = arith.constant 0 : index
    %119 = vector.load %arg9[%c2_128, %c3_129, %c0_130] : memref<18x20x8xbf16, #tpu.memory_space<vmem>>, vector<16x16x8xbf16>
    %120 = vector.shape_cast %119 : vector<16x16x8xbf16> to vector<256x8xbf16>
    %c8_131 = arith.constant 8 : index
    %c0_132 = arith.constant 0 : index
    %c0_133 = arith.constant 0 : index
    %121 = vector.load %arg4[%c8_131, %c0_132, %c0_133] : memref<9x8x8xbf16, #tpu.memory_space<vmem>>, vector<1x8x8xbf16>
    %122 = vector.shape_cast %121 : vector<1x8x8xbf16> to vector<8x8xbf16>
    %cst_134 = arith.constant dense<0.000000e+00> : vector<256x8xf32>
    %123 = tpu.matmul %120, %122, %cst_134 {dimension_numbers = #tpu.dot_dimension_numbers<[1], [0], [0], [1], [0, 0, 1, 1], [], []>} : vector<256x8xbf16>, vector<8x8xbf16>, vector<256x8xf32> -> vector<256x8xf32>
    %124 = arith.addf %118, %123 : vector<256x8xf32>
    %c0_135 = arith.constant 0 : index
    %c0_136 = arith.constant 0 : index
    %125 = vector.load %arg5[%c0_135, %c0_136] : memref<1x8xf32, #tpu.memory_space<vmem>>, vector<1x8xf32>
    %126 = vector.broadcast %125 : vector<1x8xf32> to vector<256x8xf32>
    %127 = arith.addf %124, %126 : vector<256x8xf32>
    %128 = vector.shape_cast %127 : vector<256x8xf32> to vector<8x2x16x8xf32>
    %129 = vector.extract_strided_slice %128 {offsets = [0, 0, 0, 0], sizes = [8, 1, 16, 8], strides = [1, 1, 1, 1]} : vector<8x2x16x8xf32> to vector<8x1x16x8xf32>
    %130 = vector.shape_cast %129 : vector<8x1x16x8xf32> to vector<8x16x8xf32>
    %131 = vector.extract_strided_slice %128 {offsets = [0, 1, 0, 0], sizes = [8, 1, 16, 8], strides = [1, 1, 1, 1]} : vector<8x2x16x8xf32> to vector<8x1x16x8xf32>
    %132 = vector.shape_cast %131 : vector<8x1x16x8xf32> to vector<8x16x8xf32>
    %133 = arith.addf %130, %132 : vector<8x16x8xf32>
    %134 = vector.shape_cast %133 : vector<8x16x8xf32> to vector<128x8xf32>
    %c0_137 = arith.constant 0 : index
    %c1_138 = arith.constant 1 : index
    %c1_139 = arith.constant 1 : index
    %c0_140 = arith.constant 0 : index
    %135 = vector.load %arg1[%c0_137, %c1_138, %c1_139, %c0_140] : memref<1x18x18x8xbf16, #tpu.memory_space<vmem>>, vector<1x16x16x8xbf16>
    %136 = vector.shape_cast %135 : vector<1x16x16x8xbf16> to vector<16x16x8xbf16>
    %137 = arith.extf %136 : vector<16x16x8xbf16> to vector<16x16x8xf32>
    %138 = vector.shape_cast %137 : vector<16x16x8xf32> to vector<8x2x16x8xf32>
    %139 = vector.extract_strided_slice %138 {offsets = [0, 0, 0, 0], sizes = [8, 1, 16, 8], strides = [1, 1, 1, 1]} : vector<8x2x16x8xf32> to vector<8x1x16x8xf32>
    %140 = vector.shape_cast %139 : vector<8x1x16x8xf32> to vector<8x16x8xf32>
    %141 = vector.extract_strided_slice %138 {offsets = [0, 1, 0, 0], sizes = [8, 1, 16, 8], strides = [1, 1, 1, 1]} : vector<8x2x16x8xf32> to vector<8x1x16x8xf32>
    %142 = vector.shape_cast %141 : vector<8x1x16x8xf32> to vector<8x16x8xf32>
    %143 = arith.addf %140, %142 : vector<8x16x8xf32>
    %144 = vector.shape_cast %143 : vector<8x16x8xf32> to vector<128x8xf32>
    %145 = arith.truncf %144 : vector<128x8xf32> to vector<128x8xbf16>
    %c0_141 = arith.constant 0 : index
    %c0_142 = arith.constant 0 : index
    %146 = vector.load %arg6[%c0_141, %c0_142] : memref<8x8xbf16, #tpu.memory_space<vmem>>, vector<8x8xbf16>
    %cst_143 = arith.constant dense<0.000000e+00> : vector<128x8xf32>
    %147 = tpu.matmul %145, %146, %cst_143 {dimension_numbers = #tpu.dot_dimension_numbers<[1], [0], [0], [1], [0, 0, 1, 1], [], []>} : vector<128x8xbf16>, vector<8x8xbf16>, vector<128x8xf32> -> vector<128x8xf32>
    %148 = arith.addf %134, %147 : vector<128x8xf32>
    %c0_144 = arith.constant 0 : index
    %c0_145 = arith.constant 0 : index
    %149 = vector.load %arg10[%c0_144, %c0_145] : memref<128x8xf32, #tpu.memory_space<vmem>>, vector<128x8xf32>
    tpu.vector_store %arg10[%c0_144, %c0_145], %148 {strides = array<i32>} : memref<128x8xf32, #tpu.memory_space<vmem>>, vector<128x8xf32>,
    %c0_146 = arith.constant 0 : index
    %c0_147 = arith.constant 0 : index
    %150 = tpu.strided_load %arg10[%c0_146, %c0_147] {strides = array<i32: 2, 1>} : memref<128x8xf32, #tpu.memory_space<vmem>>, vector<64x8xf32>
    %c1_148 = arith.constant 1 : index
    %c0_149 = arith.constant 0 : index
    %151 = tpu.strided_load %arg10[%c1_148, %c0_149] {strides = array<i32: 2, 1>} : memref<128x8xf32, #tpu.memory_space<vmem>>, vector<64x8xf32>
    %152 = arith.addf %150, %151 : vector<64x8xf32>
    %cst_150 = arith.constant 2.500000e-01 : f32
    %153 = vector.broadcast %cst_150 : f32 to vector<64x8xf32>
    %154 = arith.mulf %153, %152 : vector<64x8xf32>
    %c0_151 = arith.constant 0 : index
    %c0_152 = arith.constant 0 : index
    %155 = vector.load %arg7[%c0_151, %c0_152] : memref<1x8xf32, #tpu.memory_space<vmem>>, vector<1x8xf32>
    %156 = vector.broadcast %155 : vector<1x8xf32> to vector<64x8xf32>
    %157 = arith.addf %154, %156 : vector<64x8xf32>
    %c0_153 = arith.constant 0 : index
    %c0_154 = arith.constant 0 : index
    %c0_155 = arith.constant 0 : index
    %158 = vector.load %arg8[%c0_153, %c0_154, %c0_155] : memref<1x64x8xf32, #tpu.memory_space<vmem>>, vector<1x64x8xf32>
    %159 = vector.shape_cast %158 : vector<1x64x8xf32> to vector<64x8xf32>
    %160 = vector.shape_cast %157 : vector<64x8xf32> to vector<1x64x8xf32>
    tpu.vector_store %arg8[%c0_153, %c0_154, %c0_155], %160 {strides = array<i32>} : memref<1x64x8xf32, #tpu.memory_space<vmem>>, vector<1x64x8xf32>,
    return
  }
  func.func @transform_0(%arg0: i32) -> (i32, i32, i32, i32) {
    %c0_i32 = arith.constant 0 : i32
    %c0_i32_0 = arith.constant 0 : i32
    %c0_i32_1 = arith.constant 0 : i32
    %c0_i32_2 = arith.constant 0 : i32
    return %arg0, %c0_i32, %c0_i32_0, %c0_i32_1 : i32, i32, i32, i32
  }
  func.func @transform_1(%arg0: i32) -> (i32, i32, i32) {
    %c0_i32 = arith.constant 0 : i32
    %c0_i32_0 = arith.constant 0 : i32
    %c0_i32_1 = arith.constant 0 : i32
    %c0_i32_2 = arith.constant 0 : i32
    return %c0_i32, %c0_i32_0, %c0_i32_1 : i32, i32, i32
  }
  func.func @transform_2(%arg0: i32) -> (i32, i32) {
    %c0_i32 = arith.constant 0 : i32
    %c0_i32_0 = arith.constant 0 : i32
    %c0_i32_1 = arith.constant 0 : i32
    return %c0_i32, %c0_i32_0 : i32, i32
  }
  func.func @transform_3(%arg0: i32) -> (i32, i32, i32) {
    %c0_i32 = arith.constant 0 : i32
    %c0_i32_0 = arith.constant 0 : i32
    %c0_i32_1 = arith.constant 0 : i32
    %c0_i32_2 = arith.constant 0 : i32
    return %c0_i32, %c0_i32_0, %c0_i32_1 : i32, i32, i32
  }
  func.func @transform_4(%arg0: i32) -> (i32, i32) {
    %c0_i32 = arith.constant 0 : i32
    %c0_i32_0 = arith.constant 0 : i32
    %c0_i32_1 = arith.constant 0 : i32
    return %c0_i32, %c0_i32_0 : i32, i32
  }
  func.func @transform_5(%arg0: i32) -> (i32, i32) {
    %c0_i32 = arith.constant 0 : i32
    %c0_i32_0 = arith.constant 0 : i32
    %c0_i32_1 = arith.constant 0 : i32
    return %c0_i32, %c0_i32_0 : i32, i32
  }
  func.func @transform_6(%arg0: i32) -> (i32, i32) {
    %c0_i32 = arith.constant 0 : i32
    %c0_i32_0 = arith.constant 0 : i32
    %c0_i32_1 = arith.constant 0 : i32
    return %c0_i32, %c0_i32_0 : i32, i32
  }
  func.func @transform_7(%arg0: i32) -> (i32, i32, i32) {
    %c0_i32 = arith.constant 0 : i32
    %c0_i32_0 = arith.constant 0 : i32
    %c0_i32_1 = arith.constant 0 : i32
    return %arg0, %c0_i32, %c0_i32_0 : i32, i32, i32
  }
}

</mosaic_0001>

<bundles_post_ra>
// kernel: tpu_custom_call.1
= control target key start
LH: loop header
LB: loop body
LE: loop exit
PB: predicated region body
PF: predicated region fallthrough
CT: control target
= control target key end

     0   :  { %s14019_s24 = smov 0   ;;  %s18561_s0 = inlined_call_operand.vmem [shape: bf16[2,18,18,8], index: 0, kind: input, shape index: {}]   ;;  %s18562_s1 = inlined_call_operand.vmem [shape: bf16[9,8,8], index: 1, kind: input, shape index: {}]   ;;  %s18563_s2 = inlined_call_operand.vmem [shape: f32[1,8], index: 2, kind: input, shape index: {}]   ;;  %s18564_s3 = inlined_call_operand.vmem [shape: bf16[9,8,8], index: 3, kind: input, shape index: {}]   ;;  %s18565_s4 = inlined_call_operand.vmem [shape: f32[1,8], index: 4, kind: input, shape index: {}]   ;;  %s18566_s5 = inlined_call_operand.vmem [shape: bf16[8,8], index: 5, kind: input, shape index: {}]   ;;  %s18567_s6 = inlined_call_operand.vmem [shape: f32[1,8], index: 6, kind: input, shape index: {}]   ;;  %s18568_s7 = inlined_call_operand.vmem [shape: f32[2,64,8], index: 7, kind: output, shape index: {}]  }
   0x1 LB: > { %s11351_s25 = sadd.s32 4294967295, %s13976_s24   ;;  %p11355_p0 = scmp.ge.s32.totalorder %s13976_s24, 1  ;;  %s13976_s24 = sphi %s14019_s24, %s17_s24  }
   0x2   : > { %p237_p1 = scmp.lt.s32.totalorder %s13976_s24, 3 }
   0x4   : > { %p238_p2 = pnand %p11355_p0, %p237_p1 }
   0x6   : > { %241 = sbr.rel (%p238_p2) target bundleno = 1600 (0x640), region = 48 }
   0xd   : > { %v11359_v0 = vld [vmem:[%s18562_s1 + $0x4] sm:$0xf]  ;;  %vm815_vm0 = vcmask 1043456   ;;  %p269_p3 = scmp.lt.s32.totalorder %s11351_s25, 1  ;;  %v312_v2 = vld [vmem:[%s18562_s1] sm:$0xf] }
   0xe   : > { %13864 = vmatprep.subr.msk.bf16.mxu0 %vm815_vm0, %v11359_v0  ;;  %v817_v1 = vsel %vm815_vm0, %v11359_v0, 0  ;;  %13865 = vmatprep.subr.msk.bf16.mxu1 %vm815_vm0, %v11359_v0  ;;  %vm329_vm1 = vsmask.f32 3328  ;;  %vm330_vm2 = vsmask.f32 7440  ;;  %v18736_v27 = vmov 0 }
   0xf   : > { %12721 = vmatpush3.bf16.msra.mxu0 %v817_v1  ;;  %s18988_s25 = smov (!%p269_p3, %s11351_s25), 1  ;;  %13351 = vmatpush3.bf16.msra.mxu1 %v817_v1  ;;  %vm14078_vm3 = vmor %vm329_vm1, %vm330_vm2  ;;  %vm766_vm4 = vcmask 64512   ;;  %v1109_v35 = vsel %vm815_vm0, %v312_v2, 0  ;;  %vm1320_vm5 = vcmask 1042432   ;;  %vm1321_vm6 = vcmask 1046532  }
  0x10   : > { %13866 = vmatprep.subr.msk.bf16.mxu0 %vm815_vm0, %v312_v2  ;;  %s13884_s30 = smul.u32 216, %s18988_s25  ;;  %v18737_v27 = vsel %vm14078_vm3, 4294967295, %v18736_v27  ;;  %vm14296_vm7 = vmor %vm1320_vm5, %vm1321_vm6  ;;  %vm4910_vm8 = vcmask 60416   ;;  %vm4913_vm9 = vcmask 58368   ;;  %vm5062_vm10 = vcmask 1040384  }
  0x11   : > { %18738 = vst [vmem:[#allocation4_spill] sm:$0xff] %v18737_v27  ;;  %vm5063_vm11 = vcmask 1044484   ;;  %vm5194_vm12 = vcmask 60417   ;;  %vm5197_vm14 = vcmask 57344   ;;  %vm6391_vm15 = vsmask.f32 2304 }
  0x12   : > { %s14043_s10 = scalar_lea.vmem %s18561_s0, %s13884_s30  ;;  %vm15847_vm13 = vmor %vm5062_vm10, %vm5063_vm11  ;;  %vm6392_vm1 = vsmask.f32 6416  ;;  %s12332_s30 = sshll.u32 %s18988_s25, 6 }
  0x13   : > { %v14046_v3 = vld [vmem:[%s14043_s10] sm:$0xf]  ;;  %v14049_v4 = vld [vmem:[%s14043_s10 + $0x4] sm:$0xf]  ;;  %v14052_v5 = vld [vmem:[%s14043_s10 + $0x8] sm:$0x1]  ;;  %s18488_s12 = scalar_lea.vmem %s18568_s7, %s12332_s30 }
  0x14   : > { %v333_v6 = vshrl.u32 %v14046_v3, 16  ;;  %v336_v7 = vshll.u32 %v14046_v3, 16  ;;  %v342_v8 = vshll.u32 %v14049_v4, 16  ;;  %v346_v9 = vshrl.u32 %v14049_v4, 16  ;;  %v14059_v10 = vld [vmem:[%s14043_s10 + $0xc] sm:$0xf]  ;;  %vm16354_vm2 = vmor %vm6391_vm15, %vm6392_vm1 }
  0x15   : > { %v352_v11 = vshll.u32 %v14052_v5, 16  ;;  %v14063_v12 = vld [vmem:[%s14043_s10 + $0x10] sm:$0xf]  ;;  %v14066_v13 = vld [vmem:[%s14043_s10 + $0x14] sm:$0x1]  ;;  %v357_v19 = vshrl.u32 %v14059_v10, 16 }
  0x16   : > { %v335_v14 = vrot.slane %v333_v6, 4  ;;  %v338_v15 = vrot.slane %v336_v7, 5  ;;  %v344_v16 = vrot.slane %v342_v8, 5  ;;  %v348_v17 = vrot.slane %v346_v9, 4  ;;  %v14074_v26 = vld [vmem:[%s14043_s10 + $0x18] sm:$0xf] }
  0x17   : > { %v354_v18 = vrot.slane %v352_v11, 5  ;;  %v360_v20 = vshll.u32 %v14059_v10, 16  ;;  %v366_v21 = vshll.u32 %v14063_v12, 16  ;;  %v370_v24 = vshrl.u32 %v14063_v12, 16  ;;  %v14083_v31 = vld [vmem:[%s14043_s10 + $0x1c] sm:$0xf] }
  0x18   : > { %v339_v22 = vor.u32 %v338_v15, %v335_v14  ;;  %v349_v23 = vor.u32 %v348_v17, %v344_v16  ;;  %v376_v25 = vshll.u32 %v14066_v13, 16  ;;  %v359_v28 = vrot.slane %v357_v19, 4  ;;  %v14087_v38 = vld [vmem:[%s14043_s10 + $0x20] sm:$0x1]  ;;  %v14097_v45 = vld [vmem:[%s14043_s10 + $0x24] sm:$0xf] }
  0x19   : > { %v362_v29 = vrot.slane %v360_v20, 5  ;;  %v368_v30 = vrot.slane %v366_v21, 5  ;;  %v372_v34 = vrot.slane %v370_v24, 4  ;;  %v381_v39 = vshrl.u32 %v14074_v26, 16  ;;  %v14100_v50 = vld [vmem:[%s14043_s10 + $0x28] sm:$0xf] }
  0x1a   : > { %v340_v32 = vrot.slane %v339_v22, 4  ;;  %v350_v33 = vrot.slane %v349_v23, 4  ;;  %v378_v37 = vrot.slane %v376_v25, 5  ;;  %v384_v40 = vshll.u32 %v14074_v26, 16  ;;  %v14108_v57 = vld [vmem:[%s14043_s10 + $0x2c] sm:$0x1] }
  0x1b   : > { %v363_v36 = vor.u32 %v362_v29, %v359_v28  ;;  %v373_v43 = vor.u32 %v372_v34, %v368_v30  ;;  %v390_v44 = vshll.u32 %v14083_v31, 16  ;;  %v383_v48 = vrot.slane %v381_v39, 4  ;;  %v14116_v0 = vld [vmem:[%s14043_s10 + $0x30] sm:$0xf]  ;;  %v14119_v8 = vld [vmem:[%s14043_s10 + $0x34] sm:$0xf] }
  0x1c   : > { %v345_v41 = vsel %vm14078_vm3, %v340_v32, %v344_v16  ;;  %v355_v42 = vsel %vm14078_vm3, %v350_v33, %v354_v18  ;;  %v386_v49 = vrot.slane %v384_v40, 5  ;;  %v394_v53 = vshrl.u32 %v14083_v31, 16  ;;  %v14126_v16 = vld [vmem:[%s18562_s1 + $0x8] sm:$0xf]  ;;  %v14132_v19 = vld [vmem:[%s14043_s10 + $0x38] sm:$0x1] }
  0x1d   : > { %v11360_v46 = vcombine.low %v345_v41, %v355_v42  ;;  %v364_v47 = vrot.slane %v363_v36, 4  ;;  %v374_v51 = vrot.slane %v373_v43, 4  ;;  %v392_v52 = vrot.slane %v390_v44, 5  ;;  %v14139_v33 = vld [vmem:[%s14043_s10 + $0x3c] sm:$0xf] }
  0x1e   : > { %v400_v54 = vshll.u32 %v14087_v38, 16  ;;  %v387_v56 = vor.u32 %v386_v49, %v383_v48  ;;  %v405_v58 = vshrl.u32 %v14097_v45, 16  ;;  %v408_v59 = vshll.u32 %v14097_v45, 16  ;;  %v14147_v39 = vld [vmem:[%s14043_s10 + $0x40] sm:$0xf] }
  0x1f   : > { %12722 = vmatprep.mubr.msk.bf16.mxu0 %vm766_vm4, %v11360_v46  ;;  %v369_v55 = vsel %vm14078_vm3, %v364_v47, %v368_v30  ;;  %v379_v60 = vsel %vm14078_vm3, %v374_v51, %v378_v37  ;;  %v396_v61 = vrot.slane %v394_v53, 4  ;;  %v414_v63 = vshll.u32 %v14100_v50, 16  ;;  %v14152_v44 = vld [vmem:[%s14043_s10 + $0x44] sm:$0x1] }
  0x20   : > { %v402_v62 = vrot.slane %v400_v54, 5  ;;  %v11361_v1 = vcombine.low %v369_v55, %v379_v60  ;;  %v388_v2 = vrot.slane %v387_v56, 4  ;;  %v407_v6 = vrot.slane %v405_v58, 4  ;;  %v14160_v55 = vld [vmem:[%s14043_s10 + $0x48] sm:$0xf] }
  0x21   : > { %v410_v7 = vrot.slane %v408_v59, 5  ;;  %v397_v9 = vor.u32 %v396_v61, %v392_v52  ;;  %v416_v11 = vrot.slane %v414_v63, 5  ;;  %v418_v14 = vshrl.u32 %v14100_v50, 16  ;;  %v14166_v61 = vld [vmem:[%s14043_s10 + $0x4c] sm:$0xf] }
  0x22   : > { %v424_v15 = vshll.u32 %v14108_v57, 16  ;;  %12723 = vmatmul.mubr.msk.bf16.vlgmr.msra.gmra.mrb[0].mxu0 %vm766_vm4, %v11361_v1  ;;  %v393_v17 = vsel %vm14078_vm3, %v388_v2, %v392_v52  ;;  %v429_v20 = vshrl.u32 %v14116_v0, 16  ;;  %v432_v21 = vshll.u32 %v14116_v0, 16 }
  0x23   : > { %v411_v18 = vor.u32 %v410_v7, %v407_v6  ;;  %12755 = vmatpush3.bf16.msra.mxu0 %v1109_v35  ;;  %v398_v22 = vrot.slane %v397_v9, 4  ;;  %v420_v23 = vrot.slane %v418_v14, 4  ;;  %v438_v25 = vshll.u32 %v14119_v8, 16 }
  0x24   : > { %v426_v24 = vrot.slane %v424_v15, 5  ;;  %v431_v29 = vrot.slane %v429_v20, 4  ;;  %v434_v30 = vrot.slane %v432_v21, 5  ;;  %v442_v32 = vshrl.u32 %v14119_v8, 16  ;;  %13867 = vmatprep.subr.msk.bf16.mxu0 %vm815_vm0, %v14126_v16  ;;  %v14181_v21 = vld [vmem:[%s14043_s10 + $0x54] sm:$0xf] }
  0x25   : > { %v412_v28 = vrot.slane %v411_v18, 4  ;;  %v403_v34 = vsel %vm14078_vm3, %v398_v22, %v402_v62  ;;  %v421_v35 = vor.u32 %v420_v23, %v416_v11  ;;  %v440_v36 = vrot.slane %v438_v25, 5 }
  0x26   : > { %v448_v37 = vshll.u32 %v14132_v19, 16  ;;  %v11362_v40 = vcombine.low %v393_v17, %v403_v34  ;;  %v435_v42 = vor.u32 %v434_v30, %v431_v29  ;;  %v444_v43 = vrot.slane %v442_v32, 4 }
  0x27   : > { %v417_v41 = vsel %vm14078_vm3, %v412_v28, %v416_v11  ;;  %v422_v46 = vrot.slane %v421_v35, 4  ;;  %v453_v48 = vshrl.u32 %v14139_v33, 16  ;;  %v456_v49 = vshll.u32 %v14139_v33, 16  ;;  %v14171_v11 = vld [vmem:[%s14043_s10 + $0x50] sm:$0x1] }
  0x28   : > { %v450_v47 = vrot.slane %v448_v37, 5  ;;  %12726 = vmatprep.mubr.msk.bf16.mxu0 %vm766_vm4, %v11362_v40  ;;  %v436_v51 = vrot.slane %v435_v42, 4  ;;  %v445_v52 = vor.u32 %v444_v43, %v440_v36  ;;  %v462_v53 = vshll.u32 %v14147_v39, 16  ;;  %v14184_v28 = vld [vmem:[%s14043_s10 + $0x58] sm:$0xf] }
  0x29   : > { %v466_v54 = vshrl.u32 %v14147_v39, 16  ;;  %v427_v56 = vsel %vm14078_vm3, %v422_v46, %v426_v24  ;;  %v455_v58 = vrot.slane %v453_v48, 4  ;;  %v458_v59 = vrot.slane %v456_v49, 5  ;;  %v14193_v46 = vld [vmem:[%s14043_s10 + $0x5c] sm:$0x1] }
  0x2a   : > { %v472_v60 = vshll.u32 %v14152_v44, 16  ;;  %v11363_v62 = vcombine.low %v417_v41, %v427_v56  ;;  %v441_v63 = vsel %vm14078_vm3, %v436_v51, %v440_v36  ;;  %v446_v1 = vrot.slane %v445_v52, 4  ;;  %v14197_v48 = vld [vmem:[%s14043_s10 + $0x60] sm:$0xf] }
  0x2b   : > { %v464_v2 = vrot.slane %v462_v53, 5  ;;  %v459_v6 = vor.u32 %v458_v59, %v455_v58  ;;  %v468_v7 = vrot.slane %v466_v54, 4  ;;  %v477_v14 = vshrl.u32 %v14160_v55, 16  ;;  %v14203_v54 = vld [vmem:[%s14043_s10 + $0x64] sm:$0xf] }
  0x2c   : > { %v474_v9 = vrot.slane %v472_v60, 5  ;;  %12727 = vmatmul.mubr.msk.bf16.gmra.mrb[4].mxu0 %vm766_vm4, %v11363_v62  ;;  %v451_v15 = vsel %vm14078_vm3, %v446_v1, %v450_v47  ;;  %v480_v17 = vshll.u32 %v14160_v55, 16  ;;  %v486_v18 = vshll.u32 %v14166_v61, 16 }
  0x2d   : > { %v490_v20 = vshrl.u32 %v14166_v61, 16  ;;  %v11364_v22 = vcombine.low %v441_v63, %v451_v15  ;;  %v460_v23 = vrot.slane %v459_v6, 4  ;;  %v469_v24 = vor.u32 %v468_v7, %v464_v2 }
  0x2e   : > { %v479_v25 = vrot.slane %v477_v14, 4  ;;  %v482_v29 = vrot.slane %v480_v17, 5  ;;  %v488_v30 = vrot.slane %v486_v18, 5  ;;  %v496_v34 = vshll.u32 %v14171_v11, 16  ;;  %v14218_v17 = vld [vmem:[%s14043_s10 + $0x6c] sm:$0xf] }
  0x2f   : > { %v492_v32 = vrot.slane %v490_v20, 4  ;;  %12730 = vmatprep.mubr.msk.bf16.mxu0 %vm766_vm4, %v11364_v22  ;;  %v465_v35 = vsel %vm14078_vm3, %v460_v23, %v464_v2  ;;  %v470_v36 = vrot.slane %v469_v24, 4  ;;  %v501_v37 = vshrl.u32 %v14181_v21, 16  ;;  %v14221_v24 = vld [vmem:[%s14043_s10 + $0x70] sm:$0xf] }
  0x30   : > { %v504_v40 = vshll.u32 %v14181_v21, 16  ;;  %v483_v41 = vor.u32 %v482_v29, %v479_v25  ;;  %v498_v43 = vrot.slane %v496_v34, 5  ;;  %v510_v47 = vshll.u32 %v14184_v28, 16 }
  0x31   : > { %v493_v42 = vor.u32 %v492_v32, %v488_v30  ;;  %v475_v49 = vsel %vm14078_vm3, %v470_v36, %v474_v9  ;;  %v503_v51 = vrot.slane %v501_v37, 4  ;;  %v514_v53 = vshrl.u32 %v14184_v28, 16  ;;  %v14213_v9 = vld [vmem:[%s14043_s10 + $0x68] sm:$0x1]  ;;  %v14229_v37 = vld [vmem:[%s14043_s10 + $0x74] sm:$0x1] }
  0x32   : > { %v506_v52 = vrot.slane %v504_v40, 5  ;;  %v11365_v56 = vcombine.low %v465_v35, %v475_v49  ;;  %v484_v58 = vrot.slane %v483_v41, 4  ;;  %v512_v60 = vrot.slane %v510_v47, 5  ;;  %v14235_v49 = vld [vmem:[%s14043_s10 + $0x78] sm:$0xf] }
  0x33   : > { %v494_v59 = vrot.slane %v493_v42, 4  ;;  %v516_v63 = vrot.slane %v514_v53, 4  ;;  %v520_v1 = vshll.u32 %v14193_v46, 16  ;;  %v525_v2 = vshrl.u32 %v14197_v48, 16 }
  0x34   : > { %v507_v62 = vor.u32 %v506_v52, %v503_v51  ;;  %12731 = vmatmul.mubr.msk.bf16.gmra.mrb[8].mxu0 %vm766_vm4, %v11365_v56  ;;  %v489_v6 = vsel %vm14078_vm3, %v484_v58, %v488_v30  ;;  %v528_v14 = vshll.u32 %v14197_v48, 16  ;;  %v534_v15 = vshll.u32 %v14203_v54, 16 }
  0x35   : > { %v499_v7 = vsel %vm14078_vm3, %v494_v59, %v498_v43  ;;  %v517_v22 = vor.u32 %v516_v63, %v512_v60  ;;  %v522_v23 = vrot.slane %v520_v1, 5  ;;  %v527_v25 = vrot.slane %v525_v2, 4  ;;  %v14241_v63 = vld [vmem:[%s14043_s10 + $0x7c] sm:$0xf]  ;;  %v14244_v1 = vld [vmem:[%s14043_s10 + $0x80] sm:$0x1] }
  0x36   : > { %v11366_v18 = vcombine.low %v489_v6, %v499_v7  ;;  %v508_v20 = vrot.slane %v507_v62, 4  ;;  %v530_v29 = vrot.slane %v528_v14, 5  ;;  %v536_v30 = vrot.slane %v534_v15, 5  ;;  %v14249_v15 = vld [vmem:[%s14043_s10 + $0x84] sm:$0xf] }
  0x37   : > { %v538_v32 = vshrl.u32 %v14203_v54, 16  ;;  %v518_v35 = vrot.slane %v517_v22, 4  ;;  %v544_v36 = vshll.u32 %v14213_v9, 16  ;;  %v549_v40 = vshrl.u32 %v14218_v17, 16 }
  0x38   : > { %12734 = vmatprep.mubr.msk.bf16.mxu0 %vm766_vm4, %v11366_v18  ;;  %v513_v34 = vsel %vm14078_vm3, %v508_v20, %v512_v60  ;;  %v531_v41 = vor.u32 %v530_v29, %v527_v25  ;;  %v552_v43 = vshll.u32 %v14218_v17, 16  ;;  %v558_v47 = vshll.u32 %v14221_v24, 16 }
  0x39   : > { %v540_v42 = vrot.slane %v538_v32, 4  ;;  %v523_v51 = vsel %vm14078_vm3, %v518_v35, %v522_v23  ;;  %v546_v52 = vrot.slane %v544_v36, 5  ;;  %v551_v53 = vrot.slane %v549_v40, 4 }
  0x3a   : > { %v562_v56 = vshrl.u32 %v14221_v24, 16  ;;  %v11367_v58 = vcombine.low %v513_v34, %v523_v51  ;;  %v532_v59 = vrot.slane %v531_v41, 4  ;;  %v554_v62 = vrot.slane %v552_v43, 5 }
  0x3b   : > { %v541_v60 = vor.u32 %v540_v42, %v536_v30  ;;  %v560_v2 = vrot.slane %v558_v47, 5  ;;  %v568_v7 = vshll.u32 %v14229_v37, 16  ;;  %v573_v14 = vshrl.u32 %v14235_v49, 16  ;;  %v14260_v42 = vld [vmem:[%s14043_s10 + $0x88] sm:$0xf] }
  0x3c   : > { %v564_v6 = vrot.slane %v562_v56, 4  ;;  %12735 = vmatmul.mubr.msk.bf16.gmra.mrb[12].mxu0 %vm766_vm4, %v11367_v58  ;;  %v537_v18 = vsel %vm14078_vm3, %v532_v59, %v536_v30  ;;  %v555_v22 = vor.u32 %v554_v62, %v551_v53  ;;  %v576_v23 = vshll.u32 %v14235_v49, 16  ;;  %v14266_v59 = vld [vmem:[%s14043_s10 + $0x8c] sm:$0x1] }
  0x3d   : > { %v542_v20 = vrot.slane %v541_v60, 4  ;;  %v570_v29 = vrot.slane %v568_v7, 5  ;;  %v575_v32 = vrot.slane %v573_v14, 4  ;;  %v582_v34 = vshll.u32 %v14241_v63, 16 }
  0x3e   : > { %v565_v25 = vor.u32 %v564_v6, %v560_v2  ;;  %v556_v36 = vrot.slane %v555_v22, 4  ;;  %v578_v40 = vrot.slane %v576_v23, 5  ;;  %v586_v41 = vshrl.u32 %v14241_v63, 16 }
  0x3f   : > { %v547_v35 = vsel %vm14078_vm3, %v542_v20, %v546_v52  ;;  %v584_v47 = vrot.slane %v582_v34, 5  ;;  %v592_v51 = vshll.u32 %v14244_v1, 16  ;;  %v597_v52 = vshrl.u32 %v14249_v15, 16 }
  0x40   : > { %v11368_v30 = vcombine.low %v537_v18, %v547_v35  ;;  %v566_v43 = vrot.slane %v565_v25, 4  ;;  %v561_v53 = vsel %vm14078_vm3, %v556_v36, %v560_v2  ;;  %v579_v56 = vor.u32 %v578_v40, %v575_v32 }
  0x41   : > { %v588_v58 = vrot.slane %v586_v41, 4  ;;  %v594_v62 = vrot.slane %v592_v51, 5  ;;  %v600_v6 = vshll.u32 %v14249_v15, 16  ;;  %v606_v7 = vshll.u32 %v14260_v42, 16 }
  0x42   : > { %12738 = vmatprep.mubr.msk.bf16.mxu0 %vm766_vm4, %v11368_v30  ;;  %v571_v60 = vsel %vm14078_vm3, %v566_v43, %v570_v29  ;;  %v580_v18 = vrot.slane %v579_v56, 4  ;;  %v599_v2 = vrot.slane %v597_v52, 4  ;;  %v610_v25 = vshrl.u32 %v14260_v42, 16 }
  0x43   : > { %v11369_v14 = vcombine.low %v561_v53, %v571_v60  ;;  %v589_v20 = vor.u32 %v588_v58, %v584_v47  ;;  %v602_v22 = vrot.slane %v600_v6, 5  ;;  %v608_v23 = vrot.slane %v606_v7, 5  ;;  %v1273_v6 = vld [vmem:[%s14043_s10 + $0xc] sm:$0xe] }
  0x44   : > { %v616_v32 = vshll.u32 %v14266_v59, 16  ;;  %v585_v29 = vsel %vm14078_vm3, %v580_v18, %v584_v47  ;;  %v612_v36 = vrot.slane %v610_v25, 4  ;;  %v1332_v56 = vrot.slane %v14063_v12, 5 }
  0x45   : > { %12739 = vmatmul.mubr.msk.bf16.gmra.mrb[16].mxu0 %vm766_vm4, %v11369_v14  ;;  %v590_v34 = vrot.slane %v589_v20, 4  ;;  %v603_v35 = vor.u32 %v602_v22, %v599_v2  ;;  %v1534_v58 = vsel %vm815_vm0, %v14126_v16, 0  ;;  %v11392_v60 = vcombine.low %v14046_v3, %v14049_v4  ;;  %v1274_v16 = vld [vmem:[%s14043_s10 + $0x18] sm:$0xe]  ;;  %v1275_v2 = vld [vmem:[%s14043_s10 + $0x24] sm:$0xe] }
  0x46   : > { %v613_v43 = vor.u32 %v612_v36, %v608_v23  ;;  %v618_v51 = vrot.slane %v616_v32, 5  ;;  %v1328_v7 = vrot.slane %v14052_v5, 5  ;;  %v1335_v14 = vrot.slane %v14066_v13, 5 }
  0x47   : > { %v595_v40 = vsel %vm14078_vm3, %v590_v34, %v594_v62  ;;  %v604_v30 = vrot.slane %v603_v35, 4  ;;  %v1272_v62 = vld [vmem:[%s14043_s10] sm:$0xe]  ;;  %v18739_v20 = vmov 0  ;;  %v11393_v3 = vcombine.low %v14059_v10, %v14063_v12  ;;  %v1276_v34 = vld [vmem:[%s14043_s10 + $0x30] sm:$0xe] }
  0x48   : > { %v11370_v41 = vcombine.low %v585_v29, %v595_v40  ;;  %v614_v53 = vrot.slane %v613_v43, 4  ;;  %v18740_v20 = vsel %vm14296_vm7, 4294967295, %v18739_v20  ;;  %v11424_v22 = vrot.slane %v1272_v62, 9 }
  0x49   : > { %v609_v47 = vsel %vm14078_vm3, %v604_v30, %v608_v23  ;;  %18741 = vst [vmem:[#allocation5_spill] sm:$0xff] %v18740_v20  ;;  %v1325_v5 = vrot.slane %v14049_v4, 5  ;;  %v11425_v23 = vrot.slane %v1273_v6, 9  ;;  %v11394_v13 = vcombine.low %v14074_v26, %v14083_v31  ;;  %v1277_v26 = vld [vmem:[%s14043_s10 + $0x3c] sm:$0xe] }
  0x4a   : > { %12742 = vmatprep.mubr.msk.bf16.mxu0 %vm766_vm4, %v11370_v41  ;;  %v619_v52 = vsel %vm14078_vm3, %v614_v53, %v618_v51  ;;  %v11395_v25 = vcombine.low %v14097_v45, %v14100_v50  ;;  %v11396_v32 = vcombine.low %v14116_v0, %v14119_v8  ;;  %v1334_v29 = vrot.slane %v1332_v56, 4  ;;  %v1279_v6 = vld [vmem:[%s14043_s10 + $0x54] sm:$0xe] }
  0x4b   : > { %v11371_v18 = vcombine.low %v609_v47, %v619_v52  ;;  %v14316_v10 = vsel %vm14296_vm7, %v11424_v22, %v1325_v5  ;;  %v1327_v4 = vrot.slane %v1325_v5, 4  ;;  %v14320_v12 = vsel %vm14296_vm7, %v11425_v23, %v1332_v56  ;;  %v1278_v56 = vld [vmem:[%s14043_s10 + $0x48] sm:$0xe]  ;;  %v1280_v23 = vld [vmem:[%s14043_s10 + $0x60] sm:$0xe] }
  0x4c   : > { %v11426_v35 = vrot.slane %v1274_v16, 9  ;;  %v14325_v36 = vsel %vm14296_vm7, %v1334_v29, %v1335_v14  ;;  %v1339_v40 = vrot.slane %v14083_v31, 5  ;;  %v1342_v41 = vrot.slane %v14087_v38, 5  ;;  %v14343_v31 = vld [vmem:[%s18562_s1 + $0xc] sm:$0xf] }
  0x4d   : > { %12743 = vmatmul.mubr.msk.bf16.gmra.mrb[20].mxu0 %vm766_vm4, %v11371_v18  ;;  %v11427_v30 = vrot.slane %v1275_v2, 9  ;;  %v14331_v43 = vsel %vm14296_vm7, %v1327_v4, %v1328_v7  ;;  %v11442_v51 = vcombine.low %v14320_v12, %v14325_v36  ;;  %v1346_v47 = vrot.slane %v14100_v50, 5  ;;  %v325_v12 = vld [vmem:[%s14043_s10 + $0x98] sm:$0x1]  ;;  %v1284_v36 = vld [vmem:[%s14043_s10 + $0x90] sm:$0xe] }
  0x4e   : > { %12756 = vmatprep.mubr.msk.bf16.mxu0 %vm766_vm4, %v11392_v60  ;;  %v1349_v53 = vrot.slane %v14108_v57, 5  ;;  %v11441_v52 = vcombine.low %v14316_v10, %v14331_v43  ;;  %v14347_v38 = vsel %vm14296_vm7, %v11426_v35, %v1339_v40  ;;  %v1341_v60 = vrot.slane %v1339_v40, 4  ;;  %v1281_v40 = vld [vmem:[%s14043_s10 + $0x6c] sm:$0xe] }
  0x4f   : > { %v11428_v62 = vrot.slane %v1276_v34, 9  ;;  %v14352_v57 = vsel %vm14296_vm7, %v11427_v30, %v1346_v47  ;;  %v1348_v7 = vrot.slane %v1346_v47, 4  ;;  %v1353_v14 = vrot.slane %v14119_v8, 5 }
  0x50   : > { %v1356_v18 = vrot.slane %v14132_v19, 5  ;;  %v14358_v16 = vsel %vm14296_vm7, %v1341_v60, %v1342_v41  ;;  %v11429_v2 = vrot.slane %v1277_v26, 9  ;;  %v1360_v22 = vrot.slane %v14147_v39, 5 }
  0x51   : > { %v1363_v5 = vrot.slane %v14152_v44, 5  ;;  %v11443_v29 = vcombine.low %v14347_v38, %v14358_v16  ;;  %v14368_v34 = vsel %vm14296_vm7, %v1348_v7, %v1349_v53  ;;  %v14372_v19 = vsel %vm14296_vm7, %v11428_v62, %v1353_v14  ;;  %v1282_v62 = vld [vmem:[%s14043_s10 + $0x78] sm:$0xe]  ;;  %v326_v16 = vld [vmem:[%s14043_s10 + $0xa4] sm:$0x1] }
  0x52   : > { %v1355_v4 = vrot.slane %v1353_v14, 4  ;;  %v11444_v44 = vcombine.low %v14352_v57, %v14368_v34  ;;  %v1362_v35 = vrot.slane %v1360_v22, 4  ;;  %v11430_v26 = vrot.slane %v1278_v56, 9 }
  0x53   : > { %v1370_v41 = vrot.slane %v14171_v11, 5  ;;  %v11431_v30 = vrot.slane %v1279_v6, 9  ;;  %v1374_v56 = vrot.slane %v14184_v28, 5  ;;  %v1377_v60 = vrot.slane %v14193_v46, 5 }
  0x54   : > { %v14394_v53 = vsel %vm14296_vm7, %v1362_v35, %v1363_v5  ;;  %v11432_v6 = vrot.slane %v1280_v23, 9  ;;  %v1381_v5 = vrot.slane %v14203_v54, 5  ;;  %v1384_v46 = vrot.slane %v14213_v9, 5 }
  0x55   : > { %12757 = vmatmul.mubr.msk.bf16.vlgmr.msra.gmra.mrb[0].mxu0 %vm766_vm4, %v11393_v3  ;;  %v14379_v3 = vsel %vm14296_vm7, %v11429_v2, %v1360_v22  ;;  %v14408_v2 = vsel %vm14296_vm7, %v11431_v30, %v1374_v56  ;;  %v1376_v22 = vrot.slane %v1374_v56, 4  ;;  %v11433_v35 = vrot.slane %v1281_v40, 9 }
  0x56   : > { %12789 = vmatpush3.bf16.msra.mxu0 %v1534_v58  ;;  %12760 = vmatprep.mubr.msk.bf16.mxu0 %vm766_vm4, %v11394_v13  ;;  %v14386_v58 = vsel %vm14296_vm7, %v1355_v4, %v1356_v18  ;;  %v1367_v13 = vrot.slane %v14166_v61, 5  ;;  %v11446_v7 = vcombine.low %v14379_v3, %v14394_v53  ;;  %v1283_v18 = vld [vmem:[%s14043_s10 + $0x84] sm:$0xe]  ;;  %v14426_v56 = vsel %vm14296_vm7, %v11432_v6, %v1381_v5 }
  0x57   : > { %13868 = vmatprep.subr.msk.bf16.mxu0 %vm815_vm0, %v14343_v31  ;;  %v11445_v47 = vcombine.low %v14372_v19, %v14386_v58  ;;  %v14422_v30 = vsel %vm14296_vm7, %v1376_v22, %v1377_v60  ;;  %v1383_v9 = vrot.slane %v1381_v5, 4  ;;  %v11434_v60 = vrot.slane %v1282_v62, 9  ;;  %v327_v19 = vld [vmem:[%s14043_s10 + $0xb0] sm:$0x1] }
  0x58   : > { %v14403_v14 = vsel %vm14296_vm7, %v11430_v26, %v1367_v13  ;;  %v1369_v11 = vrot.slane %v1367_v13, 4  ;;  %v1388_v26 = vrot.slane %v14221_v24, 5  ;;  %v1391_v13 = vrot.slane %v14229_v37, 5 }
  0x59   : > { %v11448_v37 = vcombine.low %v14408_v2, %v14422_v30  ;;  %v1395_v45 = vrot.slane %v14241_v63, 5  ;;  %v1398_v50 = vrot.slane %v14244_v1, 5  ;;  %v1402_v62 = vrot.slane %v14260_v42, 5 }
  0x5a   : > { %v14414_v4 = vsel %vm14296_vm7, %v1369_v11, %v1370_v41  ;;  %v14436_v40 = vsel %vm14296_vm7, %v11433_v35, %v1388_v26  ;;  %v1390_v41 = vrot.slane %v1388_v26, 4  ;;  %v1385_v11 = vsel %vm14296_vm7, %v1383_v9, %v1384_v46  ;;  %v308_v9 = vld [vmem:[%s14043_s10 + $0xa8] sm:$0xf] }
  0x5b   : > { %v11447_v23 = vcombine.low %v14403_v14, %v14414_v4  ;;  %v11449_v6 = vcombine.low %v14426_v56, %v1385_v11  ;;  %v1405_v5 = vrot.slane %v14266_v59, 5  ;;  %v1396_v8 = vsel %vm14296_vm7, %v11434_v60, %v1395_v45  ;;  %v311_v60 = vld [vmem:[%s14043_s10 + $0xb8] sm:$0xf] }
  0x5c   : > { %v1392_v22 = vsel %vm14296_vm7, %v1390_v41, %v1391_v13  ;;  %v11397_v46 = vcombine.low %v14139_v33, %v14147_v39  ;;  %v11398_v35 = vcombine.low %v14160_v55, %v14166_v61  ;;  %v11399_v39 = vcombine.low %v14181_v21, %v14184_v28  ;;  %v304_v21 = vld [vmem:[%s14043_s10 + $0x90] sm:$0xf]  ;;  %v305_v28 = vld [vmem:[%s14043_s10 + $0x94] sm:$0xf] }
  0x5d   : > { %12761 = vmatmul.mubr.msk.bf16.gmra.mrb[4].mxu0 %vm766_vm4, %v11395_v25  ;;  %v11435_v25 = vrot.slane %v1283_v18, 9  ;;  %v11450_v0 = vcombine.low %v14436_v40, %v1392_v22  ;;  %v1404_v18 = vrot.slane %v1402_v62, 4  ;;  %v11400_v55 = vcombine.low %v14197_v48, %v14203_v54  ;;  %v310_v41 = vld [vmem:[%s14043_s10 + $0xb4] sm:$0xf] }
  0x5e   : > { %12764 = vmatprep.mubr.msk.bf16.mxu0 %vm766_vm4, %v11396_v32  ;;  %v1397_v32 = vrot.slane %v1395_v45, 4  ;;  %v11401_v61 = vcombine.low %v14218_v17, %v14221_v24  ;;  %v11402_v56 = vcombine.low %v14235_v49, %v14241_v63  ;;  %v11403_v48 = vcombine.low %v14249_v15, %v14260_v42  ;;  %v306_v17 = vld [vmem:[%s14043_s10 + $0x9c] sm:$0xf]  ;;  %v307_v24 = vld [vmem:[%s14043_s10 + $0xa0] sm:$0xf] }
  0x5f   : > { %v14458_v1 = vsel %vm14296_vm7, %v11435_v25, %v1402_v62  ;;  %v14466_v13 = vsel %vm14296_vm7, %v1404_v18, %v1405_v5  ;;  %v11404_v54 = vcombine.low %v304_v21, %v305_v28  ;;  %v309_v49 = vld [vmem:[%s14043_s10 + $0xac] sm:$0xf]  ;;  %v11405_v63 = vcombine.low %v306_v17, %v307_v24  ;;  %v11586_v42 = vld [vmem:[%s18562_s1 + $0x10] sm:$0xf]  ;;  %v1287_v25 = vld [vmem:[%s14043_s10 + $0xb4] sm:$0xe] }
  0x60   : > { %v1399_v59 = vsel %vm14296_vm7, %v1397_v32, %v1398_v50  ;;  %v11452_v33 = vcombine.low %v14458_v1, %v14466_v13  ;;  %v11406_v40 = vcombine.low %v308_v9, %v309_v49  ;;  %v11407_v11 = vcombine.low %v310_v41, %v311_v60  ;;  %v328_v50 = vld [vmem:[%s14043_s10 + $0xbc] sm:$0x1]  ;;  %v13910_v1 = vld [vmem:[%s14043_s10 + $0xc] sm:$0xff]   ;;  %v11626_v41 = vld [vmem:[%s14043_s10 + $0x60] sm:$0xe] }
  0x61   : > { %v11451_v26 = vcombine.low %v1396_v8, %v1399_v59  ;;  %v1893_v15 = vsel %vm815_vm0, %v14343_v31, 0  ;;  %v1409_v10 = vrot.slane %v305_v28, 5  ;;  %v11436_v43 = vrot.slane %v1284_v36, 9  ;;  %v13911_v18 = vld [vmem:[%s14043_s10 + $0x18] sm:$0xff]   ;;  %v13913_v13 = vld [vmem:[%s14043_s10 + $0x30] sm:$0xff]  }
  0x62   : > { %v1416_v31 = vrot.slane %v307_v24, 5  ;;  %v1423_v34 = vrot.slane %v309_v49, 5  ;;  %v1419_v53 = vrot.slane %v326_v16, 5  ;;  %v1426_v2 = vrot.slane %v327_v19, 5  ;;  %v13916_v24 = vld [vmem:[%s14043_s10 + $0x54] sm:$0xff]  }
  0x63   : > { %v1410_v38 = vsel %vm14296_vm7, %v11436_v43, %v1409_v10  ;;  %v1430_v30 = vrot.slane %v311_v60, 5  ;;  %v11439_v62 = vrot.slane %v1287_v25, 9  ;;  %v2619_v59 = vsel %vm815_vm0, %v11586_v42, 0  ;;  %v13918_v43 = vld [vmem:[%s14043_s10 + $0x6c] sm:$0xff]   ;;  %v14643_v19 = vld [vmem:[%s14043_s10 + $0x7c] sm:$0xf] }
  0x64   : > { %v1425_v14 = vrot.slane %v1423_v34, 4 }
  0x65   : > { %12765 = vmatmul.mubr.msk.bf16.gmra.mrb[8].mxu0 %vm766_vm4, %v11397_v46  ;;  %v1432_v5 = vrot.slane %v1430_v30, 4  ;;  %v1431_v8 = vsel %vm14296_vm7, %v11439_v62, %v1430_v30  ;;  %v13919_v30 = vld [vmem:[%s14043_s10 + $0x78] sm:$0xff]  }
  0x66   : > { %12768 = vmatprep.mubr.msk.bf16.mxu0 %vm766_vm4, %v11398_v35  ;;  %v1427_v45 = vsel %vm14296_vm7, %v1425_v14, %v1426_v2  ;;  %v13912_v35 = vld [vmem:[%s14043_s10 + $0x24] sm:$0xff]   ;;  %v14653_v14 = vld [vmem:[%s14043_s10 + $0x1c] sm:$0xf] }
  0x6d   : > { %12769 = vmatmul.mubr.msk.bf16.gmra.mrb[12].mxu0 %vm766_vm4, %v11399_v39  ;;  %v14590_v39 = vld [vmem:[%s14043_s10 + $0x4c] sm:$0xf] }
  0x6e   : > { %12772 = vmatprep.mubr.msk.bf16.mxu0 %vm766_vm4, %v11400_v55  ;;  %v14593_v55 = vld [vmem:[%s14043_s10 + $0x50] sm:$0x1] }
  0x6f   : > { %v2918_v21 = vrot.slane %v14593_v55, 5 }
  0x75   : > { %12773 = vmatmul.mubr.msk.bf16.gmra.mrb[16].mxu0 %vm766_vm4, %v11401_v61  ;;  %v11624_v61 = vld [vmem:[%s14043_s10 + $0x48] sm:$0xe] }
  0x76   : > { %12776 = vmatprep.mubr.msk.bf16.mxu0 %vm766_vm4, %v11402_v56  ;;  %v2915_v56 = vrot.slane %v14590_v39, 5  ;;  %v11640_v28 = vrot.slane %v11624_v61, 9  ;;  %v14685_v61 = vld [vmem:[%s14043_s10 + $0x94] sm:$0xf] }
  0x78   : > { %v14602_v17 = vsel %vm14296_vm7, %v11640_v28, %v2915_v56 }
  0x7d   : > { %12777 = vmatmul.mubr.msk.bf16.gmra.mrb[20].mxu0 %vm766_vm4, %v11403_v48  ;;  %v2917_v48 = vrot.slane %v2915_v56, 4  ;;  %v14688_v56 = vld [vmem:[%s14043_s10 + $0x98] sm:$0x1] }
  0x7e   : > { %12780 = vmatprep.mubr.msk.bf16.mxu0 %vm766_vm4, %v11404_v54  ;;  %v13915_v54 = vld [vmem:[%s14043_s10 + $0x48] sm:$0xff]  }
  0x7f   : > { %v14607_v9 = vsel %vm14296_vm7, %v2917_v48, %v2918_v21  ;;  %v11630_v48 = vld [vmem:[%s14043_s10 + $0x90] sm:$0xe] }
  0x85   : > { %12781 = vmatmul.mubr.msk.bf16.gmra.mrb[24].mxu0 %vm766_vm4, %v11405_v63  ;;  %v14613_v63 = vld [vmem:[%s14043_s10 + $0x64] sm:$0xf] }
  0x86   : > { %12784 = vmatprep.mubr.msk.bf16.mxu0 %vm766_vm4, %v11406_v40  ;;  %v14616_v40 = vld [vmem:[%s14043_s10 + $0x68] sm:$0x1]  ;;  %v2929_v60 = vrot.slane %v14613_v63, 5 }
  0x8d   : > { %12785 = vmatmul.mubr.msk.bf16.gmra.mrb[28].mxu0 %vm766_vm4, %v11407_v11  ;;  %v2932_v11 = vrot.slane %v14616_v40, 5 }
  0x8e   : > { %12790 = vmatprep.mubr.msk.bf16.mxu0 %vm766_vm4, %v11441_v52  ;;  %v1412_v52 = vrot.slane %v325_v12, 5  ;;  %v11538_v12 = vld [vmem:[%s14043_s10 + $0xc] sm:$0xf] }
  0x8f   : > { %v2140_v16 = vshll.u32 %v11538_v12, 16 }
  0x95   : > { %12791 = vmatmul.mubr.msk.bf16.vlgmr.msra.gmra.mrb[0].mxu0 %vm766_vm4, %v11442_v51  ;;  %v1411_v51 = vrot.slane %v1409_v10, 4  ;;  %v13917_v10 = vld [vmem:[%s14043_s10 + $0x60] sm:$0xff]  }
  0x96   : > { %12823 = vmatpush3.bf16.msra.mxu0 %v1893_v15  ;;  %12794 = vmatprep.mubr.msk.bf16.mxu0 %vm766_vm4, %v11443_v29  ;;  %v1285_v29 = vld [vmem:[%s14043_s10 + $0x9c] sm:$0xe]  ;;  %v11642_v15 = vrot.slane %v11626_v41, 9 }
  0x97   : > { %13869 = vmatprep.subr.msk.bf16.mxu0 %vm815_vm0, %v11586_v42  ;;  %v1413_v57 = vsel %vm14296_vm7, %v1411_v51, %v1412_v52  ;;  %v11437_v58 = vrot.slane %v1285_v29, 9  ;;  %v2931_v42 = vrot.slane %v2929_v60, 4  ;;  %v14630_v51 = vld [vmem:[%s14043_s10 + $0x10] sm:$0xf] }
  0x98   : > { %v11453_v3 = vcombine.low %v1410_v38, %v1413_v57  ;;  %v14626_v36 = vsel %vm14296_vm7, %v11642_v15, %v2929_v60  ;;  %v2137_v57 = vshrl.u32 %v11538_v12, 16  ;;  %v2146_v29 = vshll.u32 %v14630_v51, 16  ;;  %v13925_v38 = vld [vmem:[%s14043_s10 + $0xc0] sm:$0xff]  }
  0x99   : > { %v1417_v4 = vsel %vm14296_vm7, %v11437_v58, %v1416_v31  ;;  %v14634_v52 = vsel %vm14296_vm7, %v2931_v42, %v2932_v11  ;;  %v11646_v15 = vrot.slane %v11630_v48, 9  ;;  %v13921_v42 = vld [vmem:[%s14043_s10 + $0x90] sm:$0xff]  }
  0x9a   : > { %18742 = vst [vmem:[#allocation6_spill] sm:$0xff] %v14634_v52 }
  0x9d   : > { %12795 = vmatmul.mubr.msk.bf16.gmra.mrb[4].mxu0 %vm766_vm4, %v11444_v44  ;;  %v1286_v44 = vld [vmem:[%s14043_s10 + $0xa8] sm:$0xe] }
  0x9e   : > { %12798 = vmatprep.mubr.msk.bf16.mxu0 %vm766_vm4, %v11445_v47  ;;  %v1418_v47 = vrot.slane %v1416_v31, 4  ;;  %v11541_v31 = vld [vmem:[%s14043_s10 + $0x18] sm:$0xf] }
  0x9f   : > { %v2164_v58 = vshll.u32 %v11541_v31, 16 }
  0xa5   : > { %12799 = vmatmul.mubr.msk.bf16.gmra.mrb[8].mxu0 %vm766_vm4, %v11446_v7  ;;  %v11438_v7 = vrot.slane %v1286_v44, 9  ;;  %v14646_v44 = vld [vmem:[%s14043_s10 + $0x80] sm:$0x1] }
  0xa6   : > { %12802 = vmatprep.mubr.msk.bf16.mxu0 %vm766_vm4, %v11447_v23  ;;  %v1420_v23 = vsel %vm14296_vm7, %v1418_v47, %v1419_v53  ;;  %v11628_v47 = vld [vmem:[%s14043_s10 + $0x78] sm:$0xe]  ;;  %v2943_v53 = vrot.slane %v14643_v19, 5 }
  0xa7   : > { %v11644_v2 = vrot.slane %v11628_v47, 9 }
  0xad   : > { %12803 = vmatmul.mubr.msk.bf16.gmra.mrb[12].mxu0 %vm766_vm4, %v11448_v37  ;;  %v1424_v37 = vsel %vm14296_vm7, %v11438_v7, %v1423_v34  ;;  %v2150_v34 = vshrl.u32 %v14630_v51, 16  ;;  %v2946_v7 = vrot.slane %v14646_v44, 5 }
  0xae   : > { %12806 = vmatprep.mubr.msk.bf16.mxu0 %vm766_vm4, %v11449_v6  ;;  %v11454_v6 = vcombine.low %v1417_v4, %v1420_v23  ;;  %v11455_v22 = vcombine.low %v1424_v37, %v1427_v45  ;;  %v2139_v4 = vrot.slane %v2137_v57, 4  ;;  %v2945_v23 = vrot.slane %v2943_v53, 4  ;;  %v14657_v37 = vld [vmem:[%s14043_s10 + $0x14] sm:$0x1] }
  0xaf   : > { %v2142_v45 = vrot.slane %v2140_v16, 5  ;;  %v2152_v25 = vrot.slane %v2150_v34, 4  ;;  %v11547_v16 = vld [vmem:[%s14043_s10 + $0x30] sm:$0xf] }
  0xb5   : > { %12807 = vmatmul.mubr.msk.bf16.gmra.mrb[16].mxu0 %vm766_vm4, %v11450_v0  ;;  %v1433_v0 = vrot.slane %v328_v50, 5  ;;  %v14659_v50 = vrot.slane %v2146_v29, 5  ;;  %v14702_v29 = vld [vmem:[%s14043_s10 + $0x34] sm:$0xf] }
  0xb6   : > { %12810 = vmatprep.mubr.msk.bf16.mxu0 %vm766_vm4, %v11451_v26  ;;  %v14580_v26 = vld [vmem:[%s18562_s1 + $0x14] sm:$0xf] }
  0xb7   : > { %v1434_v32 = vsel %vm14296_vm7, %v1432_v5, %v1433_v0  ;;  %v2166_v5 = vrot.slane %v2164_v58, 5  ;;  %v2170_v0 = vshll.u32 %v14653_v14, 16 }
  0xb8   : > { %v11456_v46 = vcombine.low %v1431_v8, %v1434_v32  ;;  %v14669_v8 = vsel %vm14296_vm7, %v2945_v23, %v2946_v7  ;;  %v2174_v32 = vshrl.u32 %v14653_v14, 16 }
  0xb9   : > { %18744 = vst [vmem:[#allocation8_spill] sm:$0xff] %v14669_v8  ;;  %v14691_v28 = vrot.slane %v2170_v0, 5 }
  0xba   : > { %v2176_v41 = vrot.slane %v2174_v32, 4  ;;  %v2222_v32 = vshrl.u32 %v14702_v29, 16 }
  0xbd   : > { %12811 = vmatmul.mubr.msk.bf16.gmra.mrb[20].mxu0 %vm766_vm4, %v11452_v33  ;;  %v13914_v33 = vld [vmem:[%s14043_s10 + $0x3c] sm:$0xff]  }
  0xbe   : > { %12814 = vmatprep.mubr.msk.bf16.mxu0 %vm766_vm4, %v11453_v3  ;;  %v2161_v3 = vshrl.u32 %v11541_v31, 16 }
  0xc0   : > { %v2163_v62 = vrot.slane %v2161_v3, 4  ;;  %v13922_v3 = vld [vmem:[%s14043_s10 + $0x9c] sm:$0xff]  }
  0xc2   : > { %v2167_v21 = vor.u32 %v2166_v5, %v2163_v62  ;;  %v2212_v62 = vshll.u32 %v11547_v16, 16  ;;  %v2218_v5 = vshll.u32 %v14702_v29, 16 }
  0xc5   : > { %12815 = vmatmul.mubr.msk.bf16.gmra.mrb[24].mxu0 %vm766_vm4, %v11454_v6  ;;  %v14663_v6 = vsel %vm14296_vm7, %v11644_v2, %v2943_v53  ;;  %v14709_v53 = vrot.slane %v2167_v21, 4  ;;  %v2177_v2 = vor.u32 %v2176_v41, %v14691_v28  ;;  %v11632_v21 = vld [vmem:[%s14043_s10 + $0xa8] sm:$0xe] }
  0xc6   : > { %12818 = vmatprep.mubr.msk.bf16.mxu0 %vm766_vm4, %v11455_v22  ;;  %18743 = vst [vmem:[#allocation7_spill] sm:$0xff] %v14663_v6  ;;  %v13920_v22 = vld [vmem:[%s14043_s10 + $0x84] sm:$0xff]  }
  0xc7   : > { %v14743_v41 = vrot.slane %v2177_v2, 4  ;;  %v13924_v2 = vld [vmem:[%s14043_s10 + $0xb4] sm:$0xff]  }
  0xcd   : > { %12819 = vmatmul.mubr.msk.bf16.gmra.mrb[28].mxu0 %vm766_vm4, %v11456_v46 }
  0xce   : > { %12824 = vmatprep.mubr.msk.bf16.mxu0 %vm766_vm4, %v13910_v1  ;;  %v2156_v1 = vshll.u32 %v14657_v37, 16 }
  0xd0   : > { %v2158_v47 = vrot.slane %v2156_v1, 5  ;;  %v14727_v1 = vld [vmem:[%s14043_s10 + $0xac] sm:$0xf] }
  0xd1   : > { %v2971_v48 = vrot.slane %v14727_v1, 5 }
  0xd5   : > { %12825 = vmatmul.mubr.msk.bf16.vlgmr.msra.gmra.mrb[0].mxu0 %vm766_vm4, %v13911_v18  ;;  %v14676_v18 = vld [vmem:[%s14043_s10 + $0x20] sm:$0x1] }
  0xd6   : > { %12857 = vmatpush3.bf16.msra.mxu0 %v2619_v59  ;;  %12828 = vmatprep.mubr.msk.bf16.mxu0 %vm766_vm4, %v13912_v35  ;;  %v11544_v35 = vld [vmem:[%s14043_s10 + $0x24] sm:$0xf]  ;;  %v2143_v59 = vor.u32 %v2142_v45, %v2139_v4  ;;  %v14719_v45 = vld [vmem:[%s14043_s10 + $0x2c] sm:$0x1] }
  0xd7   : > { %13870 = vmatprep.subr.msk.bf16.mxu0 %vm815_vm0, %v14580_v26  ;;  %v2185_v60 = vshrl.u32 %v11544_v35, 16  ;;  %v2188_v11 = vshll.u32 %v11544_v35, 16  ;;  %v14730_v35 = vld [vmem:[%s14043_s10 + $0xb0] sm:$0x1] }
  0xd8   : > { %v2144_v31 = vrot.slane %v2143_v59, 4 }
  0xd9   : > { %v2187_v4 = vrot.slane %v2185_v60, 4  ;;  %v2190_v23 = vrot.slane %v2188_v11, 5  ;;  %v11550_v11 = vld [vmem:[%s14043_s10 + $0x3c] sm:$0xf] }
  0xda   : > { %v2149_v59 = vsel %vm14078_vm3, %v2144_v31, %v14659_v50  ;;  %v13923_v31 = vld [vmem:[%s14043_s10 + $0xa8] sm:$0xff]  }
  0xdb   : > { %v2191_v60 = vor.u32 %v2190_v23, %v2187_v4  ;;  %v2233_v23 = vshrl.u32 %v11550_v11, 16 }
  0xdd   : > { %12829 = vmatmul.mubr.msk.bf16.gmra.mrb[4].mxu0 %vm766_vm4, %v13913_v13  ;;  %v2153_v13 = vor.u32 %v2152_v25, %v14659_v50  ;;  %v2204_v50 = vshll.u32 %v14719_v45, 16 }
  0xde   : > { %12832 = vmatprep.mubr.msk.bf16.mxu0 %vm766_vm4, %v13914_v33  ;;  %v14682_v33 = vld [vmem:[%s14043_s10 + $0x28] sm:$0xf] }
  0xdf   : > { %v2194_v12 = vshll.u32 %v14682_v33, 16  ;;  %v2198_v57 = vshrl.u32 %v14682_v33, 16  ;;  %v2154_v58 = vrot.slane %v2153_v13, 4 }
  0xe1   : > { %v14721_v25 = vrot.slane %v2194_v12, 5  ;;  %v2200_v0 = vrot.slane %v2198_v57, 4  ;;  %v14748_v12 = vld [vmem:[%s14043_s10 + $0x40] sm:$0xf] }
  0xe3   : > { %v2201_v57 = vor.u32 %v2200_v0, %v14721_v25  ;;  %v2242_v0 = vshll.u32 %v14748_v12, 16 }
  0xe5   : > { %12833 = vmatmul.mubr.msk.bf16.gmra.mrb[8].mxu0 %vm766_vm4, %v13915_v54  ;;  %v2957_v54 = vrot.slane %v14685_v61, 5 }
  0xe6   : > { %12836 = vmatprep.mubr.msk.bf16.mxu0 %vm766_vm4, %v13916_v24  ;;  %v2960_v24 = vrot.slane %v14688_v56, 5 }
  0xe7   : > { %v14706_v34 = vsel %vm14296_vm7, %v11646_v15, %v2957_v54  ;;  %v11648_v15 = vrot.slane %v11632_v21, 9 }
  0xe8   : > { %18745 = vst [vmem:[#allocation9_spill] sm:$0xff] %v14706_v34 }
  0xed   : > { %12837 = vmatmul.mubr.msk.bf16.gmra.mrb[12].mxu0 %vm766_vm4, %v13917_v10  ;;  %v2180_v10 = vshll.u32 %v14676_v18, 16 }
  0xee   : > { %12840 = vmatprep.mubr.msk.bf16.mxu0 %vm766_vm4, %v13918_v43  ;;  %v2959_v43 = vrot.slane %v2957_v54, 4  ;;  %v2974_v54 = vrot.slane %v14730_v35, 5 }
  0xef   : > { %v14736_v13 = vrot.slane %v2180_v10, 5  ;;  %v2214_v10 = vrot.slane %v2212_v62, 5  ;;  %v11553_v62 = vld [vmem:[%s14043_s10 + $0x48] sm:$0xf] }
  0xf0   : > { %v14713_v7 = vsel %vm14296_vm7, %v2959_v43, %v2960_v24  ;;  %v2159_v24 = vsel %vm14078_vm3, %v2154_v58, %v2158_v47  ;;  %v2973_v43 = vrot.slane %v2971_v48, 4  ;;  %v2224_v58 = vrot.slane %v2222_v32, 4 }
  0xf1   : > { %18746 = vst [vmem:[#allocation10_spill] sm:$0xff] %v14713_v7  ;;  %v14759_v47 = vsel %vm14296_vm7, %v11648_v15, %v2971_v48  ;;  %v11587_v4 = vcombine.low %v2149_v59, %v2159_v24  ;;  %v2246_v32 = vshrl.u32 %v14748_v12, 16  ;;  %v2192_v48 = vrot.slane %v2191_v60, 4  ;;  %v14786_v60 = vld [vmem:[%s14043_s10 + $0xc8] sm:$0x1] }
  0xf2   : > { %18747 = vst [vmem:[#allocation11_spill] sm:$0xff] %v14759_v47  ;;  %v14765_v21 = vsel %vm14296_vm7, %v2973_v43, %v2974_v54  ;;  %v2206_v24 = vrot.slane %v2204_v50, 5  ;;  %v2257_v43 = vshrl.u32 %v11553_v62, 16  ;;  %v2235_v50 = vrot.slane %v2233_v23, 4 }
  0xf3   : > { %18748 = vst [vmem:[#allocation12_spill] sm:$0xff] %v14765_v21  ;;  %v2260_v59 = vshll.u32 %v11553_v62, 16  ;;  %v2266_v47 = vshll.u32 %v14590_v39, 16  ;;  %v14811_v62 = vld [vmem:[%s14043_s10 + $0x58] sm:$0xf] }
  0xf5   : > { %12841 = vmatmul.mubr.msk.bf16.gmra.mrb[16].mxu0 %vm766_vm4, %v13919_v30  ;;  %v14783_v30 = vld [vmem:[%s14043_s10 + $0xc4] sm:$0xf] }
  0xf6   : > { %12844 = vmatprep.mubr.msk.bf16.mxu0 %vm766_vm4, %v13920_v22  ;;  %v2209_v22 = vshrl.u32 %v11547_v16, 16  ;;  %v14753_v16 = vld [vmem:[%s14043_s10 + $0x38] sm:$0x1] }
  0xf7   : > { %v2228_v54 = vshll.u32 %v14753_v16, 16 }
  0xfd   : > { %12845 = vmatmul.mubr.msk.bf16.gmra.mrb[20].mxu0 %vm766_vm4, %v13921_v42  ;;  %v2211_v42 = vrot.slane %v2209_v22, 4  ;;  %v2236_v22 = vshll.u32 %v11550_v11, 16 }
  0xfe   : > { %12848 = vmatprep.mubr.msk.bf16.mxu0 %vm766_vm4, %v13922_v3  ;;  %v14755_v3 = vrot.slane %v2218_v5, 5  ;;  %v2173_v5 = vsel %vm14078_vm3, %v14709_v53, %v14691_v28  ;;  %v2183_v28 = vsel %vm14078_vm3, %v14743_v41, %v14736_v13  ;;  %v2202_v53 = vrot.slane %v2201_v57, 4  ;;  %v14793_v41 = vld [vmem:[%s14043_s10 + $0x44] sm:$0x1] }
  0xff   : > { %v2215_v11 = vor.u32 %v2214_v10, %v2211_v42  ;;  %v2238_v42 = vrot.slane %v2236_v22, 5  ;;  %v11634_v10 = vld [vmem:[%s14043_s10 + $0xc0] sm:$0xe]  ;;  %v2988_v13 = vrot.slane %v14786_v60, 5  ;;  %v14795_v57 = vrot.slane %v2242_v0, 5 }
 0x100   : > { %v2225_v15 = vor.u32 %v2224_v58, %v14755_v3  ;;  %v2248_v58 = vrot.slane %v2246_v32, 4  ;;  %v11650_v46 = vrot.slane %v11634_v10, 9  ;;  %v14803_v22 = vrot.slane %v2228_v54, 5  ;;  %v11556_v32 = vld [vmem:[%s14043_s10 + $0x54] sm:$0xf] }
 0x101   : > { %v14801_v23 = vrot.slane %v2215_v11, 4  ;;  %v2207_v21 = vsel %vm14078_vm3, %v2202_v53, %v2206_v24  ;;  %v2270_v0 = vshrl.u32 %v14590_v39, 16  ;;  %v2252_v11 = vshll.u32 %v14793_v41, 16 }
 0x102   : > { %v2249_v24 = vor.u32 %v2248_v58, %v14795_v57  ;;  %v2259_v53 = vrot.slane %v2257_v43, 4  ;;  %v2262_v39 = vrot.slane %v2260_v59, 5  ;;  %v14832_v43 = vrot.slane %v2266_v47, 5 }
 0x103   : > { %v2272_v59 = vrot.slane %v2270_v0, 4  ;;  %v2221_v58 = vsel %vm14078_vm3, %v14801_v23, %v14755_v3  ;;  %v14852_v23 = vld [vmem:[%s14043_s10 + $0x70] sm:$0xf] }
 0x104   : > { %v2250_v0 = vrot.slane %v2249_v24, 4  ;;  %v2318_v24 = vshrl.u32 %v14613_v63, 16 }
 0x105   : > { %12849 = vmatmul.mubr.msk.bf16.gmra.mrb[24].mxu0 %vm766_vm4, %v13923_v31  ;;  %v2985_v31 = vrot.slane %v14783_v30, 5 }
 0x106   : > { %12852 = vmatprep.mubr.msk.bf16.mxu0 %vm766_vm4, %v13924_v2  ;;  %v2197_v2 = vsel %vm14078_vm3, %v2192_v48, %v14721_v25  ;;  %v14817_v25 = vrot.slane %v2225_v15, 4  ;;  %v2239_v48 = vor.u32 %v2238_v42, %v2235_v50  ;;  %v2290_v15 = vshll.u32 %v14811_v62, 16 }
 0x107   : > { %v2987_v49 = vrot.slane %v2985_v31, 4  ;;  %v14815_v10 = vsel %vm14296_vm7, %v11650_v46, %v2985_v31  ;;  %v2281_v46 = vshrl.u32 %v11556_v32, 16  ;;  %v2284_v31 = vshll.u32 %v11556_v32, 16 }
 0x108   : > { %18749 = vst [vmem:[#allocation13_spill] sm:$0xff] %v14815_v10  ;;  %v2294_v50 = vshrl.u32 %v14811_v62, 16  ;;  %v3089_v42 = vsel %vm815_vm0, %v14580_v26, 0  ;;  %v11559_v26 = vld [vmem:[%s14043_s10 + $0x60] sm:$0xf]  ;;  %v2240_v47 = vrot.slane %v2239_v48, 4  ;;  %v2263_v32 = vor.u32 %v2262_v39, %v2259_v53 }
 0x109   : > { %v14822_v54 = vsel %vm14296_vm7, %v2987_v49, %v2988_v13  ;;  %v11588_v49 = vcombine.low %v2173_v5, %v2183_v28  ;;  %v11589_v13 = vcombine.low %v2197_v2, %v2207_v21  ;;  %v2254_v5 = vrot.slane %v2252_v11, 5  ;;  %v14844_v28 = vld [vmem:[%s14043_s10 + $0x5c] sm:$0x1]  ;;  %v11562_v21 = vld [vmem:[%s14043_s10 + $0x6c] sm:$0xf] }
 0x10a   : > { %18750 = vst [vmem:[#allocation14_spill] sm:$0xff] %v14822_v54  ;;  %v2283_v2 = vrot.slane %v2281_v46, 4  ;;  %v2286_v7 = vrot.slane %v2284_v31, 5  ;;  %v14849_v54 = vrot.slane %v2290_v15, 5  ;;  %v2296_v3 = vrot.slane %v2294_v50, 4 }
 0x10b   : > { %v2273_v10 = vor.u32 %v2272_v59, %v14832_v43  ;;  %v2308_v11 = vshll.u32 %v11559_v26, 16  ;;  %v2314_v48 = vshll.u32 %v14613_v63, 16  ;;  %v2332_v53 = vshll.u32 %v11562_v21, 16  ;;  %v11565_v63 = vld [vmem:[%s14043_s10 + $0x78] sm:$0xf] }
 0x10c   : > { %v2245_v39 = vsel %vm14078_vm3, %v2240_v47, %v14795_v57  ;;  %v2255_v46 = vsel %vm14078_vm3, %v2250_v0, %v2254_v5  ;;  %v2338_v31 = vshll.u32 %v14852_v23, 16  ;;  %v2342_v15 = vshrl.u32 %v14852_v23, 16 }
 0x10d   : > { %12853 = vmatmul.mubr.msk.bf16.gmra.mrb[28].mxu0 %vm766_vm4, %v13925_v38  ;;  %v2231_v38 = vsel %vm14078_vm3, %v14817_v25, %v14803_v22  ;;  %v2300_v22 = vshll.u32 %v14844_v28, 16  ;;  %v2305_v25 = vshrl.u32 %v11559_v26, 16  ;;  %v2264_v50 = vrot.slane %v2263_v32, 4 }
 0x10e   : > { %12858 = vmatprep.mubr.msk.bf16.mxu0 %vm766_vm4, %v11587_v4  ;;  %v2276_v4 = vshll.u32 %v14593_v55, 16  ;;  %v2329_v55 = vshrl.u32 %v11562_v21, 16  ;;  %v2287_v26 = vor.u32 %v2286_v7, %v2283_v2  ;;  %v2297_v34 = vor.u32 %v2296_v3, %v14849_v54  ;;  %v14870_v21 = vld [vmem:[%s18562_s1 + $0x18] sm:$0xf]  ;;  %v14877_v3 = vld [vmem:[%s14043_s10 + $0x74] sm:$0x1] }
 0x10f   : > { %v2274_v57 = vrot.slane %v2273_v10, 4  ;;  %v2302_v5 = vrot.slane %v2300_v22, 5  ;;  %v2307_v47 = vrot.slane %v2305_v25, 4  ;;  %v2310_v0 = vrot.slane %v2308_v11, 5 }
 0x110   : > { %v2278_v59 = vrot.slane %v2276_v4, 5  ;;  %v14874_v32 = vrot.slane %v2314_v48, 5  ;;  %v2320_v7 = vrot.slane %v2318_v24, 4  ;;  %v2331_v4 = vrot.slane %v2329_v55, 4 }
 0x111   : > { %v2334_v2 = vrot.slane %v2332_v53, 5  ;;  %v14879_v8 = vrot.slane %v2338_v31, 5  ;;  %v2344_v6 = vrot.slane %v2342_v15, 4  ;;  %v2353_v52 = vshrl.u32 %v11565_v63, 16  ;;  %v11568_v15 = vld [vmem:[%s14043_s10 + $0x84] sm:$0xf] }
 0x112   : > { %v2356_v10 = vshll.u32 %v11565_v63, 16  ;;  %v2366_v22 = vshrl.u32 %v14643_v19, 16  ;;  %v11590_v25 = vcombine.low %v2221_v58, %v2231_v38  ;;  %v11591_v11 = vcombine.low %v2245_v39, %v2255_v46 }
 0x113   : > { %v2269_v48 = vsel %vm14078_vm3, %v2264_v50, %v14832_v43  ;;  %v2279_v24 = vsel %vm14078_vm3, %v2274_v57, %v2278_v59  ;;  %v2311_v55 = vor.u32 %v2310_v0, %v2307_v47  ;;  %v2321_v53 = vor.u32 %v2320_v7, %v14874_v32 }
 0x114   : > { %v2324_v31 = vshll.u32 %v14616_v40, 16  ;;  %v2345_v58 = vor.u32 %v2344_v6, %v14879_v8  ;;  %v2355_v38 = vrot.slane %v2353_v52, 4  ;;  %v2358_v39 = vrot.slane %v2356_v10, 5  ;;  %v11571_v10 = vld [vmem:[%s14043_s10 + $0x90] sm:$0xf] }
 0x115   : > { %12859 = vmatmul.mubr.msk.bf16.vlgmr.msra.gmra.mrb[0].mxu0 %vm766_vm4, %v11588_v49  ;;  %v2288_v49 = vrot.slane %v2287_v26, 4  ;;  %v14895_v26 = vld [vmem:[%s14043_s10 + $0x88] sm:$0xf]  ;;  %v2368_v40 = vrot.slane %v2366_v22, 4  ;;  %v2377_v59 = vshrl.u32 %v11568_v15, 16  ;;  %v2380_v63 = vshll.u32 %v11568_v15, 16 }
 0x116   : > { %12891 = vmatpush3.bf16.msra.mxu0 %v3089_v42  ;;  %12862 = vmatprep.mubr.msk.bf16.mxu0 %vm766_vm4, %v11589_v13  ;;  %v2298_v42 = vrot.slane %v2297_v34, 4  ;;  %v2362_v13 = vshll.u32 %v14643_v19, 16  ;;  %v2348_v34 = vshll.u32 %v14877_v3, 16  ;;  %v2335_v19 = vor.u32 %v2334_v2, %v2331_v4  ;;  %v14913_v22 = vld [vmem:[%s14043_s10 + $0x8c] sm:$0x1] }
 0x117   : > { %13871 = vmatprep.subr.msk.bf16.mxu0 %vm815_vm0, %v14870_v21  ;;  %v2293_v43 = vsel %vm14078_vm3, %v2288_v49, %v14849_v54  ;;  %v2386_v6 = vshll.u32 %v14895_v26, 16  ;;  %v2390_v52 = vshrl.u32 %v14895_v26, 16  ;;  %v2312_v57 = vrot.slane %v2311_v55, 4 }
 0x118   : > { %v2303_v46 = vsel %vm14078_vm3, %v2298_v42, %v2302_v5  ;;  %v14903_v50 = vrot.slane %v2362_v13, 5  ;;  %v2322_v54 = vrot.slane %v2321_v53, 4  ;;  %v2326_v47 = vrot.slane %v2324_v31, 5 }
 0x119   : > { %v2350_v0 = vrot.slane %v2348_v34, 5  ;;  %v2336_v5 = vrot.slane %v2335_v19, 4  ;;  %v2346_v7 = vrot.slane %v2345_v58, 4  ;;  %v2359_v4 = vor.u32 %v2358_v39, %v2355_v38 }
 0x11a   : > { %v2372_v2 = vshll.u32 %v14646_v44, 16  ;;  %v11592_v49 = vcombine.low %v2269_v48, %v2279_v24  ;;  %v11593_v42 = vcombine.low %v2293_v43, %v2303_v46  ;;  %v2369_v13 = vor.u32 %v2368_v40, %v14903_v50  ;;  %v11574_v48 = vld [vmem:[%s14043_s10 + $0x9c] sm:$0xf]  ;;  %v14924_v24 = vld [vmem:[%s14043_s10 + $0xa0] sm:$0xf] }
 0x11b   : > { %v14915_v55 = vrot.slane %v2386_v6, 5  ;;  %v2392_v53 = vrot.slane %v2390_v52, 4  ;;  %v2317_v31 = vsel %vm14078_vm3, %v2312_v57, %v14874_v32  ;;  %v2327_v34 = vsel %vm14078_vm3, %v2322_v54, %v2326_v47 }
 0x11c   : > { %v2401_v44 = vshrl.u32 %v11571_v10, 16  ;;  %v2404_v15 = vshll.u32 %v11571_v10, 16  ;;  %v2341_v19 = vsel %vm14078_vm3, %v2336_v5, %v14879_v8  ;;  %v2351_v58 = vsel %vm14078_vm3, %v2346_v7, %v2350_v0 }
 0x11d   : > { %12863 = vmatmul.mubr.msk.bf16.gmra.mrb[4].mxu0 %vm766_vm4, %v11590_v25  ;;  %v2379_v25 = vrot.slane %v2377_v59, 4  ;;  %v2360_v38 = vrot.slane %v2359_v4, 4  ;;  %v2374_v39 = vrot.slane %v2372_v2, 5  ;;  %v2370_v43 = vrot.slane %v2369_v13, 4 }
 0x11e   : > { %12866 = vmatprep.mubr.msk.bf16.mxu0 %vm766_vm4, %v11591_v11  ;;  %v2382_v11 = vrot.slane %v2380_v63, 5  ;;  %v2396_v32 = vshll.u32 %v14913_v22, 16  ;;  %v2410_v46 = vshll.u32 %v14685_v61, 16  ;;  %v2414_v40 = vshrl.u32 %v14685_v61, 16 }
 0x11f   : > { %v2425_v59 = vshrl.u32 %v11574_v48, 16  ;;  %v2428_v63 = vshll.u32 %v11574_v48, 16  ;;  %v2434_v6 = vshll.u32 %v14924_v24, 16  ;;  %v2438_v8 = vshrl.u32 %v14924_v24, 16 }
 0x120   : > { %v2383_v52 = vor.u32 %v2382_v11, %v2379_v25  ;;  %v2393_v57 = vor.u32 %v2392_v53, %v14915_v55  ;;  %v2403_v54 = vrot.slane %v2401_v44, 4  ;;  %v2406_v47 = vrot.slane %v2404_v15, 5  ;;  %v11577_v53 = vld [vmem:[%s14043_s10 + $0xa8] sm:$0xf] }
 0x121   : > { %v11594_v0 = vcombine.low %v2317_v31, %v2327_v34  ;;  %v11595_v5 = vcombine.low %v2341_v19, %v2351_v58  ;;  %v2365_v61 = vsel %vm14078_vm3, %v2360_v38, %v14903_v50  ;;  %v2375_v7 = vsel %vm14078_vm3, %v2370_v43, %v2374_v39  ;;  %v11580_v39 = vld [vmem:[%s14043_s10 + $0xb4] sm:$0xf]  ;;  %v14955_v43 = vld [vmem:[%s14043_s10 + $0xb8] sm:$0xf] }
 0x122   : > { %v2398_v4 = vrot.slane %v2396_v32, 5  ;;  %v14944_v2 = vrot.slane %v2410_v46, 5  ;;  %v2416_v10 = vrot.slane %v2414_v40, 4  ;;  %v2430_v13 = vrot.slane %v2428_v63, 5 }
 0x123   : > { %v2436_v25 = vrot.slane %v2434_v6, 5  ;;  %v2440_v11 = vrot.slane %v2438_v8, 4  ;;  %v2384_v31 = vrot.slane %v2383_v52, 4  ;;  %v2394_v34 = vrot.slane %v2393_v57, 4 }
 0x124   : > { %v2407_v44 = vor.u32 %v2406_v47, %v2403_v54  ;;  %v2420_v50 = vshll.u32 %v14688_v56, 16  ;;  %v11596_v48 = vcombine.low %v2365_v61, %v2375_v7  ;;  %v2417_v19 = vor.u32 %v2416_v10, %v14944_v2 }
 0x125   : > { %12867 = vmatmul.mubr.msk.bf16.gmra.mrb[8].mxu0 %vm766_vm4, %v11592_v49  ;;  %v14947_v49 = vld [vmem:[%s14043_s10 + $0xa4] sm:$0x1]  ;;  %v2449_v58 = vshrl.u32 %v11577_v53, 16  ;;  %v2452_v38 = vshll.u32 %v11577_v53, 16  ;;  %v2441_v46 = vor.u32 %v2440_v11, %v2436_v25  ;;  %v2458_v40 = vshll.u32 %v14727_v1, 16 }
 0x126   : > { %12870 = vmatprep.mubr.msk.bf16.mxu0 %vm766_vm4, %v11593_v42  ;;  %v2427_v42 = vrot.slane %v2425_v59, 4  ;;  %v2444_v15 = vshll.u32 %v14947_v49, 16  ;;  %v2462_v59 = vshrl.u32 %v14727_v1, 16  ;;  %v2389_v56 = vsel %vm14078_vm3, %v2384_v31, %v14915_v55 }
 0x127   : > { %v2399_v63 = vsel %vm14078_vm3, %v2394_v34, %v2398_v4  ;;  %v2408_v6 = vrot.slane %v2407_v44, 4  ;;  %v2422_v8 = vrot.slane %v2420_v50, 5  ;;  %v2473_v52 = vshrl.u32 %v11580_v39, 16  ;;  %v11583_v34 = vld [vmem:[%s14043_s10 + $0xc0] sm:$0xf] }
 0x128   : > { %v2431_v32 = vor.u32 %v2430_v13, %v2427_v42  ;;  %v2476_v57 = vshll.u32 %v11580_v39, 16  ;;  %v2482_v54 = vshll.u32 %v14955_v43, 16  ;;  %v2486_v47 = vshrl.u32 %v14955_v43, 16 }
 0x129   : > { %v2446_v1 = vrot.slane %v2444_v15, 5  ;;  %v2454_v61 = vrot.slane %v2452_v38, 5  ;;  %v2442_v10 = vrot.slane %v2441_v46, 4  ;;  %v2460_v55 = vrot.slane %v2458_v40, 5 }
 0x12a   : > { %v2432_v7 = vrot.slane %v2431_v32, 4  ;;  %v2464_v42 = vrot.slane %v2462_v59, 4  ;;  %v11597_v13 = vcombine.low %v2389_v56, %v2399_v63  ;;  %v2475_v4 = vrot.slane %v2473_v52, 4 }
 0x12b   : > { %v2478_v11 = vrot.slane %v2476_v57, 5  ;;  %v2484_v53 = vrot.slane %v2482_v54, 5  ;;  %v2488_v31 = vrot.slane %v2486_v47, 4  ;;  %v2413_v44 = vsel %vm14078_vm3, %v2408_v6, %v14944_v2 }
 0x12c   : > { %v2447_v38 = vsel %vm14078_vm3, %v2442_v10, %v2446_v1  ;;  %v2465_v39 = vor.u32 %v2464_v42, %v2460_v55  ;;  %v2468_v32 = vshll.u32 %v14730_v35, 16  ;;  %v2497_v2 = vshrl.u32 %v11583_v34, 16 }
 0x12d   : > { %12871 = vmatmul.mubr.msk.bf16.gmra.mrb[12].mxu0 %vm766_vm4, %v11594_v0  ;;  %v2418_v0 = vrot.slane %v2417_v19, 4  ;;  %v14975_v19 = vld [vmem:[%s14043_s10 + $0xbc] sm:$0x1]  ;;  %v2500_v46 = vshll.u32 %v11583_v34, 16  ;;  %v2506_v40 = vshll.u32 %v14783_v30, 16  ;;  %v2510_v59 = vshrl.u32 %v14783_v30, 16 }
 0x12e   : > { %12874 = vmatprep.mubr.msk.bf16.mxu0 %vm766_vm4, %v11595_v5  ;;  %v2451_v5 = vrot.slane %v2449_v58, 4  ;;  %v2437_v58 = vsel %vm14078_vm3, %v2432_v7, %v2436_v25  ;;  %v2479_v56 = vor.u32 %v2478_v11, %v2475_v4  ;;  %v2489_v63 = vor.u32 %v2488_v31, %v2484_v53  ;;  %v11619_v34 = vld [vmem:[%s14043_s10 + $0xc] sm:$0xe] }
 0x12f   : > { %v2423_v50 = vsel %vm14078_vm3, %v2418_v0, %v2422_v8  ;;  %v11599_v25 = vcombine.low %v2437_v58, %v2447_v38  ;;  %v2466_v52 = vrot.slane %v2465_v39, 4  ;;  %v2470_v57 = vrot.slane %v2468_v32, 5 }
 0x130   : > { %v2455_v15 = vor.u32 %v2454_v61, %v2451_v5  ;;  %v11598_v6 = vcombine.low %v2413_v44, %v2423_v50  ;;  %v2499_v54 = vrot.slane %v2497_v2, 4  ;;  %v2502_v47 = vrot.slane %v2500_v46, 5 }
 0x131   : > { %v2508_v35 = vrot.slane %v2506_v40, 5  ;;  %v2512_v0 = vrot.slane %v2510_v59, 4  ;;  %v2480_v1 = vrot.slane %v2479_v56, 4  ;;  %v2490_v5 = vrot.slane %v2489_v63, 4  ;;  %v11620_v40 = vld [vmem:[%s14043_s10 + $0x18] sm:$0xe] }
 0x132   : > { %v2456_v8 = vrot.slane %v2455_v15, 4  ;;  %v2471_v7 = vsel %vm14078_vm3, %v2466_v52, %v2470_v57  ;;  %v2503_v10 = vor.u32 %v2502_v47, %v2499_v54  ;;  %v2880_v31 = vrot.slane %v14630_v51, 5  ;;  %v11621_v59 = vld [vmem:[%s14043_s10 + $0x24] sm:$0xe] }
 0x133   : > { %v2513_v42 = vor.u32 %v2512_v0, %v2508_v35  ;;  %v2485_v4 = vsel %vm14078_vm3, %v2480_v1, %v2484_v53  ;;  %v11635_v38 = vrot.slane %v11619_v34, 9  ;;  %v2887_v32 = vrot.slane %v14653_v14, 5  ;;  %v11623_v0 = vld [vmem:[%s14043_s10 + $0x3c] sm:$0xe] }
 0x134   : > { %v2461_v30 = vsel %vm14078_vm3, %v2456_v8, %v2460_v55  ;;  %v2504_v50 = vrot.slane %v2503_v10, 4  ;;  %v2882_v39 = vrot.slane %v2880_v31, 4  ;;  %v11637_v8 = vrot.slane %v11621_v59, 9 }
 0x135   : > { %12875 = vmatmul.mubr.msk.bf16.gmra.mrb[16].mxu0 %vm766_vm4, %v11596_v48  ;;  %v2492_v48 = vshll.u32 %v14975_v19, 16  ;;  %v11600_v55 = vcombine.low %v2461_v30, %v2471_v7  ;;  %v2514_v15 = vrot.slane %v2513_v42, 4  ;;  %v2881_v2 = vsel %vm14296_vm7, %v11635_v38, %v2880_v31  ;;  %v11625_v31 = vld [vmem:[%s14043_s10 + $0x54] sm:$0xe] }
 0x136   : > { %12878 = vmatprep.mubr.msk.bf16.mxu0 %vm766_vm4, %v11597_v13  ;;  %v2516_v13 = vshll.u32 %v14786_v60, 16  ;;  %v2883_v60 = vrot.slane %v14657_v37, 5  ;;  %v2509_v53 = vsel %vm14078_vm3, %v2504_v50, %v2508_v35  ;;  %v2894_v37 = vrot.slane %v14682_v33, 5  ;;  %v11622_v35 = vld [vmem:[%s14043_s10 + $0x30] sm:$0xe] }
 0x137   : > { %v2494_v61 = vrot.slane %v2492_v48, 5  ;;  %v11636_v48 = vrot.slane %v11620_v40, 9  ;;  %v2897_v52 = vrot.slane %v14719_v45, 5  ;;  %v2901_v54 = vrot.slane %v14702_v29, 5  ;;  %v11629_v40 = vld [vmem:[%s14043_s10 + $0x84] sm:$0xe] }
 0x138   : > { %v2518_v58 = vrot.slane %v2516_v13, 5  ;;  %v2884_v46 = vsel %vm14296_vm7, %v2882_v39, %v2883_v60  ;;  %v2896_v14 = vrot.slane %v2894_v37, 4  ;;  %v2895_v47 = vsel %vm14296_vm7, %v11637_v8, %v2894_v37  ;;  %v11627_v39 = vld [vmem:[%s14043_s10 + $0x6c] sm:$0xe] }
 0x139   : > { %v2495_v11 = vsel %vm14078_vm3, %v2490_v5, %v2494_v61  ;;  %v11652_v63 = vcombine.low %v2881_v2, %v2884_v46  ;;  %v2888_v33 = vsel %vm14296_vm7, %v11636_v48, %v2887_v32  ;;  %v2908_v45 = vrot.slane %v14748_v12, 5 }
 0x13a   : > { %v11601_v44 = vcombine.low %v2485_v4, %v2495_v11  ;;  %v2519_v51 = vsel %vm14078_vm3, %v2514_v15, %v2518_v58  ;;  %v11638_v61 = vrot.slane %v11622_v35, 9  ;;  %v2903_v30 = vrot.slane %v2901_v54, 4  ;;  %v15038_v4 = vld [vmem:[%s18562_s1 + $0x1c] sm:$0xf] }
 0x13b   : > { %v11602_v56 = vcombine.low %v2509_v53, %v2519_v51  ;;  %v2904_v7 = vrot.slane %v14753_v16, 5  ;;  %v3448_v29 = vsel %vm815_vm0, %v14870_v21, 0  ;;  %v11639_v10 = vrot.slane %v11623_v0, 9  ;;  %v18757_v0 = vld [vmem:[#allocation9_spill] sm:$0xff] }
 0x13c   : > { %v2910_v42 = vrot.slane %v2908_v45, 4  ;;  %v2911_v13 = vrot.slane %v14793_v41, 5  ;;  %v2902_v12 = vsel %vm14296_vm7, %v11638_v61, %v2901_v54  ;;  %v2922_v11 = vrot.slane %v14811_v62, 5 }
 0x13d   : > { %12879 = vmatmul.mubr.msk.bf16.gmra.mrb[20].mxu0 %vm766_vm4, %v11598_v6  ;;  %v2889_v6 = vrot.slane %v2887_v32, 4  ;;  %v2905_v16 = vsel %vm14296_vm7, %v2903_v30, %v2904_v7  ;;  %v2909_v41 = vsel %vm14296_vm7, %v11639_v10, %v2908_v45  ;;  %v2925_v15 = vrot.slane %v14844_v28, 5  ;;  %v18760_v7 = vld [vmem:[#allocation11_spill] sm:$0xff] }
 0x13e   : > { %12882 = vmatprep.mubr.msk.bf16.mxu0 %vm766_vm4, %v11599_v25  ;;  %v2890_v25 = vrot.slane %v14676_v18, 5  ;;  %v2898_v18 = vsel %vm14296_vm7, %v2896_v14, %v2897_v52  ;;  %v2912_v21 = vsel %vm14296_vm7, %v2910_v42, %v2911_v13  ;;  %v11655_v34 = vcombine.low %v2902_v12, %v2905_v16  ;;  %v18755_v52 = vld [vmem:[#allocation8_spill] sm:$0xff]  ;;  %v18763_v42 = vld [vmem:[#allocation13_spill] sm:$0xff]  ;;  %v18764_v13 = vld [vmem:[#allocation14_spill] sm:$0xff] }
 0x13f   : > { %v11654_v5 = vcombine.low %v2895_v47, %v2898_v18  ;;  %v2924_v50 = vrot.slane %v2922_v11, 4  ;;  %v2936_v38 = vrot.slane %v14852_v23, 5  ;;  %v11643_v53 = vrot.slane %v11627_v39, 9  ;;  %v11633_v47 = vld [vmem:[%s14043_s10 + $0xb4] sm:$0xe]  ;;  %v13927_v16 = vld [vmem:[%s14043_s10 + $0x24] sm:$0xff]  }
 0x140   : > { %v2891_v57 = vsel %vm14296_vm7, %v2889_v6, %v2890_v25  ;;  %v2939_v32 = vrot.slane %v14877_v3, 5  ;;  %v18751_v28 = vcombine.low %v14602_v17, %v14607_v9  ;;  %v2950_v46 = vrot.slane %v14895_v26, 5  ;;  %v18752_v17 = vld [vmem:[#allocation6_spill] sm:$0xff]  ;;  %v11631_v6 = vld [vmem:[%s14043_s10 + $0x9c] sm:$0xe] }
 0x141   : > { %v11653_v1 = vcombine.low %v2888_v33, %v2891_v57  ;;  %v2926_v62 = vsel %vm14296_vm7, %v2924_v50, %v2925_v15  ;;  %v2938_v51 = vrot.slane %v2936_v38, 4  ;;  %v2937_v2 = vsel %vm14296_vm7, %v11643_v53, %v2936_v38  ;;  %v15138_v50 = vld [vmem:[%s14043_s10 + $0x1c] sm:$0xf]  ;;  %v11752_v38 = vld [vmem:[%s14043_s10 + $0x24] sm:$0xf] }
 0x142   : > { %v11645_v59 = vrot.slane %v11629_v40, 9  ;;  %v2952_v3 = vrot.slane %v2950_v46, 4  ;;  %v18753_v9 = vcombine.low %v14626_v36, %v18752_v17  ;;  %v2964_v48 = vrot.slane %v14924_v24, 5  ;;  %v18754_v36 = vld [vmem:[#allocation7_spill] sm:$0xff]  ;;  %v15157_v40 = vld [vmem:[%s14043_s10 + $0x5c] sm:$0x1] }
 0x143   : > { %v2940_v23 = vsel %vm14296_vm7, %v2938_v51, %v2939_v32  ;;  %v11647_v8 = vrot.slane %v11631_v6, 9  ;;  %v2967_v14 = vrot.slane %v14947_v49, 5  ;;  %v18756_v33 = vcombine.low %v18754_v36, %v18755_v52  ;;  %v13931_v52 = vld [vmem:[%s14043_s10 + $0x54] sm:$0xff]  }
 0x144   : > { %v11660_v37 = vcombine.low %v2937_v2, %v2940_v23  ;;  %v2978_v54 = vrot.slane %v14955_v43, 5  ;;  %v11649_v18 = vrot.slane %v11633_v47, 9  ;;  %v2981_v45 = vrot.slane %v14975_v19, 5  ;;  %v13926_v19 = vld [vmem:[%s14043_s10 + $0x18] sm:$0xff]   ;;  %v13932_v47 = vld [vmem:[%s14043_s10 + $0x60] sm:$0xff]  }
 0x145   : > { %12883 = vmatmul.mubr.msk.bf16.gmra.mrb[24].mxu0 %vm766_vm4, %v11600_v55  ;;  %v11656_v55 = vcombine.low %v2909_v41, %v2912_v21  ;;  %v2965_v57 = vsel %vm14296_vm7, %v11647_v8, %v2964_v48  ;;  %v18765_v12 = vcombine.low %v18763_v42, %v18764_v13  ;;  %v13928_v41 = vld [vmem:[%s14043_s10 + $0x30] sm:$0xff]   ;;  %v4174_v21 = vsel %vm815_vm0, %v15038_v4, 0  ;;  %v15171_v8 = vld [vmem:[%s14043_s10 + $0xac] sm:$0xf] }
 0x146   : > { %12886 = vmatprep.mubr.msk.bf16.mxu0 %vm766_vm4, %v11601_v44  ;;  %v11641_v44 = vrot.slane %v11625_v31, 9  ;;  %v2980_v35 = vrot.slane %v2978_v54, 4  ;;  %v2979_v61 = vsel %vm14296_vm7, %v11649_v18, %v2978_v54  ;;  %v13942_v31 = vld [vmem:[%s14043_s10 + $0x9c] sm:$0xf]  ;;  %v3701_v23 = vshll.u32 %v15138_v50, 16 }
 0x147   : > { %v648_v15 = vshll.u32 %v13942_v31, 16  ;;  %v4473_v17 = vrot.slane %v15157_v40, 5 }
 0x148   : > { %v2923_v58 = vsel %vm14296_vm7, %v11641_v44, %v2922_v11  ;;  %v2982_v43 = vsel %vm14296_vm7, %v2980_v35, %v2981_v45  ;;  %v15127_v11 = vld [vmem:[%s18562_s1 + $0x20] sm:$0xf]  ;;  %v11749_v44 = vld [vmem:[%s14043_s10 + $0x18] sm:$0xf]  ;;  %v15186_v45 = vld [vmem:[%s14043_s10 + $0x34] sm:$0xf] }
 0x149   : > { %v11658_v60 = vcombine.low %v2923_v58, %v2926_v62  ;;  %v11666_v30 = vcombine.low %v2979_v61, %v2982_v43  ;;  %v15141_v58 = vld [vmem:[%s14043_s10 + $0xa0] sm:$0xf]  ;;  %v3692_v32 = vshrl.u32 %v11749_v44, 16  ;;  %v3695_v2 = vshll.u32 %v11749_v44, 16 }
 0x14a   : > { %v15166_v6 = vrot.slane %v648_v15, 5  ;;  %v3749_v13 = vshll.u32 %v15186_v45, 16 }
 0x14d   : > { %12887 = vmatmul.mubr.msk.bf16.gmra.mrb[28].mxu0 %vm766_vm4, %v11602_v56  ;;  %v2953_v56 = vrot.slane %v14913_v22, 5  ;;  %v2966_v22 = vrot.slane %v2964_v48, 4 }
 0x14e   : > { %12892 = vmatprep.mubr.msk.bf16.mxu0 %vm766_vm4, %v11652_v63  ;;  %v2951_v63 = vsel %vm14296_vm7, %v11645_v59, %v2950_v46  ;;  %v15154_v46 = vld [vmem:[%s14043_s10 + $0x58] sm:$0xf]  ;;  %v3716_v59 = vshrl.u32 %v11752_v38, 16 }
 0x14f   : > { %v2954_v26 = vsel %vm14296_vm7, %v2952_v3, %v2953_v56  ;;  %v2968_v24 = vsel %vm14296_vm7, %v2966_v22, %v2967_v14  ;;  %v11835_v3 = vld [vmem:[%s14043_s10 + $0x54] sm:$0xe]  ;;  %v4470_v56 = vrot.slane %v15154_v46, 5 }
 0x150   : > { %v11662_v25 = vcombine.low %v2951_v63, %v2954_v26  ;;  %v11664_v49 = vcombine.low %v2965_v57, %v2968_v24  ;;  %v11851_v48 = vrot.slane %v11835_v3, 9  ;;  %v3697_v57 = vrot.slane %v3695_v2, 5  ;;  %v11755_v24 = vld [vmem:[%s14043_s10 + $0x30] sm:$0xf] }
 0x151   : > { %v4472_v14 = vrot.slane %v4470_v56, 4  ;;  %v3718_v35 = vrot.slane %v3716_v59, 4  ;;  %v15221_v59 = vrot.slane %v3749_v13, 5 }
 0x152   : > { %v15180_v54 = vsel %vm14296_vm7, %v11851_v48, %v4470_v56 }
 0x155   : > { %12893 = vmatmul.mubr.msk.bf16.vlgmr.msra.gmra.mrb[0].mxu0 %vm766_vm4, %v11653_v1  ;;  %v18758_v1 = vld [vmem:[#allocation10_spill] sm:$0xff] }
 0x156   : > { %12925 = vmatpush3.bf16.msra.mxu0 %v3448_v29  ;;  %12896 = vmatprep.mubr.msk.bf16.mxu0 %vm766_vm4, %v11654_v5  ;;  %v18759_v5 = vcombine.low %v18757_v0, %v18758_v1  ;;  %v18761_v29 = vld [vmem:[#allocation12_spill] sm:$0xff]  ;;  %v15190_v0 = vsel %vm14296_vm7, %v4472_v14, %v4473_v17  ;;  %v15193_v1 = vld [vmem:[%s14043_s10 + $0x20] sm:$0x1]  ;;  %v13946_v17 = vld [vmem:[%s14043_s10 + $0xb4] sm:$0xf] }
 0x157   : > { %13872 = vmatprep.subr.msk.bf16.mxu0 %vm815_vm0, %v15038_v4  ;;  %v18762_v10 = vcombine.low %v18760_v7, %v18761_v29  ;;  %v13930_v4 = vld [vmem:[%s14043_s10 + $0x48] sm:$0xff]   ;;  %v3740_v29 = vshrl.u32 %v11755_v24, 16  ;;  %v15230_v14 = vld [vmem:[%s14043_s10 + $0x38] sm:$0x1] }
 0x158   : > { %v15200_v7 = vld [vmem:[%s14043_s10 + $0x2c] sm:$0x1] }
 0x15d   : > { %12897 = vmatmul.mubr.msk.bf16.gmra.mrb[4].mxu0 %vm766_vm4, %v11655_v34  ;;  %v645_v34 = vshrl.u32 %v13942_v31, 16  ;;  %v3711_v31 = vshll.u32 %v15193_v1, 16 }
 0x15e   : > { %12900 = vmatprep.mubr.msk.bf16.mxu0 %vm766_vm4, %v11656_v55  ;;  %v13929_v55 = vld [vmem:[%s14043_s10 + $0x3c] sm:$0xff]  }
 0x15f   : > { %v15145_v39 = vrot.slane %v645_v34, 4  ;;  %v11837_v34 = vld [vmem:[%s14043_s10 + $0x6c] sm:$0xe] }
 0x165   : > { %12901 = vmatmul.mubr.msk.bf16.gmra.mrb[8].mxu0 %vm766_vm4, %v18751_v28  ;;  %v15149_v28 = vld [vmem:[%s14043_s10 + $0x28] sm:$0xf] }
 0x166   : > { %12904 = vmatprep.mubr.msk.bf16.mxu0 %vm766_vm4, %v11658_v60  ;;  %v13944_v60 = vld [vmem:[%s14043_s10 + $0xa8] sm:$0xf]  ;;  %v3725_v63 = vshll.u32 %v15149_v28, 16  ;;  %v3729_v26 = vshrl.u32 %v15149_v28, 16 }
 0x167   : > { %v669_v53 = vshrl.u32 %v13944_v60, 16  ;;  %v672_v51 = vshll.u32 %v13944_v60, 16  ;;  %v11853_v60 = vrot.slane %v11837_v34, 9  ;;  %v15255_v34 = vld [vmem:[%s14043_s10 + $0x8c] sm:$0x1] }
 0x168   : > { %v15195_v61 = vrot.slane %v3725_v63, 5  ;;  %v3731_v43 = vrot.slane %v3729_v26, 4  ;;  %v696_v63 = vshll.u32 %v13946_v17, 16  ;;  %v13934_v26 = vld [vmem:[%s14043_s10 + $0x78] sm:$0xff]  }
 0x169   : > { %v15174_v36 = vrot.slane %v672_v51, 5 }
 0x16a   : > { %v3732_v15 = vor.u32 %v3731_v43, %v15195_v61  ;;  %v15242_v43 = vld [vmem:[%s14043_s10 + $0x44] sm:$0x1] }
 0x16d   : > { %12905 = vmatmul.mubr.msk.bf16.gmra.mrb[12].mxu0 %vm766_vm4, %v18753_v9  ;;  %v3719_v9 = vshll.u32 %v11752_v38, 16  ;;  %v3735_v38 = vshll.u32 %v15200_v7, 16 }
 0x16e   : > { %12908 = vmatprep.mubr.msk.bf16.mxu0 %vm766_vm4, %v11660_v37  ;;  %v3705_v37 = vshrl.u32 %v15138_v50, 16 }
 0x170   : > { %v3707_v18 = vrot.slane %v3705_v37, 4 }
 0x175   : > { %12909 = vmatmul.mubr.msk.bf16.gmra.mrb[16].mxu0 %vm766_vm4, %v18756_v33  ;;  %v3694_v33 = vrot.slane %v3692_v32, 4 }
 0x176   : > { %12912 = vmatprep.mubr.msk.bf16.mxu0 %vm766_vm4, %v11662_v25  ;;  %v15168_v25 = vrot.slane %v669_v53, 4  ;;  %v3742_v53 = vrot.slane %v3740_v29, 4 }
 0x177   : > { %v3698_v42 = vor.u32 %v3697_v57, %v3694_v33  ;;  %v3713_v57 = vrot.slane %v3711_v31, 5  ;;  %v15252_v31 = vld [vmem:[%s14043_s10 + $0x88] sm:$0xf] }
 0x179   : > { %v3699_v48 = vrot.slane %v3698_v42, 4  ;;  %v13937_v42 = vld [vmem:[%s14043_s10 + $0x9c] sm:$0xff]  }
 0x17d   : > { %12913 = vmatmul.mubr.msk.bf16.gmra.mrb[20].mxu0 %vm766_vm4, %v18759_v5  ;;  %v3721_v5 = vrot.slane %v3719_v9, 5  ;;  %v693_v9 = vshrl.u32 %v13946_v17, 16  ;;  %v13935_v17 = vld [vmem:[%s14043_s10 + $0x84] sm:$0xff]  }
 0x17e   : > { %12916 = vmatprep.mubr.msk.bf16.mxu0 %vm766_vm4, %v11664_v49  ;;  %v15183_v49 = vrot.slane %v3701_v23, 5  ;;  %v13933_v23 = vld [vmem:[%s14043_s10 + $0x6c] sm:$0xff]  }
 0x185   : > { %12917 = vmatmul.mubr.msk.bf16.gmra.mrb[24].mxu0 %vm766_vm4, %v18762_v10  ;;  %v3743_v10 = vshll.u32 %v11755_v24, 16 }
 0x186   : > { %12920 = vmatprep.mubr.msk.bf16.mxu0 %vm766_vm4, %v11666_v30 }
 0x187   : > { %v3745_v37 = vrot.slane %v3743_v10, 5 }
 0x189   : > { %v3746_v13 = vor.u32 %v3745_v37, %v3742_v53  ;;  %v3783_v37 = vshll.u32 %v15242_v43, 16 }
 0x18d   : > { %12921 = vmatmul.mubr.msk.bf16.gmra.mrb[28].mxu0 %vm766_vm4, %v18765_v12  ;;  %v3753_v12 = vshrl.u32 %v15186_v45, 16 }
 0x18e   : > { %12926 = vmatprep.mubr.msk.bf16.mxu0 %vm766_vm4, %v13926_v19  ;;  %v11758_v19 = vld [vmem:[%s14043_s10 + $0x3c] sm:$0xf] }
 0x18f   : > { %v3764_v51 = vshrl.u32 %v11758_v19, 16  ;;  %v3767_v32 = vshll.u32 %v11758_v19, 16  ;;  %v3755_v3 = vrot.slane %v3753_v12, 4  ;;  %v15245_v19 = vld [vmem:[%s14043_s10 + $0xb8] sm:$0xf] }
 0x191   : > { %v3766_v29 = vrot.slane %v3764_v51, 4  ;;  %v3769_v10 = vrot.slane %v3767_v32, 5  ;;  %v3756_v12 = vor.u32 %v3755_v3, %v15221_v59 }
 0x195   : > { %12927 = vmatmul.mubr.msk.bf16.vlgmr.msra.gmra.mrb[0].mxu0 %vm766_vm4, %v13927_v16  ;;  %v15207_v16 = vld [vmem:[%s14043_s10 + $0x70] sm:$0xf] }
 0x196   : > { %12959 = vmatpush3.bf16.msra.mxu0 %v4174_v21  ;;  %12930 = vmatprep.mubr.msk.bf16.mxu0 %vm766_vm4, %v13928_v41  ;;  %v15210_v41 = vld [vmem:[%s14043_s10 + $0x74] sm:$0x1]  ;;  %v3708_v21 = vor.u32 %v3707_v18, %v15183_v49  ;;  %v3757_v18 = vrot.slane %v3756_v12, 4 }
 0x197   : > { %13873 = vmatprep.subr.msk.bf16.mxu0 %vm815_vm0, %v15127_v11  ;;  %v4487_v44 = vrot.slane %v15210_v41, 5 }
 0x198   : > { %v3709_v33 = vrot.slane %v3708_v21, 4  ;;  %v3759_v21 = vshll.u32 %v15230_v14, 16 }
 0x19a   : > { %v3714_v53 = vsel %vm14078_vm3, %v3709_v33, %v3713_v57  ;;  %v13936_v57 = vld [vmem:[%s14043_s10 + $0x90] sm:$0xff]  }
 0x19d   : > { %12931 = vmatmul.mubr.msk.bf16.gmra.mrb[4].mxu0 %vm766_vm4, %v13929_v55  ;;  %v4484_v55 = vrot.slane %v15207_v16, 5 }
 0x19e   : > { %12934 = vmatprep.mubr.msk.bf16.mxu0 %vm766_vm4, %v13930_v4  ;;  %v3722_v4 = vor.u32 %v3721_v5, %v3718_v35  ;;  %v3733_v35 = vrot.slane %v3732_v15, 4  ;;  %v3737_v5 = vrot.slane %v3735_v38, 5  ;;  %v4498_v15 = vrot.slane %v15252_v31, 5 }
 0x19f   : > { %v4486_v2 = vrot.slane %v4484_v55, 4  ;;  %v15225_v56 = vsel %vm14296_vm7, %v11853_v60, %v4484_v55  ;;  %v4501_v38 = vrot.slane %v15255_v34, 5  ;;  %v3704_v60 = vsel %vm14078_vm3, %v3699_v48, %v15183_v49  ;;  %v11761_v48 = vld [vmem:[%s14043_s10 + $0x48] sm:$0xf] }
 0x1a0   : > { %18766 = vst [vmem:[#allocation6_spill] sm:$0xff] %v15225_v56  ;;  %v3723_v24 = vrot.slane %v3722_v4, 4  ;;  %v11839_v4 = vld [vmem:[%s14043_s10 + $0x84] sm:$0xe]  ;;  %v4500_v3 = vrot.slane %v4498_v15, 4  ;;  %v3761_v49 = vrot.slane %v3759_v21, 5 }
 0x1a1   : > { %v11855_v32 = vrot.slane %v11839_v4, 9  ;;  %v15302_v21 = vsel %vm815_vm0, %v15127_v11, 0  ;;  %v3788_v4 = vshrl.u32 %v11761_v48, 16  ;;  %v3791_v11 = vshll.u32 %v11761_v48, 16 }
 0x1a2   : > { %v3728_v51 = vsel %vm14078_vm3, %v3723_v24, %v15195_v61  ;;  %v15280_v61 = vrot.slane %v693_v9, 4 }
 0x1a3   : > { %v15278_v33 = vsel %vm14296_vm7, %v11855_v32, %v4498_v15 }
 0x1a4   : > { %18768 = vst [vmem:[#allocation8_spill] sm:$0xff] %v15278_v33  ;;  %v15341_v33 = vrot.slane %v3788_v4, 4 }
 0x1a5   : > { %12935 = vmatmul.mubr.msk.bf16.gmra.mrb[8].mxu0 %vm766_vm4, %v13931_v52  ;;  %v15234_v52 = vsel %vm14296_vm7, %v4486_v2, %v4487_v44  ;;  %v3738_v2 = vsel %vm14078_vm3, %v3733_v35, %v3737_v5  ;;  %v15286_v5 = vld [vmem:[%s14043_s10 + $0x4c] sm:$0xf] }
 0x1a6   : > { %12938 = vmatprep.mubr.msk.bf16.mxu0 %vm766_vm4, %v13932_v47  ;;  %18767 = vst [vmem:[#allocation7_spill] sm:$0xff] %v15234_v52  ;;  %v15237_v47 = vld [vmem:[%s14043_s10 + $0x40] sm:$0xf]  ;;  %v15296_v12 = vcombine.low %v3728_v51, %v3738_v2  ;;  %v15322_v51 = vld [vmem:[%s14043_s10 + $0xa4] sm:$0x1] }
 0x1a7   : > { %v3773_v55 = vshll.u32 %v15237_v47, 16  ;;  %v3777_v44 = vshrl.u32 %v15237_v47, 16  ;;  %v11841_v2 = vld [vmem:[%s14043_s10 + $0x9c] sm:$0xe] }
 0x1a9   : > { %v15283_v24 = vrot.slane %v3773_v55, 5  ;;  %v3779_v35 = vrot.slane %v3777_v44, 4  ;;  %v15306_v44 = vrot.slane %v3783_v37, 5  ;;  %v13948_v37 = vld [vmem:[%s14043_s10 + $0x90] sm:$0xf] }
 0x1ab   : > { %v3780_v32 = vor.u32 %v3779_v35, %v15283_v24 }
 0x1ad   : > { %12939 = vmatmul.mubr.msk.bf16.gmra.mrb[12].mxu0 %vm766_vm4, %v13933_v23  ;;  %v3770_v23 = vor.u32 %v3769_v10, %v3766_v29  ;;  %v15290_v29 = vsel %vm14296_vm7, %v4500_v3, %v4501_v38  ;;  %v15292_v10 = vrot.slane %v696_v63, 5  ;;  %v15309_v63 = vld [vmem:[%s14043_s10 + $0x54] sm:$0xf]  ;;  %v3762_v38 = vsel %vm14078_vm3, %v3757_v18, %v3761_v49 }
 0x1ae   : > { %12942 = vmatprep.mubr.msk.bf16.mxu0 %vm766_vm4, %v13934_v26  ;;  %v3747_v26 = vrot.slane %v3746_v13, 4  ;;  %18769 = vst [vmem:[#allocation9_spill] sm:$0xff] %v15290_v29  ;;  %v15294_v13 = vcombine.low %v3704_v60, %v3714_v53  ;;  %v3797_v60 = vshll.u32 %v15286_v5, 16  ;;  %v15319_v53 = vld [vmem:[%s14043_s10 + $0xa0] sm:$0xf]  ;;  %v621_v18 = vshrl.u32 %v13948_v37, 16 }
 0x1af   : > { %v15304_v55 = vrot.slane %v3770_v23, 4  ;;  %v4512_v23 = vrot.slane %v15319_v53, 5  ;;  %v3801_v3 = vshrl.u32 %v15286_v5, 16  ;;  %v13949_v49 = vld [vmem:[%s14043_s10 + $0x94] sm:$0xf] }
 0x1b0   : > { %v3752_v15 = vsel %vm14078_vm3, %v3747_v26, %v15221_v59  ;;  %v4515_v59 = vrot.slane %v15322_v51, 5  ;;  %v624_v26 = vshll.u32 %v13948_v37, 16  ;;  %v630_v48 = vshll.u32 %v13949_v49, 16  ;;  %v13938_v37 = vld [vmem:[%s14043_s10 + $0xa8] sm:$0xff]  }
 0x1b1   : > { %v4514_v9 = vrot.slane %v4512_v23, 4  ;;  %v623_v30 = vrot.slane %v621_v18, 4  ;;  %v634_v35 = vshrl.u32 %v13949_v49, 16  ;;  %v15334_v22 = vcombine.low %v3752_v15, %v3762_v38  ;;  %v13950_v49 = vld [vmem:[%s14043_s10 + $0x98] sm:$0x1] }
 0x1b2   : > { %v626_v29 = vrot.slane %v624_v26, 5  ;;  %v640_v56 = vshll.u32 %v13950_v49, 16  ;;  %v15354_v26 = vld [vmem:[%s14043_s10 + $0x50] sm:$0x1]  ;;  %v15360_v15 = vrot.slane %v3791_v11, 5 }
 0x1b3   : > { %v15345_v52 = vsel %vm14296_vm7, %v4514_v9, %v4515_v59  ;;  %v636_v18 = vrot.slane %v634_v35, 4  ;;  %v18772_v9 = vshrl.u32 %v15141_v58, 16  ;;  %v13951_v35 = vld [vmem:[%s14043_s10 + $0xa4] sm:$0x1]  ;;  %v15372_v11 = vld [vmem:[%s14043_s10 + $0xb8] sm:$0xf] }
 0x1b4   : > { %18771 = vst [vmem:[#allocation11_spill] sm:$0xff] %v15345_v52  ;;  %v627_v38 = vor.u32 %v626_v29, %v623_v30  ;;  %v664_v49 = vshll.u32 %v13951_v35, 16  ;;  %v15363_v29 = vrot.slane %v3780_v32, 4  ;;  %v15379_v32 = vld [vmem:[%s14043_s10 + $0xbc] sm:$0x1]  ;;  %v13939_v35 = vld [vmem:[%s14043_s10 + $0xb4] sm:$0xff]  }
 0x1b5   : > { %12943 = vmatmul.mubr.msk.bf16.gmra.mrb[16].mxu0 %vm766_vm4, %v13935_v17  ;;  %v11857_v17 = vrot.slane %v11841_v2, 9  ;;  %v632_v2 = vrot.slane %v630_v48, 5  ;;  %v642_v48 = vrot.slane %v640_v56, 5  ;;  %v660_v59 = vrot.slane %v18772_v9, 4  ;;  %v11843_v9 = vld [vmem:[%s14043_s10 + $0xb4] sm:$0xe] }
 0x1b6   : > { %12946 = vmatprep.mubr.msk.bf16.mxu0 %vm766_vm4, %v13936_v57  ;;  %v3812_v57 = vshrl.u32 %v15309_v63, 16  ;;  %v628_v30 = vrot.slane %v627_v38, 4  ;;  %v15365_v56 = vrot.slane %v3797_v60, 5 }
 0x1b7   : > { %v15338_v62 = vsel %vm14296_vm7, %v11857_v17, %v4512_v23  ;;  %v651_v23 = vor.u32 %v15166_v6, %v15145_v39  ;;  %v654_v17 = vshll.u32 %v15141_v58, 16  ;;  %v637_v4 = vor.u32 %v636_v18, %v632_v2 }
 0x1b8   : > { %18770 = vst [vmem:[#allocation10_spill] sm:$0xff] %v15338_v62  ;;  %v15367_v58 = vrot.slane %v3801_v3, 4  ;;  %v633_v38 = vsel %vm14078_vm3, %v628_v30, %v632_v2  ;;  %v11859_v3 = vrot.slane %v11843_v9, 9  ;;  %v4529_v2 = vrot.slane %v15379_v32, 5 }
 0x1b9   : > { %v652_v39 = vrot.slane %v651_v23, 4  ;;  %v656_v6 = vrot.slane %v654_v17, 5  ;;  %v638_v18 = vrot.slane %v637_v4, 4  ;;  %v666_v17 = vrot.slane %v664_v49, 5 }
 0x1ba   : > { %v4526_v4 = vrot.slane %v15372_v11, 5  ;;  %v675_v30 = vor.u32 %v15174_v36, %v15168_v25 }
 0x1bb   : > { %v661_v23 = vor.u32 %v660_v59, %v656_v6  ;;  %v643_v60 = vsel %vm14078_vm3, %v638_v18, %v642_v48  ;;  %v657_v52 = vsel %vm14078_vm3, %v652_v39, %v656_v6  ;;  %v13940_v59 = vld [vmem:[%s14043_s10 + $0xc0] sm:$0xff]   ;;  %v678_v39 = vshll.u32 %v15171_v8, 16 }
 0x1bc   : > { %v15392_v49 = vsel %vm14296_vm7, %v11859_v3, %v4526_v4  ;;  %v4528_v48 = vrot.slane %v4526_v4, 4  ;;  %v18774_v6 = vshrl.u32 %v15171_v8, 16  ;;  %v676_v36 = vrot.slane %v675_v30, 4  ;;  %v11767_v4 = vld [vmem:[%s14043_s10 + $0x60] sm:$0xf] }
 0x1bd   : > { %12947 = vmatmul.mubr.msk.bf16.gmra.mrb[20].mxu0 %vm766_vm4, %v13937_v42  ;;  %v11372_v42 = vcombine.low %v633_v38, %v643_v60  ;;  %v662_v62 = vrot.slane %v661_v23, 4  ;;  %18773 = vst [vmem:[#allocation12_spill] sm:$0xff] %v15392_v49  ;;  %v3821_v23 = vshll.u32 %v15154_v46, 16  ;;  %v3804_v3 = vor.u32 %v15367_v58, %v15365_v56  ;;  %v15426_v30 = vld [vmem:[%s14043_s10 + $0xd0] sm:$0xf] }
 0x1be   : > { %12950 = vmatprep.mubr.msk.bf16.mxu0 %vm766_vm4, %v13938_v37  ;;  %v15376_v37 = vrot.slane %v3812_v57, 4  ;;  %v3815_v57 = vshll.u32 %v15309_v63, 16  ;;  %v684_v9 = vrot.slane %v18774_v6, 4  ;;  %v13952_v63 = vld [vmem:[%s14043_s10 + $0xb0] sm:$0x1]  ;;  %v15406_v25 = vsel %vm14296_vm7, %v4528_v48, %v4529_v2 }
 0x1bf   : > { %12746 = vmatprep.mubr.msk.bf16.mxu1 %vm766_vm4, %v11372_v42  ;;  %v667_v18 = vsel %vm14078_vm3, %v662_v62, %v666_v17  ;;  %v688_v38 = vshll.u32 %v13952_v63, 16  ;;  %18775 = vst [vmem:[#allocation13_spill] sm:$0xff] %v15406_v25  ;;  %v699_v62 = vor.u32 %v15292_v10, %v15280_v61  ;;  %v680_v42 = vrot.slane %v678_v39, 5  ;;  %v11845_v48 = vld [vmem:[%s14043_s10 + $0xcc] sm:$0xe] }
 0x1c0   : > { %v11373_v60 = vcombine.low %v657_v52, %v667_v18  ;;  %v702_v17 = vshll.u32 %v15245_v19, 16  ;;  %v3794_v52 = vor.u32 %v15360_v15, %v15341_v33  ;;  %v18776_v61 = vshrl.u32 %v15245_v19, 16  ;;  %v13941_v15 = vld [vmem:[%s14043_s10 + $0xcc] sm:$0xff]   ;;  %v15432_v8 = vld [vmem:[%s14043_s10 + $0x64] sm:$0xf] }
 0x1c1   : > { %v690_v18 = vrot.slane %v688_v38, 5  ;;  %v700_v39 = vrot.slane %v699_v62, 4  ;;  %v3817_v6 = vrot.slane %v3815_v57, 5  ;;  %v3825_v58 = vshrl.u32 %v15154_v46, 16  ;;  %v15435_v19 = vld [vmem:[%s14043_s10 + $0xd4] sm:$0x1] }
 0x1c2   : > { %12747 = vmatmul.mubr.msk.bf16.vlgmr.msra.gmra.mrb[0].mxu1 %vm766_vm4, %v11373_v60  ;;  %v708_v10 = vrot.slane %v18776_v61, 4  ;;  %v704_v33 = vrot.slane %v702_v17, 5  ;;  %v11861_v63 = vrot.slane %v11845_v48, 9  ;;  %v4540_v60 = vrot.slane %v15426_v30, 5 }
 0x1c3   : > { %v681_v61 = vsel %vm14078_vm3, %v676_v36, %v680_v42  ;;  %v3836_v38 = vshrl.u32 %v11767_v4, 16  ;;  %v4543_v46 = vrot.slane %v15435_v19, 5  ;;  %v3839_v17 = vshll.u32 %v11767_v4, 16 }
 0x1c4   : > { %v709_v25 = vor.u32 %v708_v10, %v704_v33  ;;  %v15441_v62 = vsel %vm14296_vm7, %v11861_v63, %v4540_v60  ;;  %v4542_v57 = vrot.slane %v4540_v60, 4  ;;  %v705_v49 = vsel %vm14078_vm3, %v700_v39, %v704_v33  ;;  %v15474_v63 = vld [vmem:[%s14043_s10 + $0x68] sm:$0x1]  ;;  %v11770_v60 = vld [vmem:[%s14043_s10 + $0x6c] sm:$0xf] }
 0x1c5   : > { %12951 = vmatmul.mubr.msk.bf16.gmra.mrb[24].mxu0 %vm766_vm4, %v13939_v35  ;;  %v13953_v35 = vld [vmem:[%s14043_s10 + $0xbc] sm:$0x1]  ;;  %v3849_v10 = vshrl.u32 %v15432_v8, 16  ;;  %v15455_v4 = vrot.slane %v3821_v23, 5  ;;  %v3776_v33 = vsel %vm14078_vm3, %v15304_v55, %v15283_v24  ;;  %v3786_v23 = vsel %vm14078_vm3, %v15363_v29, %v15306_v44  ;;  %v11773_v55 = vld [vmem:[%s14043_s10 + $0x78] sm:$0xf] }
 0x1c6   : > { %12954 = vmatprep.mubr.msk.bf16.mxu0 %vm766_vm4, %v13940_v59  ;;  %v712_v2 = vshll.u32 %v13953_v35, 16  ;;  %v685_v59 = vor.u32 %v684_v9, %v680_v42  ;;  %v710_v36 = vrot.slane %v709_v25, 4  ;;  %v3845_v42 = vshll.u32 %v15432_v8, 16  ;;  %v15484_v29 = vld [vmem:[%s14043_s10 + $0x7c] sm:$0xf] }
 0x1c7   : > { %v3831_v24 = vshll.u32 %v15157_v40, 16  ;;  %v3851_v44 = vrot.slane %v3849_v10, 4  ;;  %v3873_v40 = vshrl.u32 %v15207_v16, 16  ;;  %v3893_v10 = vshll.u32 %v15484_v29, 16 }
 0x1c8   : > { %v686_v35 = vrot.slane %v685_v59, 4  ;;  %v714_v9 = vrot.slane %v712_v2, 5  ;;  %v15452_v59 = vsel %vm14296_vm7, %v4542_v57, %v4543_v46  ;;  %v3838_v57 = vrot.slane %v3836_v38, 4 }
 0x1c9   : > { %v11878_v25 = vcombine.low %v15441_v62, %v15452_v59  ;;  %v3841_v46 = vrot.slane %v3839_v17, 5  ;;  %v3887_v38 = vshll.u32 %v11773_v55, 16 }
 0x1ca   : > { %v691_v48 = vsel %vm14078_vm3, %v686_v35, %v690_v18  ;;  %v3827_v18 = vrot.slane %v3825_v58, 4  ;;  %v715_v39 = vsel %vm14078_vm3, %v710_v36, %v714_v9  ;;  %v3805_v35 = vrot.slane %v3804_v3, 4 }
 0x1cb   : > { %v11374_v2 = vcombine.low %v681_v61, %v691_v48  ;;  %v3795_v61 = vrot.slane %v3794_v52, 4  ;;  %v3818_v9 = vor.u32 %v3817_v6, %v15376_v37  ;;  %v15481_v48 = vrot.slane %v3845_v42, 5 }
 0x1cc   : > { %v3828_v36 = vor.u32 %v3827_v18, %v15455_v4  ;;  %v3860_v52 = vshrl.u32 %v11770_v60, 16  ;;  %v3863_v3 = vshll.u32 %v11770_v60, 16  ;;  %v3869_v37 = vshll.u32 %v15207_v16, 16  ;;  %v11776_v16 = vld [vmem:[%s14043_s10 + $0x84] sm:$0xf] }
 0x1cd   : > { %12955 = vmatmul.mubr.msk.bf16.gmra.mrb[28].mxu0 %vm766_vm4, %v13941_v15  ;;  %v18777_v15 = vshll.u32 %v15354_v26, 16  ;;  %12750 = vmatprep.mubr.msk.bf16.mxu1 %vm766_vm4, %v11374_v2  ;;  %v3884_v6 = vshrl.u32 %v11773_v55, 16  ;;  %v3800_v17 = vsel %vm14078_vm3, %v3795_v61, %v15365_v56  ;;  %v3897_v2 = vshrl.u32 %v15484_v29, 16 }
 0x1ce   : > { %12960 = vmatprep.mubr.msk.bf16.mxu0 %vm766_vm4, %v15294_v13  ;;  %v11375_v13 = vcombine.low %v705_v49, %v715_v39  ;;  %v3855_v49 = vshll.u32 %v15474_v63, 16  ;;  %v3819_v18 = vrot.slane %v3818_v9, 4  ;;  %v3833_v39 = vrot.slane %v3831_v24, 5 }
 0x1cf   : > { %v3809_v58 = vrot.slane %v18777_v15, 5  ;;  %v3842_v15 = vor.u32 %v3841_v46, %v3838_v57  ;;  %v3852_v60 = vor.u32 %v3851_v44, %v15481_v48  ;;  %v3862_v56 = vrot.slane %v3860_v52, 4  ;;  %v15508_v57 = vld [vmem:[%s14043_s10 + $0x80] sm:$0x1] }
 0x1d0   : > { %12751 = vmatmul.mubr.msk.bf16.gmra.mrb[4].mxu1 %vm766_vm4, %v11375_v13  ;;  %v3829_v13 = vrot.slane %v3828_v36, 4  ;;  %v3857_v55 = vrot.slane %v3855_v49, 5  ;;  %v3865_v61 = vrot.slane %v3863_v3, 5  ;;  %v3886_v9 = vrot.slane %v3884_v6, 4 }
 0x1d1   : > { %v3810_v42 = vsel %vm14078_vm3, %v3805_v35, %v3809_v58  ;;  %v15505_v58 = vrot.slane %v3869_v37, 5  ;;  %v3875_v35 = vrot.slane %v3873_v40, 4  ;;  %v3889_v24 = vrot.slane %v3887_v38, 5 }
 0x1d2   : > { %v15510_v46 = vrot.slane %v3893_v10, 5  ;;  %v3908_v44 = vshrl.u32 %v11776_v16, 16  ;;  %v3911_v36 = vshll.u32 %v11776_v16, 16  ;;  %v3843_v49 = vrot.slane %v3842_v15, 4  ;;  %v15524_v16 = vld [vmem:[%s14043_s10 + $0x94] sm:$0xf] }
 0x1d3   : > { %v3853_v52 = vrot.slane %v3852_v60, 4  ;;  %v11801_v3 = vcombine.low %v3776_v33, %v3786_v23  ;;  %v11802_v37 = vcombine.low %v3800_v17, %v3810_v42  ;;  %v3824_v40 = vsel %vm14078_vm3, %v3819_v18, %v15455_v4  ;;  %v11779_v60 = vld [vmem:[%s14043_s10 + $0x90] sm:$0xf] }
 0x1d4   : > { %v3834_v6 = vsel %vm14078_vm3, %v3829_v13, %v3833_v39  ;;  %v3866_v38 = vor.u32 %v3865_v61, %v3862_v56  ;;  %v3876_v10 = vor.u32 %v3875_v35, %v15505_v58  ;;  %v3903_v15 = vshll.u32 %v15508_v57, 16 }
 0x1d5   : > { %12961 = vmatmul.mubr.msk.bf16.vlgmr.msra.gmra.mrb[0].mxu0 %vm766_vm4, %v15296_v12  ;;  %v3899_v12 = vrot.slane %v3897_v2, 4  ;;  %v3879_v2 = vshll.u32 %v15210_v41, 16  ;;  %v3910_v23 = vrot.slane %v3908_v44, 4  ;;  %v3913_v17 = vrot.slane %v3911_v36, 5 }
 0x1d6   : > { %12993 = vmatpush3.bf16.msra.mxu0 %v15302_v21  ;;  %12964 = vmatprep.mubr.msk.bf16.mxu0 %vm766_vm4, %v15334_v22  ;;  %v3917_v21 = vshll.u32 %v15252_v31, 16  ;;  %v3921_v22 = vshrl.u32 %v15252_v31, 16  ;;  %v3890_v31 = vor.u32 %v3889_v24, %v3886_v9  ;;  %v3848_v4 = vsel %vm14078_vm3, %v3843_v49, %v15481_v48  ;;  %v11782_v49 = vld [vmem:[%s14043_s10 + $0x9c] sm:$0xf] }
 0x1d7   : > { %v3900_v33 = vor.u32 %v3899_v12, %v15510_v46  ;;  %v3858_v42 = vsel %vm14078_vm3, %v3853_v52, %v3857_v55  ;;  %v3932_v39 = vshrl.u32 %v11779_v60, 16  ;;  %v3935_v13 = vshll.u32 %v11779_v60, 16 }
 0x1d8   : > { %v15532_v18 = vrot.slane %v3917_v21, 5  ;;  %v3923_v41 = vrot.slane %v3921_v22, 4  ;;  %v3941_v56 = vshll.u32 %v15524_v16, 16  ;;  %v3945_v61 = vshrl.u32 %v15524_v16, 16 }
 0x1d9   : > { %v3867_v35 = vrot.slane %v3866_v38, 4  ;;  %v3877_v48 = vrot.slane %v3876_v10, 4  ;;  %v3881_v9 = vrot.slane %v3879_v2, 5  ;;  %v3905_v24 = vrot.slane %v3903_v15, 5 }
 0x1da   : > { %v3891_v55 = vrot.slane %v3890_v31, 4  ;;  %v3901_v12 = vrot.slane %v3900_v33, 4  ;;  %v3914_v44 = vor.u32 %v3913_v17, %v3910_v23  ;;  %v3927_v36 = vshll.u32 %v15255_v34, 16 }
 0x1db   : > { %v11803_v52 = vcombine.low %v3824_v40, %v3834_v6  ;;  %v11804_v21 = vcombine.low %v3848_v4, %v3858_v42  ;;  %v3924_v22 = vor.u32 %v3923_v41, %v15532_v18  ;;  %v3934_v60 = vrot.slane %v3932_v39, 4  ;;  %v11785_v40 = vld [vmem:[%s14043_s10 + $0xa8] sm:$0xf]  ;;  %v15553_v6 = vld [vmem:[%s14043_s10 + $0xac] sm:$0xf] }
 0x1dc   : > { %v15544_v38 = vrot.slane %v3941_v56, 5  ;;  %v3947_v10 = vrot.slane %v3945_v61, 4  ;;  %v3872_v2 = vsel %vm14078_vm3, %v3867_v35, %v15505_v58  ;;  %v3882_v15 = vsel %vm14078_vm3, %v3877_v48, %v3881_v9 }
 0x1dd   : > { %12965 = vmatmul.mubr.msk.bf16.gmra.mrb[4].mxu0 %vm766_vm4, %v11801_v3  ;;  %v15542_v3 = vld [vmem:[%s14043_s10 + $0x98] sm:$0x1]  ;;  %v3956_v34 = vshrl.u32 %v11782_v49, 16  ;;  %v3959_v31 = vshll.u32 %v11782_v49, 16  ;;  %v3896_v33 = vsel %vm14078_vm3, %v3891_v55, %v15510_v46  ;;  %v3906_v23 = vsel %vm14078_vm3, %v3901_v12, %v3905_v24 }
 0x1de   : > { %12968 = vmatprep.mubr.msk.bf16.mxu0 %vm766_vm4, %v11802_v37  ;;  %v3937_v37 = vrot.slane %v3935_v13, 5  ;;  %v3915_v17 = vrot.slane %v3914_v44, 4  ;;  %v3929_v4 = vrot.slane %v3927_v36, 5  ;;  %v3925_v42 = vrot.slane %v3924_v22, 4 }
 0x1df   : > { %v3951_v58 = vshll.u32 %v15542_v3, 16  ;;  %v3965_v41 = vshll.u32 %v15319_v53, 16  ;;  %v3969_v39 = vshrl.u32 %v15319_v53, 16  ;;  %v3980_v13 = vshrl.u32 %v11785_v40, 16 }
 0x1e0   : > { %v3983_v56 = vshll.u32 %v11785_v40, 16  ;;  %v3989_v61 = vshll.u32 %v15553_v6, 16  ;;  %v3993_v46 = vshrl.u32 %v15553_v6, 16  ;;  %v3938_v35 = vor.u32 %v3937_v37, %v3934_v60 }
 0x1e1   : > { %v3948_v48 = vor.u32 %v3947_v10, %v15544_v38  ;;  %v3958_v9 = vrot.slane %v3956_v34, 4  ;;  %v3961_v24 = vrot.slane %v3959_v31, 5  ;;  %v11805_v55 = vcombine.low %v3872_v2, %v3882_v15  ;;  %v11788_v2 = vld [vmem:[%s14043_s10 + $0xb4] sm:$0xf] }
 0x1e2   : > { %v11806_v12 = vcombine.low %v3896_v33, %v3906_v23  ;;  %v3920_v53 = vsel %vm14078_vm3, %v3915_v17, %v15532_v18  ;;  %v3930_v44 = vsel %vm14078_vm3, %v3925_v42, %v3929_v4  ;;  %v3953_v36 = vrot.slane %v3951_v58, 5  ;;  %v11791_v42 = vld [vmem:[%s14043_s10 + $0xc0] sm:$0xf]  ;;  %v15584_v58 = vld [vmem:[%s14043_s10 + $0xc4] sm:$0xf] }
 0x1e3   : > { %v15573_v49 = vrot.slane %v3965_v41, 5  ;;  %v3982_v22 = vrot.slane %v3980_v13, 4  ;;  %v3985_v60 = vrot.slane %v3983_v56, 5  ;;  %v3991_v37 = vrot.slane %v3989_v61, 5 }
 0x1e4   : > { %v3995_v10 = vrot.slane %v3993_v46, 4  ;;  %v3939_v15 = vrot.slane %v3938_v35, 4  ;;  %v3949_v34 = vrot.slane %v3948_v48, 4  ;;  %v3962_v31 = vor.u32 %v3961_v24, %v3958_v9 }
 0x1e5   : > { %12969 = vmatmul.mubr.msk.bf16.gmra.mrb[8].mxu0 %vm766_vm4, %v11803_v52  ;;  %v3971_v52 = vrot.slane %v3969_v39, 4  ;;  %v3975_v18 = vshll.u32 %v15322_v51, 16  ;;  %v11807_v33 = vcombine.low %v3920_v53, %v3930_v44  ;;  %v4004_v17 = vshrl.u32 %v11788_v2, 16 }
 0x1e6   : > { %12972 = vmatprep.mubr.msk.bf16.mxu0 %vm766_vm4, %v11804_v21  ;;  %v15576_v21 = vld [vmem:[%s14043_s10 + $0xb0] sm:$0x1]  ;;  %v4007_v4 = vshll.u32 %v11788_v2, 16  ;;  %v3986_v41 = vor.u32 %v3985_v60, %v3982_v22  ;;  %v3996_v39 = vor.u32 %v3995_v10, %v3991_v37  ;;  %v4013_v13 = vshll.u32 %v15372_v11, 16 }
 0x1e7   : > { %v3999_v40 = vshll.u32 %v15576_v21, 16  ;;  %v3972_v23 = vor.u32 %v3971_v52, %v15573_v49  ;;  %v4017_v56 = vshrl.u32 %v15372_v11, 16  ;;  %v3944_v51 = vsel %vm14078_vm3, %v3939_v15, %v15544_v38 }
 0x1e8   : > { %v3954_v61 = vsel %vm14078_vm3, %v3949_v34, %v3953_v36  ;;  %v3963_v46 = vrot.slane %v3962_v31, 4  ;;  %v3977_v35 = vrot.slane %v3975_v18, 5  ;;  %v4028_v48 = vshrl.u32 %v11791_v42, 16  ;;  %v11794_v31 = vld [vmem:[%s14043_s10 + $0xcc] sm:$0xf] }
 0x1e9   : > { %v4031_v9 = vshll.u32 %v11791_v42, 16  ;;  %v4037_v24 = vshll.u32 %v15584_v58, 16  ;;  %v3973_v53 = vrot.slane %v3972_v23, 4  ;;  %v4001_v11 = vrot.slane %v3999_v40, 5 }
 0x1ea   : > { %v4009_v44 = vrot.slane %v4007_v4, 5  ;;  %v3987_v52 = vrot.slane %v3986_v41, 4  ;;  %v3997_v22 = vrot.slane %v3996_v39, 4  ;;  %v4015_v38 = vrot.slane %v4013_v13, 5 }
 0x1eb   : > { %v4019_v60 = vrot.slane %v4017_v56, 4  ;;  %v11808_v10 = vcombine.low %v3944_v51, %v3954_v61  ;;  %v4030_v36 = vrot.slane %v4028_v48, 4  ;;  %v4033_v2 = vrot.slane %v4031_v9, 5 }
 0x1ec   : > { %v4039_v15 = vrot.slane %v4037_v24, 5  ;;  %v3968_v18 = vsel %vm14078_vm3, %v3963_v46, %v15573_v49  ;;  %v3978_v40 = vsel %vm14078_vm3, %v3973_v53, %v3977_v35  ;;  %v3992_v4 = vsel %vm14078_vm3, %v3987_v52, %v3991_v37 }
 0x1ed   : > { %12973 = vmatmul.mubr.msk.bf16.gmra.mrb[12].mxu0 %vm766_vm4, %v11805_v55  ;;  %v4041_v55 = vshrl.u32 %v15584_v58, 16  ;;  %v4002_v42 = vsel %vm14078_vm3, %v3997_v22, %v4001_v11  ;;  %v4020_v41 = vor.u32 %v4019_v60, %v4015_v38  ;;  %v4023_v39 = vshll.u32 %v15379_v32, 16 }
 0x1ee   : > { %12976 = vmatprep.mubr.msk.bf16.mxu0 %vm766_vm4, %v11806_v12  ;;  %v4006_v12 = vrot.slane %v4004_v17, 4  ;;  %v15604_v17 = vld [vmem:[%s14043_s10 + $0xc8] sm:$0x1]  ;;  %v4052_v49 = vshrl.u32 %v11794_v31, 16  ;;  %v4055_v13 = vshll.u32 %v11794_v31, 16  ;;  %v4061_v56 = vshll.u32 %v15426_v30, 16 }
 0x1ef   : > { %v4043_v34 = vrot.slane %v4041_v55, 4  ;;  %v4065_v51 = vshrl.u32 %v15426_v30, 16  ;;  %v4034_v61 = vor.u32 %v4033_v2, %v4030_v36  ;;  %v11809_v35 = vcombine.low %v3968_v18, %v3978_v40  ;;  %v11830_v18 = vld [vmem:[%s14043_s10 + $0x18] sm:$0xe] }
 0x1f0   : > { %v4010_v23 = vor.u32 %v4009_v44, %v4006_v12  ;;  %v11810_v37 = vcombine.low %v3992_v4, %v4002_v42  ;;  %v4021_v9 = vrot.slane %v4020_v41, 4  ;;  %v4025_v24 = vrot.slane %v4023_v39, 5 }
 0x1f1   : > { %v4044_v46 = vor.u32 %v4043_v34, %v4039_v15  ;;  %v4054_v55 = vrot.slane %v4052_v49, 4  ;;  %v4057_v53 = vrot.slane %v4055_v13, 5  ;;  %v4063_v32 = vrot.slane %v4061_v56, 5 }
 0x1f2   : > { %v4011_v48 = vrot.slane %v4010_v23, 4  ;;  %v4067_v11 = vrot.slane %v4065_v51, 4  ;;  %v4035_v12 = vrot.slane %v4034_v61, 4  ;;  %v4026_v22 = vsel %vm14078_vm3, %v4021_v9, %v4025_v24  ;;  %v11831_v51 = vld [vmem:[%s14043_s10 + $0x24] sm:$0xe] }
 0x1f3   : > { %v4045_v44 = vrot.slane %v4044_v46, 4  ;;  %v4058_v60 = vor.u32 %v4057_v53, %v4054_v55  ;;  %v4071_v36 = vshll.u32 %v15435_v19, 16  ;;  %v4435_v31 = vrot.slane %v15138_v50, 5  ;;  %v11832_v61 = vld [vmem:[%s14043_s10 + $0x30] sm:$0xe] }
 0x1f4   : > { %v4016_v30 = vsel %vm14078_vm3, %v4011_v48, %v4015_v38  ;;  %v4040_v2 = vsel %vm14078_vm3, %v4035_v12, %v4039_v15  ;;  %v11846_v41 = vrot.slane %v11830_v18, 9  ;;  %v4438_v19 = vrot.slane %v15193_v1, 5  ;;  %v11834_v12 = vld [vmem:[%s14043_s10 + $0x48] sm:$0xe] }
 0x1f5   : > { %12977 = vmatmul.mubr.msk.bf16.gmra.mrb[16].mxu0 %vm766_vm4, %v11807_v33  ;;  %v4047_v33 = vshll.u32 %v15604_v17, 16  ;;  %v11811_v38 = vcombine.low %v4016_v30, %v4026_v22  ;;  %v4059_v23 = vrot.slane %v4058_v60, 4  ;;  %v4073_v42 = vrot.slane %v4071_v36, 5 }
 0x1f6   : > { %12980 = vmatprep.mubr.msk.bf16.mxu0 %vm766_vm4, %v11808_v10  ;;  %v4068_v10 = vor.u32 %v4067_v11, %v4063_v32  ;;  %v4437_v39 = vrot.slane %v4435_v31, 4  ;;  %v4442_v49 = vrot.slane %v15149_v28, 5  ;;  %v4436_v13 = vsel %vm14296_vm7, %v11846_v41, %v4435_v31  ;;  %v11833_v11 = vld [vmem:[%s14043_s10 + $0x3c] sm:$0xe] }
 0x1f7   : > { %v4049_v52 = vrot.slane %v4047_v33, 5  ;;  %v4064_v15 = vsel %vm14078_vm3, %v4059_v23, %v4063_v32  ;;  %v4449_v1 = vrot.slane %v15186_v45, 5  ;;  %v4445_v48 = vrot.slane %v15200_v7, 5 }
 0x1f8   : > { %v4069_v4 = vrot.slane %v4068_v10, 4  ;;  %v4439_v56 = vsel %vm14296_vm7, %v4437_v39, %v4438_v19  ;;  %v11848_v9 = vrot.slane %v11832_v61, 9  ;;  %v4452_v24 = vrot.slane %v15230_v14, 5  ;;  %v11838_v39 = vld [vmem:[%s14043_s10 + $0x78] sm:$0xe] }
 0x1f9   : > { %v4050_v34 = vsel %vm14078_vm3, %v4045_v44, %v4049_v52  ;;  %v11863_v33 = vcombine.low %v4436_v13, %v4439_v56  ;;  %v4451_v28 = vrot.slane %v4449_v1, 4  ;;  %v4456_v53 = vrot.slane %v15237_v47, 5 }
 0x1fa   : > { %v11812_v40 = vcombine.low %v4040_v2, %v4050_v34  ;;  %v4074_v50 = vsel %vm14078_vm3, %v4069_v4, %v4073_v42  ;;  %v4450_v32 = vsel %vm14296_vm7, %v11848_v9, %v4449_v1  ;;  %v4463_v14 = vrot.slane %v15286_v5, 5 }
 0x1fb   : > { %v11813_v46 = vcombine.low %v4064_v15, %v4074_v50  ;;  %v4453_v7 = vsel %vm14296_vm7, %v4451_v28, %v4452_v24  ;;  %v11849_v30 = vrot.slane %v11833_v11, 9  ;;  %v4458_v22 = vrot.slane %v4456_v53, 4  ;;  %v11844_v11 = vld [vmem:[%s14043_s10 + $0xc0] sm:$0xe] }
 0x1fc   : > { %v11865_v52 = vcombine.low %v4450_v32, %v4453_v7  ;;  %v4459_v60 = vrot.slane %v15242_v43, 5  ;;  %v11850_v10 = vrot.slane %v11834_v12, 9  ;;  %v4465_v36 = vrot.slane %v4463_v14, 4 }
 0x1fd   : > { %12981 = vmatmul.mubr.msk.bf16.gmra.mrb[20].mxu0 %vm766_vm4, %v11809_v35  ;;  %v11847_v35 = vrot.slane %v11831_v51, 9  ;;  %v4466_v47 = vrot.slane %v15354_v26, 5  ;;  %v4457_v2 = vsel %vm14296_vm7, %v11849_v30, %v4456_v53  ;;  %v4477_v31 = vrot.slane %v15432_v8, 5  ;;  %v11836_v26 = vld [vmem:[%s14043_s10 + $0x60] sm:$0xe]  ;;  %v18786_v30 = vld [vmem:[#allocation11_spill] sm:$0xff] }
 0x1fe   : > { %12984 = vmatprep.mubr.msk.bf16.mxu0 %vm766_vm4, %v11810_v37  ;;  %v4444_v37 = vrot.slane %v4442_v49, 4  ;;  %v4460_v5 = vsel %vm14296_vm7, %v4458_v22, %v4459_v60  ;;  %v4464_v34 = vsel %vm14296_vm7, %v11850_v10, %v4463_v14  ;;  %v4480_v4 = vrot.slane %v15474_v63, 5  ;;  %v11840_v51 = vld [vmem:[%s14043_s10 + $0x90] sm:$0xe] }
 0x1ff   : > { %v4443_v45 = vsel %vm14296_vm7, %v11847_v35, %v4442_v49  ;;  %v4467_v43 = vsel %vm14296_vm7, %v4465_v36, %v4466_v47  ;;  %v11866_v18 = vcombine.low %v4457_v2, %v4460_v5  ;;  %v4479_v23 = vrot.slane %v4477_v31, 4  ;;  %v18788_v36 = vld [vmem:[#allocation12_spill] sm:$0xff]  ;;  %v18789_v47 = vld [vmem:[#allocation13_spill] sm:$0xff] }
 0x200   : > { %v4446_v55 = vsel %vm14296_vm7, %v4444_v37, %v4445_v48  ;;  %v4491_v8 = vrot.slane %v15484_v29, 5  ;;  %v11854_v15 = vrot.slane %v11838_v39, 9  ;;  %v4494_v49 = vrot.slane %v15508_v57, 5  ;;  %v11842_v48 = vld [vmem:[%s14043_s10 + $0xa8] sm:$0xe] }
 0x201   : > { %v11864_v44 = vcombine.low %v4443_v45, %v4446_v55  ;;  %v4481_v41 = vsel %vm14296_vm7, %v4479_v23, %v4480_v4  ;;  %v18778_v63 = vcombine.low %v15180_v54, %v15190_v0  ;;  %v4505_v56 = vrot.slane %v15524_v16, 5  ;;  %v18779_v54 = vld [vmem:[#allocation6_spill] sm:$0xff]  ;;  %v18780_v0 = vld [vmem:[#allocation7_spill] sm:$0xff]  ;;  %v18782_v45 = vld [vmem:[#allocation8_spill] sm:$0xff] }
 0x202   : > { %v4493_v50 = vrot.slane %v4491_v8, 4  ;;  %v4492_v13 = vsel %vm14296_vm7, %v11854_v15, %v4491_v8  ;;  %v11856_v61 = vrot.slane %v11840_v51, 9  ;;  %v4519_v37 = vrot.slane %v15553_v6, 5  ;;  %v18783_v55 = vld [vmem:[#allocation9_spill] sm:$0xff] }
 0x203   : > { %v4507_v57 = vrot.slane %v4505_v56, 4  ;;  %v11858_v28 = vrot.slane %v11842_v48, 9  ;;  %v4522_v24 = vrot.slane %v15576_v21, 5  ;;  %v18784_v53 = vcombine.low %v18782_v45, %v18783_v55  ;;  %v15808_v4 = vld [vmem:[%s18564_s3] sm:$0xf] }
 0x204   : > { %v4495_v29 = vsel %vm14296_vm7, %v4493_v50, %v4494_v49  ;;  %v4506_v35 = vsel %vm14296_vm7, %v11856_v61, %v4505_v56  ;;  %v4533_v6 = vrot.slane %v15584_v58, 5  ;;  %v11860_v12 = vrot.slane %v11844_v11, 9 }
 0x205   : > { %12985 = vmatmul.mubr.msk.bf16.gmra.mrb[24].mxu0 %vm766_vm4, %v11811_v38  ;;  %v11867_v38 = vcombine.low %v4464_v34, %v4467_v43  ;;  %v11871_v1 = vcombine.low %v4492_v13, %v4495_v29  ;;  %v4520_v32 = vsel %vm14296_vm7, %v11858_v28, %v4519_v37  ;;  %v4536_v21 = vrot.slane %v15604_v17, 5  ;;  %v11944_v34 = vld [vmem:[%s18564_s3 + $0x4] sm:$0xf] }
 0x206   : > { %12988 = vmatprep.mubr.msk.bf16.mxu0 %vm766_vm4, %v11812_v40  ;;  %v11852_v40 = vrot.slane %v11836_v26, 9  ;;  %v4534_v60 = vsel %vm14296_vm7, %v11860_v12, %v4533_v6  ;;  %v18790_v2 = vcombine.low %v18788_v36, %v18789_v47  ;;  %v13978_v17 = vmov 0   ;;  %13874 = vmatprep.subr.msk.bf16.mxu1 %vm815_vm0, %v11944_v34 }
 0x207   : > { %4918 = vst.msk [vmem:[#allocation2 + $0x18] sm:$0xf] %vm4910_vm8, %v13978_v17  ;;  %4911 = vst.msk [vmem:[#allocation2] sm:$0xf] %vm4910_vm8, %v13978_v17 }
 0x208   : > { %v4478_v42 = vsel %vm14296_vm7, %v11852_v40, %v4477_v31  ;;  %4912 = vst.msk [vmem:[#allocation2 + $0x4] sm:$0xf] %vm4910_vm8, %v13978_v17  ;;  %4915 = vst.msk [vmem:[#allocation2 + $0xc] sm:$0xf] %vm4910_vm8, %v13978_v17 }
 0x209   : > { %v11869_v19 = vcombine.low %v4478_v42, %v4481_v41  ;;  %4916 = vst.msk [vmem:[#allocation2 + $0x10] sm:$0xf] %vm4910_vm8, %v13978_v17  ;;  %4919 = vst.msk [vmem:[#allocation2 + $0x1c] sm:$0xf] %vm4910_vm8, %v13978_v17 }
 0x20a   : > { %4921 = vst.msk [vmem:[#allocation2 + $0x24] sm:$0xf] %vm4910_vm8, %v13978_v17  ;;  %4922 = vst.msk [vmem:[#allocation2 + $0x28] sm:$0xf] %vm4910_vm8, %v13978_v17 }
 0x20b   : > { %4924 = vst.msk [vmem:[#allocation2 + $0x30] sm:$0xf] %vm4910_vm8, %v13978_v17  ;;  %4925 = vst.msk [vmem:[#allocation2 + $0x34] sm:$0xf] %vm4910_vm8, %v13978_v17 }
 0x20c   : > { %4927 = vst.msk [vmem:[#allocation2 + $0x3c] sm:$0xf] %vm4910_vm8, %v13978_v17  ;;  %4928 = vst.msk [vmem:[#allocation2 + $0x40] sm:$0xf] %vm4910_vm8, %v13978_v17 }
 0x20d   : > { %12989 = vmatmul.mubr.msk.bf16.gmra.mrb[28].mxu0 %vm766_vm4, %v11813_v46  ;;  %v4508_v46 = vrot.slane %v15542_v3, 5  ;;  %v4521_v3 = vrot.slane %v4519_v37, 4  ;;  %4930 = vst.msk [vmem:[#allocation2 + $0x48] sm:$0xf] %vm4910_vm8, %v13978_v17  ;;  %4931 = vst.msk [vmem:[#allocation2 + $0x4c] sm:$0xf] %vm4910_vm8, %v13978_v17 }
 0x20e   : > { %12994 = vmatprep.mubr.msk.bf16.mxu0 %vm766_vm4, %v11863_v33  ;;  %v18781_v33 = vcombine.low %v18779_v54, %v18780_v0  ;;  %4933 = vst.msk [vmem:[#allocation2 + $0x54] sm:$0xf] %vm4910_vm8, %v13978_v17  ;;  %4934 = vst.msk [vmem:[#allocation2 + $0x58] sm:$0xf] %vm4910_vm8, %v13978_v17  ;;  %v5677_v5 = vld [vmem:[#allocation2] sm:$0xe] }
 0x20f   : > { %v4509_v16 = vsel %vm14296_vm7, %v4507_v57, %v4508_v46  ;;  %v4523_v7 = vsel %vm14296_vm7, %v4521_v3, %v4522_v24  ;;  %4936 = vst.msk [vmem:[#allocation2 + $0x60] sm:$0xf] %vm4910_vm8, %v13978_v17  ;;  %4937 = vst.msk [vmem:[#allocation2 + $0x64] sm:$0xf] %vm4910_vm8, %v13978_v17  ;;  %v15792_v62 = vld [vmem:[#allocation2 + $0x4] sm:$0xf] }
 0x210   : > { %v11873_v9 = vcombine.low %v4506_v35, %v4509_v16  ;;  %v11875_v14 = vcombine.low %v4520_v32, %v4523_v7  ;;  %4939 = vst.msk [vmem:[#allocation2 + $0x6c] sm:$0xf] %vm4910_vm8, %v13978_v17  ;;  %4940 = vst.msk [vmem:[#allocation2 + $0x70] sm:$0xf] %vm4910_vm8, %v13978_v17  ;;  %v5743_v59 = vrot.slane %v15792_v62, 5  ;;  %v11928_v43 = vrot.slane %v5677_v5, 9 }
 0x211   : > { %4942 = vst.msk [vmem:[#allocation2 + $0x78] sm:$0xf] %vm4910_vm8, %v13978_v17  ;;  %4943 = vst.msk [vmem:[#allocation2 + $0x7c] sm:$0xf] %vm4910_vm8, %v13978_v17  ;;  %v5302_v13 = vshll.u32 %v15792_v62, 16  ;;  %v5306_v29 = vshrl.u32 %v15792_v62, 16 }
 0x212   : > { %4945 = vst.msk [vmem:[#allocation2 + $0x84] sm:$0xf] %vm4910_vm8, %v13978_v17  ;;  %4946 = vst.msk [vmem:[#allocation2 + $0x88] sm:$0xf] %vm4910_vm8, %v13978_v17  ;;  %v5745_v31 = vrot.slane %v5743_v59, 4 }
 0x213   : > { %4948 = vst.msk [vmem:[#allocation2 + $0x90] sm:$0xf] %vm4910_vm8, %v13978_v17  ;;  %4949 = vst.msk [vmem:[#allocation2 + $0x94] sm:$0xf] %vm4910_vm8, %v13978_v17  ;;  %v15837_v57 = vrot.slane %v5302_v13, 5  ;;  %v5308_v46 = vrot.slane %v5306_v29, 4 }
 0x214   : > { %4951 = vst.msk [vmem:[#allocation2 + $0x9c] sm:$0xf] %vm4910_vm8, %v13978_v17  ;;  %4952 = vst.msk [vmem:[#allocation2 + $0xa0] sm:$0xf] %vm4910_vm8, %v13978_v17 }
 0x215   : > { %12995 = vmatmul.mubr.msk.bf16.vlgmr.msra.gmra.mrb[0].mxu0 %vm766_vm4, %v11864_v44  ;;  %v4535_v44 = vrot.slane %v4533_v6, 4  ;;  %4954 = vst.msk [vmem:[#allocation2 + $0xa8] sm:$0xf] %vm4910_vm8, %v13978_v17  ;;  %4955 = vst.msk [vmem:[#allocation2 + $0xac] sm:$0xf] %vm4910_vm8, %v13978_v17  ;;  %v5309_v45 = vor.u32 %v5308_v46, %v15837_v57 }
 0x216   : > { %12998 = vmatprep.mubr.msk.bf16.mxu0 %vm766_vm4, %v11865_v52  ;;  %v18785_v52 = vld [vmem:[#allocation10_spill] sm:$0xff]  ;;  %4957 = vst.msk [vmem:[#allocation2 + $0xb4] sm:$0xf] %vm4910_vm8, %v13978_v17  ;;  %4958 = vst.msk [vmem:[#allocation2 + $0xb8] sm:$0xf] %vm4910_vm8, %v13978_v17 }
 0x217   : > { %v18787_v22 = vcombine.low %v18785_v52, %v18786_v30  ;;  %v4537_v10 = vsel %vm14296_vm7, %v4535_v44, %v4536_v21  ;;  %4960 = vst.msk [vmem:[#allocation2 + $0xc0] sm:$0xf] %vm4910_vm8, %v13978_v17  ;;  %4961 = vst.msk [vmem:[#allocation2 + $0xc4] sm:$0xf] %vm4910_vm8, %v13978_v17 }
 0x218   : > { %v11877_v58 = vcombine.low %v4534_v60, %v4537_v10  ;;  %4963 = vst.msk [vmem:[#allocation2 + $0xcc] sm:$0xf] %vm4910_vm8, %v13978_v17  ;;  %4964 = vst.msk [vmem:[#allocation2 + $0xd0] sm:$0xf] %vm4910_vm8, %v13978_v17 }
 0x219   : > { %4920 = vst.msk [vmem:[#allocation2 + $0x20] sm:$0x3] %vm4913_vm9, %v13978_v17  ;;  %4914 = vst.msk [vmem:[#allocation2 + $0x8] sm:$0x3] %vm4913_vm9, %v13978_v17 }
 0x21a   : > { %4917 = vst.msk [vmem:[#allocation2 + $0x14] sm:$0x3] %vm4913_vm9, %v13978_v17  ;;  %4923 = vst.msk [vmem:[#allocation2 + $0x2c] sm:$0x3] %vm4913_vm9, %v13978_v17 }
 0x21b   : > { %4926 = vst.msk [vmem:[#allocation2 + $0x38] sm:$0x3] %vm4913_vm9, %v13978_v17  ;;  %4929 = vst.msk [vmem:[#allocation2 + $0x44] sm:$0x3] %vm4913_vm9, %v13978_v17 }
 0x21c   : > { %4932 = vst.msk [vmem:[#allocation2 + $0x50] sm:$0x3] %vm4913_vm9, %v13978_v17  ;;  %4935 = vst.msk [vmem:[#allocation2 + $0x5c] sm:$0x3] %vm4913_vm9, %v13978_v17 }
 0x21d   : > { %12999 = vmatmul.mubr.msk.bf16.gmra.mrb[4].mxu0 %vm766_vm4, %v11866_v18  ;;  %4938 = vst.msk [vmem:[#allocation2 + $0x68] sm:$0x3] %vm4913_vm9, %v13978_v17  ;;  %4941 = vst.msk [vmem:[#allocation2 + $0x74] sm:$0x3] %vm4913_vm9, %v13978_v17  ;;  %v5952_v18 = vsel %vm815_vm0, %v11944_v34, 0 }
 0x21e   : > { %13002 = vmatprep.mubr.msk.bf16.mxu0 %vm766_vm4, %v11867_v38  ;;  %4944 = vst.msk [vmem:[#allocation2 + $0x80] sm:$0x3] %vm4913_vm9, %v13978_v17  ;;  %4947 = vst.msk [vmem:[#allocation2 + $0x8c] sm:$0x3] %vm4913_vm9, %v13978_v17  ;;  %13027 = vmatpush3.bf16.msra.mxu1 %v5952_v18  ;;  %v5744_v38 = vsel %vm14296_vm7, %v11928_v43, %v5743_v59 }
 0x21f   : > { %4950 = vst.msk [vmem:[#allocation2 + $0x98] sm:$0x3] %vm4913_vm9, %v13978_v17  ;;  %4953 = vst.msk [vmem:[#allocation2 + $0xa4] sm:$0x3] %vm4913_vm9, %v13978_v17  ;;  %13875 = vmatprep.subr.msk.bf16.mxu1 %vm815_vm0, %v15808_v4 }
 0x220   : > { %4956 = vst.msk [vmem:[#allocation2 + $0xb0] sm:$0x3] %vm4913_vm9, %v13978_v17  ;;  %4959 = vst.msk [vmem:[#allocation2 + $0xbc] sm:$0x3] %vm4913_vm9, %v13978_v17 }
 0x221   : > { %4962 = vst.msk [vmem:[#allocation2 + $0xc8] sm:$0x3] %vm4913_vm9, %v13978_v17  ;;  %4965 = vst.msk [vmem:[#allocation2 + $0xd4] sm:$0x3] %vm4913_vm9, %v13978_v17 }
 0x225   : > { %13003 = vmatmul.mubr.msk.bf16.gmra.mrb[8].mxu0 %vm766_vm4, %v18778_v63  ;;  %v5244_v63 = vld [vmem:[#allocation2] sm:$0xf] }
 0x226   : > { %13006 = vmatprep.mubr.msk.bf16.mxu0 %vm766_vm4, %v11869_v19  ;;  %v5293_v56 = vshrl.u32 %v5244_v63, 16  ;;  %v5296_v51 = vshll.u32 %v5244_v63, 16 }
 0x228   : > { %v5298_v35 = vrot.slane %v5296_v51, 5 }
 0x22d   : > { %13007 = vmatmul.mubr.msk.bf16.gmra.mrb[12].mxu0 %vm766_vm4, %v18781_v33  ;;  %v5295_v33 = vrot.slane %v5293_v56, 4 }
 0x22e   : > { %13010 = vmatprep.mubr.msk.bf16.mxu0 %vm766_vm4, %v11871_v1  ;;  %v15833_v1 = vld [vmem:[%s18563_s2] ss:$0 sm:$0xff] }
 0x22f   : > { %v5299_v7 = vor.u32 %v5298_v35, %v5295_v33 }
 0x235   : > { %13011 = vmatmul.mubr.msk.bf16.gmra.mrb[16].mxu0 %vm766_vm4, %v18784_v53 }
 0x236   : > { %13014 = vmatprep.mubr.msk.bf16.mxu0 %vm766_vm4, %v11873_v9 }
 0x23d   : > { %13015 = vmatmul.mubr.msk.bf16.gmra.mrb[20].mxu0 %vm766_vm4, %v18787_v22  ;;  %v5310_v22 = vrot.slane %v5309_v45, 4 }
 0x23e   : > { %13018 = vmatprep.mubr.msk.bf16.mxu0 %vm766_vm4, %v11875_v14 }
 0x245   : > { %13019 = vmatmul.mubr.msk.bf16.gmra.mrb[24].mxu0 %vm766_vm4, %v18790_v2  ;;  %v5300_v2 = vrot.slane %v5299_v7, 4 }
 0x246   : > { %13022 = vmatprep.mubr.msk.bf16.mxu0 %vm766_vm4, %v11877_v58 }
 0x24d   : > { %13023 = vmatmul.mubr.msk.bf16.gmra.mrb[28].mxu0 %vm766_vm4, %v11878_v25  ;;  %v5246_v25 = vld [vmem:[#allocation2 + $0x8] sm:$0x1] }
 0x24e   : > { %v5746_v26 = vrot.slane %v5246_v25, 5  ;;  %v5312_v55 = vshll.u32 %v5246_v25, 16 }
 0x250   : > { %v5747_v40 = vsel %vm14296_vm7, %v5745_v31, %v5746_v26  ;;  %v5314_v60 = vrot.slane %v5312_v55, 5 }
 0x251   : > { %v11945_v23 = vcombine.low %v5744_v38, %v5747_v40 }
 0x252   : > { %v5315_v46 = vsel %vm14078_vm3, %v5310_v22, %v5314_v60 }
 0x253   : > { %13028 = vmatprep.mubr.msk.bf16.mxu1 %vm766_vm4, %v11945_v23 }
 0x295   : > { %v15812_v42 = vpop.f32.mrb[0].mxu1 }
 0x296   : > { %v15814_v41 = vpop.f32.mrb[1].mxu1 }
 0x297   : > { %v15816_v8 = vpop.f32.mrb[2].mxu1 }
 0x298   : > { %v15818_v39 = vpop.f32.mrb[3].mxu1 }
 0x2a3   : > { %v15820_v19 = vpop.f32.mrb[4].mxu1 }
 0x2a4   : > { %v15822_v15 = vpop.f32.mrb[5].mxu1 }
 0x2a5   : > { %v15824_v50 = vpop.f32.mrb[6].mxu1 }
 0x2a6   : > { %v15826_v49 = vpop.f32.mrb[7].mxu1 }
 0x2e8   : > { %v12996_v61 = vpop.f32.mrb[0].mxu0 }
 0x2e9   : > { %v4848_v54 = vadd.f32 %v12996_v61, %v15833_v1  ;;  %v4680_v0 = vpop.f32.mrb[1].mxu0  ;;  %v5305_v61 = vsel %vm14078_vm3, %v5300_v2, %v15837_v57 }
 0x2ea   : > { %v4846_v16 = vadd.f32 %v15833_v1, %v4680_v0  ;;  %v12997_v37 = vpop.f32.mrb[2].mxu0 }
 0x2eb   : > { %v4880_v48 = vmax.f32 %v4848_v54, 0.0  ;;  %v4849_v9 = vadd.f32 %v12997_v37, %v15833_v1  ;;  %v4683_v28 = vpop.f32.mrb[3].mxu0  ;;  %v15872_v54 = vld [vmem:[%s18564_s3 + $0x8] sm:$0xf]  ;;  %v15877_v37 = vsel %vm815_vm0, %v15808_v4, 0 }
 0x2ec   : > { %v4878_v3 = vmax.f32 %v4846_v16, 0.0  ;;  %v4847_v24 = vadd.f32 %v15833_v1, %v4683_v28 }
 0x2ed   : > { %v12335_v53 = vpack.c.bf16 %v4880_v48, %v4880_v48  ;;  %v4881_v32 = vmax.f32 %v4849_v9, 0.0 }
 0x2ee   : > { %v12333_v6 = vpack.c.bf16 %v4878_v3, %v4878_v3  ;;  %v4879_v11 = vmax.f32 %v4847_v24, 0.0  ;;  %v15879_v3 = vcombine.low %v5305_v61, %v5315_v46  ;;  %v15883_v24 = vsel %vm815_vm0, %v15872_v54, 0 }
 0x2ef   : > { %v5070_v14 = vrot.slane %v12335_v53, 7  ;;  %v12336_v12 = vpack.c.bf16 %v4881_v32, %v4881_v32 }
 0x2f0   : > { %v5065_v44 = vrot.slane %v12333_v6, 7  ;;  %v12334_v52 = vpack.c.bf16 %v4879_v11, %v4879_v11  ;;  %v13000_v30 = vpop.f32.mrb[4].mxu0 }
 0x2f1   : > { %v5071_v10 = vrot.slane %v5070_v14, 4  ;;  %5199 = vst.msk [vmem:[#allocation2 + $0x18] sm:$0xe] %vm5194_vm12, %v5070_v14  ;;  %v5072_v58 = vrot.slane %v12336_v12, 7  ;;  %v4852_v36 = vadd.f32 %v13000_v30, %v15833_v1  ;;  %v4696_v47 = vpop.f32.mrb[5].mxu0 }
 0x2f2   : > { %v5066_v17 = vrot.slane %v5065_v44, 4  ;;  %5195 = vst.msk [vmem:[#allocation2 + $0xc] sm:$0xe] %vm5194_vm12, %v5065_v44  ;;  %v5067_v59 = vrot.slane %v12334_v52, 7  ;;  %v4850_v25 = vadd.f32 %v15833_v1, %v4696_v47  ;;  %v13001_v5 = vpop.f32.mrb[6].mxu0 }
 0x2f3   : > { %v5073_v34 = vsel %vm15847_vm13, %v5071_v10, %v5072_v58  ;;  %v5074_v43 = vrot.slane %v5072_v58, 4  ;;  %v4884_v31 = vmax.f32 %v4852_v36, 0.0  ;;  %v4853_v26 = vadd.f32 %v13001_v5, %v15833_v1  ;;  %v4699_v18 = vpop.f32.mrb[7].mxu0 }
 0x2f4   : > { %5200 = vst.msk [vmem:[#allocation2 + $0x1c] sm:$0xf] %vm4910_vm8, %v5073_v34  ;;  %v5068_v38 = vsel %vm15847_vm13, %v5066_v17, %v5067_v59  ;;  %v5069_v40 = vrot.slane %v5067_v59, 4  ;;  %v4882_v23 = vmax.f32 %v4850_v25, 0.0  ;;  %v4851_v63 = vadd.f32 %v15833_v1, %v4699_v18 }
 0x2f5   : > { %5201 = vst.msk [vmem:[#allocation2 + $0x20] sm:$0x1] %vm5197_vm14, %v5074_v43  ;;  %v12339_v56 = vpack.c.bf16 %v4884_v31, %v4884_v31  ;;  %v4885_v51 = vmax.f32 %v4853_v26, 0.0 }
 0x2f6   : > { %5196 = vst.msk [vmem:[#allocation2 + $0x10] sm:$0xf] %vm4910_vm8, %v5068_v38  ;;  %v12337_v0 = vpack.c.bf16 %v4882_v23, %v4882_v23  ;;  %v4883_v33 = vmax.f32 %v4851_v63, 0.0 }
 0x2f7   : > { %5198 = vst.msk [vmem:[#allocation2 + $0x14] sm:$0x1] %vm5197_vm14, %v5069_v40  ;;  %v5080_v35 = vrot.slane %v12339_v56, 7  ;;  %v12340_v16 = vpack.c.bf16 %v4885_v51, %v4885_v51 }
 0x2f8   : > { %v5075_v48 = vrot.slane %v12337_v0, 7  ;;  %v12338_v57 = vpack.c.bf16 %v4883_v33, %v4883_v33  ;;  %v13004_v9 = vpop.f32.mrb[8].mxu0  ;;  %v5679_v28 = vld [vmem:[#allocation2 + $0x18] sm:$0xe] }
 0x2f9   : > { %v5081_v45 = vrot.slane %v5080_v35, 4  ;;  %5205 = vst.msk [vmem:[#allocation2 + $0x30] sm:$0xe] %vm5194_vm12, %v5080_v35  ;;  %v5082_v55 = vrot.slane %v12340_v16, 7  ;;  %v4856_v53 = vadd.f32 %v13004_v9, %v15833_v1  ;;  %v4712_v32 = vpop.f32.mrb[9].mxu0  ;;  %v11930_v4 = vrot.slane %v5679_v28, 9 }
 0x2fa   : > { %v5678_v7 = vld [vmem:[#allocation2 + $0xc] sm:$0xe]  ;;  %v5076_v6 = vrot.slane %v5075_v48, 4  ;;  %5202 = vst.msk [vmem:[#allocation2 + $0x24] sm:$0xe] %vm5194_vm12, %v5075_v48  ;;  %v5077_v11 = vrot.slane %v12338_v57, 7  ;;  %v4854_v14 = vadd.f32 %v15833_v1, %v4712_v32 }
 0x2fb   : > { %v13005_v12 = vpop.f32.mrb[10].mxu0  ;;  %v11929_v44 = vrot.slane %v5678_v7, 9  ;;  %v5083_v52 = vsel %vm15847_vm13, %v5081_v45, %v5082_v55  ;;  %v5084_v30 = vrot.slane %v5082_v55, 4  ;;  %v4888_v22 = vmax.f32 %v4856_v53, 0.0  ;;  %v15892_v58 = vld [vmem:[#allocation2 + $0x1c] sm:$0xf] }
 0x2fc   : > { %v4857_v60 = vadd.f32 %v13005_v12, %v15833_v1  ;;  %v4715_v10 = vpop.f32.mrb[11].mxu0  ;;  %5206 = vst.msk [vmem:[#allocation2 + $0x34] sm:$0xf] %vm4910_vm8, %v5083_v52  ;;  %v5078_v36 = vsel %vm15847_vm13, %v5076_v6, %v5077_v11  ;;  %v5079_v47 = vrot.slane %v5077_v11, 4  ;;  %v4886_v2 = vmax.f32 %v4854_v14, 0.0 }
 0x2fd   : > { %v4855_v17 = vadd.f32 %v15833_v1, %v4715_v10  ;;  %v15898_v59 = vld [vmem:[#allocation2 + $0x10] sm:$0xf]  ;;  %v15900_v25 = vld [vmem:[#allocation2 + $0x20] sm:$0x1]  ;;  %5207 = vst.msk [vmem:[#allocation2 + $0x38] sm:$0x1] %vm5197_vm14, %v5084_v30  ;;  %v12343_v5 = vpack.c.bf16 %v4888_v22, %v4888_v22 }
 0x2fe   : > { %5203 = vst.msk [vmem:[#allocation2 + $0x28] sm:$0xf] %vm4910_vm8, %v5078_v36  ;;  %v4889_v34 = vmax.f32 %v4857_v60, 0.0  ;;  %v15904_v43 = vld [vmem:[#allocation2 + $0x14] sm:$0x1]  ;;  %v5750_v31 = vrot.slane %v15898_v59, 5  ;;  %v12341_v18 = vpack.c.bf16 %v4886_v2, %v4886_v2 }
 0x2ff   : > { %v5757_v26 = vrot.slane %v15892_v58, 5  ;;  %5204 = vst.msk [vmem:[#allocation2 + $0x2c] sm:$0x1] %vm5197_vm14, %v5079_v47  ;;  %v4887_v38 = vmax.f32 %v4855_v17, 0.0  ;;  %v5753_v40 = vrot.slane %v15904_v43, 5  ;;  %v5760_v23 = vrot.slane %v15900_v25, 5 }
 0x300   : > { %v5090_v63 = vrot.slane %v12343_v5, 7  ;;  %v12344_v56 = vpack.c.bf16 %v4889_v34, %v4889_v34  ;;  %v5751_v51 = vsel %vm14296_vm7, %v11929_v44, %v5750_v31  ;;  %v5752_v61 = vrot.slane %v5750_v31, 4  ;;  %v13008_v33 = vpop.f32.mrb[12].mxu0  ;;  %v5681_v47 = vld [vmem:[#allocation2 + $0x30] sm:$0xe] }
 0x301   : > { %v5085_v46 = vrot.slane %v12341_v18, 7  ;;  %v12342_v0 = vpack.c.bf16 %v4887_v38, %v4887_v38  ;;  %v5758_v35 = vsel %vm14296_vm7, %v11930_v4, %v5757_v26  ;;  %v5759_v16 = vrot.slane %v5757_v26, 4  ;;  %v4728_v28 = vpop.f32.mrb[13].mxu0  ;;  %v5680_v4 = vld [vmem:[#allocation2 + $0x24] sm:$0xe] }
 0x302   : > { %v5091_v48 = vrot.slane %v5090_v63, 4  ;;  %5211 = vst.msk [vmem:[#allocation2 + $0x48] sm:$0xe] %vm5194_vm12, %v5090_v63  ;;  %v5092_v57 = vrot.slane %v12344_v56, 7  ;;  %v4860_v9 = vadd.f32 %v13008_v33, %v15833_v1  ;;  %v5754_v45 = vsel %vm14296_vm7, %v5752_v61, %v5753_v40  ;;  %v13009_v7 = vpop.f32.mrb[14].mxu0 }
 0x303   : > { %v5086_v55 = vrot.slane %v5085_v46, 4  ;;  %5208 = vst.msk [vmem:[#allocation2 + $0x3c] sm:$0xe] %vm5194_vm12, %v5085_v46  ;;  %v5087_v53 = vrot.slane %v12342_v0, 7  ;;  %v4858_v32 = vadd.f32 %v15833_v1, %v4728_v28  ;;  %v11946_v6 = vcombine.low %v5751_v51, %v5754_v45  ;;  %v4731_v52 = vpop.f32.mrb[15].mxu0 }
 0x304   : > { %v5093_v11 = vsel %vm15847_vm13, %v5091_v48, %v5092_v57  ;;  %v5094_v14 = vrot.slane %v5092_v57, 4  ;;  %v4892_v12 = vmax.f32 %v4860_v9, 0.0  ;;  %v4861_v44 = vadd.f32 %v13009_v7, %v15833_v1  ;;  %v15940_v63 = vld [vmem:[#allocation2 + $0x34] sm:$0xf] }
 0x305   : > { %5212 = vst.msk [vmem:[#allocation2 + $0x4c] sm:$0xf] %vm4910_vm8, %v5093_v11  ;;  %v5088_v30 = vsel %vm15847_vm13, %v5086_v55, %v5087_v53  ;;  %v5089_v22 = vrot.slane %v5087_v53, 4  ;;  %v4890_v60 = vmax.f32 %v4858_v32, 0.0  ;;  %v4859_v10 = vadd.f32 %v15833_v1, %v4731_v52  ;;  %13029 = vmatmul.mubr.msk.bf16.vlgmr.msra.gmra.mrb[8].mxu1 %vm766_vm4, %v11946_v6  ;;  %v15929_v36 = vld [vmem:[#allocation2 + $0x28] sm:$0xf] }
 0x306   : > { %5213 = vst.msk [vmem:[#allocation2 + $0x50] sm:$0x1] %vm5197_vm14, %v5094_v14  ;;  %v12347_v2 = vpack.c.bf16 %v4892_v12, %v4892_v12  ;;  %v4893_v17 = vmax.f32 %v4861_v44, 0.0  ;;  %v5761_v5 = vsel %vm14296_vm7, %v5759_v16, %v5760_v23  ;;  %13061 = vmatpush3.bf16.msra.mxu1 %v15877_v37  ;;  %v15936_v34 = vld [vmem:[#allocation2 + $0x2c] sm:$0x1]  ;;  %v11931_v31 = vrot.slane %v5680_v4, 9 }
 0x307   : > { %5209 = vst.msk [vmem:[#allocation2 + $0x40] sm:$0xf] %vm4910_vm8, %v5088_v30  ;;  %v12345_v26 = vpack.c.bf16 %v4890_v60, %v4890_v60  ;;  %v4891_v18 = vmax.f32 %v4859_v10, 0.0  ;;  %v11947_v38 = vcombine.low %v5758_v35, %v5761_v5  ;;  %v5764_v40 = vrot.slane %v15929_v36, 5  ;;  %13876 = vmatprep.subr.msk.bf16.mxu1 %vm815_vm0, %v15872_v54  ;;  %v15958_v12 = vld [vmem:[#allocation2 + $0x38] sm:$0x1] }
 0x308   : > { %5210 = vst.msk [vmem:[#allocation2 + $0x44] sm:$0x1] %vm5197_vm14, %v5089_v22  ;;  %v5100_v56 = vrot.slane %v12347_v2, 7  ;;  %v12348_v51 = vpack.c.bf16 %v4893_v17, %v4893_v17  ;;  %v5767_v23 = vrot.slane %v15936_v34, 5  ;;  %v11932_v37 = vrot.slane %v5681_v47, 9  ;;  %v13012_v0 = vpop.f32.mrb[16].mxu0 }
 0x309   : > { %v5095_v61 = vrot.slane %v12345_v26, 7  ;;  %v12346_v46 = vpack.c.bf16 %v4891_v18, %v4891_v18  ;;  %13032 = vmatprep.mubr.msk.bf16.mxu1 %vm766_vm4, %v11947_v38  ;;  %v5765_v33 = vsel %vm14296_vm7, %v11931_v31, %v5764_v40  ;;  %v5766_v35 = vrot.slane %v5764_v40, 4  ;;  %v4744_v57 = vpop.f32.mrb[17].mxu0  ;;  %v6376_v62 = vld [vmem:[#allocation2 + $0x14] sm:$0x3] }
 0x30a   : > { %v5101_v16 = vrot.slane %v5100_v56, 4  ;;  %5217 = vst.msk [vmem:[#allocation2 + $0x60] sm:$0xe] %vm5194_vm12, %v5100_v56  ;;  %v5102_v48 = vrot.slane %v12348_v51, 7  ;;  %v4864_v54 = vadd.f32 %v13012_v0, %v15833_v1  ;;  %v5771_v9 = vrot.slane %v15940_v63, 5  ;;  %v13013_v53 = vpop.f32.mrb[18].mxu0 }
 0x30b   : > { %v5096_v28 = vrot.slane %v5095_v61, 4  ;;  %5214 = vst.msk [vmem:[#allocation2 + $0x54] sm:$0xe] %vm5194_vm12, %v5095_v61  ;;  %v5097_v45 = vrot.slane %v12346_v46, 7  ;;  %v4862_v55 = vadd.f32 %v15833_v1, %v4744_v57  ;;  %v5768_v32 = vsel %vm14296_vm7, %v5766_v35, %v5767_v23  ;;  %v4747_v14 = vpop.f32.mrb[19].mxu0 }
 0x30c   : > { %v5103_v7 = vsel %vm15847_vm13, %v5101_v16, %v5102_v48  ;;  %v5104_v6 = vrot.slane %v5102_v48, 4  ;;  %v4896_v4 = vmax.f32 %v4864_v54, 0.0  ;;  %v4865_v11 = vadd.f32 %v13013_v53, %v15833_v1  ;;  %v5682_v10 = vld [vmem:[#allocation2 + $0x3c] sm:$0xe] }
 0x30d   : > { %5218 = vst.msk [vmem:[#allocation2 + $0x64] sm:$0xf] %vm4910_vm8, %v5103_v7  ;;  %v5098_v44 = vsel %vm15847_vm13, %v5096_v28, %v5097_v45  ;;  %v5099_v52 = vrot.slane %v5097_v45, 4  ;;  %v4894_v30 = vmax.f32 %v4862_v55, 0.0  ;;  %v4863_v22 = vadd.f32 %v15833_v1, %v4747_v14  ;;  %v5683_v28 = vld [vmem:[#allocation2 + $0x48] sm:$0xe] }
 0x30e   : > { %v15964_v60 = vld [vmem:[#allocation2 + $0x40] sm:$0xf]  ;;  %5219 = vst.msk [vmem:[#allocation2 + $0x68] sm:$0x1] %vm5197_vm14, %v5104_v6  ;;  %v12351_v47 = vpack.c.bf16 %v4896_v4, %v4896_v4  ;;  %v4897_v2 = vmax.f32 %v4865_v11, 0.0  ;;  %v11948_v17 = vcombine.low %v5765_v33, %v5768_v32  ;;  %v5772_v5 = vsel %vm14296_vm7, %v11932_v37, %v5771_v9 }
 0x30f   : > { %5215 = vst.msk [vmem:[#allocation2 + $0x58] sm:$0xf] %vm4910_vm8, %v5098_v44  ;;  %v15970_v31 = vld [vmem:[#allocation2 + $0x44] sm:$0x1]  ;;  %v12349_v26 = vpack.c.bf16 %v4894_v30, %v4894_v30  ;;  %v4895_v18 = vmax.f32 %v4863_v22, 0.0  ;;  %v5773_v38 = vrot.slane %v5771_v9, 4 }
 0x310   : > { %5216 = vst.msk [vmem:[#allocation2 + $0x5c] sm:$0x1] %vm5197_vm14, %v5099_v52  ;;  %v5774_v40 = vrot.slane %v15958_v12, 5  ;;  %v5110_v56 = vrot.slane %v12351_v47, 7  ;;  %v12352_v51 = vpack.c.bf16 %v4897_v2, %v4897_v2  ;;  %13033 = vmatmul.mubr.msk.bf16.gmra.mrb[12].mxu1 %vm766_vm4, %v11948_v17  ;;  %v11933_v23 = vrot.slane %v5682_v10, 9  ;;  %v13016_v33 = vpop.f32.mrb[20].mxu0 }
 0x311   : > { %v5778_v61 = vrot.slane %v15964_v60, 5  ;;  %v5105_v46 = vrot.slane %v12349_v26, 7  ;;  %v12350_v0 = vpack.c.bf16 %v4895_v18, %v4895_v18  ;;  %v5781_v35 = vrot.slane %v15970_v31, 5  ;;  %v4760_v9 = vpop.f32.mrb[21].mxu0  ;;  %v15985_v6 = vld [vmem:[#allocation2 + $0x4c] sm:$0xf] }
 0x312   : > { %v5775_v37 = vsel %vm14296_vm7, %v5773_v38, %v5774_v40  ;;  %v5111_v16 = vrot.slane %v5110_v56, 4  ;;  %5223 = vst.msk [vmem:[#allocation2 + $0x78] sm:$0xe] %vm5194_vm12, %v5110_v56  ;;  %v5112_v48 = vrot.slane %v12352_v51, 7  ;;  %v4868_v57 = vadd.f32 %v13016_v33, %v15833_v1  ;;  %v13017_v32 = vpop.f32.mrb[22].mxu0 }
 0x313   : > { %v11949_v54 = vcombine.low %v5772_v5, %v5775_v37  ;;  %v5106_v45 = vrot.slane %v5105_v46, 4  ;;  %5220 = vst.msk [vmem:[#allocation2 + $0x6c] sm:$0xe] %vm5194_vm12, %v5105_v46  ;;  %v5107_v55 = vrot.slane %v12350_v0, 7  ;;  %v4866_v53 = vadd.f32 %v15833_v1, %v4760_v9  ;;  %v4763_v52 = vpop.f32.mrb[23].mxu0 }
 0x314   : > { %v5779_v7 = vsel %vm14296_vm7, %v11933_v23, %v5778_v61  ;;  %v5113_v4 = vsel %vm15847_vm13, %v5111_v16, %v5112_v48  ;;  %v5114_v11 = vrot.slane %v5112_v48, 4  ;;  %v4900_v14 = vmax.f32 %v4868_v57, 0.0  ;;  %v15991_v30 = vld [vmem:[#allocation2 + $0x50] sm:$0x1]  ;;  %v5684_v17 = vld [vmem:[#allocation2 + $0x54] sm:$0xe] }
 0x315   : > { %13036 = vmatprep.mubr.msk.bf16.mxu1 %vm766_vm4, %v11949_v54  ;;  %v4869_v44 = vadd.f32 %v13017_v32, %v15833_v1  ;;  %5224 = vst.msk [vmem:[#allocation2 + $0x7c] sm:$0xf] %vm4910_vm8, %v5113_v4  ;;  %v5108_v22 = vsel %vm15847_vm13, %v5106_v45, %v5107_v55  ;;  %v5109_v10 = vrot.slane %v5107_v55, 4  ;;  %v4898_v47 = vmax.f32 %v4866_v53, 0.0 }
 0x316   : > { %v4867_v2 = vadd.f32 %v15833_v1, %v4763_v52  ;;  %5225 = vst.msk [vmem:[#allocation2 + $0x80] sm:$0x1] %vm5197_vm14, %v5114_v11  ;;  %v12355_v5 = vpack.c.bf16 %v4900_v14, %v4900_v14  ;;  %v5780_v18 = vrot.slane %v5778_v61, 4  ;;  %v11934_v38 = vrot.slane %v5683_v28, 9  ;;  %v16004_v33 = vld [vmem:[#allocation2 + $0x58] sm:$0xf] }
 0x317   : > { %5221 = vst.msk [vmem:[#allocation2 + $0x70] sm:$0xf] %vm4910_vm8, %v5108_v22  ;;  %v4901_v26 = vmax.f32 %v4869_v44, 0.0  ;;  %v12353_v40 = vpack.c.bf16 %v4898_v47, %v4898_v47  ;;  %v5785_v51 = vrot.slane %v15985_v6, 5  ;;  %v5788_v23 = vrot.slane %v15991_v30, 5 }
 0x318   : > { %5222 = vst.msk [vmem:[#allocation2 + $0x74] sm:$0x1] %vm5197_vm14, %v5109_v10  ;;  %v4899_v56 = vmax.f32 %v4867_v2, 0.0  ;;  %v5120_v46 = vrot.slane %v12355_v5, 7  ;;  %v5782_v37 = vsel %vm14296_vm7, %v5780_v18, %v5781_v35  ;;  %v11935_v16 = vrot.slane %v5684_v17, 9  ;;  %v13020_v9 = vpop.f32.mrb[24].mxu0 }
 0x319   : > { %v12356_v0 = vpack.c.bf16 %v4901_v26, %v4901_v26  ;;  %v5115_v48 = vrot.slane %v12353_v40, 7  ;;  %v11950_v61 = vcombine.low %v5779_v7, %v5782_v37  ;;  %v5786_v57 = vsel %vm14296_vm7, %v11934_v38, %v5785_v51  ;;  %v4776_v32 = vpop.f32.mrb[25].mxu0  ;;  %v16019_v47 = vld [vmem:[#allocation2 + $0x5c] sm:$0x1]  ;;  %v5685_v2 = vld [vmem:[#allocation2 + $0x60] sm:$0xe] }
 0x31a   : > { %v12354_v54 = vpack.c.bf16 %v4899_v56, %v4899_v56  ;;  %v5121_v28 = vrot.slane %v5120_v46, 4  ;;  %5229 = vst.msk [vmem:[#allocation2 + $0x90] sm:$0xe] %vm5194_vm12, %v5120_v46  ;;  %v5787_v55 = vrot.slane %v5785_v51, 4  ;;  %v13352_v53 = vadd.f32 %v13020_v9, %v15812_v42  ;;  %v13021_v11 = vpop.f32.mrb[26].mxu0 }
 0x31b   : > { %v5122_v45 = vrot.slane %v12356_v0, 7  ;;  %v5116_v4 = vrot.slane %v5115_v48, 4  ;;  %5226 = vst.msk [vmem:[#allocation2 + $0x84] sm:$0xe] %vm5194_vm12, %v5115_v48  ;;  %13037 = vmatmul.mubr.msk.bf16.gmra.mrb[16].mxu1 %vm766_vm4, %v11950_v61  ;;  %v13353_v7 = vadd.f32 %v4776_v32, %v15814_v41  ;;  %v5792_v14 = vrot.slane %v16004_v33, 5  ;;  %v4779_v10 = vpop.f32.mrb[27].mxu0 }
 0x31c   : > { %v5117_v35 = vrot.slane %v12354_v54, 7  ;;  %v5789_v22 = vsel %vm14296_vm7, %v5787_v55, %v5788_v23  ;;  %v4872_v42 = vadd.f32 %v13352_v53, %v15833_v1  ;;  %v16025_v18 = vld [vmem:[#allocation2 + $0x64] sm:$0xf]  ;;  %v13354_v40 = vadd.f32 %v13021_v11, %v15816_v8  ;;  %v16033_v23 = vld [vmem:[#allocation2 + $0x68] sm:$0x1] }
 0x31d   : > { %v5123_v44 = vsel %vm15847_vm13, %v5121_v28, %v5122_v45  ;;  %v5124_v52 = vrot.slane %v5122_v45, 4  ;;  %v11951_v5 = vcombine.low %v5786_v57, %v5789_v22  ;;  %v4870_v26 = vadd.f32 %v13353_v7, %v15833_v1  ;;  %v16035_v46 = vld [vmem:[#allocation2 + $0x6c] sm:$0xe] }
 0x31e   : > { %5230 = vst.msk [vmem:[#allocation2 + $0x94] sm:$0xf] %vm4910_vm8, %v5123_v44  ;;  %v5118_v41 = vsel %vm15847_vm13, %v5116_v4, %v5117_v35  ;;  %v5119_v17 = vrot.slane %v5117_v35, 4  ;;  %v4904_v38 = vmax.f32 %v4872_v42, 0.0  ;;  %v13355_v56 = vadd.f32 %v4779_v10, %v15818_v39 }
 0x31f   : > { %5231 = vst.msk [vmem:[#allocation2 + $0x98] sm:$0x1] %vm5197_vm14, %v5124_v52  ;;  %v5793_v51 = vsel %vm14296_vm7, %v11935_v16, %v5792_v14  ;;  %13040 = vmatprep.mubr.msk.bf16.mxu1 %vm766_vm4, %v11951_v5  ;;  %v4902_v0 = vmax.f32 %v4870_v26, 0.0  ;;  %v5794_v37 = vrot.slane %v5792_v14, 4  ;;  %v5795_v48 = vrot.slane %v16019_v47, 5 }
 0x320   : > { %5227 = vst.msk [vmem:[#allocation2 + $0x88] sm:$0xf] %vm4910_vm8, %v5118_v41  ;;  %v11936_v54 = vrot.slane %v5685_v2, 9  ;;  %v12359_v61 = vpack.c.bf16 %v4904_v38, %v4904_v38  ;;  %v4873_v8 = vadd.f32 %v13354_v40, %v15833_v1  ;;  %v4871_v39 = vadd.f32 %v13355_v56, %v15833_v1  ;;  %v13024_v45 = vpop.f32.mrb[28].mxu0  ;;  %v16053_v5 = vld [vmem:[#allocation2 + $0x70] sm:$0xf] }
 0x321   : > { %5228 = vst.msk [vmem:[#allocation2 + $0x8c] sm:$0x1] %vm5197_vm14, %v5119_v17  ;;  %v5799_v16 = vrot.slane %v16025_v18, 5  ;;  %v12357_v57 = vpack.c.bf16 %v4902_v0, %v4902_v0  ;;  %v5796_v9 = vsel %vm14296_vm7, %v5794_v37, %v5795_v48  ;;  %v5802_v28 = vrot.slane %v16033_v23, 5  ;;  %v4792_v7 = vpop.f32.mrb[29].mxu0 }
 0x322   : > { %v11937_v55 = vrot.slane %v16035_v46, 9  ;;  %v5130_v53 = vrot.slane %v12359_v61, 7  ;;  %v4905_v32 = vmax.f32 %v4873_v8, 0.0  ;;  %v4903_v4 = vmax.f32 %v4871_v39, 0.0  ;;  %v13025_v22 = vpop.f32.mrb[30].mxu0 }
 0x323   : > { %v11952_v35 = vcombine.low %v5793_v51, %v5796_v9  ;;  %v5125_v11 = vrot.slane %v12357_v57, 7  ;;  %v5800_v14 = vsel %vm14296_vm7, %v11936_v54, %v5799_v16  ;;  %v5801_v44 = vrot.slane %v5799_v16, 4  ;;  %v4795_v17 = vpop.f32.mrb[31].mxu0  ;;  %v16063_v54 = vld [vmem:[#allocation2 + $0x74] sm:$0x1] }
 0x324   : > { %v13356_v52 = vadd.f32 %v13024_v45, %v15820_v19  ;;  %v5131_v42 = vrot.slane %v5130_v53, 4  ;;  %5235 = vst.msk [vmem:[#allocation2 + $0xa8] sm:$0xe] %vm5194_vm12, %v5130_v53  ;;  %v12360_v10 = vpack.c.bf16 %v4905_v32, %v4905_v32  ;;  %v12358_v2 = vpack.c.bf16 %v4903_v4, %v4903_v4  ;;  %v5687_v8 = vld [vmem:[#allocation2 + $0x78] sm:$0xe] }
 0x325   : > { %13041 = vmatmul.mubr.msk.bf16.gmra.mrb[20].mxu1 %vm766_vm4, %v11952_v35  ;;  %v13357_v41 = vadd.f32 %v4792_v7, %v15822_v15  ;;  %v5126_v26 = vrot.slane %v5125_v11, 4  ;;  %5232 = vst.msk [vmem:[#allocation2 + $0x9c] sm:$0xe] %vm5194_vm12, %v5125_v11  ;;  %v5803_v38 = vsel %vm14296_vm7, %v5801_v44, %v5802_v28  ;;  %v13358_v40 = vadd.f32 %v13025_v22, %v15824_v50  ;;  %v16071_v9 = vld [vmem:[#allocation2 + $0x7c] sm:$0xf] }
 0x326   : > { %v4876_v19 = vadd.f32 %v13356_v52, %v15833_v1  ;;  %v5132_v56 = vrot.slane %v12360_v10, 7  ;;  %v5127_v51 = vrot.slane %v12358_v2, 7  ;;  %v11953_v46 = vcombine.low %v5800_v14, %v5803_v38  ;;  %v16076_v32 = vld [vmem:[#allocation2 + $0x80] sm:$0x1]  ;;  %v5688_v4 = vld [vmem:[#allocation2 + $0x84] sm:$0xe] }
 0x327   : > { %v4874_v0 = vadd.f32 %v13357_v41, %v15833_v1  ;;  %v4877_v15 = vadd.f32 %v13358_v40, %v15833_v1  ;;  %v13359_v48 = vadd.f32 %v4795_v17, %v15826_v49  ;;  %v5806_v61 = vrot.slane %v16053_v5, 5  ;;  %v16083_v10 = vld [vmem:[#allocation2 + $0x88] sm:$0xf] }
 0x328   : > { %v4908_v37 = vmax.f32 %v4876_v19, 0.0  ;;  %v5133_v39 = vsel %vm15847_vm13, %v5131_v42, %v5132_v56  ;;  %v5134_v16 = vrot.slane %v5132_v56, 4  ;;  %v5128_v50 = vsel %vm15847_vm13, %v5126_v26, %v5127_v51  ;;  %13044 = vmatprep.mubr.msk.bf16.mxu1 %vm766_vm4, %v11953_v46  ;;  %v5689_v26 = vld [vmem:[#allocation2 + $0x90] sm:$0xe]  ;;  %v16090_v56 = vld [vmem:[#allocation2 + $0x8c] sm:$0x1] }
 0x329   : > { %v5129_v57 = vrot.slane %v5127_v51, 4  ;;  %5236 = vst.msk [vmem:[#allocation2 + $0xac] sm:$0xf] %vm4910_vm8, %v5133_v39  ;;  %5233 = vst.msk [vmem:[#allocation2 + $0xa0] sm:$0xf] %vm4910_vm8, %v5128_v50  ;;  %v4906_v28 = vmax.f32 %v4874_v0, 0.0  ;;  %v4875_v53 = vadd.f32 %v13359_v48, %v15833_v1  ;;  %v5807_v35 = vsel %vm14296_vm7, %v11937_v55, %v5806_v61 }
 0x32a   : > { %v12363_v49 = vpack.c.bf16 %v4908_v37, %v4908_v37  ;;  %v4909_v45 = vmax.f32 %v4877_v15, 0.0  ;;  %5237 = vst.msk [vmem:[#allocation2 + $0xb0] sm:$0x1] %vm5197_vm14, %v5134_v16  ;;  %v5808_v7 = vrot.slane %v5806_v61, 4  ;;  %v5809_v11 = vrot.slane %v16063_v54, 5 }
 0x32b   : > { %5234 = vst.msk [vmem:[#allocation2 + $0xa4] sm:$0x1] %vm5197_vm14, %v5129_v57  ;;  %v11938_v14 = vrot.slane %v5687_v8, 9  ;;  %v12361_v52 = vpack.c.bf16 %v4906_v28, %v4906_v28  ;;  %v4907_v42 = vmax.f32 %v4875_v53, 0.0  ;;  %v5813_v2 = vrot.slane %v16071_v9, 5 }
 0x32c   : > { %v5140_v44 = vrot.slane %v12363_v49, 7  ;;  %v12364_v22 = vpack.c.bf16 %v4909_v45, %v4909_v45  ;;  %v5810_v1 = vsel %vm14296_vm7, %v5808_v7, %v5809_v11  ;;  %v5816_v41 = vrot.slane %v16076_v32, 5  ;;  %v16092_v51 = vld [vmem:[#allocation2 + $0x94] sm:$0xf]  ;;  %v16097_v48 = vld [vmem:[#allocation2 + $0x98] sm:$0x1] }
 0x32d   : > { %v11939_v17 = vrot.slane %v5688_v4, 9  ;;  %v5135_v38 = vrot.slane %v12361_v52, 7  ;;  %v12362_v40 = vpack.c.bf16 %v4907_v42, %v4907_v42  ;;  %v11954_v46 = vcombine.low %v5807_v35, %v5810_v1  ;;  %v5691_v61 = vld [vmem:[#allocation2 + $0xa8] sm:$0xe]  ;;  %v5690_v57 = vld [vmem:[#allocation2 + $0x9c] sm:$0xe] }
 0x32e   : > { %v5141_v55 = vrot.slane %v5140_v44, 4  ;;  %5241 = vst.msk [vmem:[#allocation2 + $0xc0] sm:$0xe] %vm5194_vm12, %v5140_v44  ;;  %v5142_v19 = vrot.slane %v12364_v22, 7  ;;  %v5814_v0 = vsel %vm14296_vm7, %v11938_v14, %v5813_v2  ;;  %v5815_v37 = vrot.slane %v5813_v2, 4 }
 0x32f   : > { %v5820_v15 = vrot.slane %v16083_v10, 5  ;;  %v5136_v8 = vrot.slane %v5135_v38, 4  ;;  %5238 = vst.msk [vmem:[#allocation2 + $0xb4] sm:$0xe] %vm5194_vm12, %v5135_v38  ;;  %v5137_v50 = vrot.slane %v12362_v40, 7  ;;  %13045 = vmatmul.mubr.msk.bf16.gmra.mrb[24].mxu1 %vm766_vm4, %v11954_v46  ;;  %v5823_v53 = vrot.slane %v16090_v56, 5 }
 0x330   : > { %v5143_v39 = vsel %vm15847_vm13, %v5141_v55, %v5142_v19  ;;  %v5144_v16 = vrot.slane %v5142_v19, 4  ;;  %v5817_v49 = vsel %vm14296_vm7, %v5815_v37, %v5816_v41  ;;  %v16109_v4 = vld [vmem:[#allocation2 + $0xa0] sm:$0xf]  ;;  %v16111_v35 = vld [vmem:[#allocation2 + $0xac] sm:$0xf]  ;;  %v11940_v44 = vrot.slane %v5689_v26, 9 }
 0x331   : > { %5242 = vst.msk [vmem:[#allocation2 + $0xc4] sm:$0xf] %vm4910_vm8, %v5143_v39  ;;  %v5821_v28 = vsel %vm14296_vm7, %v11939_v17, %v5820_v15  ;;  %v5822_v45 = vrot.slane %v5820_v15, 4  ;;  %v5138_v7 = vsel %vm15847_vm13, %v5136_v8, %v5137_v50  ;;  %v5139_v11 = vrot.slane %v5137_v50, 4  ;;  %v16118_v22 = vld [vmem:[#allocation2 + $0xb0] sm:$0x1] }
 0x332   : > { %5243 = vst.msk [vmem:[#allocation2 + $0xc8] sm:$0x1] %vm5197_vm14, %v5144_v16  ;;  %v11955_v14 = vcombine.low %v5814_v0, %v5817_v49  ;;  %v16116_v52 = vld [vmem:[#allocation2 + $0xa4] sm:$0x1]  ;;  %v5827_v1 = vrot.slane %v16092_v51, 5  ;;  %v5830_v2 = vrot.slane %v16097_v48, 5 }
 0x333   : > { %5239 = vst.msk [vmem:[#allocation2 + $0xb8] sm:$0xf] %vm4910_vm8, %v5138_v7  ;;  %v5824_v42 = vsel %vm14296_vm7, %v5822_v45, %v5823_v53  ;;  %v11941_v41 = vrot.slane %v5690_v57, 9  ;;  %v5247_v17 = vld [vmem:[#allocation2 + $0xc] sm:$0xf]  ;;  %v5834_v26 = vrot.slane %v16109_v4, 5 }
 0x334   : > { %5240 = vst.msk [vmem:[#allocation2 + $0xbc] sm:$0x1] %vm5197_vm14, %v5139_v11  ;;  %13048 = vmatprep.mubr.msk.bf16.mxu1 %vm766_vm4, %v11955_v14  ;;  %v11956_v21 = vcombine.low %v5821_v28, %v5824_v42  ;;  %v5837_v55 = vrot.slane %v16116_v52, 5  ;;  %v11942_v38 = vrot.slane %v5691_v61, 9  ;;  %v5828_v19 = vsel %vm14296_vm7, %v11940_v44, %v5827_v1  ;;  %v5250_v28 = vld [vmem:[#allocation2 + $0x18] sm:$0xf] }
 0x335   : > { %v5829_v40 = vrot.slane %v5827_v1, 4  ;;  %v5841_v46 = vrot.slane %v16111_v35, 5  ;;  %v5844_v0 = vrot.slane %v16118_v22, 5  ;;  %v5835_v37 = vsel %vm14296_vm7, %v11941_v41, %v5834_v26  ;;  %v16942_v27 = vld [vmem:[#allocation2 + $0xa8] sm:$0xe] }
 0x336   : > { %v5836_v15 = vrot.slane %v5834_v26, 4  ;;  %v5317_v8 = vshrl.u32 %v5247_v17, 16  ;;  %v5320_v39 = vshll.u32 %v5247_v17, 16  ;;  %v5692_v57 = vld [vmem:[#allocation2 + $0xb4] sm:$0xe]  ;;  %v18587_v49 = vshll.u32 %v15898_v59, 16 }
 0x337   : > { %v5831_v16 = vsel %vm14296_vm7, %v5829_v40, %v5830_v2  ;;  %v5842_v61 = vsel %vm14296_vm7, %v11942_v38, %v5841_v46  ;;  %v5843_v50 = vrot.slane %v5841_v46, 4  ;;  %v11943_v7 = vrot.slane %v5692_v57, 9  ;;  %13049 = vmatmul.mubr.msk.bf16.gmra.mrb[28].mxu1 %vm766_vm4, %v11956_v21  ;;  %18817 = vst [vmem:[#allocation15_spill] sm:$0xff] %v16942_v27 }
 0x338   : > { %v11957_v45 = vcombine.low %v5828_v19, %v5831_v16  ;;  %v5838_v53 = vsel %vm14296_vm7, %v5836_v15, %v5837_v55  ;;  %v5319_v11 = vrot.slane %v5317_v8, 4  ;;  %v5322_v42 = vrot.slane %v5320_v39, 5  ;;  %v5253_v39 = vld [vmem:[#allocation2 + $0x24] sm:$0xf] }
 0x339   : > { %v11958_v14 = vcombine.low %v5835_v37, %v5838_v53  ;;  %v5845_v44 = vsel %vm14296_vm7, %v5843_v50, %v5844_v0  ;;  %v5328_v1 = vrot.slane %v18587_v49, 5  ;;  %v5330_v17 = vshrl.u32 %v15898_v59, 16  ;;  %v5256_v49 = vld [vmem:[#allocation2 + $0x30] sm:$0xf] }
 0x33a   : > { %13052 = vmatprep.mubr.msk.bf16.mxu1 %vm766_vm4, %v11957_v45  ;;  %v11959_v2 = vcombine.low %v5842_v61, %v5845_v44  ;;  %v16148_v41 = vld [vmem:[#allocation2 + $0xb8] sm:$0xf]  ;;  %v5336_v26 = vshll.u32 %v15904_v43, 16  ;;  %v5341_v55 = vshrl.u32 %v5250_v28, 16  ;;  %v5323_v19 = vor.u32 %v5322_v42, %v5319_v11 }
 0x33b   : > { %v16152_v38 = vld [vmem:[#allocation2 + $0xbc] sm:$0x1]  ;;  %v5848_v21 = vrot.slane %v16148_v41, 5  ;;  %v5344_v40 = vshll.u32 %v5250_v28, 16  ;;  %v18586_v46 = vshll.u32 %v15892_v58, 16  ;;  %v5332_v37 = vrot.slane %v5330_v17, 4 }
 0x33c   : > { %v5851_v0 = vrot.slane %v16152_v38, 5  ;;  %v5338_v15 = vrot.slane %v5336_v26, 5  ;;  %v5343_v8 = vrot.slane %v5341_v55, 4  ;;  %v5324_v61 = vrot.slane %v5323_v19, 4 }
 0x33d   : > { %v5849_v43 = vsel %vm14296_vm7, %v11943_v7, %v5848_v21  ;;  %v5850_v16 = vrot.slane %v5848_v21, 4  ;;  %v5346_v50 = vrot.slane %v5344_v40, 5  ;;  %v5333_v57 = vor.u32 %v5332_v37, %v5328_v1 }
 0x33e   : > { %v5352_v28 = vrot.slane %v18586_v46, 5  ;;  %v5354_v45 = vshrl.u32 %v15892_v58, 16  ;;  %v5360_v53 = vshll.u32 %v15900_v25, 16  ;;  %v5329_v44 = vsel %vm14078_vm3, %v5324_v61, %v5328_v1 }
 0x33f   : > { %v5852_v11 = vsel %vm14296_vm7, %v5850_v16, %v5851_v0  ;;  %v5347_v42 = vor.u32 %v5346_v50, %v5343_v8  ;;  %v5365_v26 = vshrl.u32 %v5253_v39, 16  ;;  %v5334_v55 = vrot.slane %v5333_v57, 4  ;;  %13053 = vmatmul.mubr.msk.bf16.gmra.mrb[32].mxu1 %vm766_vm4, %v11958_v14 }
 0x340   : > { %v11960_v7 = vcombine.low %v5849_v43, %v5852_v11  ;;  %v5356_v21 = vrot.slane %v5354_v45, 4  ;;  %v5362_v19 = vrot.slane %v5360_v53, 5  ;;  %v5368_v46 = vshll.u32 %v5253_v39, 16  ;;  %13056 = vmatprep.mubr.msk.bf16.mxu1 %vm766_vm4, %v11959_v2 }
 0x341   : > { %v5348_v40 = vrot.slane %v5347_v42, 4  ;;  %v5367_v37 = vrot.slane %v5365_v26, 4  ;;  %v5374_v25 = vshll.u32 %v15929_v36, 16  ;;  %v5339_v1 = vsel %vm14078_vm3, %v5334_v55, %v5338_v15 }
 0x342   : > { %v5357_v0 = vor.u32 %v5356_v21, %v5352_v28  ;;  %v5378_v8 = vshrl.u32 %v15929_v36, 16  ;;  %v5384_v43 = vshll.u32 %v15936_v34, 16  ;;  %v11978_v16 = vcombine.low %v5329_v44, %v5339_v1  ;;  %v5259_v44 = vld [vmem:[#allocation2 + $0x3c] sm:$0xf] }
 0x343   : > { %v5353_v14 = vsel %vm14078_vm3, %v5348_v40, %v5352_v28  ;;  %v5370_v61 = vrot.slane %v5368_v46, 5  ;;  %v5376_v39 = vrot.slane %v5374_v25, 5  ;;  %v5389_v53 = vshrl.u32 %v5256_v49, 16 }
 0x344   : > { %v5358_v50 = vrot.slane %v5357_v0, 4  ;;  %v5380_v2 = vrot.slane %v5378_v8, 4  ;;  %v5386_v57 = vrot.slane %v5384_v43, 5  ;;  %v5392_v11 = vshll.u32 %v5256_v49, 16 }
 0x345   : > { %v5371_v15 = vor.u32 %v5370_v61, %v5367_v37  ;;  %v18590_v42 = vshll.u32 %v15940_v63, 16  ;;  %v5402_v34 = vshrl.u32 %v15940_v63, 16  ;;  %v5391_v26 = vrot.slane %v5389_v53, 4 }
 0x346   : > { %v5363_v28 = vsel %vm14078_vm3, %v5358_v50, %v5362_v19  ;;  %v5381_v46 = vor.u32 %v5380_v2, %v5376_v39  ;;  %v5408_v55 = vshll.u32 %v15958_v12, 16  ;;  %v5394_v1 = vrot.slane %v5392_v11, 5 }
 0x347   : > { %v11979_v21 = vcombine.low %v5353_v14, %v5363_v28  ;;  %v5372_v40 = vrot.slane %v5371_v15, 4  ;;  %v5400_v0 = vrot.slane %v18590_v42, 5  ;;  %v5404_v49 = vrot.slane %v5402_v34, 4  ;;  %13057 = vmatmul.mubr.msk.bf16.gmra.mrb[36].mxu1 %vm766_vm4, %v11960_v7  ;;  %v5262_v14 = vld [vmem:[#allocation2 + $0x48] sm:$0xf] }
 0x348   : > { %v5382_v37 = vrot.slane %v5381_v46, 4  ;;  %v5410_v43 = vrot.slane %v5408_v55, 5  ;;  %v5413_v61 = vshrl.u32 %v5259_v44, 16  ;;  %v5395_v50 = vor.u32 %v5394_v1, %v5391_v26  ;;  %13062 = vmatprep.mubr.msk.bf16.mxu1 %vm766_vm4, %v15879_v3 }
 0x349   : > { %v5377_v19 = vsel %vm14078_vm3, %v5372_v40, %v5376_v39  ;;  %v5416_v2 = vshll.u32 %v5259_v44, 16  ;;  %v18588_v12 = vshll.u32 %v15964_v60, 16  ;;  %v5405_v15 = vor.u32 %v5404_v49, %v5400_v0 }
 0x34a   : > { %v5387_v53 = vsel %vm14078_vm3, %v5382_v37, %v5386_v57  ;;  %v5415_v11 = vrot.slane %v5413_v61, 4  ;;  %v18589_v28 = vshrl.u32 %v15964_v60, 16  ;;  %v5396_v7 = vrot.slane %v5395_v50, 4  ;;  %v5265_v61 = vld [vmem:[#allocation2 + $0x54] sm:$0xf] }
 0x34b   : > { %v16202_v46 = vcombine.low %v5377_v19, %v5387_v53  ;;  %v5418_v55 = vrot.slane %v5416_v2, 5  ;;  %v5424_v39 = vrot.slane %v18588_v12, 5  ;;  %v5406_v44 = vrot.slane %v5405_v15, 4 }
 0x34c   : > { %v5428_v26 = vrot.slane %v18589_v28, 4  ;;  %v5432_v3 = vshll.u32 %v15970_v31, 16  ;;  %v5437_v40 = vshrl.u32 %v5262_v14, 16  ;;  %v5401_v57 = vsel %vm14078_vm3, %v5396_v7, %v5400_v0  ;;  %v16221_v7 = vld [vmem:[%s18564_s3 + $0xc] sm:$0xf] }
 0x34d   : > { %v5419_v1 = vor.u32 %v5418_v55, %v5415_v11  ;;  %v5440_v37 = vshll.u32 %v5262_v14, 16  ;;  %v5446_v49 = vshll.u32 %v15985_v6, 16  ;;  %v5411_v19 = vsel %vm14078_vm3, %v5406_v44, %v5410_v43 }
 0x34e   : > { %v5429_v50 = vor.u32 %v5428_v26, %v5424_v39  ;;  %v5434_v2 = vrot.slane %v5432_v3, 5  ;;  %v5439_v53 = vrot.slane %v5437_v40, 4  ;;  %v11981_v15 = vcombine.low %v5401_v57, %v5411_v19  ;;  %v5268_v3 = vld [vmem:[#allocation2 + $0x60] sm:$0xf] }
 0x34f   : > { %v5420_v12 = vrot.slane %v5419_v1, 4  ;;  %v5442_v28 = vrot.slane %v5440_v37, 5  ;;  %v5448_v31 = vrot.slane %v5446_v49, 5  ;;  %v5450_v0 = vshrl.u32 %v15985_v6, 16  ;;  %13063 = vmatmul.mubr.msk.bf16.vlgmr.msra.gmra.mrb[8].mxu1 %vm766_vm4, %v11978_v16 }
 0x350   : > { %v5430_v42 = vrot.slane %v5429_v50, 4  ;;  %v5456_v14 = vshll.u32 %v15991_v30, 16  ;;  %v5461_v11 = vshrl.u32 %v5265_v61, 16  ;;  %v5464_v44 = vshll.u32 %v5265_v61, 16  ;;  %13095 = vmatpush3.bf16.msra.mxu1 %v15883_v24  ;;  %13066 = vmatprep.mubr.msk.bf16.mxu1 %vm766_vm4, %v11979_v21 }
 0x351   : > { %v5425_v43 = vsel %vm14078_vm3, %v5420_v12, %v5424_v39  ;;  %v5443_v55 = vor.u32 %v5442_v28, %v5439_v53  ;;  %v18592_v26 = vshll.u32 %v16004_v33, 16  ;;  %v5452_v40 = vrot.slane %v5450_v0, 4  ;;  %13877 = vmatprep.subr.msk.bf16.mxu1 %vm815_vm0, %v16221_v7  ;;  %v5271_v53 = vld [vmem:[#allocation2 + $0x6c] sm:$0xf] }
 0x352   : > { %v5435_v30 = vsel %vm14078_vm3, %v5430_v42, %v5434_v2  ;;  %v5458_v57 = vrot.slane %v5456_v14, 5  ;;  %v5463_v16 = vrot.slane %v5461_v11, 4  ;;  %v5466_v12 = vrot.slane %v5464_v44, 5 }
 0x353   : > { %v11982_v1 = vcombine.low %v5425_v43, %v5435_v30  ;;  %v5444_v37 = vrot.slane %v5443_v55, 4  ;;  %v5472_v28 = vrot.slane %v18592_v26, 5  ;;  %v5453_v24 = vor.u32 %v5452_v40, %v5448_v31 }
 0x354   : > { %v5474_v21 = vshrl.u32 %v16004_v33, 16  ;;  %v5480_v39 = vshll.u32 %v16019_v47, 16  ;;  %v5485_v42 = vshrl.u32 %v5268_v3, 16  ;;  %v5467_v19 = vor.u32 %v5466_v12, %v5463_v16 }
 0x355   : > { %v5449_v61 = vsel %vm14078_vm3, %v5444_v37, %v5448_v31  ;;  %v5488_v50 = vshll.u32 %v5268_v3, 16  ;;  %v18591_v2 = vshll.u32 %v16025_v18, 16  ;;  %v5454_v14 = vrot.slane %v5453_v24, 4 }
 0x356   : > { %v5476_v11 = vrot.slane %v5474_v21, 4  ;;  %v5482_v43 = vrot.slane %v5480_v39, 5  ;;  %v5487_v55 = vrot.slane %v5485_v42, 4  ;;  %v5468_v44 = vrot.slane %v5467_v19, 4  ;;  %v5274_v19 = vld [vmem:[#allocation2 + $0x78] sm:$0xf] }
 0x357   : > { %v5490_v30 = vrot.slane %v5488_v50, 5  ;;  %v5496_v47 = vrot.slane %v18591_v2, 5  ;;  %v5498_v40 = vshrl.u32 %v16025_v18, 16  ;;  %v5459_v31 = vsel %vm14078_vm3, %v5454_v14, %v5458_v57  ;;  %13067 = vmatmul.mubr.msk.bf16.gmra.mrb[12].mxu1 %vm766_vm4, %v16202_v46 }
 0x358   : > { %v5477_v3 = vor.u32 %v5476_v11, %v5472_v28  ;;  %v5504_v16 = vshll.u32 %v16033_v23, 16  ;;  %v5509_v37 = vshrl.u32 %v5271_v53, 16  ;;  %v11983_v12 = vcombine.low %v5449_v61, %v5459_v31  ;;  %13070 = vmatprep.mubr.msk.bf16.mxu1 %vm766_vm4, %v11981_v15 }
 0x359   : > { %v5473_v24 = vsel %vm14078_vm3, %v5468_v44, %v5472_v28  ;;  %v5491_v39 = vor.u32 %v5490_v30, %v5487_v55  ;;  %v5500_v42 = vrot.slane %v5498_v40, 4  ;;  %v5512_v11 = vshll.u32 %v5271_v53, 16 }
 0x35a   : > { %v5478_v50 = vrot.slane %v5477_v3, 4  ;;  %v5506_v57 = vrot.slane %v5504_v16, 5  ;;  %v5511_v14 = vrot.slane %v5509_v37, 4  ;;  %v18595_v26 = vshll.u32 %v16053_v5, 16 }
 0x35b   : > { %v5492_v23 = vrot.slane %v5491_v39, 4  ;;  %v5501_v2 = vor.u32 %v5500_v42, %v5496_v47  ;;  %v5522_v46 = vshrl.u32 %v16053_v5, 16  ;;  %v5514_v61 = vrot.slane %v5512_v11, 5  ;;  %v5277_v42 = vld [vmem:[#allocation2 + $0x84] sm:$0xf] }
 0x35c   : > { %v5483_v28 = vsel %vm14078_vm3, %v5478_v50, %v5482_v43  ;;  %v5528_v55 = vshll.u32 %v16063_v54, 16  ;;  %v5533_v44 = vshrl.u32 %v5274_v19, 16  ;;  %v5520_v53 = vrot.slane %v18595_v26, 5 }
 0x35d   : > { %v11984_v30 = vcombine.low %v5473_v24, %v5483_v28  ;;  %v5497_v15 = vsel %vm14078_vm3, %v5492_v23, %v5496_v47  ;;  %v5502_v31 = vrot.slane %v5501_v2, 4  ;;  %v5515_v3 = vor.u32 %v5514_v61, %v5511_v14 }
 0x35e   : > { %v5524_v16 = vrot.slane %v5522_v46, 4  ;;  %v5530_v37 = vrot.slane %v5528_v55, 5  ;;  %v5535_v39 = vrot.slane %v5533_v44, 4  ;;  %v5536_v54 = vshll.u32 %v5274_v19, 16 }
 0x35f   : > { %v5507_v43 = vsel %vm14078_vm3, %v5502_v31, %v5506_v57  ;;  %v18593_v24 = vshll.u32 %v16071_v9, 16  ;;  %v18594_v50 = vshrl.u32 %v16071_v9, 16  ;;  %v5516_v2 = vrot.slane %v5515_v3, 4  ;;  %13071 = vmatmul.mubr.msk.bf16.gmra.mrb[16].mxu1 %vm766_vm4, %v11982_v1 }
 0x360   : > { %v11985_v47 = vcombine.low %v5497_v15, %v5507_v43  ;;  %v5525_v11 = vor.u32 %v5524_v16, %v5520_v53  ;;  %v5552_v23 = vshll.u32 %v16076_v32, 16  ;;  %v5538_v14 = vrot.slane %v5536_v54, 5  ;;  %13074 = vmatprep.mubr.msk.bf16.mxu1 %vm766_vm4, %v11983_v12  ;;  %v5280_v16 = vld [vmem:[#allocation2 + $0x90] sm:$0xf] }
 0x361   : > { %v5544_v28 = vrot.slane %v18593_v24, 5  ;;  %v5548_v61 = vrot.slane %v18594_v50, 4  ;;  %v5557_v57 = vshrl.u32 %v5277_v42, 16  ;;  %v5521_v19 = vsel %vm14078_vm3, %v5516_v2, %v5520_v53 }
 0x362   : > { %v5526_v55 = vrot.slane %v5525_v11, 4  ;;  %v5554_v44 = vrot.slane %v5552_v23, 5  ;;  %v5560_v15 = vshll.u32 %v5277_v42, 16  ;;  %v5539_v31 = vor.u32 %v5538_v14, %v5535_v39 }
 0x363   : > { %v5549_v32 = vor.u32 %v5548_v61, %v5544_v28  ;;  %v5559_v3 = vrot.slane %v5557_v57, 4  ;;  %v5566_v1 = vshll.u32 %v16083_v10, 16  ;;  %v5570_v24 = vshrl.u32 %v16083_v10, 16  ;;  %v5283_v57 = vld [vmem:[#allocation2 + $0x9c] sm:$0xf] }
 0x364   : > { %v5531_v43 = vsel %vm14078_vm3, %v5526_v55, %v5530_v37  ;;  %v5562_v54 = vrot.slane %v5560_v15, 5  ;;  %v5576_v12 = vshll.u32 %v16090_v56, 16  ;;  %v5540_v26 = vrot.slane %v5539_v31, 4 }
 0x365   : > { %v11986_v50 = vcombine.low %v5521_v19, %v5531_v43  ;;  %v5550_v53 = vrot.slane %v5549_v32, 4  ;;  %v5568_v42 = vrot.slane %v5566_v1, 5  ;;  %v5572_v2 = vrot.slane %v5570_v24, 4 }
 0x366   : > { %v5563_v39 = vor.u32 %v5562_v54, %v5559_v3  ;;  %v5578_v11 = vrot.slane %v5576_v12, 5  ;;  %v5581_v23 = vshrl.u32 %v5280_v16, 16  ;;  %v5545_v37 = vsel %vm14078_vm3, %v5540_v26, %v5544_v28 }
 0x367   : > { %v5555_v14 = vsel %vm14078_vm3, %v5550_v53, %v5554_v44  ;;  %v5584_v61 = vshll.u32 %v5280_v16, 16  ;;  %v5590_v56 = vshll.u32 %v16092_v51, 16  ;;  %v5573_v15 = vor.u32 %v5572_v2, %v5568_v42  ;;  %13075 = vmatmul.mubr.msk.bf16.gmra.mrb[20].mxu1 %vm766_vm4, %v11984_v30  ;;  %v5286_v2 = vld [vmem:[#allocation2 + $0xa8] sm:$0xf] }
 0x368   : > { %v11987_v19 = vcombine.low %v5545_v37, %v5555_v14  ;;  %v5564_v55 = vrot.slane %v5563_v39, 4  ;;  %v5583_v31 = vrot.slane %v5581_v23, 4  ;;  %v5594_v43 = vshrl.u32 %v16092_v51, 16  ;;  %13078 = vmatprep.mubr.msk.bf16.mxu1 %vm766_vm4, %v11985_v47 }
 0x369   : > { %v5586_v32 = vrot.slane %v5584_v61, 5  ;;  %v5592_v3 = vrot.slane %v5590_v56, 5  ;;  %v5600_v26 = vshll.u32 %v16097_v48, 16  ;;  %v5574_v44 = vrot.slane %v5573_v15, 4 }
 0x36a   : > { %v5569_v28 = vsel %vm14078_vm3, %v5564_v55, %v5568_v42  ;;  %v5605_v16 = vshrl.u32 %v5283_v57, 16  ;;  %v5608_v54 = vshll.u32 %v5283_v57, 16  ;;  %v5596_v30 = vrot.slane %v5594_v43, 4 }
 0x36b   : > { %v5587_v12 = vor.u32 %v5586_v32, %v5583_v31  ;;  %v5602_v53 = vrot.slane %v5600_v26, 5  ;;  %v5614_v39 = vshll.u32 %v16109_v4, 16  ;;  %v5579_v23 = vsel %vm14078_vm3, %v5574_v44, %v5578_v11 }
 0x36c   : > { %v5607_v48 = vrot.slane %v5605_v16, 4  ;;  %v5610_v37 = vrot.slane %v5608_v54, 5  ;;  %v5618_v47 = vshrl.u32 %v16109_v4, 16  ;;  %v11988_v14 = vcombine.low %v5569_v28, %v5579_v23  ;;  %v5289_v23 = vld [vmem:[#allocation2 + $0xb4] sm:$0xf] }
 0x36d   : > { %v5588_v42 = vrot.slane %v5587_v12, 4  ;;  %v5597_v61 = vor.u32 %v5596_v30, %v5592_v3  ;;  %v5616_v57 = vrot.slane %v5614_v39, 5  ;;  %v5624_v31 = vshll.u32 %v16116_v52, 16 }
 0x36e   : > { %v5611_v55 = vor.u32 %v5610_v37, %v5607_v48  ;;  %v5620_v15 = vrot.slane %v5618_v47, 4  ;;  %v5629_v32 = vshrl.u32 %v5286_v2, 16  ;;  %v5632_v44 = vshll.u32 %v5286_v2, 16 }
 0x36f   : > { %v5593_v11 = vsel %vm14078_vm3, %v5588_v42, %v5592_v3  ;;  %v5598_v26 = vrot.slane %v5597_v61, 4  ;;  %v18596_v16 = vshll.u32 %v16111_v35, 16  ;;  %v5626_v12 = vrot.slane %v5624_v31, 5  ;;  %13079 = vmatmul.mubr.msk.bf16.gmra.mrb[24].mxu1 %vm766_vm4, %v11986_v50 }
 0x370   : > { %v5612_v28 = vrot.slane %v5611_v55, 4  ;;  %v5621_v54 = vor.u32 %v5620_v15, %v5616_v57  ;;  %v5631_v30 = vrot.slane %v5629_v32, 4  ;;  %v5634_v37 = vrot.slane %v5632_v44, 5  ;;  %13082 = vmatprep.mubr.msk.bf16.mxu1 %vm766_vm4, %v11987_v19 }
 0x371   : > { %v5603_v48 = vsel %vm14078_vm3, %v5598_v26, %v5602_v53  ;;  %v5640_v52 = vrot.slane %v18596_v16, 5  ;;  %v5642_v3 = vshrl.u32 %v16111_v35, 16  ;;  %v5648_v55 = vshll.u32 %v16118_v22, 16 }
 0x372   : > { %v11989_v2 = vcombine.low %v5593_v11, %v5603_v48  ;;  %v5617_v42 = vsel %vm14078_vm3, %v5612_v28, %v5616_v57  ;;  %v5622_v61 = vrot.slane %v5621_v54, 4  ;;  %v5635_v15 = vor.u32 %v5634_v37, %v5631_v30 }
 0x373   : > { %v5644_v50 = vrot.slane %v5642_v3, 4  ;;  %v5653_v53 = vshrl.u32 %v5289_v23, 16  ;;  %v5656_v31 = vshll.u32 %v5289_v23, 16  ;;  %v5650_v26 = vrot.slane %v5648_v55, 5  ;;  %v13954_v55 = vld [vmem:[#allocation2] sm:$0xe] }
 0x374   : > { %v5627_v32 = vsel %vm14078_vm3, %v5622_v61, %v5626_v12  ;;  %v18597_v19 = vshll.u32 %v16148_v41, 16  ;;  %v18598_v11 = vshrl.u32 %v16148_v41, 16  ;;  %v5636_v44 = vrot.slane %v5635_v15, 4  ;;  %v6375_v61 = vld [vmem:[#allocation2 + $0x8] sm:$0x3] }
 0x375   : > { %v11990_v57 = vcombine.low %v5617_v42, %v5627_v32  ;;  %v5645_v28 = vor.u32 %v5644_v50, %v5640_v52  ;;  %v5655_v22 = vrot.slane %v5653_v53, 4  ;;  %v5658_v54 = vrot.slane %v5656_v31, 5 }
 0x376   : > { %v5664_v30 = vrot.slane %v18597_v19, 5  ;;  %v5668_v23 = vrot.slane %v18598_v11, 4  ;;  %v5672_v48 = vshll.u32 %v16152_v38, 16  ;;  %v5641_v12 = vsel %vm14078_vm3, %v5636_v44, %v5640_v52 }
 0x377   : > { %v5646_v37 = vrot.slane %v5645_v28, 4  ;;  %v6395_v16 = vshrl.u32 %v13954_v55, 16  ;;  %v6398_v42 = vshll.u32 %v13954_v55, 16  ;;  %v5659_v15 = vor.u32 %v5658_v54, %v5655_v22  ;;  %13083 = vmatmul.mubr.msk.bf16.gmra.mrb[28].mxu1 %vm766_vm4, %v11988_v14 }
 0x378   : > { %v5669_v50 = vor.u32 %v5668_v23, %v5664_v30  ;;  %v5674_v53 = vrot.slane %v5672_v48, 5  ;;  %v6403_v31 = vrot.slane %v5306_v29, 5  ;;  %v6404_v52 = vrot.slane %v5302_v13, 6  ;;  %13086 = vmatprep.mubr.msk.bf16.mxu1 %vm766_vm4, %v11989_v2  ;;  %v13955_v29 = vld [vmem:[#allocation2 + $0xc] sm:$0xe] }
 0x379   : > { %v5651_v32 = vsel %vm14078_vm3, %v5646_v37, %v5650_v26  ;;  %v6397_v38 = vrot.slane %v6395_v16, 5  ;;  %v6400_v19 = vrot.slane %v6398_v42, 6  ;;  %v5660_v28 = vrot.slane %v5659_v15, 4 }
 0x37a   : > { %v11991_v44 = vcombine.low %v5641_v12, %v5651_v32  ;;  %v5670_v22 = vrot.slane %v5669_v50, 4  ;;  %v6409_v54 = vshrl.u32 %v6375_v61, 16  ;;  %v6405_v48 = vor.u32 %v6404_v52, %v6403_v31 }
 0x37b   : > { %v6401_v23 = vor.u32 %v6400_v19, %v6397_v38  ;;  %v6412_v55 = vshll.u32 %v6375_v61, 16  ;;  %v6418_v11 = vshrl.u32 %v13955_v29, 16  ;;  %v5665_v14 = vsel %vm14078_vm3, %v5660_v28, %v5664_v30 }
 0x37c   : > { %v5675_v16 = vsel %vm14078_vm3, %v5670_v22, %v5674_v53  ;;  %v6411_v26 = vrot.slane %v6409_v54, 5  ;;  %v6421_v13 = vshll.u32 %v13955_v29, 16  ;;  %v6407_v12 = vrot.slane %v6405_v48, 4  ;;  %v6377_v29 = vld [vmem:[#allocation2 + $0x20] sm:$0x3] }
 0x37d   : > { %v11992_v37 = vcombine.low %v5665_v14, %v5675_v16  ;;  %v6402_v2 = vrot.slane %v6401_v23, 4  ;;  %v6414_v42 = vrot.slane %v6412_v55, 6  ;;  %v18793_v19 = vmov 0 }
 0x37e   : > { %v18794_v19 = vsel %vm16354_vm2, 4294967295, %v18793_v19  ;;  %v6420_v61 = vrot.slane %v6418_v11, 5  ;;  %v6423_v15 = vrot.slane %v6421_v13, 6  ;;  %v6426_v30 = vrot.slane %v5330_v17, 5  ;;  %v13956_v11 = vld [vmem:[#allocation2 + $0x18] sm:$0xe] }
 0x37f   : > { %18795 = vst [vmem:[#allocation14_spill] sm:$0xff] %v18794_v19  ;;  %v18796_v50 = vshll.u32 %v15898_v59, 16  ;;  %v6406_v31 = vsel %vm16354_vm2, %v6402_v2, %v6405_v48  ;;  %v6415_v32 = vor.u32 %v6414_v42, %v6411_v26  ;;  %v6432_v38 = vshrl.u32 %v6376_v62, 16  ;;  %13087 = vmatmul.mubr.msk.bf16.gmra.mrb[32].mxu1 %vm766_vm4, %v11990_v57 }
 0x380   : > { %v6435_v52 = vshll.u32 %v6376_v62, 16  ;;  %v6424_v28 = vor.u32 %v6423_v15, %v6420_v61  ;;  %v16366_v54 = vsel %vm815_vm0, %v16221_v7, 0  ;;  %v6441_v23 = vshrl.u32 %v13956_v11, 16  ;;  %13090 = vmatprep.mubr.msk.bf16.mxu1 %vm766_vm4, %v11991_v44 }
 0x381   : > { %v6427_v53 = vrot.slane %v18796_v50, 6  ;;  %v6416_v59 = vsel %vm16354_vm2, %v6407_v12, %v6415_v32  ;;  %v6434_v17 = vrot.slane %v6432_v38, 5  ;;  %v6444_v48 = vshll.u32 %v13956_v11, 16  ;;  %v6378_v32 = vld [vmem:[#allocation2 + $0x2c] sm:$0x3] }
 0x382   : > { %v6437_v55 = vrot.slane %v6435_v52, 6  ;;  %v12010_v14 = vcombine.low %v6406_v31, %v6416_v59  ;;  %v6425_v16 = vrot.slane %v6424_v28, 4  ;;  %v6443_v62 = vrot.slane %v6441_v23, 5 }
 0x383   : > { %v6428_v22 = vor.u32 %v6427_v53, %v6426_v30  ;;  %v6446_v7 = vrot.slane %v6444_v48, 6  ;;  %v6449_v2 = vrot.slane %v5354_v45, 5  ;;  %v18797_v57 = vshll.u32 %v15892_v58, 16  ;;  %v13957_v30 = vld [vmem:[#allocation2 + $0x24] sm:$0xe] }
 0x384   : > { %v6438_v13 = vor.u32 %v6437_v55, %v6434_v17  ;;  %v6455_v61 = vshrl.u32 %v6377_v29, 16  ;;  %v6458_v15 = vshll.u32 %v6377_v29, 16  ;;  %v6464_v50 = vshrl.u32 %v13957_v30, 16 }
 0x385   : > { %v6430_v26 = vrot.slane %v6428_v22, 4  ;;  %v6450_v42 = vrot.slane %v18797_v57, 6  ;;  %v6429_v12 = vsel %vm16354_vm2, %v6425_v16, %v6428_v22  ;;  %v6447_v53 = vor.u32 %v6446_v7, %v6443_v62  ;;  %v13958_v62 = vld [vmem:[#allocation2 + $0x30] sm:$0xe] }
 0x386   : > { %v6467_v38 = vshll.u32 %v13957_v30, 16  ;;  %v6457_v28 = vrot.slane %v6455_v61, 5  ;;  %v6460_v45 = vrot.slane %v6458_v15, 6  ;;  %v6466_v11 = vrot.slane %v6464_v50, 5 }
 0x387   : > { %v6439_v44 = vsel %vm16354_vm2, %v6430_v26, %v6438_v13  ;;  %v6451_v31 = vor.u32 %v6450_v42, %v6449_v2  ;;  %v6448_v58 = vrot.slane %v6447_v53, 4  ;;  %v6472_v22 = vrot.slane %v5378_v8, 5  ;;  %13091 = vmatmul.mubr.msk.bf16.gmra.mrb[36].mxu1 %vm766_vm4, %v11992_v37 }
 0x388   : > { %v12011_v52 = vcombine.low %v6429_v12, %v6439_v44  ;;  %v6469_v59 = vrot.slane %v6467_v38, 6  ;;  %v6461_v17 = vor.u32 %v6460_v45, %v6457_v28  ;;  %v6473_v55 = vrot.slane %v5374_v25, 6  ;;  %13096 = vmatprep.mubr.msk.bf16.mxu1 %vm766_vm4, %v12010_v14  ;;  %v6379_v25 = vld [vmem:[#allocation2 + $0x38] sm:$0x3] }
 0x389   : > { %v6453_v23 = vrot.slane %v6451_v31, 4  ;;  %v6478_v29 = vshrl.u32 %v6378_v32, 16  ;;  %v6481_v48 = vshll.u32 %v6378_v32, 16  ;;  %v6452_v16 = vsel %vm16354_vm2, %v6448_v58, %v6451_v31  ;;  %v13959_v58 = vld [vmem:[#allocation2 + $0x3c] sm:$0xe] }
 0x38a   : > { %v6470_v26 = vor.u32 %v6469_v59, %v6466_v11  ;;  %v6487_v13 = vshrl.u32 %v13958_v62, 16  ;;  %v6490_v7 = vshll.u32 %v13958_v62, 16  ;;  %v6474_v2 = vor.u32 %v6473_v55, %v6472_v22  ;;  %v6380_v11 = vld [vmem:[#allocation2 + $0x44] sm:$0x3]  ;;  %v16403_v62 = vld [vmem:[%s18564_s3 + $0x10] sm:$0xf] }
 0x38b   : > { %v6462_v8 = vsel %vm16354_vm2, %v6453_v23, %v6461_v17  ;;  %v6480_v57 = vrot.slane %v6478_v29, 5  ;;  %v6483_v36 = vrot.slane %v6481_v48, 6  ;;  %v6495_v50 = vrot.slane %v5402_v34, 5 }
 0x38c   : > { %v12012_v42 = vcombine.low %v6452_v16, %v6462_v8  ;;  %v6471_v12 = vrot.slane %v6470_v26, 4  ;;  %v6489_v61 = vrot.slane %v6487_v13, 5  ;;  %v6492_v37 = vrot.slane %v6490_v7, 6 }
 0x38d   : > { %v6476_v15 = vrot.slane %v6474_v2, 4  ;;  %v6484_v30 = vor.u32 %v6483_v36, %v6480_v57  ;;  %v18798_v44 = vshll.u32 %v15940_v63, 16  ;;  %v6501_v32 = vshrl.u32 %v6379_v25, 16 }
 0x38e   : > { %v6475_v14 = vsel %vm16354_vm2, %v6471_v12, %v6474_v2  ;;  %v6493_v31 = vor.u32 %v6492_v37, %v6489_v61  ;;  %v6504_v38 = vshll.u32 %v6379_v25, 16  ;;  %v6510_v23 = vshrl.u32 %v13959_v58, 16  ;;  %v6381_v12 = vld [vmem:[#allocation2 + $0x50] sm:$0x3]  ;;  %v13960_v61 = vld [vmem:[#allocation2 + $0x48] sm:$0xe] }
 0x38f   : > { %v6496_v53 = vrot.slane %v18798_v44, 6  ;;  %v6485_v28 = vsel %vm16354_vm2, %v6476_v15, %v6484_v30  ;;  %v6513_v59 = vshll.u32 %v13959_v58, 16  ;;  %v6503_v34 = vrot.slane %v6501_v32, 5  ;;  %13097 = vmatmul.mubr.msk.bf16.vlgmr.msra.gmra.mrb[8].mxu1 %vm766_vm4, %v12011_v52  ;;  %v13961_v58 = vld [vmem:[#allocation2 + $0x54] sm:$0xe] }
 0x390   : > { %v12013_v22 = vcombine.low %v6475_v14, %v6485_v28  ;;  %v6494_v17 = vrot.slane %v6493_v31, 4  ;;  %v6506_v55 = vrot.slane %v6504_v38, 6  ;;  %v6512_v29 = vrot.slane %v6510_v23, 5  ;;  %13129 = vmatpush3.bf16.msra.mxu1 %v16366_v54  ;;  %13100 = vmatprep.mubr.msk.bf16.mxu1 %vm766_vm4, %v12012_v42 }
 0x391   : > { %v6497_v45 = vor.u32 %v6496_v53, %v6495_v50  ;;  %v6515_v48 = vrot.slane %v6513_v59, 6  ;;  %v18799_v16 = vshrl.u32 %v15964_v60, 16  ;;  %v18800_v8 = vshll.u32 %v15964_v60, 16  ;;  %13878 = vmatprep.subr.msk.bf16.mxu1 %vm815_vm0, %v16403_v62 }
 0x392   : > { %v6507_v7 = vor.u32 %v6506_v55, %v6503_v34  ;;  %v6524_v57 = vshrl.u32 %v6380_v11, 16  ;;  %v6527_v25 = vshll.u32 %v6380_v11, 16  ;;  %v6533_v37 = vshrl.u32 %v13960_v61, 16  ;;  %v6382_v34 = vld [vmem:[#allocation2 + $0x5c] sm:$0x3] }
 0x393   : > { %v6499_v63 = vrot.slane %v6497_v45, 4  ;;  %v6518_v26 = vrot.slane %v18799_v16, 5  ;;  %v6498_v13 = vsel %vm16354_vm2, %v6494_v17, %v6497_v45  ;;  %v6519_v2 = vrot.slane %v18800_v8, 6 }
 0x394   : > { %v6516_v36 = vor.u32 %v6515_v48, %v6512_v29  ;;  %v6536_v15 = vshll.u32 %v13960_v61, 16  ;;  %v6526_v50 = vrot.slane %v6524_v57, 5  ;;  %v6541_v60 = vrot.slane %v5450_v0, 5  ;;  %v13962_v61 = vld [vmem:[#allocation2 + $0x60] sm:$0xe] }
 0x395   : > { %v6508_v52 = vsel %vm16354_vm2, %v6499_v63, %v6507_v7  ;;  %v6520_v30 = vor.u32 %v6519_v2, %v6518_v26  ;;  %v6529_v42 = vrot.slane %v6527_v25, 6  ;;  %v6535_v53 = vrot.slane %v6533_v37, 5 }
 0x396   : > { %v12014_v54 = vcombine.low %v6498_v13, %v6508_v52  ;;  %v6517_v44 = vrot.slane %v6516_v36, 4  ;;  %v6538_v31 = vrot.slane %v6536_v15, 6  ;;  %v6542_v32 = vrot.slane %v5446_v49, 6 }
 0x397   : > { %v6522_v14 = vrot.slane %v6520_v30, 4  ;;  %v6547_v38 = vshrl.u32 %v6381_v12, 16  ;;  %v6530_v45 = vor.u32 %v6529_v42, %v6526_v50  ;;  %v6550_v11 = vshll.u32 %v6381_v12, 16  ;;  %13101 = vmatmul.mubr.msk.bf16.gmra.mrb[12].mxu1 %vm766_vm4, %v12013_v22  ;;  %v6383_v50 = vld [vmem:[#allocation2 + $0x68] sm:$0x3] }
 0x398   : > { %v6521_v28 = vsel %vm16354_vm2, %v6517_v44, %v6520_v30  ;;  %v6556_v0 = vshrl.u32 %v13961_v58, 16  ;;  %v6539_v23 = vor.u32 %v6538_v31, %v6535_v53  ;;  %v6543_v59 = vor.u32 %v6542_v32, %v6541_v60  ;;  %13104 = vmatprep.mubr.msk.bf16.mxu1 %vm766_vm4, %v12014_v54 }
 0x399   : > { %v6549_v17 = vrot.slane %v6547_v38, 5  ;;  %v6559_v55 = vshll.u32 %v13961_v58, 16  ;;  %v6531_v63 = vsel %vm16354_vm2, %v6522_v14, %v6530_v45  ;;  %v6552_v29 = vrot.slane %v6550_v11, 6 }
 0x39a   : > { %v6558_v48 = vrot.slane %v6556_v0, 5  ;;  %v6564_v6 = vrot.slane %v5474_v21, 5  ;;  %v12015_v49 = vcombine.low %v6521_v28, %v6531_v63  ;;  %v6540_v16 = vrot.slane %v6539_v23, 4  ;;  %v6384_v23 = vld [vmem:[#allocation2 + $0x74] sm:$0x3] }
 0x39b   : > { %v6545_v26 = vrot.slane %v6543_v59, 4  ;;  %v6561_v13 = vrot.slane %v6559_v55, 6  ;;  %v6553_v7 = vor.u32 %v6552_v29, %v6549_v17  ;;  %v18801_v8 = vshll.u32 %v16004_v33, 16 }
 0x39c   : > { %v6570_v57 = vshrl.u32 %v6382_v34, 16  ;;  %v6573_v36 = vshll.u32 %v6382_v34, 16  ;;  %v6544_v25 = vsel %vm16354_vm2, %v6540_v16, %v6543_v59  ;;  %v6579_v21 = vshrl.u32 %v13962_v61, 16  ;;  %v13963_v59 = vld [vmem:[#allocation2 + $0x6c] sm:$0xe] }
 0x39d   : > { %v6565_v2 = vrot.slane %v18801_v8, 6  ;;  %v6562_v12 = vor.u32 %v6561_v13, %v6558_v48  ;;  %v6582_v37 = vshll.u32 %v13962_v61, 16  ;;  %v6554_v22 = vsel %vm16354_vm2, %v6545_v26, %v6553_v7 }
 0x39e   : > { %v6572_v52 = vrot.slane %v6570_v57, 5  ;;  %v6575_v30 = vrot.slane %v6573_v36, 6  ;;  %v12016_v60 = vcombine.low %v6544_v25, %v6554_v22  ;;  %v6581_v33 = vrot.slane %v6579_v21, 5  ;;  %v6385_v36 = vld [vmem:[#allocation2 + $0x80] sm:$0x3] }
 0x39f   : > { %v6566_v15 = vor.u32 %v6565_v2, %v6564_v6  ;;  %v6563_v54 = vrot.slane %v6562_v12, 4  ;;  %v6584_v44 = vrot.slane %v6582_v37, 6  ;;  %v6587_v14 = vrot.slane %v5498_v40, 5  ;;  %13105 = vmatmul.mubr.msk.bf16.gmra.mrb[16].mxu1 %vm766_vm4, %v12015_v49  ;;  %v13964_v25 = vld [vmem:[#allocation2 + $0x78] sm:$0xe] }
 0x3a0   : > { %v6576_v53 = vor.u32 %v6575_v30, %v6572_v52  ;;  %v18802_v31 = vshll.u32 %v16025_v18, 16  ;;  %v6593_v45 = vshrl.u32 %v6383_v50, 16  ;;  %v6596_v11 = vshll.u32 %v6383_v50, 16  ;;  %13108 = vmatprep.mubr.msk.bf16.mxu1 %vm766_vm4, %v12016_v60 }
 0x3a1   : > { %v6568_v42 = vrot.slane %v6566_v15, 4  ;;  %v6567_v38 = vsel %vm16354_vm2, %v6563_v54, %v6566_v15  ;;  %v6585_v28 = vor.u32 %v6584_v44, %v6581_v33  ;;  %v6602_v17 = vshrl.u32 %v13963_v59, 16 }
 0x3a2   : > { %v6588_v32 = vrot.slane %v18802_v31, 6  ;;  %v6605_v34 = vshll.u32 %v13963_v59, 16  ;;  %v6595_v18 = vrot.slane %v6593_v45, 5  ;;  %v6598_v63 = vrot.slane %v6596_v11, 6 }
 0x3a3   : > { %v6577_v58 = vsel %vm16354_vm2, %v6568_v42, %v6576_v53  ;;  %v6586_v55 = vrot.slane %v6585_v28, 4  ;;  %v6604_v48 = vrot.slane %v6602_v17, 5  ;;  %v6610_v16 = vrot.slane %v5522_v46, 5 }
 0x3a4   : > { %v6589_v0 = vor.u32 %v6588_v32, %v6587_v14  ;;  %v12017_v40 = vcombine.low %v6567_v38, %v6577_v58  ;;  %v6607_v6 = vrot.slane %v6605_v34, 6  ;;  %v6599_v13 = vor.u32 %v6598_v63, %v6595_v18  ;;  %v13965_v32 = vld [vmem:[#allocation2 + $0x84] sm:$0xe]  ;;  %v6386_v58 = vld [vmem:[#allocation2 + $0x8c] sm:$0x3] }
 0x3a5   : > { %v18803_v7 = vshll.u32 %v16053_v5, 16  ;;  %v6616_v49 = vshrl.u32 %v6384_v23, 16  ;;  %v6619_v57 = vshll.u32 %v6384_v23, 16  ;;  %v6625_v12 = vshrl.u32 %v13964_v25, 16 }
 0x3a6   : > { %v6591_v29 = vrot.slane %v6589_v0, 4  ;;  %v6590_v26 = vsel %vm16354_vm2, %v6586_v55, %v6589_v0  ;;  %v6608_v2 = vor.u32 %v6607_v6, %v6604_v48  ;;  %v6628_v61 = vshll.u32 %v13964_v25, 16 }
 0x3a7   : > { %v6611_v8 = vrot.slane %v18803_v7, 6  ;;  %v6618_v22 = vrot.slane %v6616_v49, 5  ;;  %v18804_v46 = vshrl.u32 %v16071_v9, 16  ;;  %v6621_v50 = vrot.slane %v6619_v57, 6  ;;  %13109 = vmatmul.mubr.msk.bf16.gmra.mrb[20].mxu1 %vm766_vm4, %v12017_v40 }
 0x3a8   : > { %v6600_v21 = vsel %vm16354_vm2, %v6591_v29, %v6599_v13  ;;  %v6609_v30 = vrot.slane %v6608_v2, 4  ;;  %v6627_v5 = vrot.slane %v6625_v12, 5  ;;  %v6630_v54 = vrot.slane %v6628_v61, 6  ;;  %v13966_v13 = vld [vmem:[#allocation2 + $0x90] sm:$0xe] }
 0x3a9   : > { %v6612_v37 = vor.u32 %v6611_v8, %v6610_v16  ;;  %v6633_v15 = vrot.slane %v18804_v46, 5  ;;  %v12018_v52 = vcombine.low %v6590_v26, %v6600_v21  ;;  %v18805_v33 = vshll.u32 %v16071_v9, 16 }
 0x3aa   : > { %v6639_v42 = vshrl.u32 %v6385_v36, 16  ;;  %v6622_v14 = vor.u32 %v6621_v50, %v6618_v22  ;;  %v6642_v31 = vshll.u32 %v6385_v36, 16  ;;  %v6648_v38 = vshrl.u32 %v13965_v32, 16  ;;  %v6387_v36 = vld [vmem:[#allocation2 + $0x98] sm:$0x3] }
 0x3ab   : > { %v6614_v60 = vrot.slane %v6612_v37, 4  ;;  %v6634_v44 = vrot.slane %v18805_v33, 6  ;;  %v6613_v53 = vsel %vm16354_vm2, %v6609_v30, %v6612_v37  ;;  %v6631_v28 = vor.u32 %v6630_v54, %v6627_v5  ;;  %13112 = vmatprep.mubr.msk.bf16.mxu1 %vm766_vm4, %v12018_v52  ;;  %v13967_v54 = vld [vmem:[#allocation2 + $0x9c] sm:$0xe] }
 0x3ac   : > { %v6641_v11 = vrot.slane %v6639_v42, 5  ;;  %v6651_v0 = vshll.u32 %v13965_v32, 16  ;;  %v6644_v23 = vrot.slane %v6642_v31, 6  ;;  %v6650_v59 = vrot.slane %v6648_v38, 5 }
 0x3ad   : > { %v6635_v45 = vor.u32 %v6634_v44, %v6633_v15  ;;  %v6623_v9 = vsel %vm16354_vm2, %v6614_v60, %v6622_v14  ;;  %v6656_v17 = vrot.slane %v5570_v24, 5  ;;  %v6632_v55 = vrot.slane %v6631_v28, 4  ;;  %v6388_v60 = vld [vmem:[#allocation2 + $0xa4] sm:$0x3] }
 0x3ae   : > { %v12019_v34 = vcombine.low %v6613_v53, %v6623_v9  ;;  %v6653_v63 = vrot.slane %v6651_v0, 6  ;;  %v6645_v40 = vor.u32 %v6644_v23, %v6641_v11  ;;  %v6657_v29 = vrot.slane %v5566_v1, 6  ;;  %v6389_v9 = vld [vmem:[#allocation2 + $0xb0] sm:$0x3]  ;;  %v13968_v23 = vld [vmem:[#allocation2 + $0xa8] sm:$0xe] }
 0x3af   : > { %v6637_v18 = vrot.slane %v6635_v45, 4  ;;  %v6662_v48 = vshrl.u32 %v6386_v58, 16  ;;  %v6665_v6 = vshll.u32 %v6386_v58, 16  ;;  %v6636_v16 = vsel %vm16354_vm2, %v6632_v55, %v6635_v45 }
 0x3b0   : > { %v6654_v26 = vor.u32 %v6653_v63, %v6650_v59  ;;  %v6671_v7 = vshrl.u32 %v13966_v13, 16  ;;  %v6674_v8 = vshll.u32 %v13966_v13, 16  ;;  %v6658_v49 = vor.u32 %v6657_v29, %v6656_v17  ;;  %13113 = vmatmul.mubr.msk.bf16.gmra.mrb[24].mxu1 %vm766_vm4, %v12019_v34 }
 0x3b1   : > { %v6646_v24 = vsel %vm16354_vm2, %v6637_v18, %v6645_v40  ;;  %v6664_v2 = vrot.slane %v6662_v48, 5  ;;  %v6667_v57 = vrot.slane %v6665_v6, 6  ;;  %v6679_v37 = vrot.slane %v5594_v43, 5 }
 0x3b2   : > { %v12020_v25 = vcombine.low %v6636_v16, %v6646_v24  ;;  %v6655_v12 = vrot.slane %v6654_v26, 4  ;;  %v6673_v10 = vrot.slane %v6671_v7, 5  ;;  %v6676_v1 = vrot.slane %v6674_v8, 6 }
 0x3b3   : > { %v6660_v61 = vrot.slane %v6658_v49, 4  ;;  %v6668_v21 = vor.u32 %v6667_v57, %v6664_v2  ;;  %v6680_v22 = vrot.slane %v5590_v56, 6  ;;  %v6685_v52 = vshrl.u32 %v6387_v36, 16 }
 0x3b4   : > { %v6659_v46 = vsel %vm16354_vm2, %v6655_v12, %v6658_v49  ;;  %v6677_v15 = vor.u32 %v6676_v1, %v6673_v10  ;;  %v6688_v30 = vshll.u32 %v6387_v36, 16  ;;  %13116 = vmatprep.mubr.msk.bf16.mxu1 %vm766_vm4, %v12020_v25  ;;  %v6694_v43 = vshrl.u32 %v13967_v54, 16  ;;  %v6390_v36 = vld [vmem:[#allocation2 + $0xbc] sm:$0x3] }
 0x3b5   : > { %v6669_v50 = vsel %vm16354_vm2, %v6660_v61, %v6668_v21  ;;  %v6681_v5 = vor.u32 %v6680_v22, %v6679_v37  ;;  %v6697_v33 = vshll.u32 %v13967_v54, 16  ;;  %v6687_v44 = vrot.slane %v6685_v52, 5  ;;  %v7056_v21 = vld [vmem:[#allocation2 + $0xc] sm:$0xf] }
 0x3b6   : > { %v12021_v51 = vcombine.low %v6659_v46, %v6669_v50  ;;  %v6678_v56 = vrot.slane %v6677_v15, 4  ;;  %v6690_v42 = vrot.slane %v6688_v30, 6  ;;  %v6696_v14 = vrot.slane %v6694_v43, 5 }
 0x3b7   : > { %v6683_v53 = vrot.slane %v6681_v5, 4  ;;  %v6699_v31 = vrot.slane %v6697_v33, 6  ;;  %v6702_v32 = vrot.slane %v5618_v47, 5  ;;  %v6703_v45 = vrot.slane %v5614_v39, 6  ;;  %v16504_v33 = vld [vmem:[#allocation2 + $0x10] sm:$0xf] }
 0x3b8   : > { %v6682_v38 = vsel %vm16354_vm2, %v6678_v56, %v6681_v5  ;;  %v6691_v28 = vor.u32 %v6690_v42, %v6687_v44  ;;  %v6708_v11 = vshrl.u32 %v6388_v60, 16  ;;  %v6711_v0 = vshll.u32 %v6388_v60, 16  ;;  %13117 = vmatmul.mubr.msk.bf16.gmra.mrb[28].mxu1 %vm766_vm4, %v12021_v51 }
 0x3b9   : > { %v6700_v58 = vor.u32 %v6699_v31, %v6696_v14  ;;  %v6717_v59 = vshrl.u32 %v13968_v23, 16  ;;  %v6720_v17 = vshll.u32 %v13968_v23, 16  ;;  %v6704_v55 = vor.u32 %v6703_v45, %v6702_v32  ;;  %v16508_v31 = vld [vmem:[#allocation2 + $0x14] sm:$0x1] }
 0x3ba   : > { %v6692_v34 = vsel %vm16354_vm2, %v6683_v53, %v6691_v28  ;;  %v6710_v18 = vrot.slane %v6708_v11, 5  ;;  %v6725_v47 = vrot.slane %v5642_v3, 5  ;;  %v6713_v29 = vrot.slane %v6711_v0, 6  ;;  %v13969_v3 = vld [vmem:[#allocation2 + $0xb4] sm:$0xe] }
 0x3bb   : > { %v12022_v63 = vcombine.low %v6682_v38, %v6692_v34  ;;  %v6701_v40 = vrot.slane %v6700_v58, 4  ;;  %v6719_v4 = vrot.slane %v6717_v59, 5  ;;  %v6706_v39 = vrot.slane %v6704_v55, 4  ;;  %v16517_v34 = vld [vmem:[#allocation2 + $0x1c] sm:$0xf] }
 0x3bc   : > { %v6722_v48 = vrot.slane %v6720_v17, 6  ;;  %v18806_v6 = vshll.u32 %v16111_v35, 16  ;;  %v6731_v26 = vshrl.u32 %v6389_v9, 16  ;;  %v6714_v7 = vor.u32 %v6713_v29, %v6710_v18 }
 0x3bd   : > { %13120 = vmatprep.mubr.msk.bf16.mxu1 %vm766_vm4, %v12022_v63  ;;  %v6705_v13 = vsel %vm16354_vm2, %v6701_v40, %v6704_v55  ;;  %v6734_v8 = vshll.u32 %v6389_v9, 16  ;;  %v6740_v24 = vshrl.u32 %v13969_v3, 16  ;;  %v6743_v25 = vshll.u32 %v13969_v3, 16  ;;  %v16519_v55 = vld [vmem:[#allocation2 + $0x20] sm:$0x1] }
 0x3be   : > { %v6726_v16 = vrot.slane %v18806_v6, 6  ;;  %v6723_v49 = vor.u32 %v6722_v48, %v6719_v4  ;;  %v6733_v57 = vrot.slane %v6731_v26, 5  ;;  %v6715_v12 = vsel %vm16354_vm2, %v6706_v39, %v6714_v7  ;;  %v7062_v4 = vld [vmem:[#allocation2 + $0x24] sm:$0xf]  ;;  %v16529_v3 = vld [vmem:[#allocation2 + $0x28] sm:$0xf] }
 0x3bf   : > { %v6736_v35 = vrot.slane %v6734_v8, 6  ;;  %v6742_v10 = vrot.slane %v6740_v24, 5  ;;  %v18807_v1 = vshrl.u32 %v16148_v41, 16  ;;  %v12023_v37 = vcombine.low %v6705_v13, %v6715_v12 }
 0x3c0   : > { %v6727_v2 = vor.u32 %v6726_v16, %v6725_v47  ;;  %v6724_v22 = vrot.slane %v6723_v49, 4  ;;  %v6745_v15 = vrot.slane %v6743_v25, 6  ;;  %v18808_v30 = vshll.u32 %v16148_v41, 16  ;;  %v7059_v41 = vld [vmem:[#allocation2 + $0x18] sm:$0xf] }
 0x3c1   : > { %v6748_v61 = vrot.slane %v18807_v1, 5  ;;  %v6737_v52 = vor.u32 %v6736_v35, %v6733_v57  ;;  %v6754_v5 = vshrl.u32 %v6390_v36, 16  ;;  %v6757_v60 = vshll.u32 %v6390_v36, 16  ;;  %13121 = vmatmul.mubr.msk.bf16.gmra.mrb[32].mxu1 %vm766_vm4, %v12023_v37 }
 0x3c2   : > { %v6729_v46 = vrot.slane %v6727_v2, 4  ;;  %v6749_v50 = vrot.slane %v18808_v30, 6  ;;  %v6728_v54 = vsel %vm16354_vm2, %v6724_v22, %v6727_v2  ;;  %v6746_v43 = vor.u32 %v6745_v15, %v6742_v10  ;;  %v16540_v10 = vld [vmem:[#allocation2 + $0x2c] sm:$0x1]  ;;  %v7065_v22 = vld [vmem:[#allocation2 + $0x30] sm:$0xf] }
 0x3c3   : > { %v7105_v51 = vshrl.u32 %v7056_v21, 16  ;;  %v7108_v56 = vshll.u32 %v7056_v21, 16  ;;  %v6756_v53 = vrot.slane %v6754_v5, 5  ;;  %v6759_v14 = vrot.slane %v6757_v60, 6  ;;  %v16547_v30 = vld [vmem:[#allocation2 + $0x34] sm:$0xf] }
 0x3c4   : > { %v6738_v44 = vsel %vm16354_vm2, %v6729_v46, %v6737_v52  ;;  %v6750_v42 = vor.u32 %v6749_v50, %v6748_v61  ;;  %v6747_v38 = vrot.slane %v6746_v43, 4  ;;  %v18629_v0 = vshll.u32 %v16504_v33, 16 }
 0x3c5   : > { %v12024_v32 = vcombine.low %v6728_v54, %v6738_v44  ;;  %v7107_v28 = vrot.slane %v7105_v51, 4  ;;  %v7110_v45 = vrot.slane %v7108_v56, 5  ;;  %v6760_v58 = vor.u32 %v6759_v14, %v6756_v53  ;;  %v16556_v44 = vld [vmem:[#allocation2 + $0x38] sm:$0x1] }
 0x3c6   : > { %v6752_v11 = vrot.slane %v6750_v42, 4  ;;  %v18630_v9 = vshrl.u32 %v16504_v33, 16  ;;  %v6751_v23 = vsel %vm16354_vm2, %v6747_v38, %v6750_v42  ;;  %v7124_v17 = vshll.u32 %v16508_v31, 16  ;;  %v7068_v38 = vld [vmem:[#allocation2 + $0x3c] sm:$0xf] }
 0x3c7   : > { %13124 = vmatprep.mubr.msk.bf16.mxu1 %vm766_vm4, %v12024_v32  ;;  %v7111_v59 = vor.u32 %v7110_v45, %v7107_v28  ;;  %v7129_v18 = vshrl.u32 %v7059_v41, 16  ;;  %v7116_v63 = vrot.slane %v18629_v0, 5  ;;  %v7132_v29 = vshll.u32 %v7059_v41, 16 }
 0x3c8   : > { %v6761_v47 = vsel %vm16354_vm2, %v6752_v11, %v6760_v58  ;;  %v7120_v40 = vrot.slane %v18630_v9, 4  ;;  %v7126_v6 = vrot.slane %v7124_v17, 5  ;;  %v18627_v7 = vshll.u32 %v16517_v34, 16  ;;  %v16912_v9 = vld [vmem:[#allocation2 + $0x90] sm:$0xe] }
 0x3c9   : > { %v12025_v39 = vcombine.low %v6751_v23, %v6761_v47  ;;  %v7112_v48 = vrot.slane %v7111_v59, 4  ;;  %v7131_v16 = vrot.slane %v7129_v18, 4  ;;  %v7134_v13 = vrot.slane %v7132_v29, 5  ;;  %v16563_v23 = vld [vmem:[#allocation2 + $0x40] sm:$0xf]  ;;  %18815 = vst [vmem:[#allocation12_spill] sm:$0xff] %v16912_v9 }
 0x3ca   : > { %v7121_v26 = vor.u32 %v7120_v40, %v7116_v63  ;;  %v18628_v8 = vshrl.u32 %v16517_v34, 16  ;;  %v7148_v49 = vshll.u32 %v16519_v55, 16  ;;  %v8057_v2 = vsel %vm815_vm0, %v16403_v62, 0 }
 0x3cb   : > { %v7117_v24 = vsel %vm14078_vm3, %v7112_v48, %v7116_v63  ;;  %v7153_v57 = vshrl.u32 %v7062_v4, 16  ;;  %v7135_v25 = vor.u32 %v7134_v13, %v7131_v16  ;;  %v7140_v12 = vrot.slane %v18627_v7, 5  ;;  %13125 = vmatmul.mubr.msk.bf16.gmra.mrb[36].mxu1 %vm766_vm4, %v12025_v39  ;;  %v16573_v39 = vld [vmem:[%s18564_s3 + $0x14] sm:$0xf]  ;;  %v16578_v16 = vld [vmem:[#allocation2 + $0x44] sm:$0x1] }
 0x3cc   : > { %v7122_v36 = vrot.slane %v7121_v26, 4  ;;  %v7144_v35 = vrot.slane %v18628_v8, 4  ;;  %v7150_v1 = vrot.slane %v7148_v49, 5  ;;  %v7156_v21 = vshll.u32 %v7062_v4, 16 }
 0x3cd   : > { %v7155_v61 = vrot.slane %v7153_v57, 4  ;;  %v18625_v37 = vshll.u32 %v16529_v3, 16  ;;  %v7136_v46 = vrot.slane %v7135_v25, 4  ;;  %v18626_v52 = vshrl.u32 %v16529_v3, 16 }
 0x3ce   : > { %v7127_v62 = vsel %vm14078_vm3, %v7122_v36, %v7126_v6  ;;  %v7145_v15 = vor.u32 %v7144_v35, %v7140_v12  ;;  %v7158_v5 = vrot.slane %v7156_v21, 5  ;;  %v7172_v54 = vshll.u32 %v16540_v10, 16 }
 0x3cf   : > { %v12043_v50 = vcombine.low %v7117_v24, %v7127_v62  ;;  %v7164_v60 = vrot.slane %v18625_v37, 5  ;;  %v7141_v43 = vsel %vm14078_vm3, %v7136_v46, %v7140_v12  ;;  %v7168_v56 = vrot.slane %v18626_v52, 4  ;;  %v7071_v24 = vld [vmem:[#allocation2 + $0x48] sm:$0xf]  ;;  %v16583_v12 = vld [vmem:[#allocation2 + $0x4c] sm:$0xf] }
 0x3d0   : > { %v7146_v51 = vrot.slane %v7145_v15, 4  ;;  %v7177_v42 = vshrl.u32 %v7065_v22, 16  ;;  %v7159_v53 = vor.u32 %v7158_v5, %v7155_v61  ;;  %v7174_v14 = vrot.slane %v7172_v54, 5  ;;  %v16594_v5 = vld [vmem:[#allocation2 + $0x50] sm:$0x1] }
 0x3d1   : > { %13130 = vmatprep.mubr.msk.bf16.mxu1 %vm766_vm4, %v12043_v50  ;;  %v7180_v41 = vshll.u32 %v7065_v22, 16  ;;  %v18619_v32 = vshll.u32 %v16547_v30, 16  ;;  %v7169_v45 = vor.u32 %v7168_v56, %v7164_v60  ;;  %v18620_v58 = vshrl.u32 %v16547_v30, 16  ;;  %v16872_v52 = vld [vmem:[#allocation2 + $0x78] sm:$0xe] }
 0x3d2   : > { %v7151_v28 = vsel %vm14078_vm3, %v7146_v51, %v7150_v1  ;;  %v7179_v11 = vrot.slane %v7177_v42, 4  ;;  %v7160_v17 = vrot.slane %v7159_v53, 4  ;;  %v7196_v29 = vshll.u32 %v16556_v44, 16 }
 0x3d3   : > { %v12044_v59 = vcombine.low %v7141_v43, %v7151_v28  ;;  %v7182_v18 = vrot.slane %v7180_v41, 5  ;;  %v7188_v47 = vrot.slane %v18619_v32, 5  ;;  %v7170_v63 = vrot.slane %v7169_v45, 4  ;;  %v7074_v43 = vld [vmem:[#allocation2 + $0x54] sm:$0xf] }
 0x3d4   : > { %v7192_v40 = vrot.slane %v18620_v58, 4  ;;  %v7201_v4 = vshrl.u32 %v7068_v38, 16  ;;  %v7165_v48 = vsel %vm14078_vm3, %v7160_v17, %v7164_v60  ;;  %v7204_v26 = vshll.u32 %v7068_v38, 16  ;;  %v16746_v58 = vld [vmem:[#allocation2 + $0xc4] sm:$0xf] }
 0x3d5   : > { %13131 = vmatmul.mubr.msk.bf16.vlgmr.msra.gmra.mrb[8].mxu1 %vm766_vm4, %v12044_v59  ;;  %v7183_v6 = vor.u32 %v7182_v18, %v7179_v11  ;;  %v18616_v13 = vshll.u32 %v16563_v23, 16  ;;  %v7175_v49 = vsel %vm14078_vm3, %v7170_v63, %v7174_v14  ;;  %v7198_v36 = vrot.slane %v7196_v29, 5  ;;  %v16601_v14 = vld [vmem:[#allocation2 + $0x58] sm:$0xf]  ;;  %18814 = vst [vmem:[#allocation11_spill] sm:$0xff] %v16746_v58 }
 0x3d6   : > { %13163 = vmatpush3.bf16.msra.mxu1 %v8057_v2  ;;  %v7193_v57 = vor.u32 %v7192_v40, %v7188_v47  ;;  %v7203_v25 = vrot.slane %v7201_v4, 4  ;;  %v12045_v35 = vcombine.low %v7165_v48, %v7175_v49  ;;  %v7206_v61 = vrot.slane %v7204_v26, 5  ;;  %v16610_v40 = vld [vmem:[#allocation2 + $0x5c] sm:$0x1]  ;;  %v7077_v48 = vld [vmem:[#allocation2 + $0x60] sm:$0xf] }
 0x3d7   : > { %v7184_v1 = vrot.slane %v7183_v6, 4  ;;  %v7212_v21 = vrot.slane %v18616_v13, 5  ;;  %13879 = vmatprep.subr.msk.bf16.mxu1 %vm815_vm0, %v16573_v39  ;;  %v18618_v2 = vshrl.u32 %v16563_v23, 16  ;;  %v7220_v62 = vshll.u32 %v16578_v16, 16  ;;  %v7101_v13 = vld [vmem:[#allocation2 + $0xc0] sm:$0xf] }
 0x3d8   : > { %v7194_v22 = vrot.slane %v7193_v57, 4  ;;  %v7225_v46 = vshrl.u32 %v7071_v24, 16  ;;  %13134 = vmatprep.mubr.msk.bf16.mxu1 %vm766_vm4, %v12045_v35  ;;  %v7207_v50 = vor.u32 %v7206_v61, %v7203_v25  ;;  %v7228_v60 = vshll.u32 %v7071_v24, 16 }
 0x3d9   : > { %v7189_v15 = vsel %vm14078_vm3, %v7184_v1, %v7188_v47  ;;  %v18612_v54 = vshll.u32 %v16583_v12, 16  ;;  %v7216_v56 = vrot.slane %v18618_v2, 4  ;;  %v7222_v42 = vrot.slane %v7220_v62, 5 }
 0x3da   : > { %v7199_v51 = vsel %vm14078_vm3, %v7194_v22, %v7198_v36  ;;  %v7227_v53 = vrot.slane %v7225_v46, 4  ;;  %v7208_v38 = vrot.slane %v7207_v50, 4  ;;  %v7230_v28 = vrot.slane %v7228_v60, 5  ;;  %v16621_v22 = vld [vmem:[#allocation2 + $0x64] sm:$0xf] }
 0x3db   : > { %v12046_v41 = vcombine.low %v7189_v15, %v7199_v51  ;;  %v7236_v45 = vrot.slane %v18612_v54, 5  ;;  %v7217_v11 = vor.u32 %v7216_v56, %v7212_v21  ;;  %v18614_v59 = vshrl.u32 %v16583_v12, 16  ;;  %v7080_v51 = vld [vmem:[#allocation2 + $0x6c] sm:$0xf] }
 0x3dc   : > { %v7244_v17 = vshll.u32 %v16594_v5, 16  ;;  %v7249_v18 = vshrl.u32 %v7074_v43, 16  ;;  %v7213_v47 = vsel %vm14078_vm3, %v7208_v38, %v7212_v21  ;;  %v7231_v63 = vor.u32 %v7230_v28, %v7227_v53 }
 0x3dd   : > { %13135 = vmatmul.mubr.msk.bf16.gmra.mrb[12].mxu1 %vm766_vm4, %v12046_v41  ;;  %v7252_v29 = vshll.u32 %v7074_v43, 16  ;;  %v18606_v4 = vshll.u32 %v16601_v14, 16  ;;  %v7218_v6 = vrot.slane %v7217_v11, 4  ;;  %v7240_v26 = vrot.slane %v18614_v59, 4  ;;  %v16627_v43 = vld [vmem:[#allocation2 + $0x68] sm:$0x1] }
 0x3de   : > { %v7246_v24 = vrot.slane %v7244_v17, 5  ;;  %v7251_v49 = vrot.slane %v7249_v18, 4  ;;  %v7232_v57 = vrot.slane %v7231_v63, 4  ;;  %v18608_v35 = vshrl.u32 %v16601_v14, 16  ;;  %v16635_v63 = vld [vmem:[#allocation2 + $0x70] sm:$0xf] }
 0x3df   : > { %v7254_v36 = vrot.slane %v7252_v29, 5  ;;  %v7260_v25 = vrot.slane %v18606_v4, 5  ;;  %v7223_v1 = vsel %vm14078_vm3, %v7218_v6, %v7222_v42  ;;  %v7241_v61 = vor.u32 %v7240_v26, %v7236_v45 }
 0x3e0   : > { %v7268_v21 = vshll.u32 %v16610_v40, 16  ;;  %v7273_v62 = vshrl.u32 %v7077_v48, 16  ;;  %v12047_v46 = vcombine.low %v7213_v47, %v7223_v1  ;;  %v7237_v15 = vsel %vm14078_vm3, %v7232_v57, %v7236_v45  ;;  %v16641_v57 = vld [vmem:[#allocation2 + $0x74] sm:$0x1] }
 0x3e1   : > { %v7255_v50 = vor.u32 %v7254_v36, %v7251_v49  ;;  %v7264_v60 = vrot.slane %v18608_v35, 4  ;;  %v7242_v56 = vrot.slane %v7241_v61, 4  ;;  %v7276_v41 = vshll.u32 %v7077_v48, 16 }
 0x3e2   : > { %v7270_v53 = vrot.slane %v7268_v21, 5  ;;  %v7275_v42 = vrot.slane %v7273_v62, 4  ;;  %13138 = vmatprep.mubr.msk.bf16.mxu1 %vm766_vm4, %v12047_v46  ;;  %v18601_v11 = vshll.u32 %v16621_v22, 16  ;;  %v18605_v17 = vshrl.u32 %v16621_v22, 16  ;;  %v7083_v21 = vld [vmem:[#allocation2 + $0x78] sm:$0xf] }
 0x3e3   : > { %v7256_v38 = vrot.slane %v7255_v50, 4  ;;  %v7265_v28 = vor.u32 %v7264_v60, %v7260_v25  ;;  %v7247_v45 = vsel %vm14078_vm3, %v7242_v56, %v7246_v24  ;;  %v7278_v18 = vrot.slane %v7276_v41, 5  ;;  %v16651_v41 = vld [vmem:[#allocation2 + $0x7c] sm:$0xf] }
 0x3e4   : > { %v7292_v47 = vshll.u32 %v16627_v43, 16  ;;  %v7297_v29 = vshrl.u32 %v7080_v51, 16  ;;  %v12048_v6 = vcombine.low %v7237_v15, %v7247_v45  ;;  %v7284_v49 = vrot.slane %v18601_v11, 5  ;;  %v16667_v11 = vld [vmem:[#allocation2 + $0x88] sm:$0xf] }
 0x3e5   : > { %v7261_v48 = vsel %vm14078_vm3, %v7256_v38, %v7260_v25  ;;  %v7266_v26 = vrot.slane %v7265_v28, 4  ;;  %v7279_v36 = vor.u32 %v7278_v18, %v7275_v42  ;;  %v7288_v24 = vrot.slane %v18605_v17, 4  ;;  %18809 = vst [vmem:[#allocation6_spill] sm:$0xff] %v16667_v11 }
 0x3e6   : > { %v7294_v1 = vrot.slane %v7292_v47, 5  ;;  %v7299_v61 = vrot.slane %v7297_v29, 4  ;;  %13139 = vmatmul.mubr.msk.bf16.gmra.mrb[16].mxu1 %vm766_vm4, %v12048_v6  ;;  %v7300_v46 = vshll.u32 %v7080_v51, 16  ;;  %v18599_v25 = vshll.u32 %v16635_v63, 16 }
 0x3e7   : > { %v7271_v62 = vsel %vm14078_vm3, %v7266_v26, %v7270_v53  ;;  %v18600_v15 = vshrl.u32 %v16635_v63, 16  ;;  %v7280_v60 = vrot.slane %v7279_v36, 4  ;;  %v7289_v56 = vor.u32 %v7288_v24, %v7284_v49  ;;  %v16657_v53 = vld [vmem:[#allocation2 + $0x80] sm:$0x1] }
 0x3e8   : > { %v12049_v50 = vcombine.low %v7261_v48, %v7271_v62  ;;  %v7316_v42 = vshll.u32 %v16641_v57, 16  ;;  %v7302_v38 = vrot.slane %v7300_v46, 5  ;;  %v7308_v28 = vrot.slane %v18599_v25, 5  ;;  %v7086_v62 = vld [vmem:[#allocation2 + $0x84] sm:$0xf] }
 0x3e9   : > { %v7312_v45 = vrot.slane %v18600_v15, 4  ;;  %v7321_v51 = vshrl.u32 %v7083_v21, 16  ;;  %v7285_v18 = vsel %vm14078_vm3, %v7280_v60, %v7284_v49  ;;  %v7290_v47 = vrot.slane %v7289_v56, 4 }
 0x3ea   : > { %13142 = vmatprep.mubr.msk.bf16.mxu1 %vm766_vm4, %v12049_v50  ;;  %v7318_v29 = vrot.slane %v7316_v42, 5  ;;  %v7324_v6 = vshll.u32 %v7083_v21, 16  ;;  %v7303_v48 = vor.u32 %v7302_v38, %v7299_v61  ;;  %v18602_v24 = vshll.u32 %v16651_v41, 16 }
 0x3eb   : > { %v7313_v26 = vor.u32 %v7312_v45, %v7308_v28  ;;  %v7323_v36 = vrot.slane %v7321_v51, 4  ;;  %v7295_v46 = vsel %vm14078_vm3, %v7290_v47, %v7294_v1  ;;  %v18603_v15 = vshrl.u32 %v16651_v41, 16  ;;  %v16673_v45 = vld [vmem:[#allocation2 + $0x8c] sm:$0x1] }
 0x3ec   : > { %v7326_v25 = vrot.slane %v7324_v6, 5  ;;  %v7340_v50 = vshll.u32 %v16657_v53, 16  ;;  %v12050_v49 = vcombine.low %v7285_v18, %v7295_v46  ;;  %v7304_v60 = vrot.slane %v7303_v48, 4  ;;  %v7089_v48 = vld [vmem:[#allocation2 + $0x90] sm:$0xf] }
 0x3ed   : > { %v7314_v56 = vrot.slane %v7313_v26, 4  ;;  %v7332_v61 = vrot.slane %v18602_v24, 5  ;;  %v7336_v42 = vrot.slane %v18603_v15, 4  ;;  %v7345_v1 = vshrl.u32 %v7086_v62, 16 }
 0x3ee   : > { %v7327_v21 = vor.u32 %v7326_v25, %v7323_v36  ;;  %v7342_v38 = vrot.slane %v7340_v50, 5  ;;  %13143 = vmatmul.mubr.msk.bf16.gmra.mrb[20].mxu1 %vm766_vm4, %v12050_v49  ;;  %v7309_v51 = vsel %vm14078_vm3, %v7304_v60, %v7308_v28  ;;  %v7348_v47 = vshll.u32 %v7086_v62, 16  ;;  %v16681_v50 = vld [vmem:[#allocation2 + $0x94] sm:$0xf]  ;;  %v16690_v60 = vld [vmem:[#allocation2 + $0x98] sm:$0x1] }
 0x3ef   : > { %v7319_v18 = vsel %vm14078_vm3, %v7314_v56, %v7318_v29  ;;  %v18604_v6 = vshll.u32 %v16667_v11, 16  ;;  %v7337_v36 = vor.u32 %v7336_v42, %v7332_v61  ;;  %v7347_v46 = vrot.slane %v7345_v1, 4  ;;  %18810 = vst [vmem:[#allocation7_spill] sm:$0xff] %v16681_v50 }
 0x3f0   : > { %v12051_v25 = vcombine.low %v7309_v51, %v7319_v18  ;;  %v7328_v26 = vrot.slane %v7327_v21, 4  ;;  %v7350_v24 = vrot.slane %v7348_v47, 5  ;;  %v18607_v15 = vshrl.u32 %v16667_v11, 16  ;;  %v7092_v47 = vld [vmem:[#allocation2 + $0x9c] sm:$0xf] }
 0x3f1   : > { %v7356_v49 = vrot.slane %v18604_v6, 5  ;;  %v7364_v28 = vshll.u32 %v16673_v45, 16  ;;  %v7338_v62 = vrot.slane %v7337_v36, 4  ;;  %v7369_v56 = vshrl.u32 %v7089_v48, 16 }
 0x3f2   : > { %13146 = vmatprep.mubr.msk.bf16.mxu1 %vm766_vm4, %v12051_v25  ;;  %v7333_v29 = vsel %vm14078_vm3, %v7328_v26, %v7332_v61  ;;  %v7372_v21 = vshll.u32 %v7089_v48, 16  ;;  %v7351_v42 = vor.u32 %v7350_v24, %v7347_v46  ;;  %v7360_v1 = vrot.slane %v18607_v15, 4  ;;  %v16698_v26 = vld [vmem:[#allocation2 + $0xa0] sm:$0xf] }
 0x3f3   : > { %v7366_v51 = vrot.slane %v7364_v28, 5  ;;  %v18609_v18 = vshll.u32 %v16681_v50, 16  ;;  %v7343_v6 = vsel %vm14078_vm3, %v7338_v62, %v7342_v38  ;;  %v7371_v25 = vrot.slane %v7369_v56, 4  ;;  %18811 = vst [vmem:[#allocation8_spill] sm:$0xff] %v16698_v26  ;;  %v16708_v56 = vld [vmem:[#allocation2 + $0xa4] sm:$0x1] }
 0x3f4   : > { %v7374_v17 = vrot.slane %v7372_v21, 5  ;;  %v18610_v61 = vshrl.u32 %v16681_v50, 16  ;;  %v12052_v36 = vcombine.low %v7333_v29, %v7343_v6  ;;  %v7352_v4 = vrot.slane %v7351_v42, 4 }
 0x3f5   : > { %v7361_v48 = vor.u32 %v7360_v1, %v7356_v49  ;;  %v7380_v24 = vrot.slane %v18609_v18, 5  ;;  %v7388_v15 = vshll.u32 %v16690_v60, 16  ;;  %v7393_v35 = vshrl.u32 %v7092_v47, 16 }
 0x3f6   : > { %v7375_v46 = vor.u32 %v7374_v17, %v7371_v25  ;;  %v7384_v28 = vrot.slane %v18610_v61, 4  ;;  %13147 = vmatmul.mubr.msk.bf16.gmra.mrb[24].mxu1 %vm766_vm4, %v12052_v36  ;;  %v7357_v38 = vsel %vm14078_vm3, %v7352_v4, %v7356_v49  ;;  %v7396_v6 = vshll.u32 %v7092_v47, 16  ;;  %v7095_v25 = vld [vmem:[#allocation2 + $0xa8] sm:$0xf]  ;;  %v16716_v49 = vld [vmem:[#allocation2 + $0xac] sm:$0xf] }
 0x3f7   : > { %v7362_v62 = vrot.slane %v7361_v48, 4  ;;  %v18611_v29 = vshll.u32 %v16698_v26, 16  ;;  %v7390_v17 = vrot.slane %v7388_v15, 5  ;;  %v7395_v1 = vrot.slane %v7393_v35, 4  ;;  %18812 = vst [vmem:[#allocation9_spill] sm:$0xff] %v16716_v49 }
 0x3f8   : > { %v7376_v21 = vrot.slane %v7375_v46, 4  ;;  %v7385_v42 = vor.u32 %v7384_v28, %v7380_v24  ;;  %v7398_v61 = vrot.slane %v7396_v6, 5  ;;  %v18613_v4 = vshrl.u32 %v16698_v26, 16 }
 0x3f9   : > { %v7367_v18 = vsel %vm14078_vm3, %v7362_v62, %v7366_v51  ;;  %v7404_v36 = vrot.slane %v18611_v29, 5  ;;  %v7412_v15 = vshll.u32 %v16708_v56, 16  ;;  %v16723_v51 = vld [vmem:[#allocation2 + $0xb0] sm:$0x1]  ;;  %v7417_v62 = vshrl.u32 %v7095_v25, 16 }
 0x3fa   : > { %v12053_v48 = vcombine.low %v7357_v38, %v7367_v18  ;;  %v7381_v47 = vsel %vm14078_vm3, %v7376_v21, %v7380_v24  ;;  %v7386_v46 = vrot.slane %v7385_v42, 4  ;;  %v7399_v35 = vor.u32 %v7398_v61, %v7395_v1  ;;  %v7098_v21 = vld [vmem:[#allocation2 + $0xb4] sm:$0xf] }
 0x3fb   : > { %v7408_v28 = vrot.slane %v18613_v4, 4  ;;  %v7420_v6 = vshll.u32 %v7095_v25, 16  ;;  %v7414_v18 = vrot.slane %v7412_v15, 5  ;;  %v18615_v38 = vshll.u32 %v16716_v49, 16  ;;  %v16730_v4 = vld [vmem:[#allocation2 + $0xb8] sm:$0xf] }
 0x3fc   : > { %13150 = vmatprep.mubr.msk.bf16.mxu1 %vm766_vm4, %v12053_v48  ;;  %v7391_v29 = vsel %vm14078_vm3, %v7386_v46, %v7390_v17  ;;  %v18617_v24 = vshrl.u32 %v16716_v49, 16  ;;  %v7400_v61 = vrot.slane %v7399_v35, 4  ;;  %v7419_v54 = vrot.slane %v7417_v62, 4  ;;  %18813 = vst [vmem:[#allocation10_spill] sm:$0xff] %v16730_v4 }
 0x3fd   : > { %v12054_v42 = vcombine.low %v7381_v47, %v7391_v29  ;;  %v7409_v1 = vor.u32 %v7408_v28, %v7404_v36  ;;  %v7422_v59 = vrot.slane %v7420_v6, 5  ;;  %v7428_v25 = vrot.slane %v18615_v38, 5  ;;  %v16740_v6 = vld [vmem:[#allocation2 + $0xbc] sm:$0x1] }
 0x3fe   : > { %v7432_v48 = vrot.slane %v18617_v24, 4  ;;  %v7436_v17 = vshll.u32 %v16723_v51, 16  ;;  %v7405_v46 = vsel %vm14078_vm3, %v7400_v61, %v7404_v36  ;;  %v7441_v47 = vshrl.u32 %v7098_v21, 16 }
 0x3ff   : > { %13151 = vmatmul.mubr.msk.bf16.gmra.mrb[28].mxu1 %vm766_vm4, %v12054_v42  ;;  %v7410_v29 = vrot.slane %v7409_v1, 4  ;;  %v7444_v15 = vshll.u32 %v7098_v21, 16  ;;  %v7423_v35 = vor.u32 %v7422_v59, %v7419_v54  ;;  %v18621_v38 = vshll.u32 %v16730_v4, 16 }
 0x400   : > { %v7433_v28 = vor.u32 %v7432_v48, %v7428_v25  ;;  %v7438_v62 = vrot.slane %v7436_v17, 5  ;;  %v7443_v2 = vrot.slane %v7441_v47, 4  ;;  %v18622_v42 = vshrl.u32 %v16730_v4, 16 }
 0x401   : > { %v7415_v24 = vsel %vm14078_vm3, %v7410_v29, %v7414_v18  ;;  %v7446_v32 = vrot.slane %v7444_v15, 5  ;;  %v7424_v61 = vrot.slane %v7423_v35, 4  ;;  %v7452_v54 = vrot.slane %v18621_v38, 5 }
 0x402   : > { %v12055_v36 = vcombine.low %v7405_v46, %v7415_v24  ;;  %v7434_v21 = vrot.slane %v7433_v28, 4  ;;  %v7456_v1 = vrot.slane %v18622_v42, 4  ;;  %v7460_v48 = vshll.u32 %v16740_v6, 16  ;;  %v16758_v46 = vld [vmem:[#allocation2 + $0xc8] sm:$0x1] }
 0x403   : > { %v7447_v59 = vor.u32 %v7446_v32, %v7443_v2  ;;  %v7465_v17 = vshrl.u32 %v7101_v13, 16  ;;  %v7429_v18 = vsel %vm14078_vm3, %v7424_v61, %v7428_v25  ;;  %v7468_v29 = vshll.u32 %v7101_v13, 16  ;;  %v16761_v32 = vld [vmem:[#allocation2 + $0xc] sm:$0xe]  ;;  %v16766_v61 = vld [vmem:[#allocation2 + $0x18] sm:$0xe] }
 0x404   : > { %13154 = vmatprep.mubr.msk.bf16.mxu1 %vm766_vm4, %v12055_v36  ;;  %v7439_v24 = vsel %vm14078_vm3, %v7434_v21, %v7438_v62  ;;  %v18623_v47 = vshll.u32 %v16746_v58, 16  ;;  %v7457_v35 = vor.u32 %v7456_v1, %v7452_v54  ;;  %v7462_v28 = vrot.slane %v7460_v48, 5 }
 0x405   : > { %v12056_v2 = vcombine.low %v7429_v18, %v7439_v24  ;;  %v7448_v15 = vrot.slane %v7447_v59, 4  ;;  %v7467_v38 = vrot.slane %v7465_v17, 4  ;;  %v7470_v42 = vrot.slane %v7468_v29, 5 }
 0x406   : > { %v7476_v36 = vrot.slane %v18623_v47, 5  ;;  %v18624_v25 = vshrl.u32 %v16746_v58, 16  ;;  %v7458_v62 = vrot.slane %v7457_v35, 4  ;;  %v7484_v21 = vshll.u32 %v16758_v46, 16 }
 0x407   : > { %13155 = vmatmul.mubr.msk.bf16.gmra.mrb[32].mxu1 %vm766_vm4, %v12056_v2  ;;  %v7453_v13 = vsel %vm14078_vm3, %v7448_v15, %v7452_v54  ;;  %v12075_v59 = vrot.slane %v16761_v32, 9  ;;  %v7471_v1 = vor.u32 %v7470_v42, %v7467_v38  ;;  %v7848_v17 = vrot.slane %v16504_v33, 5  ;;  %v16781_v15 = vld [vmem:[#allocation2 + $0x24] sm:$0xe] }
 0x408   : > { %v7480_v48 = vrot.slane %v18624_v25, 4  ;;  %v7851_v18 = vrot.slane %v16508_v31, 5  ;;  %v7463_v24 = vsel %vm14078_vm3, %v7458_v62, %v7462_v28  ;;  %v7486_v29 = vrot.slane %v7484_v21, 5  ;;  %v16790_v62 = vld [vmem:[#allocation2 + $0x30] sm:$0xe] }
 0x409   : > { %v12076_v2 = vrot.slane %v16766_v61, 9  ;;  %v7855_v54 = vrot.slane %v16517_v34, 5  ;;  %v12057_v35 = vcombine.low %v7453_v13, %v7463_v24  ;;  %v7472_v47 = vrot.slane %v7471_v1, 4 }
 0x40a   : > { %v7481_v38 = vor.u32 %v7480_v48, %v7476_v36  ;;  %v7849_v42 = vsel %vm14296_vm7, %v12075_v59, %v7848_v17  ;;  %v7850_v25 = vrot.slane %v7848_v17, 4  ;;  %v7858_v28 = vrot.slane %v16519_v55, 5 }
 0x40b   : > { %v16787_v31 = vsel %vm14296_vm7, %v12076_v2, %v7855_v54  ;;  %v7857_v37 = vrot.slane %v7855_v54, 4  ;;  %13158 = vmatprep.mubr.msk.bf16.mxu1 %vm766_vm4, %v12057_v35  ;;  %v7477_v13 = vsel %vm14078_vm3, %v7472_v47, %v7476_v36  ;;  %v16797_v1 = vsel %vm815_vm0, %v16573_v39, 0  ;;  %v16806_v2 = vld [vmem:[#allocation2 + $0x3c] sm:$0xe]  ;;  %v16812_v35 = vld [vmem:[#allocation2 + $0x48] sm:$0xe] }
 0x40c   : > { %v7482_v21 = vrot.slane %v7481_v38, 4  ;;  %v12077_v59 = vrot.slane %v16781_v15, 9  ;;  %v7852_v48 = vsel %vm14296_vm7, %v7850_v25, %v7851_v18  ;;  %v7862_v17 = vrot.slane %v16529_v3, 5 }
 0x40d   : > { %v7859_v55 = vsel %vm14296_vm7, %v7857_v37, %v7858_v28  ;;  %v7865_v24 = vrot.slane %v16540_v10, 5  ;;  %v12092_v36 = vcombine.low %v7849_v42, %v7852_v48  ;;  %v12078_v54 = vrot.slane %v16790_v62, 9 }
 0x40e   : > { %v7487_v47 = vsel %vm14078_vm3, %v7482_v21, %v7486_v29  ;;  %v12093_v39 = vcombine.low %v16787_v31, %v7859_v55  ;;  %v7863_v37 = vsel %vm14296_vm7, %v12077_v59, %v7862_v17  ;;  %v7864_v18 = vrot.slane %v7862_v17, 4  ;;  %v16821_v31 = vld [vmem:[#allocation2 + $0x54] sm:$0xe] }
 0x40f   : > { %v12058_v25 = vcombine.low %v7477_v13, %v7487_v47  ;;  %v7869_v38 = vrot.slane %v16547_v30, 5  ;;  %v7872_v10 = vrot.slane %v16556_v44, 5  ;;  %v12079_v28 = vrot.slane %v16806_v2, 9 }
 0x410   : > { %v7876_v29 = vrot.slane %v16563_v23, 5  ;;  %v7879_v42 = vrot.slane %v16578_v16, 5  ;;  %v7866_v13 = vsel %vm14296_vm7, %v7864_v18, %v7865_v24  ;;  %v12080_v44 = vrot.slane %v16812_v35, 9  ;;  %v16844_v18 = vld [vmem:[#allocation2 + $0x60] sm:$0xe] }
 0x411   : > { %13159 = vmatmul.mubr.msk.bf16.gmra.mrb[36].mxu1 %vm766_vm4, %v12058_v25  ;;  %v16828_v21 = vsel %vm14296_vm7, %v12078_v54, %v7869_v38  ;;  %v7871_v59 = vrot.slane %v7869_v38, 4  ;;  %v12094_v48 = vcombine.low %v7863_v37, %v7866_v13  ;;  %v7883_v17 = vrot.slane %v16583_v12, 5 }
 0x412   : > { %13164 = vmatprep.mubr.msk.bf16.mxu1 %vm766_vm4, %v12092_v36  ;;  %v16834_v16 = vsel %vm14296_vm7, %v12079_v28, %v7876_v29  ;;  %v7878_v55 = vrot.slane %v7876_v29, 4  ;;  %v7886_v47 = vrot.slane %v16594_v5, 5  ;;  %v12081_v54 = vrot.slane %v16821_v31, 9  ;;  %v16856_v28 = vld [vmem:[#allocation2 + $0x6c] sm:$0xe] }
 0x413   : > { %v16839_v24 = vsel %vm14296_vm7, %v7871_v59, %v7872_v10  ;;  %v7890_v25 = vrot.slane %v16601_v14, 5  ;;  %v16854_v38 = vsel %vm14296_vm7, %v12080_v44, %v7883_v17  ;;  %v7885_v10 = vrot.slane %v7883_v17, 4 }
 0x414   : > { %v16850_v37 = vsel %vm14296_vm7, %v7878_v55, %v7879_v42  ;;  %v7893_v59 = vrot.slane %v16610_v40, 5  ;;  %v12082_v44 = vrot.slane %v16844_v18, 9  ;;  %v7897_v55 = vrot.slane %v16621_v22, 5 }
 0x415   : > { %v16862_v29 = vsel %vm14296_vm7, %v12081_v54, %v7890_v25  ;;  %v7892_v13 = vrot.slane %v7890_v25, 4  ;;  %v16867_v42 = vsel %vm14296_vm7, %v7885_v10, %v7886_v47  ;;  %v7900_v17 = vrot.slane %v16627_v43, 5  ;;  %v16882_v25 = vld [vmem:[#allocation2 + $0x84] sm:$0xe] }
 0x416   : > { %v12083_v40 = vrot.slane %v16856_v28, 9  ;;  %v7904_v47 = vrot.slane %v16635_v63, 5  ;;  %v16888_v43 = vsel %vm14296_vm7, %v12082_v44, %v7897_v55  ;;  %v7899_v8 = vrot.slane %v7897_v55, 4 }
 0x417   : > { %v16878_v54 = vsel %vm14296_vm7, %v7892_v13, %v7893_v59  ;;  %v7907_v7 = vrot.slane %v16641_v57, 5  ;;  %v16894_v13 = vld [vmem:[%s18564_s3 + $0x18] sm:$0xf]  ;;  %v12084_v10 = vrot.slane %v16872_v52, 9  ;;  %v7911_v44 = vrot.slane %v16651_v41, 5 }
 0x418   : > { %v16899_v59 = vsel %vm14296_vm7, %v12083_v40, %v7904_v47  ;;  %v7906_v0 = vrot.slane %v7904_v47, 4  ;;  %v16907_v57 = vsel %vm14296_vm7, %v7899_v8, %v7900_v17  ;;  %v7914_v55 = vrot.slane %v16657_v53, 5  ;;  %v16924_v17 = vld [vmem:[#allocation2 + $0x9c] sm:$0xe] }
 0x419   : > { %13165 = vmatmul.mubr.msk.bf16.vlgmr.msra.gmra.mrb[8].mxu1 %vm766_vm4, %v12093_v39  ;;  %v12085_v39 = vrot.slane %v16882_v25, 9  ;;  %v7918_v40 = vrot.slane %v16667_v11, 5  ;;  %v7913_v8 = vrot.slane %v7911_v44, 4  ;;  %18816 = vst [vmem:[#allocation13_spill] sm:$0xff] %v16924_v17  ;;  %v7928_v36 = vrot.slane %v16690_v60, 5 }
 0x41a   : > { %13197 = vmatpush3.bf16.msra.mxu1 %v16797_v1  ;;  %13168 = vmatprep.mubr.msk.bf16.mxu1 %vm766_vm4, %v12094_v48  ;;  %v16918_v1 = vsel %vm14296_vm7, %v7906_v0, %v7907_v7  ;;  %v16922_v48 = vsel %vm14296_vm7, %v12084_v10, %v7911_v44  ;;  %v7921_v0 = vrot.slane %v16673_v45, 5  ;;  %v12086_v10 = vrot.slane %v16912_v9, 9 }
 0x41b   : > { %13880 = vmatprep.subr.msk.bf16.mxu1 %vm815_vm0, %v16894_v13  ;;  %v16932_v47 = vsel %vm14296_vm7, %v12085_v39, %v7918_v40  ;;  %v7920_v5 = vrot.slane %v7918_v40, 4  ;;  %v16937_v7 = vsel %vm14296_vm7, %v7913_v8, %v7914_v55  ;;  %v7925_v44 = vrot.slane %v16681_v50, 5  ;;  %v16952_v40 = vld [vmem:[#allocation2 + $0xb4] sm:$0xe] }
 0x41c   : > { %v12087_v45 = vrot.slane %v16924_v17, 9  ;;  %v7932_v55 = vrot.slane %v16698_v26, 5  ;;  %18818 = vst [vmem:[#allocation16_spill] sm:$0xff] %v16952_v40  ;;  %v7935_v53 = vrot.slane %v16708_v56, 5  ;;  %v12088_v17 = vrot.slane %v16942_v27, 9 }
 0x41d   : > { %v16948_v39 = vsel %vm14296_vm7, %v7920_v5, %v7921_v0  ;;  %v16958_v60 = vsel %vm14296_vm7, %v12086_v10, %v7925_v44  ;;  %v7927_v50 = vrot.slane %v7925_v44, 4  ;;  %v7939_v26 = vrot.slane %v16716_v49, 5 }
 0x41e   : > { %v16963_v5 = vsel %vm14296_vm7, %v12087_v45, %v7932_v55  ;;  %v7934_v0 = vrot.slane %v7932_v55, 4  ;;  %v18819_v9 = vcombine.low %v16828_v21, %v16839_v24  ;;  %v7942_v56 = vrot.slane %v16723_v51, 5  ;;  %v16978_v55 = vld [vmem:[#allocation2 + $0xc0] sm:$0xe] }
 0x41f   : > { %v16973_v10 = vsel %vm14296_vm7, %v7927_v50, %v7928_v36  ;;  %v12089_v44 = vrot.slane %v16952_v40, 9  ;;  %v7946_v45 = vrot.slane %v16730_v4, 5  ;;  %18820 = vst [vmem:[#allocation17_spill] sm:$0xff] %v16978_v55  ;;  %v18821_v8 = vcombine.low %v16834_v16, %v16850_v37 }
 0x420   : > { %v16988_v50 = vsel %vm14296_vm7, %v7934_v0, %v7935_v53  ;;  %v16992_v51 = vsel %vm14296_vm7, %v12088_v17, %v7939_v26  ;;  %v7941_v21 = vrot.slane %v7939_v26, 4  ;;  %v7949_v37 = vrot.slane %v16740_v6, 5  ;;  %v8252_v0 = vld [vmem:[#allocation2 + $0x14] sm:$0x3] }
 0x421   : > { %13169 = vmatmul.mubr.msk.bf16.gmra.mrb[12].mxu1 %vm766_vm4, %v18819_v9  ;;  %v16998_v16 = vsel %vm14296_vm7, %v12089_v44, %v7946_v45  ;;  %v7948_v36 = vrot.slane %v7946_v45, 4  ;;  %v12090_v53 = vrot.slane %v16978_v55, 9  ;;  %v7953_v17 = vrot.slane %v16746_v58, 5 }
 0x422   : > { %13172 = vmatprep.mubr.msk.bf16.mxu1 %vm766_vm4, %v18821_v8  ;;  %v17003_v8 = vsel %vm14296_vm7, %v7941_v21, %v7942_v56  ;;  %v7956_v26 = vrot.slane %v16758_v46, 5  ;;  %v8269_v6 = vshrl.u32 %v16761_v32, 16  ;;  %v8272_v45 = vshll.u32 %v16761_v32, 16  ;;  %v8253_v56 = vld [vmem:[#allocation2 + $0x20] sm:$0x3] }
 0x423   : > { %v17012_v44 = vsel %vm14296_vm7, %v7948_v36, %v7949_v37  ;;  %v17020_v21 = vsel %vm14296_vm7, %v12090_v53, %v7953_v17  ;;  %v7955_v46 = vrot.slane %v7953_v17, 4  ;;  %v18822_v9 = vshrl.u32 %v16504_v33, 16 }
 0x424   : > { %v8271_v24 = vrot.slane %v8269_v6, 5  ;;  %v8274_v55 = vrot.slane %v8272_v45, 6  ;;  %v18823_v36 = vshll.u32 %v16504_v33, 16  ;;  %v8283_v4 = vshrl.u32 %v8252_v0, 16 }
 0x425   : > { %v8277_v58 = vrot.slane %v18822_v9, 5  ;;  %v17028_v32 = vsel %vm14296_vm7, %v7955_v46, %v7956_v26  ;;  %v8286_v40 = vshll.u32 %v8252_v0, 16  ;;  %v8292_v49 = vshrl.u32 %v16766_v61, 16 }
 0x426   : > { %v8278_v37 = vrot.slane %v18823_v36, 6  ;;  %v8295_v53 = vshll.u32 %v16766_v61, 16  ;;  %v18824_v17 = vcombine.low %v16854_v38, %v16867_v42  ;;  %v8275_v9 = vor.u32 %v8274_v55, %v8271_v24 }
 0x427   : > { %v18825_v6 = vcombine.low %v16862_v29, %v16878_v54  ;;  %v8285_v0 = vrot.slane %v8283_v4, 5  ;;  %v8288_v45 = vrot.slane %v8286_v40, 6  ;;  %v18826_v46 = vshrl.u32 %v16517_v34, 16 }
 0x428   : > { %v8279_v26 = vor.u32 %v8278_v37, %v8277_v58  ;;  %v8294_v36 = vrot.slane %v8292_v49, 5  ;;  %v8297_v20 = vrot.slane %v8295_v53, 6  ;;  %v18827_v38 = vshll.u32 %v16517_v34, 16  ;;  %v8254_v58 = vld [vmem:[#allocation2 + $0x2c] sm:$0x3] }
 0x429   : > { %13173 = vmatmul.mubr.msk.bf16.gmra.mrb[16].mxu1 %vm766_vm4, %v18824_v17  ;;  %v8300_v61 = vrot.slane %v18826_v46, 5  ;;  %v8306_v17 = vshrl.u32 %v8253_v56, 16  ;;  %v8309_v27 = vshll.u32 %v8253_v56, 16  ;;  %v8315_v24 = vshrl.u32 %v16781_v15, 16 }
 0x42a   : > { %13176 = vmatprep.mubr.msk.bf16.mxu1 %vm766_vm4, %v18825_v6  ;;  %v8301_v42 = vrot.slane %v18827_v38, 6  ;;  %v8276_v29 = vrot.slane %v8275_v9, 4  ;;  %v8281_v54 = vrot.slane %v8279_v26, 4  ;;  %v8318_v4 = vshll.u32 %v16781_v15, 16 }
 0x42b   : > { %v8308_v55 = vrot.slane %v8306_v17, 5  ;;  %v8311_v6 = vrot.slane %v8309_v27, 6  ;;  %v8289_v40 = vor.u32 %v8288_v45, %v8285_v0  ;;  %v8298_v37 = vor.u32 %v8297_v20, %v8294_v36  ;;  %v8255_v17 = vld [vmem:[#allocation2 + $0x38] sm:$0x3] }
 0x42c   : > { %v8302_v33 = vor.u32 %v8301_v42, %v8300_v61  ;;  %v8317_v49 = vrot.slane %v8315_v24, 5  ;;  %v8320_v11 = vrot.slane %v8318_v4, 6  ;;  %v18828_v34 = vshrl.u32 %v16529_v3, 16 }
 0x42d   : > { %v8312_v53 = vor.u32 %v8311_v6, %v8308_v55  ;;  %v18829_v56 = vshll.u32 %v16529_v3, 16  ;;  %v18830_v9 = vcombine.low %v16888_v43, %v16907_v57  ;;  %v8329_v27 = vshrl.u32 %v8254_v58, 16 }
 0x42e   : > { %v8304_v46 = vrot.slane %v8302_v33, 4  ;;  %v8323_v38 = vrot.slane %v18828_v34, 5  ;;  %v8332_v42 = vshll.u32 %v8254_v58, 16  ;;  %v8338_v15 = vshrl.u32 %v16790_v62, 16  ;;  %v8256_v34 = vld [vmem:[#allocation2 + $0x44] sm:$0x3] }
 0x42f   : > { %v8324_v61 = vrot.slane %v18829_v56, 6  ;;  %v8341_v20 = vshll.u32 %v16790_v62, 16  ;;  %v18831_v0 = vcombine.low %v16899_v59, %v16918_v1  ;;  %v8321_v45 = vor.u32 %v8320_v11, %v8317_v49 }
 0x430   : > { %v8290_v3 = vsel %vm16354_vm2, %v8281_v54, %v8289_v40  ;;  %v8299_v36 = vrot.slane %v8298_v37, 4  ;;  %v8340_v43 = vrot.slane %v8338_v15, 5  ;;  %v8331_v55 = vrot.slane %v8329_v27, 5 }
 0x431   : > { %13177 = vmatmul.mubr.msk.bf16.gmra.mrb[20].mxu1 %vm766_vm4, %v18830_v9  ;;  %v17064_v57 = vor.u32 %v8324_v61, %v8323_v38  ;;  %v8334_v24 = vrot.slane %v8332_v42, 6  ;;  %v8343_v6 = vrot.slane %v8341_v20, 6  ;;  %v8280_v62 = vsel %vm16354_vm2, %v8276_v29, %v8279_v26 }
 0x432   : > { %13180 = vmatprep.mubr.msk.bf16.mxu1 %vm766_vm4, %v18831_v0  ;;  %v8313_v59 = vsel %vm16354_vm2, %v8304_v46, %v8312_v53  ;;  %v17072_v11 = vsel %vm815_vm0, %v16894_v13, 0  ;;  %v17074_v1 = vrot.slane %v8321_v45, 4  ;;  %v17076_v54 = vcombine.low %v8280_v62, %v8290_v3 }
 0x433   : > { %v18832_v58 = vshrl.u32 %v16547_v30, 16  ;;  %v18833_v40 = vshll.u32 %v16547_v30, 16  ;;  %v8352_v49 = vshrl.u32 %v8255_v17, 16  ;;  %v8303_v26 = vsel %vm16354_vm2, %v8299_v36, %v8302_v33 }
 0x434   : > { %v8344_v29 = vor.u32 %v8343_v6, %v8340_v43  ;;  %v8355_v46 = vshll.u32 %v8255_v17, 16  ;;  %v8361_v13 = vshrl.u32 %v16806_v2, 16  ;;  %v17085_v53 = vcombine.low %v8303_v26, %v8313_v59  ;;  %v8257_v43 = vld [vmem:[#allocation2 + $0x50] sm:$0x3] }
 0x435   : > { %v8346_v4 = vrot.slane %v18832_v58, 5  ;;  %v8347_v37 = vrot.slane %v18833_v40, 6  ;;  %v8327_v38 = vrot.slane %v17064_v57, 4  ;;  %v8335_v56 = vor.u32 %v8334_v24, %v8331_v55 }
 0x436   : > { %v8364_v61 = vshll.u32 %v16806_v2, 16  ;;  %v18834_v30 = vcombine.low %v16922_v48, %v16937_v7  ;;  %v8326_v33 = vsel %vm16354_vm2, %v17074_v1, %v17064_v57  ;;  %v18835_v9 = vshrl.u32 %v16563_v23, 16 }
 0x437   : > { %v18836_v42 = vshll.u32 %v16563_v23, 16  ;;  %v8375_v20 = vshrl.u32 %v8256_v34, 16  ;;  %v18837_v2 = vcombine.low %v16932_v47, %v16948_v39  ;;  %v17105_v48 = vor.u32 %v8347_v37, %v8346_v4 }
 0x438   : > { %v8369_v27 = vrot.slane %v18835_v9, 5  ;;  %v8354_v7 = vrot.slane %v8352_v49, 5  ;;  %v8378_v0 = vshll.u32 %v8256_v34, 16  ;;  %v8384_v45 = vshrl.u32 %v16812_v35, 16 }
 0x439   : > { %13181 = vmatmul.mubr.msk.bf16.gmra.mrb[24].mxu1 %vm766_vm4, %v18834_v30  ;;  %v8370_v15 = vrot.slane %v18836_v42, 6  ;;  %v17108_v3 = vrot.slane %v8344_v29, 4  ;;  %v8357_v36 = vrot.slane %v8355_v46, 6  ;;  %v8363_v17 = vrot.slane %v8361_v13, 5  ;;  %v8258_v46 = vld [vmem:[#allocation2 + $0x5c] sm:$0x3] }
 0x43a   : > { %13184 = vmatprep.mubr.msk.bf16.mxu1 %vm766_vm4, %v18837_v2  ;;  %v8387_v23 = vshll.u32 %v16812_v35, 16  ;;  %v8366_v55 = vrot.slane %v8364_v61, 6  ;;  %v8377_v6 = vrot.slane %v8375_v20, 5  ;;  %v8380_v62 = vrot.slane %v8378_v0, 6 }
 0x43b   : > { %v8371_v24 = vor.u32 %v8370_v15, %v8369_v27  ;;  %v8386_v47 = vrot.slane %v8384_v45, 5  ;;  %v18838_v59 = vshrl.u32 %v16583_v12, 16  ;;  %v18839_v4 = vshll.u32 %v16583_v12, 16 }
 0x43c   : > { %v8389_v39 = vrot.slane %v8387_v23, 6  ;;  %v8336_v37 = vsel %vm16354_vm2, %v8327_v38, %v8335_v56  ;;  %v8350_v49 = vrot.slane %v17105_v48, 4  ;;  %v8398_v34 = vshrl.u32 %v8257_v43, 16 }
 0x43d   : > { %v8392_v58 = vrot.slane %v18838_v59, 5  ;;  %v8393_v40 = vrot.slane %v18839_v4, 6  ;;  %v8401_v26 = vshll.u32 %v8257_v43, 16  ;;  %v8349_v35 = vsel %vm16354_vm2, %v17108_v3, %v17105_v48 }
 0x43e   : > { %v8358_v29 = vor.u32 %v8357_v36, %v8354_v7  ;;  %v8407_v13 = vshrl.u32 %v16821_v31, 16  ;;  %v8410_v61 = vshll.u32 %v16821_v31, 16  ;;  %v8367_v12 = vor.u32 %v8366_v55, %v8363_v17  ;;  %v8259_v55 = vld [vmem:[#allocation2 + $0x68] sm:$0x3] }
 0x43f   : > { %v8373_v30 = vrot.slane %v8371_v24, 4  ;;  %v8381_v9 = vor.u32 %v8380_v62, %v8377_v6  ;;  %v18840_v38 = vshrl.u32 %v16601_v14, 16  ;;  %v18841_v27 = vcombine.low %v16958_v60, %v16973_v10 }
 0x440   : > { %v8390_v42 = vor.u32 %v8389_v39, %v8386_v47  ;;  %v8394_v15 = vor.u32 %v8393_v40, %v8392_v58  ;;  %v8400_v20 = vrot.slane %v8398_v34, 5  ;;  %v8409_v2 = vrot.slane %v8407_v13, 5 }
 0x441   : > { %v8415_v56 = vrot.slane %v18840_v38, 5  ;;  %13185 = vmatmul.mubr.msk.bf16.gmra.mrb[28].mxu1 %vm766_vm4, %v18841_v27  ;;  %v18842_v48 = vcombine.low %v16963_v5, %v16988_v50  ;;  %v8403_v31 = vrot.slane %v8401_v26, 6  ;;  %v8412_v7 = vrot.slane %v8410_v61, 6  ;;  %v8260_v27 = vld [vmem:[#allocation2 + $0x74] sm:$0x3] }
 0x442   : > { %v18843_v0 = vshll.u32 %v16601_v14, 16  ;;  %v8421_v3 = vshrl.u32 %v8258_v46, 16  ;;  %v8359_v60 = vsel %vm16354_vm2, %v8350_v49, %v8358_v29  ;;  %v8424_v10 = vshll.u32 %v8258_v46, 16 }
 0x443   : > { %13188 = vmatprep.mubr.msk.bf16.mxu1 %vm766_vm4, %v18842_v48  ;;  %v8430_v36 = vshrl.u32 %v16844_v18, 16  ;;  %v8433_v17 = vshll.u32 %v16844_v18, 16  ;;  %v8368_v43 = vrot.slane %v8367_v12, 4  ;;  %v8382_v5 = vsel %vm16354_vm2, %v8373_v30, %v8381_v9 }
 0x444   : > { %v8416_v45 = vrot.slane %v18843_v0, 6  ;;  %v8423_v23 = vrot.slane %v8421_v3, 5  ;;  %v8413_v6 = vor.u32 %v8412_v7, %v8409_v2  ;;  %v8426_v62 = vrot.slane %v8424_v10, 6 }
 0x445   : > { %v8432_v14 = vrot.slane %v8430_v36, 5  ;;  %v8435_v47 = vrot.slane %v8433_v17, 6  ;;  %v8391_v39 = vrot.slane %v8390_v42, 4  ;;  %v8396_v59 = vrot.slane %v8394_v15, 4 }
 0x446   : > { %v8417_v50 = vor.u32 %v8416_v45, %v8415_v56  ;;  %v8404_v58 = vor.u32 %v8403_v31, %v8400_v20  ;;  %v18844_v40 = vshrl.u32 %v16621_v22, 16  ;;  %v18845_v18 = vshll.u32 %v16621_v22, 16  ;;  %v8261_v45 = vld [vmem:[#allocation2 + $0x80] sm:$0x3] }
 0x447   : > { %v8444_v26 = vshrl.u32 %v8259_v55, 16  ;;  %v8447_v29 = vshll.u32 %v8259_v55, 16  ;;  %v8427_v46 = vor.u32 %v8426_v62, %v8423_v23  ;;  %v8436_v13 = vor.u32 %v8435_v47, %v8432_v14 }
 0x448   : > { %v8419_v4 = vrot.slane %v8417_v50, 4  ;;  %v8438_v49 = vrot.slane %v18844_v40, 5  ;;  %v8439_v34 = vrot.slane %v18845_v18, 6  ;;  %v8453_v61 = vshrl.u32 %v16856_v28, 16 }
 0x449   : > { %v8456_v12 = vshll.u32 %v16856_v28, 16  ;;  %v18846_v30 = vcombine.low %v16992_v51, %v17003_v8  ;;  %v17157_v22 = vcombine.low %v8326_v33, %v8336_v37  ;;  %v17159_v9 = vcombine.low %v8349_v35, %v8359_v60 }
 0x44a   : > { %v8372_v38 = vsel %vm16354_vm2, %v8368_v43, %v8371_v24  ;;  %v8414_v56 = vrot.slane %v8413_v6, 4  ;;  %v18847_v28 = vcombine.low %v16998_v16, %v17012_v44  ;;  %v8405_v8 = vsel %vm16354_vm2, %v8396_v59, %v8404_v58  ;;  %v8262_v59 = vld [vmem:[#allocation2 + $0x8c] sm:$0x3] }
 0x44b   : > { %13189 = vmatmul.mubr.msk.bf16.gmra.mrb[32].mxu1 %vm766_vm4, %v18846_v30  ;;  %v17167_v51 = vcombine.low %v8372_v38, %v8382_v5  ;;  %v8455_v57 = vrot.slane %v8453_v61, 5  ;;  %v8458_v1 = vrot.slane %v8456_v12, 6  ;;  %v8395_v33 = vsel %vm16354_vm2, %v8391_v39, %v8394_v15 }
 0x44c   : > { %13192 = vmatprep.mubr.msk.bf16.mxu1 %vm766_vm4, %v18847_v28  ;;  %v17173_v37 = vor.u32 %v8439_v34, %v8438_v49  ;;  %v8446_v24 = vrot.slane %v8444_v26, 5  ;;  %v8449_v35 = vrot.slane %v8447_v29, 6  ;;  %v8428_v16 = vsel %vm16354_vm2, %v8419_v4, %v8427_v46  ;;  %v18853_v46 = vld [vmem:[#allocation6_spill] sm:$0xff] }
 0x44d   : > { %v17177_v44 = vrot.slane %v8436_v13, 4  ;;  %v18848_v42 = vshrl.u32 %v16635_v63, 16  ;;  %v18849_v2 = vshll.u32 %v16635_v63, 16  ;;  %v17183_v31 = vcombine.low %v8395_v33, %v8405_v8 }
 0x44e   : > { %v8418_v15 = vsel %vm16354_vm2, %v8414_v56, %v8417_v50  ;;  %v8459_v7 = vor.u32 %v8458_v1, %v8455_v57  ;;  %v8467_v0 = vshrl.u32 %v8260_v27, 16  ;;  %v8470_v3 = vshll.u32 %v8260_v27, 16  ;;  %v18856_v56 = vld [vmem:[#allocation12_spill] sm:$0xff] }
 0x44f   : > { %v8461_v20 = vrot.slane %v18848_v42, 5  ;;  %v8462_v48 = vrot.slane %v18849_v2, 6  ;;  %v8476_v60 = vshrl.u32 %v16872_v52, 16  ;;  %v8479_v10 = vshll.u32 %v16872_v52, 16 }
 0x450   : > { %v18850_v36 = vshrl.u32 %v16651_v41, 16  ;;  %v17191_v43 = vcombine.low %v8418_v15, %v8428_v16  ;;  %v8442_v63 = vrot.slane %v17173_v37, 4  ;;  %v8450_v5 = vor.u32 %v8449_v35, %v8446_v24  ;;  %v8263_v24 = vld [vmem:[#allocation2 + $0x98] sm:$0x3]  ;;  %v18857_v15 = vld [vmem:[#allocation7_spill] sm:$0xff] }
 0x451   : > { %v18851_v23 = vshll.u32 %v16651_v41, 16  ;;  %v8441_v50 = vsel %vm16354_vm2, %v17177_v44, %v17173_v37  ;;  %v17200_v6 = vor.u32 %v8462_v48, %v8461_v20  ;;  %v8490_v62 = vshrl.u32 %v8261_v45, 16 }
 0x452   : > { %v8484_v17 = vrot.slane %v18850_v36, 5  ;;  %v8493_v52 = vshll.u32 %v8261_v45, 16  ;;  %v18852_v14 = vcombine.low %v17020_v21, %v17028_v32  ;;  %v17206_v47 = vrot.slane %v8459_v7, 4 }
 0x453   : > { %v8485_v55 = vrot.slane %v18851_v23, 6  ;;  %v8469_v39 = vrot.slane %v8467_v0, 5  ;;  %v8499_v41 = vshrl.u32 %v16882_v25, 16  ;;  %v8502_v58 = vshll.u32 %v16882_v25, 16 }
 0x454   : > { %13193 = vmatmul.mubr.msk.bf16.gmra.mrb[36].mxu1 %vm766_vm4, %v18852_v14  ;;  %v8472_v4 = vrot.slane %v8470_v3, 6  ;;  %v8478_v40 = vrot.slane %v8476_v60, 5  ;;  %v8481_v49 = vrot.slane %v8479_v10, 6  ;;  %v8451_v21 = vsel %vm16354_vm2, %v8442_v63, %v8450_v5  ;;  %v17237_v60 = vld [vmem:[%s18564_s3 + $0x1c] sm:$0xf] }
 0x455   : > { %13198 = vmatprep.mubr.msk.bf16.mxu1 %vm766_vm4, %v17076_v54  ;;  %v17212_v18 = vor.u32 %v8485_v55, %v8484_v17  ;;  %v8492_v32 = vrot.slane %v8490_v62, 5  ;;  %v8495_v34 = vrot.slane %v8493_v52, 6  ;;  %v8501_v26 = vrot.slane %v8499_v41, 5  ;;  %v18860_v55 = vld [vmem:[#allocation13_spill] sm:$0xff] }
 0x456   : > { %v8504_v29 = vrot.slane %v8502_v58, 6  ;;  %v18854_v13 = vshrl.u32 %v18853_v46, 16  ;;  %v18855_v25 = vshll.u32 %v18853_v46, 16  ;;  %v8513_v30 = vshrl.u32 %v8262_v59, 16 }
 0x457   : > { %v8465_v54 = vrot.slane %v17200_v6, 4  ;;  %v8516_v38 = vshll.u32 %v8262_v59, 16  ;;  %v8522_v28 = vshrl.u32 %v18856_v56, 16  ;;  %v8525_v8 = vshll.u32 %v18856_v56, 16 }
 0x458   : > { %v8507_v61 = vrot.slane %v18854_v13, 5  ;;  %v8508_v12 = vrot.slane %v18855_v25, 6  ;;  %v8464_v27 = vsel %vm16354_vm2, %v17206_v47, %v17200_v6  ;;  %v8473_v57 = vor.u32 %v8472_v4, %v8469_v39  ;;  %v8264_v39 = vld [vmem:[#allocation2 + $0xa4] sm:$0x3] }
 0x459   : > { %v8482_v1 = vor.u32 %v8481_v49, %v8478_v40  ;;  %v8488_v33 = vrot.slane %v17212_v18, 4  ;;  %v8496_v35 = vor.u32 %v8495_v34, %v8492_v32  ;;  %v8505_v16 = vor.u32 %v8504_v29, %v8501_v26  ;;  %v18861_v40 = vld [vmem:[#allocation8_spill] sm:$0xff] }
 0x45a   : > { %v8524_v42 = vrot.slane %v8522_v28, 5  ;;  %v8527_v20 = vrot.slane %v8525_v8, 6  ;;  %v17228_v2 = vor.u32 %v8508_v12, %v8507_v61  ;;  %v8515_v48 = vrot.slane %v8513_v30, 5  ;;  %v18864_v61 = vld [vmem:[#allocation15_spill] sm:$0xff] }
 0x45b   : > { %v18858_v7 = vshrl.u32 %v18857_v15, 16  ;;  %v18859_v45 = vshll.u32 %v18857_v15, 16  ;;  %v8518_v10 = vrot.slane %v8516_v38, 6  ;;  %v8536_v17 = vshrl.u32 %v8263_v24, 16 }
 0x45c   : > { %13199 = vmatmul.mubr.msk.bf16.vlgmr.msra.gmra.mrb[8].mxu1 %vm766_vm4, %v17085_v53  ;;  %v8528_v36 = vor.u32 %v8527_v20, %v8524_v42  ;;  %v8539_v63 = vshll.u32 %v8263_v24, 16  ;;  %v8474_v5 = vsel %vm16354_vm2, %v8465_v54, %v8473_v57  ;;  %v8483_v23 = vrot.slane %v8482_v1, 4  ;;  %v8265_v24 = vld [vmem:[#allocation2 + $0xb0] sm:$0x3]  ;;  %v18865_v42 = vld [vmem:[#allocation9_spill] sm:$0xff] }
 0x45d   : > { %v8530_v0 = vrot.slane %v18858_v7, 5  ;;  %v8531_v3 = vrot.slane %v18859_v45, 6  ;;  %13231 = vmatpush3.bf16.msra.mxu1 %v17072_v11  ;;  %13202 = vmatprep.mubr.msk.bf16.mxu1 %vm766_vm4, %v17157_v22  ;;  %v8545_v6 = vshrl.u32 %v18860_v55, 16  ;;  %v8548_v62 = vshll.u32 %v18860_v55, 16  ;;  %v8266_v45 = vld [vmem:[#allocation2 + $0xbc] sm:$0x3] }
 0x45e   : > { %v8497_v53 = vsel %vm16354_vm2, %v8488_v33, %v8496_v35  ;;  %v8538_v14 = vrot.slane %v8536_v17, 5  ;;  %v8541_v47 = vrot.slane %v8539_v63, 6  ;;  %13881 = vmatprep.subr.msk.bf16.mxu1 %vm815_vm0, %v17237_v60  ;;  %v8506_v11 = vrot.slane %v8505_v16, 4  ;;  %v18869_v63 = vld [vmem:[#allocation10_spill] sm:$0xff] }
 0x45f   : > { %v8532_v52 = vor.u32 %v8531_v3, %v8530_v0  ;;  %v8511_v22 = vrot.slane %v17228_v2, 4  ;;  %v8547_v59 = vrot.slane %v8545_v6, 5  ;;  %v8550_v41 = vrot.slane %v8548_v62, 6 }
 0x460   : > { %v8519_v58 = vor.u32 %v8518_v10, %v8515_v48  ;;  %v8529_v4 = vrot.slane %v8528_v36, 4  ;;  %v18862_v49 = vshrl.u32 %v18861_v40, 16  ;;  %v18863_v34 = vshll.u32 %v18861_v40, 16  ;;  %v18868_v10 = vld [vmem:[#allocation16_spill] sm:$0xff]  ;;  %v8267_v40 = vld [vmem:[#allocation2 + $0xc8] sm:$0x3] }
 0x461   : > { %v8551_v29 = vor.u32 %v8550_v41, %v8547_v59  ;;  %v8559_v46 = vshrl.u32 %v8264_v39, 16  ;;  %v8562_v13 = vshll.u32 %v8264_v39, 16  ;;  %v8568_v25 = vshrl.u32 %v18864_v61, 16  ;;  %v18872_v39 = vld [vmem:[#allocation17_spill] sm:$0xff] }
 0x462   : > { %v8553_v32 = vrot.slane %v18862_v49, 5  ;;  %v8554_v26 = vrot.slane %v18863_v34, 6  ;;  %v8534_v12 = vrot.slane %v8532_v52, 4  ;;  %v8542_v30 = vor.u32 %v8541_v47, %v8538_v14 }
 0x463   : > { %v8571_v38 = vshll.u32 %v18864_v61, 16  ;;  %v17264_v56 = vcombine.low %v8441_v50, %v8451_v21  ;;  %v17266_v28 = vcombine.low %v8464_v27, %v8474_v5  ;;  %v8561_v8 = vrot.slane %v8559_v46, 5  ;;  %v18873_v61 = vld [vmem:[#allocation11_spill] sm:$0xff] }
 0x464   : > { %v8555_v54 = vor.u32 %v8554_v26, %v8553_v32  ;;  %v8564_v57 = vrot.slane %v8562_v13, 6  ;;  %13203 = vmatmul.mubr.msk.bf16.gmra.mrb[12].mxu1 %vm766_vm4, %v17159_v9  ;;  %v8487_v1 = vsel %vm16354_vm2, %v8483_v23, %v17212_v18  ;;  %v8570_v35 = vrot.slane %v8568_v25, 5 }
 0x465   : > { %v8573_v16 = vrot.slane %v8571_v38, 6  ;;  %13206 = vmatprep.mubr.msk.bf16.mxu1 %vm766_vm4, %v17167_v51  ;;  %v17275_v37 = vcombine.low %v8487_v1, %v8497_v53  ;;  %v8510_v44 = vsel %vm16354_vm2, %v8506_v11, %v17228_v2  ;;  %v8552_v50 = vrot.slane %v8551_v29, 4  ;;  %v8931_v29 = vld [vmem:[#allocation2 + $0x18] sm:$0xf] }
 0x466   : > { %v8557_v33 = vrot.slane %v8555_v54, 4  ;;  %v8565_v21 = vor.u32 %v8564_v57, %v8561_v8  ;;  %v8520_v9 = vsel %vm16354_vm2, %v8511_v22, %v8519_v58  ;;  %v8533_v18 = vsel %vm16354_vm2, %v8529_v4, %v8532_v52 }
 0x467   : > { %v8543_v27 = vsel %vm16354_vm2, %v8534_v12, %v8542_v30  ;;  %v18866_v20 = vshrl.u32 %v18865_v42, 16  ;;  %v8574_v48 = vor.u32 %v8573_v16, %v8570_v35  ;;  %v18867_v15 = vshll.u32 %v18865_v42, 16 }
 0x468   : > { %v8582_v0 = vshrl.u32 %v8265_v24, 16  ;;  %v8585_v2 = vshll.u32 %v8265_v24, 16  ;;  %v8566_v3 = vsel %vm16354_vm2, %v8557_v33, %v8565_v21  ;;  %v8591_v36 = vshrl.u32 %v18868_v10, 16  ;;  %v17323_v24 = vld [vmem:[#allocation2 + $0x1c] sm:$0xf] }
 0x469   : > { %v8576_v51 = vrot.slane %v18866_v20, 5  ;;  %v8577_v7 = vrot.slane %v18867_v15, 6  ;;  %v8594_v17 = vshll.u32 %v18868_v10, 16  ;;  %v18870_v5 = vshrl.u32 %v18869_v63, 16 }
 0x46a   : > { %v17296_v55 = vcombine.low %v8510_v44, %v8520_v9  ;;  %v17298_v6 = vcombine.low %v8533_v18, %v8543_v27  ;;  %v8556_v62 = vsel %vm16354_vm2, %v8552_v50, %v8555_v54  ;;  %v18871_v53 = vshll.u32 %v18869_v63, 16  ;;  %v8934_v9 = vld [vmem:[#allocation2 + $0x24] sm:$0xf] }
 0x46b   : > { %v8599_v23 = vrot.slane %v18870_v5, 5  ;;  %v8605_v14 = vshrl.u32 %v8266_v45, 16  ;;  %v8608_v47 = vshll.u32 %v8266_v45, 16  ;;  %v8614_v11 = vshrl.u32 %v18872_v39, 16 }
 0x46c   : > { %v8600_v52 = vrot.slane %v18871_v53, 6  ;;  %v8617_v22 = vshll.u32 %v18872_v39, 16  ;;  %v17306_v59 = vcombine.low %v8556_v62, %v8566_v3  ;;  %v17308_v41 = vor.u32 %v8577_v7, %v8576_v51  ;;  %13207 = vmatmul.mubr.msk.bf16.gmra.mrb[16].mxu1 %vm766_vm4, %v17183_v31  ;;  %v17326_v51 = vld [vmem:[#allocation2 + $0x28] sm:$0xf]  ;;  %v17328_v7 = vld [vmem:[#allocation2 + $0x20] sm:$0x1] }
 0x46d   : > { %v8584_v58 = vrot.slane %v8582_v0, 5  ;;  %v8587_v4 = vrot.slane %v8585_v2, 6  ;;  %v17312_v49 = vrot.slane %v8574_v48, 4  ;;  %v8593_v32 = vrot.slane %v8591_v36, 5  ;;  %13210 = vmatprep.mubr.msk.bf16.mxu1 %vm766_vm4, %v17191_v43 }
 0x46e   : > { %v8596_v34 = vrot.slane %v8594_v17, 6  ;;  %v17314_v26 = vor.u32 %v8600_v52, %v8599_v23  ;;  %v8616_v46 = vrot.slane %v8614_v11, 5  ;;  %v8619_v13 = vrot.slane %v8617_v22, 6 }
 0x46f   : > { %v18874_v25 = vshrl.u32 %v18873_v61, 16  ;;  %v18875_v30 = vshll.u32 %v18873_v61, 16  ;;  %v8607_v38 = vrot.slane %v8605_v14, 5  ;;  %v8610_v31 = vrot.slane %v8608_v47, 6 }
 0x470   : > { %v8628_v8 = vshrl.u32 %v8267_v40, 16  ;;  %v8631_v57 = vshll.u32 %v8267_v40, 16  ;;  %v8580_v1 = vrot.slane %v17308_v41, 4  ;;  %v8980_v35 = vshrl.u32 %v8931_v29, 16 }
 0x471   : > { %v8622_v12 = vrot.slane %v18874_v25, 5  ;;  %v8623_v54 = vrot.slane %v18875_v30, 6  ;;  %v8983_v16 = vshll.u32 %v8931_v29, 16  ;;  %v8588_v43 = vor.u32 %v8587_v4, %v8584_v58  ;;  %v17349_v58 = vld [vmem:[#allocation2 + $0x34] sm:$0xf] }
 0x472   : > { %v8597_v44 = vor.u32 %v8596_v34, %v8593_v32  ;;  %v8630_v50 = vrot.slane %v8628_v8, 5  ;;  %v8633_v21 = vrot.slane %v8631_v57, 6  ;;  %v8603_v18 = vrot.slane %v17314_v26, 4  ;;  %v17359_v29 = vld [vmem:[#allocation2 + $0x2c] sm:$0x1] }
 0x473   : > { %v8624_v33 = vor.u32 %v8623_v54, %v8622_v12  ;;  %v8620_v27 = vor.u32 %v8619_v13, %v8616_v46  ;;  %v8982_v42 = vrot.slane %v8980_v35, 4  ;;  %v8985_v20 = vrot.slane %v8983_v16, 5  ;;  %18876 = vst [vmem:[#allocation6_spill] sm:$0xff] %v17359_v29  ;;  %v8940_v30 = vld [vmem:[#allocation2 + $0x3c] sm:$0xf] }
 0x474   : > { %v8611_v48 = vor.u32 %v8610_v31, %v8607_v38  ;;  %v18680_v0 = vshll.u32 %v17323_v24, 16  ;;  %v18681_v2 = vshrl.u32 %v17323_v24, 16  ;;  %v8634_v45 = vor.u32 %v8633_v21, %v8630_v50  ;;  %13211 = vmatmul.mubr.msk.bf16.gmra.mrb[20].mxu1 %vm766_vm4, %v17264_v56  ;;  %v8937_v56 = vld [vmem:[#allocation2 + $0x30] sm:$0xf]  ;;  %v17373_v57 = vld [vmem:[#allocation2 + $0x40] sm:$0xf] }
 0x475   : > { %v8626_v15 = vrot.slane %v8624_v33, 4  ;;  %v8986_v3 = vor.u32 %v8985_v20, %v8982_v42  ;;  %v9004_v10 = vshrl.u32 %v8934_v9, 16  ;;  %v9007_v36 = vshll.u32 %v8934_v9, 16  ;;  %13214 = vmatprep.mubr.msk.bf16.mxu1 %vm766_vm4, %v17266_v28 }
 0x476   : > { %v8589_v17 = vsel %vm16354_vm2, %v8580_v1, %v8588_v43  ;;  %v8991_v63 = vrot.slane %v18680_v0, 5  ;;  %v8995_v5 = vrot.slane %v18681_v2, 4  ;;  %v18678_v23 = vshll.u32 %v17326_v51, 16 }
 0x477   : > { %v8598_v62 = vrot.slane %v8597_v44, 4  ;;  %v8621_v53 = vrot.slane %v8620_v27, 4  ;;  %v8999_v52 = vshll.u32 %v17328_v7, 16  ;;  %v9006_v14 = vrot.slane %v9004_v10, 4  ;;  %v17382_v44 = vld [vmem:[#allocation2 + $0x38] sm:$0x1] }
 0x478   : > { %v8996_v47 = vor.u32 %v8995_v5, %v8991_v63  ;;  %v9009_v39 = vrot.slane %v9007_v36, 5  ;;  %v17346_v11 = vrot.slane %v18678_v23, 5  ;;  %v18679_v22 = vshrl.u32 %v17326_v51, 16  ;;  %v17403_v10 = vld [vmem:[#allocation2 + $0x4c] sm:$0xf] }
 0x479   : > { %v8579_v28 = vsel %vm16354_vm2, %v17312_v49, %v17308_v41  ;;  %v8612_v4 = vsel %vm16354_vm2, %v8603_v18, %v8611_v48  ;;  %v8635_v40 = vsel %vm16354_vm2, %v8626_v15, %v8634_v45  ;;  %v8987_v32 = vrot.slane %v8986_v3, 4  ;;  %v8943_v18 = vld [vmem:[#allocation2 + $0x48] sm:$0xf] }
 0x47a   : > { %v8997_v34 = vrot.slane %v8996_v47, 4  ;;  %v9010_v46 = vor.u32 %v9009_v39, %v9006_v14  ;;  %v9019_v13 = vrot.slane %v18679_v22, 4  ;;  %v9028_v61 = vshrl.u32 %v8937_v56, 16 }
 0x47b   : > { %v17363_v25 = vcombine.low %v8579_v28, %v8589_v17  ;;  %v8602_v41 = vsel %vm16354_vm2, %v8598_v62, %v17314_v26  ;;  %v9031_v49 = vshll.u32 %v8937_v56, 16  ;;  %v18674_v12 = vshll.u32 %v17349_v58, 16 }
 0x47c   : > { %v8625_v54 = vsel %vm16354_vm2, %v8621_v53, %v8624_v33  ;;  %v9001_v38 = vrot.slane %v8999_v52, 5  ;;  %v9020_v31 = vor.u32 %v9019_v13, %v17346_v11  ;;  %v18675_v8 = vshrl.u32 %v17349_v58, 16  ;;  %13215 = vmatmul.mubr.msk.bf16.gmra.mrb[24].mxu1 %vm766_vm4, %v17275_v37  ;;  %v17398_v37 = vld [vmem:[%s18566_s5] sm:$0xf]  ;;  %v17430_v13 = vld [vmem:[#allocation2 + $0x58] sm:$0xf] }
 0x47d   : > { %v17375_v1 = vcombine.low %v8602_v41, %v8612_v4  ;;  %v17377_v35 = vcombine.low %v8625_v54, %v8635_v40  ;;  %v8992_v26 = vsel %vm14078_vm3, %v8987_v32, %v8991_v63  ;;  %v9023_v43 = vshll.u32 %v17359_v29, 16  ;;  %13218 = vmatprep.mubr.msk.bf16.mxu1 %vm766_vm4, %v17296_v55  ;;  %13883 = vmatprep.subr.msk.bf16.mxu0 %vm815_vm0, %v17398_v37  ;;  %v8946_v4 = vld [vmem:[#allocation2 + $0x54] sm:$0xf]  ;;  %v8976_v29 = vld [vmem:[#allocation2 + $0xcc] sm:$0xf] }
 0x47e   : > { %v9002_v33 = vsel %vm14078_vm3, %v8997_v34, %v9001_v38  ;;  %v9011_v50 = vrot.slane %v9010_v46, 4  ;;  %v9030_v21 = vrot.slane %v9028_v61, 4  ;;  %v9052_v9 = vshrl.u32 %v8940_v30, 16  ;;  %v17432_v61 = vld [vmem:[#allocation2 + $0x50] sm:$0x1] }
 0x47f   : > { %v9033_v27 = vrot.slane %v9031_v49, 5  ;;  %v17392_v42 = vrot.slane %v18674_v12, 5  ;;  %v9055_v20 = vshll.u32 %v8940_v30, 16  ;;  %v18669_v48 = vshll.u32 %v17373_v57, 16 }
 0x480   : > { %v9021_v15 = vrot.slane %v9020_v31, 4  ;;  %v9043_v45 = vrot.slane %v18675_v8, 4  ;;  %v9054_v3 = vrot.slane %v9052_v9, 4  ;;  %v18670_v55 = vshrl.u32 %v17373_v57, 16  ;;  %v8949_v9 = vld [vmem:[#allocation2 + $0x60] sm:$0xf] }
 0x481   : > { %v9025_v36 = vrot.slane %v9023_v43, 5  ;;  %v17409_v17 = vsel %vm815_vm0, %v17237_v60, 0  ;;  %v9057_v63 = vrot.slane %v9055_v20, 5  ;;  %v17413_v5 = vrot.slane %v18669_v48, 5  ;;  %v17423_v60 = vld [vmem:[#allocation2 + $0x44] sm:$0x1] }
 0x482   : > { %v17415_v62 = vcombine.low %v8992_v26, %v9002_v33  ;;  %v9047_v53 = vshll.u32 %v17382_v44, 16  ;;  %v9067_v52 = vrot.slane %v18670_v55, 4  ;;  %v9076_v14 = vshrl.u32 %v8943_v18, 16  ;;  %v17573_v48 = vld [vmem:[#allocation2 + $0xa0] sm:$0xf] }
 0x483   : > { %v9016_v56 = vsel %vm14078_vm3, %v9011_v50, %v17346_v11  ;;  %v9034_v47 = vor.u32 %v9033_v27, %v9030_v21  ;;  %v9079_v39 = vshll.u32 %v8943_v18, 16  ;;  %v18664_v28 = vshll.u32 %v17403_v10, 16  ;;  %18883 = vst [vmem:[#allocation9_spill] sm:$0xff] %v17573_v48 }
 0x484   : > { %v9026_v40 = vsel %vm14078_vm3, %v9021_v15, %v9025_v36  ;;  %v9044_v32 = vor.u32 %v9043_v45, %v17392_v42  ;;  %v9058_v34 = vor.u32 %v9057_v63, %v9054_v3  ;;  %v9068_v46 = vor.u32 %v9067_v52, %v17413_v5  ;;  %13219 = vmatmul.mubr.msk.bf16.gmra.mrb[28].mxu1 %vm766_vm4, %v17298_v6  ;;  %v17452_v15 = vld [vmem:[#allocation2 + $0x64] sm:$0xf] }
 0x485   : > { %v9078_v11 = vrot.slane %v9076_v14, 4  ;;  %v9081_v41 = vrot.slane %v9079_v39, 5  ;;  %v17436_v49 = vrot.slane %v18664_v28, 5  ;;  %v18666_v30 = vshrl.u32 %v17403_v10, 16  ;;  %13222 = vmatprep.mubr.msk.bf16.mxu1 %vm766_vm4, %v17306_v59  ;;  %v17463_v39 = vld [vmem:[#allocation2 + $0x5c] sm:$0x1] }
 0x486   : > { %v17441_v54 = vrot.slane %v9047_v53, 5  ;;  %v9071_v38 = vshll.u32 %v17423_v60, 16  ;;  %v9100_v31 = vshrl.u32 %v8946_v4, 16  ;;  %v9103_v26 = vshll.u32 %v8946_v4, 16 }
 0x487   : > { %v17446_v43 = vcombine.low %v9016_v56, %v9026_v40  ;;  %v9035_v33 = vrot.slane %v9034_v47, 4  ;;  %v9091_v50 = vrot.slane %v18666_v30, 4  ;;  %v18659_v21 = vshll.u32 %v17430_v13, 16 }
 0x488   : > { %v9045_v18 = vrot.slane %v9044_v32, 4  ;;  %v9059_v6 = vrot.slane %v9058_v34, 4  ;;  %v9069_v27 = vrot.slane %v9068_v46, 4  ;;  %v9095_v20 = vshll.u32 %v17432_v61, 16 }
 0x489   : > { %v9082_v45 = vor.u32 %v9081_v41, %v9078_v11  ;;  %v9092_v3 = vor.u32 %v9091_v50, %v17436_v49  ;;  %v9102_v59 = vrot.slane %v9100_v31, 4  ;;  %v9105_v36 = vrot.slane %v9103_v26, 5  ;;  %v8952_v11 = vld [vmem:[#allocation2 + $0x6c] sm:$0xf] }
 0x48a   : > { %v9073_v63 = vrot.slane %v9071_v38, 5  ;;  %v17457_v53 = vrot.slane %v18659_v21, 5  ;;  %v18660_v52 = vshrl.u32 %v17430_v13, 16  ;;  %v9124_v14 = vshrl.u32 %v8949_v9, 16 }
 0x48b   : > { %v9040_v56 = vsel %vm14078_vm3, %v9035_v33, %v17392_v42  ;;  %v9093_v47 = vrot.slane %v9092_v3, 4  ;;  %v9127_v4 = vshll.u32 %v8949_v9, 16  ;;  %v18657_v40 = vshll.u32 %v17452_v15, 16  ;;  %v17477_v33 = vld [vmem:[#allocation2 + $0x70] sm:$0xf] }
 0x48c   : > { %v9050_v32 = vsel %vm14078_vm3, %v9045_v18, %v17441_v54  ;;  %v9064_v34 = vsel %vm14078_vm3, %v9059_v6, %v17413_v5  ;;  %v9074_v46 = vsel %vm14078_vm3, %v9069_v27, %v9073_v63  ;;  %v9115_v42 = vrot.slane %v18660_v52, 4  ;;  %18878 = vst [vmem:[#allocation12_spill] sm:$0xff] %v17477_v33  ;;  %13223 = vmatmul.mubr.msk.bf16.gmra.mrb[32].mxu1 %vm766_vm4, %v17363_v25  ;;  %v17491_v25 = vld [vmem:[#allocation2 + $0x68] sm:$0x1] }
 0x48d   : > { %v9083_v41 = vrot.slane %v9082_v45, 4  ;;  %v9097_v38 = vrot.slane %v9095_v20, 5  ;;  %v9106_v31 = vor.u32 %v9105_v36, %v9102_v59  ;;  %v18658_v26 = vshrl.u32 %v17452_v15, 16  ;;  %13226 = vmatprep.mubr.msk.bf16.mxu1 %vm766_vm4, %v17375_v1 }
 0x48e   : > { %v9116_v54 = vor.u32 %v9115_v42, %v17457_v53  ;;  %v9119_v5 = vshll.u32 %v17463_v39, 16  ;;  %v9126_v50 = vrot.slane %v9124_v14, 4  ;;  %v9129_v9 = vrot.slane %v9127_v4, 5  ;;  %v8955_v4 = vld [vmem:[#allocation2 + $0x78] sm:$0xf] }
 0x48f   : > { %v9098_v18 = vsel %vm14078_vm3, %v9093_v47, %v9097_v38  ;;  %v17489_v6 = vrot.slane %v18657_v40, 5  ;;  %v9148_v27 = vshrl.u32 %v8952_v11, 16  ;;  %v9151_v20 = vshll.u32 %v8952_v11, 16  ;;  %v17506_v40 = vld [vmem:[#allocation2 + $0x7c] sm:$0xf] }
 0x490   : > { %v9117_v45 = vrot.slane %v9116_v54, 4  ;;  %v9139_v3 = vrot.slane %v18658_v26, 4  ;;  %v18661_v59 = vshll.u32 %v17477_v33, 16  ;;  %v18663_v36 = vshrl.u32 %v17477_v33, 16  ;;  %18879 = vst [vmem:[#allocation7_spill] sm:$0xff] %v17506_v40 }
 0x491   : > { %v9088_v1 = vsel %vm14078_vm3, %v9083_v41, %v17436_v49  ;;  %v9107_v63 = vrot.slane %v9106_v31, 4  ;;  %v9150_v14 = vrot.slane %v9148_v27, 4  ;;  %v9153_v47 = vrot.slane %v9151_v20, 5 }
 0x492   : > { %v9121_v42 = vrot.slane %v9119_v5, 5  ;;  %v9130_v11 = vor.u32 %v9129_v9, %v9126_v50  ;;  %v17502_v38 = vrot.slane %v18661_v59, 5  ;;  %v9163_v54 = vrot.slane %v18663_v36, 4  ;;  %v17516_v5 = vld [vmem:[#allocation2 + $0x74] sm:$0x1] }
 0x493   : > { %v12160_v26 = vcombine.low %v9040_v56, %v9050_v32  ;;  %v17508_v21 = vcombine.low %v9064_v34, %v9074_v46  ;;  %v17510_v52 = vcombine.low %v9088_v1, %v9098_v18  ;;  %v9143_v49 = vshll.u32 %v17491_v25, 16  ;;  %v8958_v34 = vld [vmem:[#allocation2 + $0x84] sm:$0xf]  ;;  %v17526_v1 = vld [vmem:[#allocation2 + $0x88] sm:$0xf] }
 0x494   : > { %v9122_v41 = vsel %vm14078_vm3, %v9117_v45, %v9121_v42  ;;  %v9140_v31 = vor.u32 %v9139_v3, %v17489_v6  ;;  %v9172_v50 = vshrl.u32 %v8955_v4, 16  ;;  %v9175_v9 = vshll.u32 %v8955_v4, 16  ;;  %13227 = vmatmul.mubr.msk.bf16.gmra.mrb[36].mxu1 %vm766_vm4, %v17377_v35  ;;  %18880 = vst [vmem:[#allocation13_spill] sm:$0xff] %v17526_v1  ;;  %v17531_v4 = vld [vmem:[#allocation2 + $0x80] sm:$0x1] }
 0x495   : > { %v9154_v27 = vor.u32 %v9153_v47, %v9150_v14  ;;  %v9164_v20 = vor.u32 %v9163_v54, %v17502_v38  ;;  %v18662_v56 = vshll.u32 %v17506_v40, 16  ;;  %v18665_v32 = vshrl.u32 %v17506_v40, 16  ;;  %13232 = vmatprep.mubr.msk.bf16.mxu1 %vm766_vm4, %v17415_v62 }
 0x496   : > { %v9112_v46 = vsel %vm14078_vm3, %v9107_v63, %v17457_v53  ;;  %v9131_v18 = vrot.slane %v9130_v11, 4  ;;  %v9174_v45 = vrot.slane %v9172_v50, 4  ;;  %v9177_v3 = vrot.slane %v9175_v9, 5  ;;  %v8961_v50 = vld [vmem:[#allocation2 + $0x90] sm:$0xf] }
 0x497   : > { %v9145_v14 = vrot.slane %v9143_v49, 5  ;;  %v9167_v47 = vshll.u32 %v17516_v5, 16  ;;  %v17535_v35 = vrot.slane %v18662_v56, 5  ;;  %v9187_v53 = vrot.slane %v18665_v32, 4 }
 0x498   : > { %v17539_v63 = vcombine.low %v9112_v46, %v9122_v41  ;;  %v9141_v42 = vrot.slane %v9140_v31, 4  ;;  %v9196_v11 = vshrl.u32 %v8958_v34, 16  ;;  %v9199_v54 = vshll.u32 %v8958_v34, 16  ;;  %v17548_v46 = vld [vmem:[#allocation2 + $0x94] sm:$0xf] }
 0x499   : > { %v9155_v9 = vrot.slane %v9154_v27, 4  ;;  %v9165_v62 = vrot.slane %v9164_v20, 4  ;;  %v9188_v49 = vor.u32 %v9187_v53, %v17535_v35  ;;  %v18667_v59 = vshll.u32 %v17526_v1, 16  ;;  %18881 = vst [vmem:[#allocation8_spill] sm:$0xff] %v17548_v46  ;;  %v17550_v34 = vld [vmem:[#allocation2 + $0x8c] sm:$0x1] }
 0x49a   : > { %v9136_v56 = vsel %vm14078_vm3, %v9131_v18, %v17489_v6  ;;  %v9178_v36 = vor.u32 %v9177_v3, %v9174_v45  ;;  %v9191_v28 = vshll.u32 %v17531_v4, 16  ;;  %v18668_v41 = vshrl.u32 %v17526_v1, 16  ;;  %v8964_v45 = vld [vmem:[#allocation2 + $0x9c] sm:$0xf] }
 0x49b   : > { %v9169_v31 = vrot.slane %v9167_v47, 5  ;;  %v9198_v27 = vrot.slane %v9196_v11, 4  ;;  %v9201_v20 = vrot.slane %v9199_v54, 5  ;;  %v9220_v32 = vshrl.u32 %v8961_v50, 16 }
 0x49c   : > { %v9146_v53 = vsel %vm14078_vm3, %v9141_v42, %v9145_v14  ;;  %v17556_v30 = vrot.slane %v18667_v59, 5  ;;  %v9211_v6 = vrot.slane %v18668_v41, 4  ;;  %v9223_v18 = vshll.u32 %v8961_v50, 16  ;;  %v17569_v14 = vld [vmem:[%s18564_s3 + $0x20] sm:$0xf]  ;;  %13233 = vmatmul.mubr.msk.bf16.vlgmr.msra.gmra.mrb[8].mxu1 %vm766_vm4, %v17446_v43 }
 0x49d   : > { %v9160_v3 = vsel %vm14078_vm3, %v9155_v9, %v17502_v38  ;;  %v9170_v47 = vsel %vm14078_vm3, %v9165_v62, %v9169_v31  ;;  %v9189_v11 = vrot.slane %v9188_v49, 4  ;;  %v18671_v54 = vshll.u32 %v17548_v46, 16  ;;  %18882 = vst [vmem:[#allocation15_spill] sm:$0xff] %v17569_v14  ;;  %13265 = vmatpush3.bf16.msra.mxu1 %v17409_v17  ;;  %13236 = vmatprep.mubr.msk.bf16.mxu1 %vm766_vm4, %v12160_v26  ;;  %v17584_v43 = vld [vmem:[#allocation2 + $0x98] sm:$0x1] }
 0x49e   : > { %v9179_v42 = vrot.slane %v9178_v36, 4  ;;  %v9193_v50 = vrot.slane %v9191_v28, 5  ;;  %v9222_v59 = vrot.slane %v9220_v32, 4  ;;  %v9225_v41 = vrot.slane %v9223_v18, 5  ;;  %13882 = vmatprep.subr.msk.bf16.mxu1 %vm815_vm0, %v17569_v14 }
 0x49f   : > { %v9202_v38 = vor.u32 %v9201_v20, %v9198_v27  ;;  %v9215_v9 = vshll.u32 %v17550_v34, 16  ;;  %v18672_v62 = vshrl.u32 %v17548_v46, 16  ;;  %v9244_v49 = vshrl.u32 %v8964_v45, 16  ;;  %v8967_v27 = vld [vmem:[#allocation2 + $0xa8] sm:$0xf] }
 0x4a0   : > { %v17579_v31 = vcombine.low %v9136_v56, %v9146_v53  ;;  %v17581_v55 = vcombine.low %v9160_v3, %v9170_v47  ;;  %v9212_v28 = vor.u32 %v9211_v6, %v17556_v30  ;;  %v9247_v36 = vshll.u32 %v8964_v45, 16  ;;  %v17598_v45 = vld [vmem:[#allocation2 + $0xac] sm:$0xf] }
 0x4a1   : > { %v9194_v17 = vsel %vm14078_vm3, %v9189_v11, %v9193_v50  ;;  %v17592_v26 = vrot.slane %v18671_v54, 5  ;;  %v9235_v56 = vrot.slane %v18672_v62, 4  ;;  %v18673_v32 = vshll.u32 %v17573_v48, 16  ;;  %18884 = vst [vmem:[#allocation16_spill] sm:$0xff] %v17598_v45 }
 0x4a2   : > { %v9226_v20 = vor.u32 %v9225_v41, %v9222_v59  ;;  %v9246_v53 = vrot.slane %v9244_v49, 4  ;;  %v9249_v6 = vrot.slane %v9247_v36, 5  ;;  %v18676_v18 = vshrl.u32 %v17573_v48, 16  ;;  %v17614_v41 = vld [vmem:[#allocation2 + $0xa4] sm:$0x1] }
 0x4a3   : > { %v9184_v3 = vsel %vm14078_vm3, %v9179_v42, %v17535_v35  ;;  %v17603_v47 = vrot.slane %v9202_v38, 4  ;;  %v17605_v11 = vrot.slane %v9215_v9, 5  ;;  %v17609_v50 = vrot.slane %v18673_v32, 5  ;;  %v17621_v42 = vld [vmem:[#allocation2 + $0xb0] sm:$0x1] }
 0x4a4   : > { %v17611_v54 = vrot.slane %v9212_v28, 4  ;;  %v9239_v59 = vshll.u32 %v17584_v43, 16  ;;  %v9259_v49 = vrot.slane %v18676_v18, 4  ;;  %v9268_v36 = vshrl.u32 %v8967_v27, 16  ;;  %18885 = vst [vmem:[#allocation10_spill] sm:$0xff] %v17621_v42  ;;  %13237 = vmatmul.mubr.msk.bf16.gmra.mrb[12].mxu1 %vm766_vm4, %v17508_v21 }
 0x4a5   : > { %v17618_v62 = vcombine.low %v9184_v3, %v9194_v17  ;;  %v9236_v35 = vor.u32 %v9235_v56, %v17592_v26  ;;  %v9271_v38 = vshll.u32 %v8967_v27, 16  ;;  %v18677_v9 = vshll.u32 %v17598_v45, 16  ;;  %v8970_v18 = vld [vmem:[#allocation2 + $0xb4] sm:$0xf]  ;;  %13240 = vmatprep.mubr.msk.bf16.mxu1 %vm766_vm4, %v17510_v52  ;;  %v17637_v21 = vld [vmem:[#allocation2 + $0xb8] sm:$0xf] }
 0x4a6   : > { %v17626_v28 = vrot.slane %v9226_v20, 4  ;;  %v9250_v32 = vor.u32 %v9249_v6, %v9246_v53  ;;  %v9270_v12 = vrot.slane %v9268_v36, 4  ;;  %v18682_v8 = vshrl.u32 %v17598_v45, 16  ;;  %18886 = vst [vmem:[#allocation17_spill] sm:$0xff] %v17637_v21  ;;  %v8973_v20 = vld [vmem:[#allocation2 + $0xc0] sm:$0xf] }
 0x4a7   : > { %v9260_v17 = vor.u32 %v9259_v49, %v17609_v50  ;;  %v9263_v56 = vshll.u32 %v17614_v41, 16  ;;  %v9273_v27 = vrot.slane %v9271_v38, 5  ;;  %v17635_v3 = vrot.slane %v18677_v9, 5 }
 0x4a8   : > { %v17647_v53 = vrot.slane %v9239_v59, 5  ;;  %v9283_v6 = vrot.slane %v18682_v8, 4  ;;  %v17651_v49 = vrot.slane %v9236_v35, 4  ;;  %v9292_v38 = vshrl.u32 %v8970_v18, 16 }
 0x4a9   : > { %v9274_v36 = vor.u32 %v9273_v27, %v9270_v12  ;;  %v9295_v9 = vshll.u32 %v8970_v18, 16  ;;  %v17653_v23 = vrot.slane %v9250_v32, 4  ;;  %v9287_v22 = vshll.u32 %v17621_v42, 16  ;;  %v17663_v27 = vld [vmem:[#allocation2 + $0xc4] sm:$0xf] }
 0x4aa   : > { %v18686_v0 = vshll.u32 %v17637_v21, 16  ;;  %v18687_v2 = vshrl.u32 %v17637_v21, 16  ;;  %v9232_v59 = vsel %vm14078_vm3, %v17626_v28, %v17592_v26  ;;  %v9261_v8 = vrot.slane %v9260_v17, 4  ;;  %18887 = vst [vmem:[#allocation11_spill] sm:$0xff] %v17663_v27  ;;  %v17665_v32 = vld [vmem:[#allocation2 + $0xbc] sm:$0x1] }
 0x4ab   : > { %v9265_v35 = vrot.slane %v9263_v56, 5  ;;  %v9284_v12 = vor.u32 %v9283_v6, %v17635_v3  ;;  %18888 = vst [vmem:[#allocation4_spill] sm:$0xff] %v17665_v32  ;;  %v9294_v18 = vrot.slane %v9292_v38, 4  ;;  %v9297_v52 = vrot.slane %v9295_v9, 5 }
 0x4ac   : > { %v9303_v19 = vrot.slane %v18686_v0, 5  ;;  %v9307_v14 = vrot.slane %v18687_v2, 4  ;;  %v9242_v26 = vsel %vm14078_vm3, %v17651_v49, %v17647_v53  ;;  %v9275_v28 = vrot.slane %v9274_v36, 4  ;;  %13241 = vmatmul.mubr.msk.bf16.gmra.mrb[16].mxu1 %vm766_vm4, %v17539_v63  ;;  %v17681_v0 = vld [vmem:[#allocation2 + $0xc8] sm:$0x1] }
 0x4ad   : > { %v9316_v17 = vshrl.u32 %v8973_v20, 16  ;;  %v9319_v56 = vshll.u32 %v8973_v20, 16  ;;  %v9256_v9 = vsel %vm14078_vm3, %v17653_v23, %v17609_v50  ;;  %v9289_v6 = vrot.slane %v9287_v22, 5  ;;  %18889 = vst [vmem:[#allocation18_spill] sm:$0xff] %v17681_v0  ;;  %13244 = vmatprep.mubr.msk.bf16.mxu1 %vm766_vm4, %v17579_v31  ;;  %v17687_v36 = vld [vmem:[#allocation2 + $0xd0] sm:$0xf] }
 0x4ae   : > { %v9308_v38 = vor.u32 %v9307_v14, %v9303_v19  ;;  %v18693_v2 = vshll.u32 %v17663_v27, 16  ;;  %v9285_v53 = vrot.slane %v9284_v12, 4  ;;  %v9311_v20 = vshll.u32 %v17665_v32, 16  ;;  %18890 = vst [vmem:[#allocation19_spill] sm:$0xff] %v17687_v36 }
 0x4af   : > { %v9318_v49 = vrot.slane %v9316_v17, 4  ;;  %v9321_v63 = vrot.slane %v9319_v56, 5  ;;  %v9266_v23 = vsel %vm14078_vm3, %v9261_v8, %v9265_v35  ;;  %v9298_v22 = vor.u32 %v9297_v52, %v9294_v18  ;;  %v17700_v8 = vld [vmem:[#allocation2 + $0xd4] sm:$0x1] }
 0x4b0   : > { %v9327_v14 = vrot.slane %v18693_v2, 5  ;;  %v18696_v50 = vshrl.u32 %v17663_v27, 16  ;;  %v9280_v31 = vsel %vm14078_vm3, %v9275_v28, %v17635_v3  ;;  %v9309_v12 = vrot.slane %v9308_v38, 4 }
 0x4b1   : > { %v9340_v21 = vshrl.u32 %v8976_v29, 16  ;;  %v9343_v32 = vshll.u32 %v8976_v29, 16  ;;  %v9322_v17 = vor.u32 %v9321_v63, %v9318_v49  ;;  %v9335_v42 = vshll.u32 %v17681_v0, 16 }
 0x4b2   : > { %v9331_v56 = vrot.slane %v18696_v50, 4  ;;  %v18698_v52 = vshll.u32 %v17687_v36, 16  ;;  %v9290_v35 = vsel %vm14078_vm3, %v9285_v53, %v9289_v6  ;;  %v9313_v18 = vrot.slane %v9311_v20, 5 }
 0x4b3   : > { %v9342_v2 = vrot.slane %v9340_v21, 4  ;;  %v9345_v45 = vrot.slane %v9343_v32, 5  ;;  %v9299_v3 = vrot.slane %v9298_v22, 4  ;;  %v18699_v38 = vshrl.u32 %v17687_v36, 16 }
 0x4b4   : > { %v9332_v28 = vor.u32 %v9331_v56, %v9327_v14  ;;  %v17707_v29 = vrot.slane %v18698_v52, 5  ;;  %v9314_v49 = vsel %vm14078_vm3, %v9309_v12, %v9313_v18  ;;  %v9359_v50 = vshll.u32 %v17700_v8, 16  ;;  %13245 = vmatmul.mubr.msk.bf16.gmra.mrb[20].mxu1 %vm766_vm4, %v17581_v55  ;;  %v17734_v12 = vld [vmem:[#allocation2 + $0x18] sm:$0xe]  ;;  %v17741_v56 = vld [vmem:[#allocation2 + $0x30] sm:$0xe] }
 0x4b5   : > { %v9346_v63 = vor.u32 %v9345_v45, %v9342_v2  ;;  %v18700_v0 = vrot.slane %v17323_v24, 5  ;;  %v9323_v21 = vrot.slane %v9322_v17, 4  ;;  %v9337_v6 = vrot.slane %v9335_v42, 5  ;;  %13248 = vmatprep.mubr.msk.bf16.mxu1 %vm766_vm4, %v17618_v62  ;;  %v17837_v52 = vld [vmem:[#allocation2 + $0x84] sm:$0xe] }
 0x4b6   : > { %v9333_v32 = vrot.slane %v9332_v28, 4  ;;  %v9355_v53 = vrot.slane %v18699_v38, 4  ;;  %v18891_v2 = vsel %vm14078_vm3, %v17611_v54, %v17605_v11  ;;  %v18892_v45 = vsel %vm14078_vm3, %v17603_v47, %v17556_v30  ;;  %18895 = vst [vmem:[#allocation20_spill] sm:$0xff] %v17837_v52 }
 0x4b7   : > { %v12167_v55 = vcombine.low %v18892_v45, %v18891_v2  ;;  %v12168_v20 = vcombine.low %v9232_v59, %v9242_v26  ;;  %v17730_v22 = vcombine.low %v9256_v9, %v9266_v23  ;;  %v17732_v42 = vcombine.low %v9280_v31, %v9290_v35  ;;  %v17748_v9 = vld [vmem:[#allocation2 + $0x3c] sm:$0xe]  ;;  %v18901_v31 = vld [vmem:[#allocation10_spill] sm:$0xff] }
 0x4b8   : > { %v9304_v62 = vsel %vm14078_vm3, %v9299_v3, %v9303_v19  ;;  %v9338_v17 = vsel %vm14078_vm3, %v9333_v32, %v9337_v6  ;;  %v9347_v54 = vrot.slane %v9346_v63, 4  ;;  %v9356_v11 = vor.u32 %v9355_v53, %v17707_v29  ;;  %v17767_v32 = vld [vmem:[#allocation2 + $0x54] sm:$0xe] }
 0x4b9   : > { %v17743_v30 = vcombine.low %v9304_v62, %v9314_v49  ;;  %v9361_v47 = vrot.slane %v9359_v50, 5  ;;  %v9725_v59 = vrot.slane %v18700_v0, 4  ;;  %v9726_v26 = vrot.slane %v17328_v7, 5  ;;  %v17759_v49 = vld [vmem:[#allocation2 + $0x48] sm:$0xe] }
 0x4ba   : > { %v9328_v19 = vsel %vm14078_vm3, %v9323_v21, %v9327_v14  ;;  %v9357_v23 = vrot.slane %v9356_v11, 4  ;;  %v12192_v3 = vrot.slane %v17741_v56, 9  ;;  %v9737_v50 = vrot.slane %v17349_v58, 5 }
 0x4bb   : > { %v17754_v18 = vcombine.low %v9328_v19, %v9338_v17  ;;  %v9740_v28 = vrot.slane %v17382_v44, 5  ;;  %v9352_v7 = vsel %vm14078_vm3, %v9347_v54, %v17707_v29  ;;  %v12193_v14 = vrot.slane %v17748_v9, 9 }
 0x4bc   : > { %v9744_v63 = vrot.slane %v17373_v57, 5  ;;  %v9747_v21 = vrot.slane %v17423_v60, 5  ;;  %v9362_v6 = vsel %vm14078_vm3, %v9357_v23, %v9361_v47  ;;  %v17773_v44 = vsel %vm14296_vm7, %v9725_v59, %v9726_v26  ;;  %13249 = vmatmul.mubr.msk.bf16.gmra.mrb[24].mxu1 %vm766_vm4, %v12167_v55  ;;  %v17794_v47 = vld [vmem:[#allocation2 + $0x60] sm:$0xe]  ;;  %v17806_v23 = vld [vmem:[#allocation2 + $0x6c] sm:$0xe] }
 0x4bd   : > { %v17777_v2 = vsel %vm14296_vm7, %v12192_v3, %v9737_v50  ;;  %v9739_v29 = vrot.slane %v9737_v50, 4  ;;  %v12194_v62 = vrot.slane %v17759_v49, 9  ;;  %v9751_v16 = vrot.slane %v17403_v10, 5  ;;  %13252 = vmatprep.mubr.msk.bf16.mxu1 %vm766_vm4, %v12168_v20  ;;  %v17902_v59 = vld [vmem:[#allocation2 + $0xb4] sm:$0xe] }
 0x4be   : > { %v17782_v45 = vsel %vm14296_vm7, %v12193_v14, %v9744_v63  ;;  %v9746_v60 = vrot.slane %v9744_v63, 4  ;;  %v9754_v54 = vrot.slane %v17432_v61, 5  ;;  %v12195_v11 = vrot.slane %v17767_v32, 9  ;;  %18899 = vst [vmem:[#allocation24_spill] sm:$0xff] %v17902_v59 }
 0x4bf   : > { %v17789_v17 = vsel %vm14296_vm7, %v9739_v29, %v9740_v28  ;;  %v9758_v55 = vrot.slane %v17430_v13, 5  ;;  %v17804_v20 = vsel %vm14296_vm7, %v12194_v62, %v9751_v16  ;;  %v9753_v19 = vrot.slane %v9751_v16, 4 }
 0x4c0   : > { %v17800_v26 = vsel %vm14296_vm7, %v9746_v60, %v9747_v21  ;;  %v9761_v28 = vrot.slane %v17463_v39, 5  ;;  %v12196_v63 = vrot.slane %v17794_v47, 9  ;;  %v9765_v21 = vrot.slane %v17452_v15, 5 }
 0x4c1   : > { %v17812_v3 = vsel %vm14296_vm7, %v12195_v11, %v9758_v55  ;;  %v9760_v50 = vrot.slane %v9758_v55, 4  ;;  %v17817_v14 = vsel %vm14296_vm7, %v9753_v19, %v9754_v54  ;;  %v9768_v29 = vrot.slane %v17491_v25, 5  ;;  %v17830_v11 = vld [vmem:[#allocation2 + $0x78] sm:$0xe] }
 0x4c2   : > { %v12197_v16 = vrot.slane %v17806_v23, 9  ;;  %v9772_v39 = vrot.slane %v17477_v33, 5  ;;  %18894 = vst [vmem:[#allocation5_spill] sm:$0xff] %v17830_v11  ;;  %v17832_v54 = vcombine.low %v9352_v7, %v9362_v6  ;;  %v9767_v19 = vrot.slane %v9765_v21, 4 }
 0x4c3   : > { %v17826_v62 = vsel %vm14296_vm7, %v9760_v50, %v9761_v28  ;;  %v9775_v25 = vrot.slane %v17516_v5, 5  ;;  %v17841_v50 = vsel %vm14296_vm7, %v12196_v63, %v9765_v21  ;;  %v9779_v7 = vrot.slane %v17506_v40, 5  ;;  %v17875_v21 = vld [vmem:[#allocation2 + $0x9c] sm:$0xe] }
 0x4c4   : > { %v17845_v28 = vsel %vm14296_vm7, %v12197_v16, %v9772_v39  ;;  %v9774_v38 = vrot.slane %v9772_v39, 4  ;;  %13253 = vmatmul.mubr.msk.bf16.gmra.mrb[28].mxu1 %vm766_vm4, %v17730_v22  ;;  %v17852_v6 = vsel %vm14296_vm7, %v9767_v19, %v9768_v29  ;;  %v12198_v5 = vrot.slane %v17830_v11, 9  ;;  %v17866_v39 = vld [vmem:[#allocation2 + $0x90] sm:$0xe]  ;;  %18897 = vst [vmem:[#allocation22_spill] sm:$0xff] %v17875_v21 }
 0x4c5   : > { %v9782_v55 = vrot.slane %v17531_v4, 5  ;;  %v9786_v63 = vrot.slane %v17526_v1, 5  ;;  %13256 = vmatprep.mubr.msk.bf16.mxu1 %vm766_vm4, %v17732_v42  ;;  %v9781_v22 = vrot.slane %v9779_v7, 4  ;;  %v12199_v29 = vrot.slane %v17837_v52, 9  ;;  %18896 = vst [vmem:[#allocation21_spill] sm:$0xff] %v17866_v39 }
 0x4c6   : > { %v17863_v16 = vsel %vm14296_vm7, %v9774_v38, %v9775_v25  ;;  %v17872_v19 = vsel %vm14296_vm7, %v12198_v5, %v9779_v7  ;;  %v9789_v60 = vrot.slane %v17550_v34, 5  ;;  %v9793_v61 = vrot.slane %v17548_v46, 5  ;;  %v17920_v46 = vld [vmem:[#allocation2 + $0xc0] sm:$0xe]  ;;  %v12281_v1 = vld [vmem:[%s14043_s10 + $0x2c] sm:$0x1] }
 0x4c7   : > { %v9788_v42 = vrot.slane %v9786_v63, 4  ;;  %v17879_v38 = vsel %vm14296_vm7, %v9781_v22, %v9782_v55  ;;  %v17883_v25 = vsel %vm14296_vm7, %v12199_v29, %v9786_v63  ;;  %v9796_v4 = vrot.slane %v17584_v43, 5  ;;  %v17896_v22 = vld [vmem:[#allocation2 + $0xa8] sm:$0xe]  ;;  %18902 = vst [vmem:[#allocation10_spill] sm:$0xff] %v17920_v46 }
 0x4c8   : > { %v12200_v5 = vrot.slane %v17866_v39, 9  ;;  %v11095_v55 = vsel %vm815_vm0, %v17398_v37, 0  ;;  %18898 = vst [vmem:[#allocation23_spill] sm:$0xff] %v17896_v22  ;;  %v9795_v29 = vrot.slane %v9793_v61, 4  ;;  %v12201_v43 = vrot.slane %v17875_v21, 9  ;;  %v18900_v37 = vld [vmem:[#allocation16_spill] sm:$0xff] }
 0x4c9   : > { %v17891_v34 = vsel %vm14296_vm7, %v9788_v42, %v9789_v60  ;;  %13333 = vmatpush3.bf16.msra.mxu0 %v11095_v55  ;;  %v9800_v7 = vrot.slane %v17573_v48, 5  ;;  %v9803_v42 = vrot.slane %v17614_v41, 5  ;;  %v9807_v35 = vrot.slane %v18900_v37, 5  ;;  %v17940_v37 = vld [vmem:[#allocation2 + $0xcc] sm:$0xe]  ;;  %v12279_v39 = vld [vmem:[%s14043_s10 + $0x24] sm:$0xff]  }
 0x4ca   : > { %v17906_v60 = vsel %vm14296_vm7, %v12200_v5, %v9793_v61  ;;  %v9810_v0 = vrot.slane %v18901_v31, 5  ;;  %v17913_v63 = vsel %vm14296_vm7, %v9795_v29, %v9796_v4  ;;  %v12202_v21 = vrot.slane %v17896_v22, 9  ;;  %v18903_v4 = vld [vmem:[#allocation17_spill] sm:$0xff] }
 0x4cb   : > { %v17917_v55 = vsel %vm14296_vm7, %v12201_v43, %v9800_v7  ;;  %v9802_v48 = vrot.slane %v9800_v7, 4  ;;  %v9809_v31 = vrot.slane %v9807_v35, 4  ;;  %v12203_v61 = vrot.slane %v17902_v59, 9 }
 0x4cc   : > { %13257 = vmatmul.mubr.msk.bf16.gmra.mrb[32].mxu1 %vm766_vm4, %v17743_v30  ;;  %v9814_v5 = vrot.slane %v18903_v4, 5  ;;  %v17936_v29 = vsel %vm14296_vm7, %v12202_v21, %v9807_v35  ;;  %v18904_v30 = vld [vmem:[#allocation4_spill] sm:$0xff]  ;;  %v9821_v41 = vrot.slane %v17663_v27, 5  ;;  %v10144_v53 = vshrl.u32 %v17734_v12, 16 }
 0x4cd   : > { %13260 = vmatprep.mubr.msk.bf16.mxu1 %vm766_vm4, %v17754_v18  ;;  %v17932_v7 = vsel %vm14296_vm7, %v9802_v48, %v9803_v42  ;;  %v9817_v43 = vrot.slane %v18904_v30, 5  ;;  %18905 = vst [vmem:[#allocation4_spill] sm:$0xff] %v17940_v37  ;;  %v17946_v18 = vsel %vm14296_vm7, %v9809_v31, %v9810_v0  ;;  %v12204_v48 = vrot.slane %v17920_v46, 9  ;;  %v18906_v30 = vld [vmem:[#allocation18_spill] sm:$0xff] }
 0x4ce   : > { %v9816_v59 = vrot.slane %v9814_v5, 4  ;;  %v17953_v21 = vsel %vm14296_vm7, %v12203_v61, %v9814_v5  ;;  %v9823_v42 = vrot.slane %v9821_v41, 4  ;;  %v9824_v27 = vrot.slane %v18906_v30, 5 }
 0x4cf   : > { %v12205_v0 = vrot.slane %v17940_v37, 9  ;;  %v9828_v31 = vrot.slane %v17687_v36, 5  ;;  %v9831_v46 = vrot.slane %v17700_v8, 5  ;;  %v17967_v61 = vsel %vm14296_vm7, %v12204_v48, %v9821_v41  ;;  %v18914_v36 = vld [vmem:[#allocation6_spill] sm:$0xff] }
 0x4d0   : > { %v17958_v4 = vsel %vm14296_vm7, %v9816_v59, %v9817_v43  ;;  %18908 = vst [vmem:[#allocation25_spill] sm:$0xff] %v17967_v61  ;;  %v17971_v5 = vsel %vm14296_vm7, %v9823_v42, %v9824_v27  ;;  %v18910_v59 = vrot.slane %v17323_v24, 5  ;;  %v18911_v43 = vrot.slane %v17734_v12, 9 }
 0x4d1   : > { %18907 = vst [vmem:[#allocation18_spill] sm:$0xff] %v17958_v4  ;;  %18909 = vst [vmem:[#allocation26_spill] sm:$0xff] %v17971_v5  ;;  %v17983_v35 = vsel %vm14296_vm7, %v12205_v0, %v9828_v31  ;;  %v9830_v41 = vrot.slane %v9828_v31, 4  ;;  %v18913_v48 = vrot.slane %v17326_v51, 5  ;;  %v9733_v37 = vrot.slane %v18914_v36, 5 }
 0x4d2   : > { %v9724_v30 = vsel %vm14296_vm7, %v18911_v43, %v18910_v59  ;;  %18912 = vst [vmem:[#allocation27_spill] sm:$0xff] %v17983_v35  ;;  %v17991_v59 = vld [vmem:[#allocation2 + $0x24] sm:$0xe]  ;;  %v18919_v8 = vshrl.u32 %v17323_v24, 16  ;;  %v10146_v52 = vrot.slane %v10144_v53, 5  ;;  %v10914_v4 = vunpack.c.l.bf16 %v12279_v39 }
 0x4d3   : > { %v12207_v27 = vcombine.low %v9724_v30, %v17773_v44  ;;  %v9732_v42 = vrot.slane %v18913_v48, 4  ;;  %v17995_v43 = vsel %vm14296_vm7, %v9830_v41, %v9831_v46  ;;  %v12191_v0 = vrot.slane %v17991_v59, 9  ;;  %v18917_v46 = vld [vmem:[#allocation15_spill] sm:$0xff] }
 0x4d4   : > { %13261 = vmatmul.mubr.msk.bf16.gmra.mrb[36].mxu1 %vm766_vm4, %v17832_v54  ;;  %18915 = vst [vmem:[#allocation6_spill] sm:$0xff] %v17995_v43  ;;  %v18916_v54 = vmov %v18913_v48  ;;  %v10610_v41 = vsel %vm815_vm0, %v18917_v46, 0  ;;  %v12273_v48 = vld [vmem:[%s14043_s10 + $0xc] sm:$0xff]   ;;  %v18918_v44 = vcombine.low %v17777_v2, %v17789_v17  ;;  %v10152_v2 = vrot.slane %v18919_v8, 5  ;;  %v12284_v43 = vld [vmem:[%s14043_s10 + $0x38] sm:$0x1] }
 0x4d5   : > { %13266 = vmatprep.mubr.msk.bf16.mxu1 %vm766_vm4, %v12207_v27  ;;  %v9734_v36 = vsel %vm14296_vm7, %v9732_v42, %v9733_v37  ;;  %v9731_v31 = vsel %vm14296_vm7, %v12191_v0, %v18916_v54  ;;  %v12397_v27 = vld [vmem:[%s14043_s10 + $0x18] sm:$0xff]   ;;  %v10147_v37 = vshll.u32 %v17734_v12, 16  ;;  %v12275_v42 = vld [vmem:[%s14043_s10 + $0x14] sm:$0x1]  ;;  %v12278_v54 = vld [vmem:[%s14043_s10 + $0x20] sm:$0x1]  ;;  %v10909_v46 = vunpack.c.h.bf16 %v12273_v48 }
 0x4d6   : > { %v12208_v30 = vcombine.low %v9731_v31, %v9734_v36  ;;  %v12367_v0 = vunpack.c.l.bf16 %v12397_v27  ;;  %v12368_v36 = vunpack.c.h.bf16 %v12397_v27  ;;  %v10908_v31 = vunpack.c.l.bf16 %v12273_v48 }
 0x4d7   : > { %v10910_v17 = vunpack.c.l.bf16 %v12275_v42  ;;  %v10913_v22 = vunpack.c.l.bf16 %v12278_v54  ;;  %v10149_v40 = vrot.slane %v10147_v37, 6  ;;  %vm11004_vm0 = vcmask 1046528  }
 0x4d8   : > { %v10957_v12 = vadd.f32 %v12368_v36, %v10909_v46  ;;  %v18920_v48 = vshll.u32 %v17323_v24, 16  ;;  %v10915_v8 = vunpack.c.h.bf16 %v12279_v39  ;;  %v18921_v42 = vcombine.low %v17782_v45, %v17800_v26 }
 0x4d9   : > { %v10958_v27 = vadd.f32 %v10913_v22, %v10910_v17  ;;  %v10919_v36 = vunpack.c.l.bf16 %v12284_v43  ;;  %v18922_v22 = vcombine.low %v17804_v20, %v17817_v14  ;;  %v10167_v39 = vshrl.u32 %v17991_v59, 16 }
 0x4da   : > { %v10153_v5 = vrot.slane %v18920_v48, 6  ;;  %v11006_v61 = vrot.slane %v10957_v12, 1  ;;  %v10170_v45 = vshll.u32 %v17991_v59, 16  ;;  %v10150_v12 = vor.u32 %v10149_v40, %v10146_v52  ;;  %v10128_v59 = vld [vmem:[#allocation2 + $0x2c] sm:$0x3] }
 0x4db   : > { %v11008_v37 = vrot.slane %v10958_v27, 1  ;;  %v10193_v27 = vshll.u32 %v17741_v56, 16  ;;  %v18923_v40 = vcombine.low %v17812_v3, %v17826_v62  ;;  %v18924_v52 = vcombine.low %v17841_v50, %v17852_v6 }
 0x4dc   : > { %13267 = vmatmul.mubr.msk.bf16.vlgmr.msra.gmra.mrb[8].mxu1 %vm766_vm4, %v12208_v30  ;;  %v12398_v30 = vld [vmem:[%s14043_s10 + $0x30] sm:$0xff]   ;;  %v10154_v20 = vor.u32 %v10153_v5, %v10152_v2  ;;  %v10151_v5 = vrot.slane %v10150_v12, 4  ;;  %v10181_v62 = vshrl.u32 %v10128_v59, 16  ;;  %v18927_v50 = vshrl.u32 %v17349_v58, 16 }
 0x4dd   : > { %13299 = vmatpush3.bf16.msra.mxu1 %v10610_v41  ;;  %13270 = vmatprep.mubr.msk.bf16.mxu1 %vm766_vm4, %v18918_v44  ;;  %v10127_v41 = vld [vmem:[#allocation2 + $0x20] sm:$0x3]  ;;  %v10956_v44 = vadd.f32 %v12367_v0, %v10908_v31  ;;  %v12371_v33 = vunpack.c.l.bf16 %v12398_v30  ;;  %v12372_v11 = vunpack.c.h.bf16 %v12398_v30  ;;  %v10916_v0 = vunpack.c.l.bf16 %v12281_v1 }
 0x4de   : > { %v10158_v53 = vshrl.u32 %v10127_v41, 16  ;;  %v10161_v54 = vshll.u32 %v10127_v41, 16  ;;  %v11009_v26 = vsel %vm11004_vm0, %v11006_v61, %v11008_v37  ;;  %v10156_v2 = vrot.slane %v10154_v20, 4 }
 0x4df   : > { %v11005_v35 = vrot.slane %v10956_v44, 1  ;;  %v10959_v31 = vadd.f32 %v12371_v33, %v10914_v4  ;;  %v10960_v46 = vadd.f32 %v12372_v11, %v10915_v8  ;;  %v10961_v30 = vadd.f32 %v10919_v36, %v10916_v0 }
 0x4e0   : > { %v10160_v14 = vrot.slane %v10158_v53, 5  ;;  %v10163_v33 = vrot.slane %v10161_v54, 6  ;;  %v10169_v11 = vrot.slane %v10167_v39, 5  ;;  %v10172_v4 = vrot.slane %v10170_v45, 6 }
 0x4e1   : > { %v11007_v24 = vsel %vm11004_vm0, %v11005_v35, %v11006_v61  ;;  %v11010_v1 = vrot.slane %v10959_v31, 1  ;;  %v11011_v43 = vrot.slane %v10960_v46, 1  ;;  %v11013_v44 = vrot.slane %v10961_v30, 1 }
 0x4e2   : > { %v11061_v17 = vpack.c.bf16 %v11009_v26, %v11007_v24  ;;  %v10190_v61 = vshrl.u32 %v17741_v56, 16  ;;  %v18925_v8 = vshrl.u32 %v17326_v51, 16  ;;  %v18926_v53 = vshll.u32 %v17326_v51, 16  ;;  %v10129_v56 = vld [vmem:[#allocation2 + $0x38] sm:$0x3] }
 0x4e3   : > { %v11012_v35 = vsel %vm11004_vm0, %v11010_v1, %v11011_v43  ;;  %v11014_v41 = vsel %vm11004_vm0, %v11011_v43, %v11013_v44  ;;  %v10164_v0 = vor.u32 %v10163_v33, %v10160_v14  ;;  %v10173_v3 = vor.u32 %v10172_v4, %v10169_v11  ;;  %v10130_v44 = vld [vmem:[#allocation2 + $0x44] sm:$0x3] }
 0x4e4   : > { %13271 = vmatmul.mubr.msk.bf16.gmra.mrb[12].mxu1 %vm766_vm4, %v18921_v42  ;;  %13334 = vmatprep.mubr.msk.bf16.mxu0 %vm766_vm4, %v11061_v17  ;;  %v11062_v48 = vpack.c.bf16 %v11014_v41, %v11012_v35  ;;  %v10175_v42 = vrot.slane %v18925_v8, 5  ;;  %v10176_v37 = vrot.slane %v18926_v53, 6  ;;  %v10184_v36 = vshll.u32 %v10128_v59, 16  ;;  %v12399_v41 = vld [vmem:[%s14043_s10 + $0x48] sm:$0xff]  }
 0x4e5   : > { %13274 = vmatprep.mubr.msk.bf16.mxu1 %vm766_vm4, %v18922_v22  ;;  %v10192_v22 = vrot.slane %v10190_v61, 5  ;;  %v10195_v54 = vrot.slane %v10193_v27, 6  ;;  %v10198_v6 = vrot.slane %v18927_v50, 5  ;;  %v18928_v24 = vshll.u32 %v17349_v58, 16 }
 0x4e6   : > { %13335 = vmatmul.mubr.msk.bf16.vlgmr.msra.gmra.mrb[32].mxu0 %vm766_vm4, %v11062_v48  ;;  %v10204_v46 = vshrl.u32 %v10129_v56, 16  ;;  %v10207_v39 = vshll.u32 %v10129_v56, 16  ;;  %v10213_v51 = vshrl.u32 %v17748_v9, 16  ;;  %v10216_v45 = vshll.u32 %v17748_v9, 16  ;;  %v12290_v56 = vld [vmem:[%s14043_s10 + $0x50] sm:$0x1] }
 0x4e7   : > { %v10199_v31 = vrot.slane %v18928_v24, 6  ;;  %v10155_v30 = vsel %vm16354_vm2, %v10151_v5, %v10154_v20  ;;  %v18066_v17 = vor.u32 %v10176_v37, %v10175_v42  ;;  %v18068_v1 = vrot.slane %v10181_v62, 5  ;;  %v12287_v42 = vld [vmem:[%s14043_s10 + $0x44] sm:$0x1]  ;;  %v12291_v24 = vld [vmem:[%s14043_s10 + $0x54] sm:$0xff]  }
 0x4e8   : > { %v18070_v43 = vrot.slane %v10184_v36, 6  ;;  %v10165_v58 = vsel %vm16354_vm2, %v10156_v2, %v10164_v0  ;;  %v18074_v12 = vrot.slane %v10173_v3, 4  ;;  %v10196_v14 = vor.u32 %v10195_v54, %v10192_v22  ;;  %v12400_v22 = vld [vmem:[%s14043_s10 + $0x60] sm:$0xff]  }
 0x4e9   : > { %v18076_v35 = vor.u32 %v10199_v31, %v10198_v6  ;;  %v18930_v9 = vcombine.low %v17845_v28, %v17863_v16  ;;  %v18082_v20 = vrot.slane %v10204_v46, 5  ;;  %v18084_v33 = vrot.slane %v10207_v39, 6  ;;  %v10131_v31 = vld [vmem:[#allocation2 + $0x50] sm:$0x3] }
 0x4ea   : > { %v18086_v11 = vrot.slane %v10213_v51, 5  ;;  %v18088_v4 = vrot.slane %v10216_v45, 6  ;;  %v18931_v59 = vcombine.low %v17872_v19, %v17879_v38  ;;  %v18932_v28 = vshrl.u32 %v17373_v57, 16 }
 0x4eb   : > { %v18933_v61 = vshll.u32 %v17373_v57, 16  ;;  %v10227_v48 = vshrl.u32 %v10130_v44, 16  ;;  %v18101_v5 = vcombine.low %v10155_v30, %v10165_v58  ;;  %v10179_v2 = vrot.slane %v18066_v17, 4  ;;  %v12293_v30 = vld [vmem:[%s14043_s10 + $0x5c] sm:$0x1] }
 0x4ec   : > { %13275 = vmatmul.mubr.msk.bf16.gmra.mrb[16].mxu1 %vm766_vm4, %v18923_v40  ;;  %v10221_v16 = vrot.slane %v18932_v28, 5  ;;  %v10236_v40 = vshrl.u32 %v17759_v49, 16  ;;  %v10187_v19 = vor.u32 %v18070_v43, %v18068_v1  ;;  %v10239_v38 = vshll.u32 %v17759_v49, 16 }
 0x4ed   : > { %13278 = vmatprep.mubr.msk.bf16.mxu1 %vm766_vm4, %v18924_v52  ;;  %v10222_v27 = vrot.slane %v18933_v61, 6  ;;  %v12285_v52 = vld [vmem:[%s14043_s10 + $0x3c] sm:$0xff]   ;;  %v18107_v8 = vrot.slane %v10196_v14, 4  ;;  %v10202_v57 = vrot.slane %v18076_v35, 4  ;;  %v12375_v53 = vunpack.c.l.bf16 %v12399_v41 }
 0x4ee   : > { %v12376_v37 = vunpack.c.h.bf16 %v12399_v41  ;;  %v10210_v0 = vor.u32 %v18084_v33, %v18082_v20  ;;  %v10219_v3 = vor.u32 %v18088_v4, %v18086_v11  ;;  %v10230_v62 = vshll.u32 %v10130_v44, 16 }
 0x4ef   : > { %v10920_v36 = vunpack.c.l.bf16 %v12285_v52  ;;  %v18117_v49 = vor.u32 %v10222_v27, %v10221_v16  ;;  %v18119_v54 = vrot.slane %v10227_v48, 5  ;;  %v18121_v50 = vrot.slane %v10236_v40, 5 }
 0x4f0   : > { %v10921_v6 = vunpack.c.h.bf16 %v12285_v52  ;;  %v10241_v46 = vrot.slane %v10239_v38, 6  ;;  %v10922_v39 = vunpack.c.l.bf16 %v12287_v42  ;;  %v10925_v51 = vunpack.c.l.bf16 %v12290_v56 }
 0x4f1   : > { %v10962_v45 = vadd.f32 %v12375_v53, %v10920_v36  ;;  %v18934_v58 = vshrl.u32 %v17403_v10, 16  ;;  %v12380_v41 = vunpack.c.h.bf16 %v12400_v22  ;;  %v18935_v28 = vcombine.low %v17883_v25, %v17891_v34 }
 0x4f2   : > { %v10963_v14 = vadd.f32 %v12376_v37, %v10921_v6  ;;  %v18936_v16 = vshll.u32 %v17403_v10, 16  ;;  %v10964_v27 = vadd.f32 %v10925_v51, %v10922_v39  ;;  %v10926_v40 = vunpack.c.l.bf16 %v12291_v24 }
 0x4f3   : > { %v10244_v44 = vrot.slane %v18934_v58, 5  ;;  %v11015_v48 = vrot.slane %v10962_v45, 1  ;;  %v18937_v52 = vcombine.low %v17906_v60, %v17913_v63  ;;  %v10250_v38 = vshrl.u32 %v10131_v31, 16  ;;  %v10132_v45 = vld [vmem:[#allocation2 + $0x5c] sm:$0x3] }
 0x4f4   : > { %13279 = vmatmul.mubr.msk.bf16.gmra.mrb[20].mxu1 %vm766_vm4, %v18930_v9  ;;  %v12379_v9 = vunpack.c.l.bf16 %v12400_v22  ;;  %v10245_v61 = vrot.slane %v18936_v16, 6  ;;  %v11016_v42 = vrot.slane %v10963_v14, 1  ;;  %v10927_v53 = vunpack.c.h.bf16 %v12291_v24 }
 0x4f5   : > { %13282 = vmatprep.mubr.msk.bf16.mxu1 %vm766_vm4, %v18931_v59  ;;  %v12296_v59 = vld [vmem:[%s14043_s10 + $0x68] sm:$0x1]  ;;  %v10928_v37 = vunpack.c.l.bf16 %v12293_v30  ;;  %v10253_v56 = vshll.u32 %v10131_v31, 16  ;;  %v11018_v36 = vrot.slane %v10964_v27, 1  ;;  %v10232_v22 = vrot.slane %v10230_v62, 6 }
 0x4f6   : > { %v10931_v25 = vunpack.c.l.bf16 %v12296_v59  ;;  %v10965_v34 = vadd.f32 %v12379_v9, %v10926_v40  ;;  %v10242_v10 = vor.u32 %v10241_v46, %v18121_v50  ;;  %v11017_v6 = vsel %vm11004_vm0, %v11015_v48, %v11016_v42  ;;  %v10133_v59 = vld [vmem:[#allocation2 + $0x68] sm:$0x3] }
 0x4f7   : > { %v10966_v39 = vadd.f32 %v12380_v41, %v10927_v53  ;;  %v18140_v51 = vor.u32 %v10245_v61, %v10244_v44  ;;  %v11019_v63 = vsel %vm11004_vm0, %v11016_v42, %v11018_v36  ;;  %v10259_v24 = vshrl.u32 %v17767_v32, 16 }
 0x4f8   : > { %v10967_v60 = vadd.f32 %v10931_v25, %v10928_v37  ;;  %v11020_v58 = vrot.slane %v10965_v34, 1  ;;  %v10262_v31 = vshll.u32 %v17767_v32, 16  ;;  %v11063_v30 = vpack.c.bf16 %v11019_v63, %v11017_v6 }
 0x4f9   : > { %v11021_v14 = vrot.slane %v10966_v39, 1  ;;  %v10252_v9 = vrot.slane %v10250_v38, 5  ;;  %v10255_v62 = vrot.slane %v10253_v56, 6  ;;  %v18938_v50 = vshrl.u32 %v17430_v13, 16 }
 0x4fa   : > { %v11023_v41 = vrot.slane %v10967_v60, 1  ;;  %v18939_v44 = vshll.u32 %v17430_v13, 16  ;;  %v10273_v16 = vshrl.u32 %v10132_v45, 16  ;;  %v10276_v61 = vshll.u32 %v10132_v45, 16  ;;  %13338 = vmatprep.mubr.msk.bf16.mxu0 %vm766_vm4, %v11063_v30  ;;  %v18947_v30 = vld [vmem:[#allocation26_spill] sm:$0xff] }
 0x4fb   : > { %v10267_v46 = vrot.slane %v18938_v50, 5  ;;  %v11022_v27 = vsel %vm11004_vm0, %v11020_v58, %v11021_v14  ;;  %v18940_v32 = vcombine.low %v17917_v55, %v17932_v7  ;;  %v10282_v48 = vshrl.u32 %v17794_v47, 16 }
 0x4fc   : > { %13283 = vmatmul.mubr.msk.bf16.gmra.mrb[24].mxu1 %vm766_vm4, %v18935_v28  ;;  %v10268_v28 = vrot.slane %v18939_v44, 6  ;;  %v10285_v40 = vshll.u32 %v17794_v47, 16  ;;  %v11024_v13 = vsel %vm11004_vm0, %v11021_v14, %v11023_v41  ;;  %v18942_v42 = vcombine.low %v17936_v29, %v17946_v18 }
 0x4fd   : > { %13286 = vmatprep.mubr.msk.bf16.mxu1 %vm766_vm4, %v18937_v52  ;;  %v18941_v52 = vshrl.u32 %v17452_v15, 16  ;;  %v18943_v53 = vshll.u32 %v17452_v15, 16  ;;  %v10296_v55 = vshrl.u32 %v10133_v59, 16  ;;  %v10299_v7 = vshll.u32 %v10133_v59, 16  ;;  %v10134_v59 = vld [vmem:[#allocation2 + $0x74] sm:$0x3] }
 0x4fe   : > { %v11064_v56 = vpack.c.bf16 %v11024_v13, %v11022_v27  ;;  %v10220_v47 = vrot.slane %v10219_v3, 4  ;;  %v10225_v36 = vrot.slane %v18117_v49, 4  ;;  %v10233_v25 = vor.u32 %v10232_v22, %v18119_v54 }
 0x4ff   : > { %v10290_v38 = vrot.slane %v18941_v52, 5  ;;  %v10291_v37 = vrot.slane %v18943_v53, 6  ;;  %v10243_v34 = vrot.slane %v10242_v10, 4  ;;  %v10248_v6 = vrot.slane %v18140_v51, 4  ;;  %v18950_v53 = vld [vmem:[#allocation12_spill] sm:$0xff] }
 0x500   : > { %v10256_v29 = vor.u32 %v10255_v62, %v10252_v9  ;;  %v10261_v18 = vrot.slane %v10259_v24, 5  ;;  %v10264_v39 = vrot.slane %v10262_v31, 6  ;;  %13339 = vmatmul.mubr.msk.bf16.gmra.mrb[36].mxu0 %vm766_vm4, %v11064_v56  ;;  %v18173_v15 = vor.u32 %v10268_v28, %v10267_v46  ;;  %v18946_v31 = vld [vmem:[#allocation25_spill] sm:$0xff]  ;;  %v12401_v9 = vld [vmem:[%s14043_s10 + $0x78] sm:$0xff]  }
 0x501   : > { %v10275_v45 = vrot.slane %v10273_v16, 5  ;;  %v10278_v63 = vrot.slane %v10276_v61, 6  ;;  %v10284_v60 = vrot.slane %v10282_v48, 5  ;;  %v10287_v58 = vrot.slane %v10285_v40, 6  ;;  %v18949_v28 = vld [vmem:[#allocation5_spill] sm:$0xff]  ;;  %v12297_v61 = vld [vmem:[%s14043_s10 + $0x6c] sm:$0xff]  }
 0x502   : > { %v18175_v11 = vor.u32 %v10291_v37, %v10290_v38  ;;  %v10298_v4 = vrot.slane %v10296_v55, 5  ;;  %v10301_v3 = vrot.slane %v10299_v7, 6  ;;  %v10178_v54 = vsel %vm16354_vm2, %v18074_v12, %v18066_v17  ;;  %v12299_v48 = vld [vmem:[%s14043_s10 + $0x74] sm:$0x1]  ;;  %v12302_v38 = vld [vmem:[%s14043_s10 + $0x80] sm:$0x1] }
 0x503   : > { %v10188_v22 = vsel %vm16354_vm2, %v10179_v2, %v10187_v19  ;;  %v10211_v10 = vsel %vm16354_vm2, %v10202_v57, %v10210_v0  ;;  %v10234_v12 = vsel %vm16354_vm2, %v10225_v36, %v10233_v25  ;;  %v10257_v1 = vsel %vm16354_vm2, %v10248_v6, %v10256_v29  ;;  %v18944_v19 = vld [vmem:[#allocation18_spill] sm:$0xff] }
 0x504   : > { %13287 = vmatmul.mubr.msk.bf16.gmra.mrb[28].mxu1 %vm766_vm4, %v18940_v32  ;;  %v10265_v43 = vor.u32 %v10264_v39, %v10261_v18  ;;  %v10305_v17 = vshrl.u32 %v17806_v23, 16  ;;  %v10308_v2 = vshll.u32 %v17806_v23, 16  ;;  %v18945_v20 = vcombine.low %v17953_v21, %v18944_v19  ;;  %v12303_v29 = vld [vmem:[%s14043_s10 + $0x84] sm:$0xff]   ;;  %v10135_v39 = vld [vmem:[#allocation2 + $0x80] sm:$0x3] }
 0x505   : > { %13290 = vmatprep.mubr.msk.bf16.mxu1 %vm766_vm4, %v18942_v42  ;;  %v10201_v33 = vsel %vm16354_vm2, %v18107_v8, %v18076_v35  ;;  %v10224_v57 = vsel %vm16354_vm2, %v10220_v47, %v18117_v49  ;;  %v10271_v0 = vrot.slane %v18173_v15, 4  ;;  %v10279_v24 = vor.u32 %v10278_v63, %v10275_v45  ;;  %v12402_v47 = vld [vmem:[%s14043_s10 + $0x90] sm:$0xff]  }
 0x506   : > { %v18948_v23 = vcombine.low %v18946_v31, %v18947_v30  ;;  %v10247_v21 = vsel %vm16354_vm2, %v10243_v34, %v18140_v51  ;;  %v10288_v14 = vor.u32 %v10287_v58, %v10284_v60  ;;  %v10294_v35 = vrot.slane %v18175_v11, 4  ;;  %v18953_v58 = vld [vmem:[#allocation27_spill] sm:$0xff] }
 0x507   : > { %v10302_v8 = vor.u32 %v10301_v3, %v10298_v4  ;;  %v18222_v49 = vcombine.low %v10178_v54, %v10188_v22  ;;  %v18224_v62 = vcombine.low %v10201_v33, %v10211_v10  ;;  %v18226_v50 = vcombine.low %v10224_v57, %v10234_v12  ;;  %v18954_v4 = vld [vmem:[#allocation6_spill] sm:$0xff] }
 0x508   : > { %v18228_v46 = vcombine.low %v10247_v21, %v10257_v1  ;;  %v18230_v41 = vrot.slane %v10265_v43, 4  ;;  %v18232_v51 = vrot.slane %v10305_v17, 5  ;;  %v18234_v44 = vrot.slane %v10308_v2, 6  ;;  %v12305_v12 = vld [vmem:[%s14043_s10 + $0x8c] sm:$0x1]  ;;  %v18956_v17 = vld [vmem:[#allocation7_spill] sm:$0xff] }
 0x509   : > { %v10328_v16 = vshrl.u32 %v18949_v28, 16  ;;  %v18240_v27 = vsel %vm16354_vm2, %v10271_v0, %v10279_v24  ;;  %v10331_v32 = vshll.u32 %v18949_v28, 16  ;;  %v12383_v40 = vunpack.c.l.bf16 %v12401_v9  ;;  %v12308_v43 = vld [vmem:[%s14043_s10 + $0x98] sm:$0x1] }
 0x50a   : > { %v12384_v52 = vunpack.c.h.bf16 %v12401_v9  ;;  %v18245_v13 = vrot.slane %v10288_v14, 4  ;;  %v18249_v42 = vsel %vm16354_vm2, %v10294_v35, %v10302_v8  ;;  %v18951_v37 = vshrl.u32 %v18950_v53, 16 }
 0x50b   : > { %v18952_v7 = vshll.u32 %v18950_v53, 16  ;;  %v10319_v36 = vshrl.u32 %v10134_v59, 16  ;;  %v10322_v25 = vshll.u32 %v10134_v59, 16  ;;  %v10932_v34 = vunpack.c.l.bf16 %v12297_v61 }
 0x50c   : > { %13291 = vmatmul.mubr.msk.bf16.gmra.mrb[32].mxu1 %vm766_vm4, %v18945_v20  ;;  %v10313_v55 = vrot.slane %v18951_v37, 5  ;;  %v10933_v6 = vunpack.c.h.bf16 %v12297_v61  ;;  %v10311_v18 = vor.u32 %v18234_v44, %v18232_v51  ;;  %v18259_v45 = vrot.slane %v10328_v16, 5 }
 0x50d   : > { %13294 = vmatprep.mubr.msk.bf16.mxu1 %vm766_vm4, %v18948_v23  ;;  %v10314_v56 = vrot.slane %v18952_v7, 6  ;;  %v10934_v63 = vunpack.c.l.bf16 %v12299_v48  ;;  %v10937_v60 = vunpack.c.l.bf16 %v12302_v38  ;;  %v18955_v3 = vcombine.low %v18953_v58, %v18954_v4  ;;  %v10136_v48 = vld [vmem:[#allocation2 + $0x8c] sm:$0x3]  ;;  %v18959_v7 = vld [vmem:[#allocation20_spill] sm:$0xff] }
 0x50e   : > { %v18265_v54 = vrot.slane %v10331_v32, 6  ;;  %v10968_v22 = vadd.f32 %v12383_v40, %v10932_v34  ;;  %v10969_v10 = vadd.f32 %v12384_v52, %v10933_v6  ;;  %v12387_v1 = vunpack.c.l.bf16 %v12402_v47 }
 0x50f   : > { %v18957_v2 = vshrl.u32 %v18956_v17, 16  ;;  %v10970_v20 = vadd.f32 %v10937_v60, %v10934_v63  ;;  %v12388_v33 = vunpack.c.h.bf16 %v12402_v47  ;;  %v10938_v57 = vunpack.c.l.bf16 %v12303_v29 }
 0x510   : > { %v18958_v0 = vshll.u32 %v18956_v17, 16  ;;  %v11025_v31 = vrot.slane %v10968_v22, 1  ;;  %v11026_v30 = vrot.slane %v10969_v10, 1  ;;  %v10939_v23 = vunpack.c.h.bf16 %v12303_v29  ;;  %v18960_v29 = vld [vmem:[#allocation13_spill] sm:$0xff] }
 0x511   : > { %v10336_v19 = vrot.slane %v18957_v2, 5  ;;  %v10342_v21 = vshrl.u32 %v10135_v39, 16  ;;  %v11028_v14 = vrot.slane %v10970_v20, 1  ;;  %v10940_v35 = vunpack.c.l.bf16 %v12305_v12  ;;  %v18964_v12 = vld [vmem:[#allocation8_spill] sm:$0xff] }
 0x512   : > { %v10337_v24 = vrot.slane %v18958_v0, 6  ;;  %v10943_v8 = vunpack.c.l.bf16 %v12308_v43  ;;  %v10345_v9 = vshll.u32 %v10135_v39, 16  ;;  %v11027_v59 = vsel %vm11004_vm0, %v11025_v31, %v11026_v30 }
 0x513   : > { %v10972_v51 = vadd.f32 %v12388_v33, %v10939_v23  ;;  %v18276_v44 = vor.u32 %v10314_v56, %v10313_v55  ;;  %v10321_v28 = vrot.slane %v10319_v36, 5  ;;  %v11029_v16 = vsel %vm11004_vm0, %v11026_v30, %v11028_v14 }
 0x514   : > { %13295 = vmatmul.mubr.msk.bf16.gmra.mrb[36].mxu1 %vm766_vm4, %v18955_v3  ;;  %v10973_v61 = vadd.f32 %v10943_v8, %v10940_v35  ;;  %v10324_v32 = vrot.slane %v10322_v25, 6  ;;  %v11065_v40 = vpack.c.bf16 %v11029_v16, %v11027_v59  ;;  %v10334_v53 = vor.u32 %v18265_v54, %v18259_v45  ;;  %v10137_v25 = vld [vmem:[#allocation2 + $0x98] sm:$0x3]  ;;  %v18963_v3 = vld [vmem:[#allocation21_spill] sm:$0xff]  ;;  %v18967_v16 = vld [vmem:[#allocation22_spill] sm:$0xff] }
 0x515   : > { %13300 = vmatprep.mubr.msk.bf16.mxu1 %vm766_vm4, %v18101_v5  ;;  %v10971_v5 = vadd.f32 %v12387_v1, %v10938_v57  ;;  %v11031_v38 = vrot.slane %v10972_v51, 1  ;;  %v18281_v37 = vor.u32 %v10337_v24, %v10336_v19  ;;  %v10351_v47 = vshrl.u32 %v18959_v7, 16 }
 0x516   : > { %v11033_v34 = vrot.slane %v10973_v61, 1  ;;  %v10344_v55 = vrot.slane %v10342_v21, 5  ;;  %v10347_v56 = vrot.slane %v10345_v9, 6  ;;  %v10354_v36 = vshll.u32 %v18959_v7, 16  ;;  %13342 = vmatprep.mubr.msk.bf16.mxu0 %vm766_vm4, %v11065_v40  ;;  %v12403_v7 = vld [vmem:[%s14043_s10 + $0xa8] sm:$0xff]  }
 0x517   : > { %v11030_v52 = vrot.slane %v10971_v5, 1  ;;  %v18961_v39 = vshrl.u32 %v18960_v29, 16  ;;  %v18962_v63 = vshll.u32 %v18960_v29, 16  ;;  %v10365_v58 = vshrl.u32 %v10136_v48, 16 }
 0x518   : > { %v10368_v4 = vshll.u32 %v10136_v48, 16  ;;  %v10374_v54 = vshrl.u32 %v18963_v3, 16  ;;  %v10377_v22 = vshll.u32 %v18963_v3, 16  ;;  %v18965_v1 = vshrl.u32 %v18964_v12, 16  ;;  %v12314_v3 = vld [vmem:[%s14043_s10 + $0xb0] sm:$0x1] }
 0x519   : > { %v11032_v6 = vsel %vm11004_vm0, %v11030_v52, %v11031_v38  ;;  %v10359_v45 = vrot.slane %v18961_v39, 5  ;;  %v10360_v60 = vrot.slane %v18962_v63, 6  ;;  %v10388_v2 = vshrl.u32 %v10137_v25, 16 }
 0x51a   : > { %v10382_v43 = vrot.slane %v18965_v1, 5  ;;  %v10391_v19 = vshll.u32 %v10137_v25, 16  ;;  %v10312_v20 = vrot.slane %v10311_v18, 4  ;;  %v10317_v33 = vrot.slane %v18276_v44, 4 }
 0x51b   : > { %v10325_v57 = vor.u32 %v10324_v32, %v10321_v28  ;;  %v10353_v0 = vrot.slane %v10351_v47, 5  ;;  %v10340_v24 = vrot.slane %v18281_v37, 4  ;;  %v10348_v31 = vor.u32 %v10347_v56, %v10344_v55  ;;  %v18968_v55 = vld [vmem:[#allocation9_spill] sm:$0xff] }
 0x51c   : > { %13301 = vmatmul.mubr.msk.bf16.vlgmr.msra.gmra.mrb[8].mxu1 %vm766_vm4, %v18222_v49  ;;  %v11034_v49 = vsel %vm11004_vm0, %v11031_v38, %v11033_v34  ;;  %v10356_v30 = vrot.slane %v10354_v36, 6  ;;  %v18305_v23 = vor.u32 %v10360_v60, %v10359_v45  ;;  %v10367_v21 = vrot.slane %v10365_v58, 5  ;;  %v10138_v38 = vld [vmem:[#allocation2 + $0xa4] sm:$0x3] }
 0x51d   : > { %13304 = vmatprep.mubr.msk.bf16.mxu1 %vm766_vm4, %v18224_v62  ;;  %v11066_v10 = vpack.c.bf16 %v11034_v49, %v11032_v6  ;;  %v18966_v62 = vshll.u32 %v18964_v12, 16  ;;  %v10370_v14 = vrot.slane %v10368_v4, 6  ;;  %v10376_v35 = vrot.slane %v10374_v54, 5  ;;  %v12309_v6 = vld [vmem:[%s14043_s10 + $0x9c] sm:$0xff]   ;;  %v12311_v58 = vld [vmem:[%s14043_s10 + $0xa4] sm:$0x1] }
 0x51e   : > { %v10379_v8 = vrot.slane %v10377_v22, 6  ;;  %v10335_v9 = vrot.slane %v10334_v53, 4  ;;  %v10390_v18 = vrot.slane %v10388_v2, 5  ;;  %v10393_v5 = vrot.slane %v10391_v19, 6 }
 0x51f   : > { %v10383_v17 = vrot.slane %v18966_v62, 6  ;;  %13343 = vmatmul.mubr.msk.bf16.gmra.mrb[40].mxu0 %vm766_vm4, %v11066_v10  ;;  %v10270_v51 = vsel %vm16354_vm2, %v18230_v41, %v18173_v15  ;;  %v10293_v28 = vsel %vm16354_vm2, %v18245_v13, %v18175_v11  ;;  %v10397_v61 = vshrl.u32 %v18967_v16, 16  ;;  %v18971_v10 = vld [vmem:[#allocation23_spill] sm:$0xff] }
 0x520   : > { %v10400_v32 = vshll.u32 %v18967_v16, 16  ;;  %v12246_v48 = vcombine.low %v10293_v28, %v18249_v42  ;;  %v10326_v15 = vsel %vm16354_vm2, %v10317_v33, %v10325_v57  ;;  %v10357_v41 = vor.u32 %v10356_v30, %v10353_v0  ;;  %v10139_v57 = vld [vmem:[#allocation2 + $0xb0] sm:$0x3]  ;;  %v12317_v30 = vld [vmem:[%s14043_s10 + $0xbc] sm:$0x1] }
 0x521   : > { %v18307_v59 = vor.u32 %v10383_v17, %v10382_v43  ;;  %v10349_v11 = vsel %vm16354_vm2, %v10340_v24, %v10348_v31  ;;  %v10363_v13 = vrot.slane %v18305_v23, 4  ;;  %v10371_v40 = vor.u32 %v10370_v14, %v10367_v21  ;;  %v12404_v43 = vld [vmem:[%s14043_s10 + $0xc0] sm:$0xff]   ;;  %v18972_v21 = vld [vmem:[#allocation16_spill] sm:$0xff] }
 0x522   : > { %v10380_v52 = vor.u32 %v10379_v8, %v10376_v35  ;;  %v10394_v53 = vor.u32 %v10393_v5, %v10390_v18  ;;  %v18338_v47 = vrot.slane %v10397_v61, 5  ;;  %v18340_v34 = vrot.slane %v10400_v32, 6  ;;  %v12320_v5 = vld [vmem:[%s14043_s10 + $0xc8] sm:$0x1] }
 0x523   : > { %v10386_v42 = vrot.slane %v18307_v59, 4  ;;  %v18969_v56 = vshrl.u32 %v18968_v55, 16  ;;  %v18970_v25 = vshll.u32 %v18968_v55, 16  ;;  %v10411_v45 = vshrl.u32 %v10138_v38, 16 }
 0x524   : > { %13305 = vmatmul.mubr.msk.bf16.gmra.mrb[12].mxu1 %vm766_vm4, %v18226_v50  ;;  %v12245_v50 = vcombine.low %v10270_v51, %v18240_v27  ;;  %v10339_v27 = vsel %vm16354_vm2, %v10335_v9, %v18281_v37  ;;  %v18347_v37 = vrot.slane %v10357_v41, 4  ;;  %v18351_v63 = vsel %vm16354_vm2, %v10363_v13, %v10371_v40 }
 0x525   : > { %13308 = vmatprep.mubr.msk.bf16.mxu1 %vm766_vm4, %v18228_v46  ;;  %v10316_v46 = vsel %vm16354_vm2, %v10312_v20, %v18276_v44  ;;  %v10405_v36 = vrot.slane %v18969_v56, 5  ;;  %v10406_v44 = vrot.slane %v18970_v25, 6  ;;  %v12248_v39 = vcombine.low %v10339_v27, %v10349_v11  ;;  %v12315_v20 = vld [vmem:[%s14043_s10 + $0xb4] sm:$0xff]  }
 0x526   : > { %v12247_v29 = vcombine.low %v10316_v46, %v10326_v15  ;;  %v18353_v60 = vrot.slane %v10380_v52, 4  ;;  %v12391_v49 = vunpack.c.l.bf16 %v12403_v7  ;;  %v12392_v4 = vunpack.c.h.bf16 %v12403_v7  ;;  %v18975_v56 = vld [vmem:[#allocation24_spill] sm:$0xff] }
 0x527   : > { %v10395_v54 = vsel %vm16354_vm2, %v10386_v42, %v10394_v53  ;;  %v10414_v22 = vshll.u32 %v10138_v38, 16  ;;  %v10420_v12 = vshrl.u32 %v18971_v10, 16  ;;  %v10944_v1 = vunpack.c.l.bf16 %v12309_v6 }
 0x528   : > { %v10403_v62 = vor.u32 %v18340_v34, %v18338_v47  ;;  %v18364_v17 = vor.u32 %v10406_v44, %v10405_v36  ;;  %v10423_v2 = vshll.u32 %v18971_v10, 16  ;;  %v10945_v19 = vunpack.c.h.bf16 %v12309_v6 }
 0x529   : > { %v18369_v33 = vrot.slane %v10411_v45, 5  ;;  %v10946_v0 = vunpack.c.l.bf16 %v12311_v58  ;;  %v10949_v24 = vunpack.c.l.bf16 %v12314_v3  ;;  %v10974_v31 = vadd.f32 %v12391_v49, %v10944_v1 }
 0x52a   : > { %v18973_v14 = vshrl.u32 %v18972_v21, 16  ;;  %v10975_v8 = vadd.f32 %v12392_v4, %v10945_v19  ;;  %v12395_v9 = vunpack.c.l.bf16 %v12404_v43  ;;  %v12396_v18 = vunpack.c.h.bf16 %v12404_v43 }
 0x52b   : > { %v18974_v51 = vshll.u32 %v18972_v21, 16  ;;  %v10976_v16 = vadd.f32 %v10949_v24, %v10946_v0  ;;  %v11035_v61 = vrot.slane %v10974_v31, 1  ;;  %v10950_v32 = vunpack.c.l.bf16 %v12315_v20  ;;  %v18976_v0 = vld [vmem:[#allocation17_spill] sm:$0xff]  ;;  %v18979_v31 = vld [vmem:[#allocation10_spill] sm:$0xff] }
 0x52c   : > { %13309 = vmatmul.mubr.msk.bf16.gmra.mrb[16].mxu1 %vm766_vm4, %v12245_v50  ;;  %v10428_v35 = vrot.slane %v18973_v14, 5  ;;  %v10434_v50 = vshrl.u32 %v10139_v57, 16  ;;  %v10951_v15 = vunpack.c.h.bf16 %v12315_v20  ;;  %v10952_v41 = vunpack.c.l.bf16 %v12317_v30 }
 0x52d   : > { %13312 = vmatprep.mubr.msk.bf16.mxu1 %vm766_vm4, %v12246_v48  ;;  %v10429_v28 = vrot.slane %v18974_v51, 6  ;;  %v11036_v48 = vrot.slane %v10975_v8, 1  ;;  %v10437_v11 = vshll.u32 %v10139_v57, 16  ;;  %v11038_v13 = vrot.slane %v10976_v16, 1  ;;  %v10141_v57 = vld [vmem:[#allocation2 + $0xc8] sm:$0x3] }
 0x52e   : > { %v10955_v40 = vunpack.c.l.bf16 %v12320_v5  ;;  %v10977_v52 = vadd.f32 %v12395_v9, %v10950_v32  ;;  %v10416_v38 = vrot.slane %v10414_v22, 6  ;;  %v10422_v46 = vrot.slane %v10420_v12, 5  ;;  %v18983_v16 = vld [vmem:[#allocation4_spill] sm:$0xff] }
 0x52f   : > { %v11037_v27 = vsel %vm11004_vm0, %v11035_v61, %v11036_v48  ;;  %v10978_v42 = vadd.f32 %v12396_v18, %v10951_v15  ;;  %v10425_v53 = vrot.slane %v10423_v2, 6  ;;  %v11039_v7 = vsel %vm11004_vm0, %v11036_v48, %v11038_v13 }
 0x530   : > { %v10979_v47 = vadd.f32 %v10955_v40, %v10952_v41  ;;  %v11040_v34 = vrot.slane %v10977_v52, 1  ;;  %v18380_v55 = vor.u32 %v10429_v28, %v10428_v35  ;;  %v10443_v36 = vshrl.u32 %v18975_v56, 16  ;;  %v18980_v35 = vld [vmem:[#allocation11_spill] sm:$0xff] }
 0x531   : > { %v11067_v25 = vpack.c.bf16 %v11039_v7, %v11037_v27  ;;  %v11041_v44 = vrot.slane %v10978_v42, 1  ;;  %v10436_v6 = vrot.slane %v10434_v50, 5  ;;  %v10439_v45 = vrot.slane %v10437_v11, 6  ;;  %v10142_v52 = vld [vmem:[#allocation2 + $0xd4] sm:$0x3] }
 0x532   : > { %v10446_v58 = vshll.u32 %v18975_v56, 16  ;;  %v11043_v49 = vrot.slane %v10979_v47, 1  ;;  %v10362_v4 = vsel %vm16354_vm2, %v18347_v37, %v18305_v23  ;;  %v10404_v10 = vrot.slane %v10403_v62, 4  ;;  %v10140_v37 = vld [vmem:[#allocation2 + $0xbc] sm:$0x3]  ;;  %v18984_v47 = vld [vmem:[#allocation19_spill] sm:$0xff] }
 0x533   : > { %13346 = vmatprep.mubr.msk.bf16.mxu0 %vm766_vm4, %v11067_v25  ;;  %v11042_v3 = vsel %vm11004_vm0, %v11040_v34, %v11041_v44  ;;  %v10409_v1 = vrot.slane %v18364_v17, 4  ;;  %v10417_v43 = vor.u32 %v10416_v38, %v18369_v33  ;;  %v10426_v23 = vor.u32 %v10425_v53, %v10422_v46 }
 0x534   : > { %13313 = vmatmul.mubr.msk.bf16.gmra.mrb[20].mxu1 %vm766_vm4, %v12247_v29  ;;  %v10385_v29 = vsel %vm16354_vm2, %v18353_v60, %v18307_v59  ;;  %v11044_v12 = vsel %vm11004_vm0, %v11041_v44, %v11043_v49  ;;  %v10432_v19 = vrot.slane %v18380_v55, 4  ;;  %v10440_v59 = vor.u32 %v10439_v45, %v10436_v6 }
 0x535   : > { %13316 = vmatprep.mubr.msk.bf16.mxu1 %vm766_vm4, %v12248_v39  ;;  %v12249_v39 = vcombine.low %v10362_v4, %v18351_v63  ;;  %v12250_v22 = vcombine.low %v10385_v29, %v10395_v54  ;;  %v11068_v2 = vpack.c.bf16 %v11044_v12, %v11042_v3  ;;  %v10445_v60 = vrot.slane %v10443_v36, 5 }
 0x536   : > { %v10448_v20 = vrot.slane %v10446_v58, 6  ;;  %v18977_v24 = vshrl.u32 %v18976_v0, 16  ;;  %v18978_v54 = vshll.u32 %v18976_v0, 16  ;;  %v10466_v30 = vshrl.u32 %v18979_v31, 16 }
 0x537   : > { %v10469_v21 = vshll.u32 %v18979_v31, 16  ;;  %13347 = vmatmul.mubr.msk.bf16.gmra.mrb[44].mxu0 %vm766_vm4, %v11068_v2  ;;  %v10457_v33 = vshrl.u32 %v10140_v37, 16  ;;  %v10460_v14 = vshll.u32 %v10140_v37, 16  ;;  %v18981_v8 = vshrl.u32 %v18980_v35, 16 }
 0x538   : > { %v10451_v63 = vrot.slane %v18977_v24, 5  ;;  %v10452_v62 = vrot.slane %v18978_v54, 6  ;;  %v18982_v18 = vshll.u32 %v18980_v35, 16  ;;  %v10480_v51 = vshrl.u32 %v10141_v57, 16 }
 0x539   : > { %v10474_v9 = vrot.slane %v18981_v8, 5  ;;  %v10483_v28 = vshll.u32 %v10141_v57, 16  ;;  %v10489_v61 = vshrl.u32 %v18983_v16, 16  ;;  %v10408_v32 = vsel %vm16354_vm2, %v10404_v10, %v18364_v17 }
 0x53a   : > { %v10475_v5 = vrot.slane %v18982_v18, 6  ;;  %v10418_v50 = vsel %vm16354_vm2, %v10409_v1, %v10417_v43  ;;  %v10427_v48 = vrot.slane %v10426_v23, 4  ;;  %v10492_v15 = vshll.u32 %v18983_v16, 16 }
 0x53b   : > { %v10441_v41 = vsel %vm16354_vm2, %v10432_v19, %v10440_v59  ;;  %v10449_v11 = vor.u32 %v10448_v20, %v10445_v60  ;;  %v10468_v13 = vrot.slane %v10466_v30, 5  ;;  %v10471_v40 = vrot.slane %v10469_v21, 6 }
 0x53c   : > { %13317 = vmatmul.mubr.msk.bf16.gmra.mrb[24].mxu1 %vm766_vm4, %v12249_v39  ;;  %v10453_v38 = vor.u32 %v10452_v62, %v10451_v63  ;;  %v10459_v46 = vrot.slane %v10457_v33, 5  ;;  %v10462_v27 = vrot.slane %v10460_v14, 6  ;;  %v10476_v42 = vor.u32 %v10475_v5, %v10474_v9  ;;  %v18453_v5 = vld [vmem:[%s18565_s4] ss:$0 sm:$0xff] }
 0x53d   : > { %13320 = vmatprep.mubr.msk.bf16.mxu1 %vm766_vm4, %v12250_v22  ;;  %v10482_v53 = vrot.slane %v10480_v51, 5  ;;  %v10485_v7 = vrot.slane %v10483_v28, 6  ;;  %v10491_v17 = vrot.slane %v10489_v61, 5  ;;  %v18985_v34 = vshrl.u32 %v18984_v47, 16 }
 0x53e   : > { %v10494_v36 = vrot.slane %v10492_v15, 6  ;;  %v18986_v25 = vshll.u32 %v18984_v47, 16  ;;  %v10503_v6 = vshrl.u32 %v10142_v52, 16  ;;  %v10506_v45 = vshll.u32 %v10142_v52, 16 }
 0x53f   : > { %v10497_v56 = vrot.slane %v18985_v34, 5  ;;  %v12251_v58 = vcombine.low %v10408_v32, %v10418_v50  ;;  %v10431_v49 = vsel %vm16354_vm2, %v10427_v48, %v18380_v55  ;;  %v10472_v4 = vor.u32 %v10471_v40, %v10468_v13 }
 0x540   : > { %v10498_v44 = vrot.slane %v18986_v25, 6  ;;  %v12252_v29 = vcombine.low %v10431_v49, %v10441_v41  ;;  %v10455_v3 = vrot.slane %v10453_v38, 4  ;;  %v10463_v39 = vor.u32 %v10462_v27, %v10459_v46 }
 0x541   : > { %v10450_v22 = vrot.slane %v10449_v11, 4  ;;  %v10478_v10 = vrot.slane %v10476_v42, 4  ;;  %v10486_v12 = vor.u32 %v10485_v7, %v10482_v53  ;;  %v10495_v1 = vor.u32 %v10494_v36, %v10491_v17 }
 0x542   : > { %v10499_v43 = vor.u32 %v10498_v44, %v10497_v56  ;;  %v10505_v23 = vrot.slane %v10503_v6, 5  ;;  %v10508_v37 = vrot.slane %v10506_v45, 6  ;;  %v10473_v2 = vrot.slane %v10472_v4, 4 }
 0x543   : > { %v10464_v19 = vsel %vm16354_vm2, %v10455_v3, %v10463_v39  ;;  %v10487_v55 = vsel %vm16354_vm2, %v10478_v10, %v10486_v12  ;;  %v10454_v59 = vsel %vm16354_vm2, %v10450_v22, %v10453_v38  ;;  %v10496_v60 = vrot.slane %v10495_v1, 4  ;;  %v18481_v10 = vld [vmem:[%s18567_s6] ss:$0 sm:$0xff] }
 0x544   : > { %13321 = vmatmul.mubr.msk.bf16.gmra.mrb[28].mxu1 %vm766_vm4, %v12251_v58  ;;  %v10501_v20 = vrot.slane %v10499_v43, 4  ;;  %v10509_v57 = vor.u32 %v10508_v37, %v10505_v23  ;;  %v12253_v0 = vcombine.low %v10454_v59, %v10464_v19  ;;  %v10477_v24 = vsel %vm16354_vm2, %v10473_v2, %v10476_v42 }
 0x545   : > { %13324 = vmatprep.mubr.msk.bf16.mxu1 %vm766_vm4, %v12252_v29  ;;  %v12254_v63 = vcombine.low %v10477_v24, %v10487_v55  ;;  %v10500_v54 = vsel %vm16354_vm2, %v10496_v60, %v10499_v43 }
 0x546   : > { %v10510_v62 = vsel %vm16354_vm2, %v10501_v20, %v10509_v57 }
 0x547   : > { %v12255_v31 = vcombine.low %v10500_v54, %v10510_v62 }
 0x54c   : > { %13325 = vmatmul.mubr.msk.bf16.gmra.mrb[32].mxu1 %vm766_vm4, %v12253_v0 }
 0x54d   : > { %13328 = vmatprep.mubr.msk.bf16.mxu1 %vm766_vm4, %v12254_v63 }
 0x554   : > { %13329 = vmatmul.mubr.msk.bf16.gmra.mrb[36].mxu1 %vm766_vm4, %v12255_v31 }
 0x5b9   : > { %v13336_v30 = vpop.f32.mrb[32].mxu0 }
 0x5ba   : > { %v11131_v21 = vpop.f32.mrb[33].mxu0 }
 0x5bb   : > { %v13337_v33 = vpop.f32.mrb[34].mxu0 }
 0x5bc   : > { %v11134_v14 = vpop.f32.mrb[35].mxu0 }
 0x5d3   : > { %v18446_v35 = vpop.f32.mrb[36].mxu0 }
 0x5d4   : > { %v11147_v8 = vpop.f32.mrb[37].mxu0 }
 0x5d5   : > { %v18448_v9 = vpop.f32.mrb[38].mxu0 }
 0x5d6   : > { %v11150_v18 = vpop.f32.mrb[39].mxu0 }
 0x5ef   : > { %v13302_v26 = vpop.f32.mrb[8].mxu1 }
 0x5f0   : > { %v10814_v51 = vadd.f32 %v13302_v26, %v18453_v5  ;;  %v10646_v28 = vpop.f32.mrb[9].mxu1 }
 0x5f1   : > { %v10812_v16 = vadd.f32 %v18453_v5, %v10646_v28  ;;  %v13303_v61 = vpop.f32.mrb[10].mxu1 }
 0x5f2   : > { %v10815_v32 = vadd.f32 %v13303_v61, %v18453_v5  ;;  %v10649_v50 = vpop.f32.mrb[11].mxu1  ;;  %v18459_v41 = vpop.f32.mrb[40].mxu0 }
 0x5f3   : > { %v10813_v48 = vadd.f32 %v18453_v5, %v10649_v50  ;;  %v10844_v15 = vadd.f32 %v10814_v51, %v10812_v16  ;;  %v18461_v11 = vpop.f32.mrb[41].mxu0 }
 0x5f4   : > { %v18463_v52 = vpop.f32.mrb[42].mxu0 }
 0x5f5   : > { %v11194_v13 = vadd.f32 %v11131_v21, %v10844_v15  ;;  %v10845_v40 = vadd.f32 %v10815_v32, %v10813_v48  ;;  %v18465_v38 = vpop.f32.mrb[43].mxu0 }
 0x5f7   : > { %11210 = vst.msk [vmem:[#allocation3] sm:$0xff] %vm766_vm4, %v11194_v13  ;;  %v11195_v46 = vadd.f32 %v11134_v14, %v10845_v40  ;;  %v13306_v27 = vpop.f32.mrb[12].mxu1 }
 0x5f8   : > { %v10818_v42 = vadd.f32 %v13306_v27, %v18453_v5  ;;  %v10662_v53 = vpop.f32.mrb[13].mxu1 }
 0x5f9   : > { %11211 = vst.msk [vmem:[#allocation3 + $0x8] sm:$0xff] %vm766_vm4, %v11195_v46  ;;  %v10816_v7 = vadd.f32 %v18453_v5, %v10662_v53  ;;  %v13307_v17 = vpop.f32.mrb[14].mxu1 }
 0x5fa   : > { %v10819_v47 = vadd.f32 %v13307_v17, %v18453_v5  ;;  %v10665_v34 = vpop.f32.mrb[15].mxu1 }
 0x5fb   : > { %v10846_v56 = vadd.f32 %v10818_v42, %v10816_v7  ;;  %v10817_v36 = vadd.f32 %v18453_v5, %v10665_v34 }
 0x5fd   : > { %v11196_v25 = vadd.f32 %v13336_v30, %v10846_v56  ;;  %v10847_v44 = vadd.f32 %v10819_v47, %v10817_v36 }
 0x5ff   : > { %11212 = vst.msk [vmem:[#allocation3 + $0x10] sm:$0xff] %vm766_vm4, %v11196_v25  ;;  %v11197_v6 = vadd.f32 %v13337_v33, %v10847_v44  ;;  %v13310_v45 = vpop.f32.mrb[16].mxu1 }
 0x600   : > { %v11226_v58 = vld [vmem:[#allocation3] ss:$2 sm:$0xff]  ;;  %v11242_v49 = vld [vmem:[#allocation3 + $0x1] ss:$2 sm:$0xff]  ;;  %v10822_v4 = vadd.f32 %v13310_v45, %v18453_v5  ;;  %v10678_v29 = vpop.f32.mrb[17].mxu1 }
 0x601   : > { %v11257_v3 = vadd.f32 %v11242_v49, %v11226_v58  ;;  %11213 = vst.msk [vmem:[#allocation3 + $0x18] sm:$0xff] %vm766_vm4, %v11197_v6  ;;  %v10820_v39 = vadd.f32 %v18453_v5, %v10678_v29  ;;  %v13311_v22 = vpop.f32.mrb[18].mxu1 }
 0x602   : > { %v10823_v12 = vadd.f32 %v13311_v22, %v18453_v5  ;;  %v10681_v1 = vpop.f32.mrb[19].mxu1 }
 0x603   : > { %v11265_v43 = vmul.f32 0.25, %v11257_v3  ;;  %v10821_v23 = vadd.f32 %v18453_v5, %v10681_v1  ;;  %v10848_v37 = vadd.f32 %v10822_v4, %v10820_v39 }
 0x605   : > { %v11280_v2 = vadd.f32 %v18481_v10, %v11265_v43  ;;  %v11198_v19 = vadd.f32 %v11147_v8, %v10848_v37  ;;  %v10849_v55 = vadd.f32 %v10823_v12, %v10821_v23 }
 0x607   : > { %11288 = vst.msk [vmem:[%s18488_s12] sm:$0xff] %vm766_vm4, %v11280_v2  ;;  %11214 = vst.msk [vmem:[#allocation3 + $0x20] sm:$0xff] %vm766_vm4, %v11198_v19  ;;  %v11199_v59 = vadd.f32 %v11150_v18, %v10849_v55  ;;  %v13314_v60 = vpop.f32.mrb[20].mxu1 }
 0x608   : > { %v11228_v20 = vld [vmem:[#allocation3 + $0x10] ss:$2 sm:$0xff]  ;;  %v11244_v57 = vld [vmem:[#allocation3 + $0x11] ss:$2 sm:$0xff]  ;;  %v10826_v0 = vadd.f32 %v13314_v60, %v18453_v5  ;;  %v10694_v24 = vpop.f32.mrb[21].mxu1 }
 0x609   : > { %v11258_v63 = vadd.f32 %v11244_v57, %v11228_v20  ;;  %11215 = vst.msk [vmem:[#allocation3 + $0x28] sm:$0xff] %vm766_vm4, %v11199_v59  ;;  %v10824_v54 = vadd.f32 %v18453_v5, %v10694_v24  ;;  %v13315_v62 = vpop.f32.mrb[22].mxu1 }
 0x60a   : > { %v10827_v31 = vadd.f32 %v13315_v62, %v18453_v5  ;;  %v10697_v30 = vpop.f32.mrb[23].mxu1  ;;  %v18501_v51 = vpop.f32.mrb[44].mxu0 }
 0x60b   : > { %v11266_v21 = vmul.f32 0.25, %v11258_v63  ;;  %v10850_v33 = vadd.f32 %v10826_v0, %v10824_v54  ;;  %v10825_v14 = vadd.f32 %v18453_v5, %v10697_v30  ;;  %v11179_v28 = vpop.f32.mrb[45].mxu0 }
 0x60c   : > { %v18507_v32 = vpop.f32.mrb[46].mxu0 }
 0x60d   : > { %v11281_v8 = vadd.f32 %v18481_v10, %v11266_v21  ;;  %v11200_v18 = vadd.f32 %v18446_v35, %v10850_v33  ;;  %v10851_v26 = vadd.f32 %v10827_v31, %v10825_v14  ;;  %v11182_v35 = vpop.f32.mrb[47].mxu0 }
 0x60f   : > { %11289 = vst.msk [vmem:[%s18488_s12 + $0x8] sm:$0xff] %vm766_vm4, %v11281_v8  ;;  %11216 = vst.msk [vmem:[#allocation3 + $0x30] sm:$0xff] %vm766_vm4, %v11200_v18  ;;  %v11201_v16 = vadd.f32 %v18448_v9, %v10851_v26  ;;  %v13318_v61 = vpop.f32.mrb[24].mxu1 }
 0x610   : > { %v11230_v50 = vld [vmem:[#allocation3 + $0x20] ss:$2 sm:$0xff]  ;;  %v11246_v48 = vld [vmem:[#allocation3 + $0x21] ss:$2 sm:$0xff]  ;;  %v10830_v15 = vadd.f32 %v13318_v61, %v18453_v5  ;;  %v10710_v13 = vpop.f32.mrb[25].mxu1 }
 0x611   : > { %v11259_v40 = vadd.f32 %v11246_v48, %v11230_v50  ;;  %11217 = vst.msk [vmem:[#allocation3 + $0x38] sm:$0xff] %vm766_vm4, %v11201_v16  ;;  %v10828_v46 = vadd.f32 %v18453_v5, %v10710_v13  ;;  %v13319_v27 = vpop.f32.mrb[26].mxu1 }
 0x612   : > { %v10831_v42 = vadd.f32 %v13319_v27, %v18453_v5  ;;  %v10713_v53 = vpop.f32.mrb[27].mxu1 }
 0x613   : > { %v11267_v9 = vmul.f32 0.25, %v11259_v40  ;;  %v10829_v7 = vadd.f32 %v18453_v5, %v10713_v53  ;;  %v10852_v17 = vadd.f32 %v10830_v15, %v10828_v46 }
 0x615   : > { %v11282_v47 = vadd.f32 %v18481_v10, %v11267_v9  ;;  %v11202_v34 = vadd.f32 %v18461_v11, %v10852_v17  ;;  %v10853_v56 = vadd.f32 %v10831_v42, %v10829_v7 }
 0x617   : > { %11290 = vst.msk [vmem:[%s18488_s12 + $0x10] sm:$0xff] %vm766_vm4, %v11282_v47  ;;  %11218 = vst.msk [vmem:[#allocation3 + $0x40] sm:$0xff] %vm766_vm4, %v11202_v34  ;;  %v11203_v36 = vadd.f32 %v18465_v38, %v10853_v56  ;;  %v13322_v25 = vpop.f32.mrb[28].mxu1 }
 0x618   : > { %v11232_v44 = vld [vmem:[#allocation3 + $0x30] ss:$2 sm:$0xff]  ;;  %v11248_v6 = vld [vmem:[#allocation3 + $0x31] ss:$2 sm:$0xff]  ;;  %v10834_v45 = vadd.f32 %v13322_v25, %v18453_v5  ;;  %v10726_v58 = vpop.f32.mrb[29].mxu1 }
 0x619   : > { %v11260_v49 = vadd.f32 %v11248_v6, %v11232_v44  ;;  %11219 = vst.msk [vmem:[#allocation3 + $0x48] sm:$0xff] %vm766_vm4, %v11203_v36  ;;  %v10832_v4 = vadd.f32 %v18453_v5, %v10726_v58  ;;  %v13323_v11 = vpop.f32.mrb[30].mxu1 }
 0x61a   : > { %v10835_v29 = vadd.f32 %v13323_v11, %v18453_v5  ;;  %v10729_v3 = vpop.f32.mrb[31].mxu1 }
 0x61b   : > { %v11268_v39 = vmul.f32 0.25, %v11260_v49  ;;  %v10854_v22 = vadd.f32 %v10834_v45, %v10832_v4  ;;  %v10833_v38 = vadd.f32 %v18453_v5, %v10729_v3 }
 0x61d   : > { %v11283_v12 = vadd.f32 %v18481_v10, %v11268_v39  ;;  %v11204_v1 = vadd.f32 %v18459_v41, %v10854_v22  ;;  %v10855_v43 = vadd.f32 %v10835_v29, %v10833_v38 }
 0x61f   : > { %11291 = vst.msk [vmem:[%s18488_s12 + $0x18] sm:$0xff] %vm766_vm4, %v11283_v12  ;;  %11220 = vst.msk [vmem:[#allocation3 + $0x50] sm:$0xff] %vm766_vm4, %v11204_v1  ;;  %v11205_v23 = vadd.f32 %v18463_v52, %v10855_v43  ;;  %v13326_v37 = vpop.f32.mrb[32].mxu1 }
 0x620   : > { %v11234_v2 = vld [vmem:[#allocation3 + $0x40] ss:$2 sm:$0xff]  ;;  %v11250_v19 = vld [vmem:[#allocation3 + $0x41] ss:$2 sm:$0xff]  ;;  %v10838_v55 = vadd.f32 %v13326_v37, %v18453_v5  ;;  %v10742_v59 = vpop.f32.mrb[33].mxu1 }
 0x621   : > { %v11261_v60 = vadd.f32 %v11250_v19, %v11234_v2  ;;  %11221 = vst.msk [vmem:[#allocation3 + $0x58] sm:$0xff] %vm766_vm4, %v11205_v23  ;;  %v10836_v20 = vadd.f32 %v18453_v5, %v10742_v59  ;;  %v13327_v41 = vpop.f32.mrb[34].mxu1 }
 0x622   : > { %v10839_v57 = vadd.f32 %v13327_v41, %v18453_v5  ;;  %v10745_v0 = vpop.f32.mrb[35].mxu1 }
 0x623   : > { %v11269_v24 = vmul.f32 0.25, %v11261_v60  ;;  %v10837_v63 = vadd.f32 %v18453_v5, %v10745_v0  ;;  %v10856_v52 = vadd.f32 %v10838_v55, %v10836_v20 }
 0x625   : > { %v11284_v54 = vadd.f32 %v18481_v10, %v11269_v24  ;;  %v11206_v62 = vadd.f32 %v11179_v28, %v10856_v52  ;;  %v10857_v31 = vadd.f32 %v10839_v57, %v10837_v63 }
 0x627   : > { %11292 = vst.msk [vmem:[%s18488_s12 + $0x20] sm:$0xff] %vm766_vm4, %v11284_v54  ;;  %11222 = vst.msk [vmem:[#allocation3 + $0x60] sm:$0xff] %vm766_vm4, %v11206_v62  ;;  %v11207_v30 = vadd.f32 %v11182_v35, %v10857_v31  ;;  %v13330_v21 = vpop.f32.mrb[36].mxu1 }
 0x628   : > { %v11236_v33 = vld [vmem:[#allocation3 + $0x50] ss:$2 sm:$0xff]  ;;  %v11252_v14 = vld [vmem:[#allocation3 + $0x51] ss:$2 sm:$0xff]  ;;  %v10842_v8 = vadd.f32 %v13330_v21, %v18453_v5  ;;  %v10758_v18 = vpop.f32.mrb[37].mxu1 }
 0x629   : > { %v11262_v26 = vadd.f32 %v11252_v14, %v11236_v33  ;;  %11223 = vst.msk [vmem:[#allocation3 + $0x68] sm:$0xff] %vm766_vm4, %v11207_v30  ;;  %v10840_v16 = vadd.f32 %v18453_v5, %v10758_v18  ;;  %v13331_v61 = vpop.f32.mrb[38].mxu1 }
 0x62a   : > { %v10843_v28 = vadd.f32 %v13331_v61, %v18453_v5  ;;  %v10761_v50 = vpop.f32.mrb[39].mxu1 }
 0x62b   : > { %v11270_v48 = vmul.f32 0.25, %v11262_v26  ;;  %v10858_v15 = vadd.f32 %v10842_v8, %v10840_v16  ;;  %v10841_v13 = vadd.f32 %v18453_v5, %v10761_v50 }
 0x62d   : > { %v11285_v35 = vadd.f32 %v18481_v10, %v11270_v48  ;;  %v11208_v40 = vadd.f32 %v18501_v51, %v10858_v15  ;;  %v10859_v46 = vadd.f32 %v10843_v28, %v10841_v13 }
 0x62f   : > { %11293 = vst.msk [vmem:[%s18488_s12 + $0x28] sm:$0xff] %vm766_vm4, %v11285_v35  ;;  %11224 = vst.msk [vmem:[#allocation3 + $0x70] sm:$0xff] %vm766_vm4, %v11208_v40  ;;  %v11209_v27 = vadd.f32 %v18507_v32, %v10859_v46 }
 0x630   : > { %v11238_v42 = vld [vmem:[#allocation3 + $0x60] ss:$2 sm:$0xff]  ;;  %v11254_v53 = vld [vmem:[#allocation3 + $0x61] ss:$2 sm:$0xff] }
 0x631   : > { %v11263_v9 = vadd.f32 %v11254_v53, %v11238_v42  ;;  %11225 = vst.msk [vmem:[#allocation3 + $0x78] sm:$0xff] %vm766_vm4, %v11209_v27 }
 0x633   : > { %v11271_v7 = vmul.f32 0.25, %v11263_v9 }
 0x635   : > { %v11286_v5 = vadd.f32 %v18481_v10, %v11271_v7 }
 0x637   : > { %11294 = vst.msk [vmem:[%s18488_s12 + $0x30] sm:$0xff] %vm766_vm4, %v11286_v5 }
 0x638   : > { %v11240_v17 = vld [vmem:[#allocation3 + $0x70] ss:$2 sm:$0xff]  ;;  %v11256_v51 = vld [vmem:[#allocation3 + $0x71] ss:$2 sm:$0xff] }
 0x639   : > { %v11264_v47 = vadd.f32 %v11256_v51, %v11240_v17 }
 0x63b   : > { %v11272_v34 = vmul.f32 0.25, %v11264_v47 }
 0x63d   : > { %v11287_v56 = vadd.f32 %v18481_v10, %v11272_v34 }
 0x63f   : > { %11295 = vst.msk [vmem:[%s18488_s12 + $0x38] sm:$0xff] %vm766_vm4, %v11287_v56 }
 0x640 PF: > { %s17_s24 = sadd.s32 1, %s13976_s24  }
 0x641   : > { %p14_p4 = scmp.ge.s32.totalorder %s17_s24, 4  }
 0x643   :  { %16 = sbr.rel (!%p14_p4) target bundleno = 1 (0x1), region = 113 }

</bundles_post_ra>
